<compile_context>
chip_gen: v6e
topology: v6e:2x2x1
jax: 0.10.0
libtpu: 0.0.40
codegen_flags: <defaults>
</compile_context>

<pallas_src>
import math

import jax
import jax.numpy as jnp
from jax import lax
from jax.experimental import pallas as pl
from jax.experimental.pallas import tpu as pltpu

# ----------------------------- model constants ------------------------------
D_MODEL = 128          # torch: 512
N_HEADS = 4            # torch: 8
D_K = D_V = 32         # torch: 64   (N_HEADS * D_K == D_MODEL, as in torch)
D_FF = 256             # torch: 1024
ONEHOT_H = 32          # torch: 32
PEP_LEN = 8            # torch: 14
HLA_LEN = 16           # torch: 372
PROJ_H1 = 256          # torch: 2048
PROJ_H2 = 128          # torch: 512
N_LAYERS = 1
VOCAB = 33
VOCAB_PAD = 128        # token table zero-padded to an aligned contraction dim
PAD_ID = 1
LN_EPS = 1e-5
BN_EPS = 1e-5
NEG_INF = -1e9

_VMEM = pl.BlockSpec(memory_space=pltpu.MemorySpace.VMEM)
_PARALLEL = pltpu.CompilerParams(dimension_semantics=("parallel",))


# ------------------------------- kernel math ---------------------------------
def _erf(x):
    # Abramowitz & Stegun 7.1.26, |err| <= 1.5e-7 (matches exact-erf GELU in f32).
    a1, a2, a3, a4, a5 = 0.254829592, -0.284496736, 1.421413741, -1.453152027, 1.061405429
    p = 0.3275911
    s = jnp.where(x >= 0.0, 1.0, -1.0)
    ax = jnp.abs(x)
    t = 1.0 / (1.0 + p * ax)
    poly = ((((a5 * t + a4) * t + a3) * t + a2) * t + a1) * t
    return s * (1.0 - poly * jnp.exp(-ax * ax))


def _gelu(x):
    # nn.GELU() default = exact erf formulation (kept in f32).
    return 0.5 * x * (1.0 + _erf(x * 0.7071067811865476))


def _layernorm(x, g, b):
    mean = jnp.mean(x, axis=-1, keepdims=True)
    xc = x - mean
    var = jnp.mean(xc * xc, axis=-1, keepdims=True)
    return xc * jax.lax.rsqrt(var + LN_EPS) * g + b


# ------------------------------ Pallas kernels --------------------------------
def _embed_pair_kernel(pep_tok_ref, hla_tok_ref, table_ref,
                       pep_w_ref, pep_b_ref, hla_w_ref, hla_b_ref,
                       pe_pep_ref, pe_hla_ref,
                       pep_out_ref, hla_out_ref):
    """Both SEQembeddings: in-kernel one-hot gather -> Linear -> GELU -> +PE."""
    table = table_ref[...]                                  # [VOCAB_PAD, ONEHOT_H] f32

    def embed_one(tok_col, w_ref, b_ref, pe_ref):
        L = tok_col.shape[0]
        vocab_iota = lax.broadcasted_iota(jnp.int32, (L, VOCAB_PAD), 1)
        onehot = (tok_col == vocab_iota).astype(jnp.float32)         # [L, VOCAB_PAD]
        feats = jnp.dot(onehot, table,
                        preferred_element_type=jnp.float32)          # exact row gather
        y = _gelu(jnp.dot(feats.astype(jnp.bfloat16), w_ref[...],
                          preferred_element_type=jnp.float32) + b_ref[...])
        return y + pe_ref[...]                                        # dropout = identity

    pep_out_ref[0] = embed_one(pep_tok_ref[0], pep_w_ref, pep_b_ref, pe_pep_ref)
    hla_out_ref[0] = embed_one(hla_tok_ref[0], hla_w_ref, hla_b_ref, pe_hla_ref)


def _layer_pair_kernel(pep_state_ref, hla_state_ref, pep_emb_ref, hla_emb_ref,
                       pep_pad_col_ref, pep_pad_row_ref,
                       hla_pad_col_ref, hla_pad_row_ref,
                       wq_ref, bq_ref, wk_ref, bk_ref, wv_ref, bv_ref,
                       wo_ref, bo_ref, ln1g_ref, ln1b_ref,
                       w1_ref, b1_ref, w2_ref, b2_ref, ln2g_ref, ln2b_ref,
                       pep_out_ref, hla_out_ref):
    """One CrossAttentionLayer applied to BOTH directions (shared weights)."""
    inv_sqrt_dk = 1.0 / math.sqrt(D_K)
    wq, bq = wq_ref[...], bq_ref[...]          # [H,D,dk] bf16, [H,1,dk] f32
    wk, bk = wk_ref[...], bk_ref[...]
    wv, bv = wv_ref[...], bv_ref[...]
    wo, bo = wo_ref[...], bo_ref[...]          # [H,dv,D] bf16, [1,D] f32
    ln1g, ln1b = ln1g_ref[...], ln1b_ref[...]
    w1, b1 = w1_ref[...], b1_ref[...]
    w2, b2 = w2_ref[...], b2_ref[...]
    ln2g, ln2b = ln2g_ref[...], ln2b_ref[...]

    def direction(x, kv, q_pad_col, k_pad_row):
        # x: [Lq, D] query/residual state; kv: [Lk, D] fixed key/value embedding.
        Lq, D = x.shape
        xq = x.astype(jnp.bfloat16)
        xk = kv.astype(jnp.bfloat16)
        pad = (q_pad_col + k_pad_row) > 0.5                     # [Lq, Lk] bool
        attn_out = jnp.zeros((Lq, D), jnp.float32)
        for h in range(N_HEADS):                                # static unroll
            q_h = jnp.dot(xq, wq[h], preferred_element_type=jnp.float32) + bq[h]
            k_h = jnp.dot(xk, wk[h], preferred_element_type=jnp.float32) + bk[h]
            v_h = jnp.dot(xk, wv[h], preferred_element_type=jnp.float32) + bv[h]
            s = lax.dot_general(q_h.astype(jnp.bfloat16), k_h.astype(jnp.bfloat16),
                                (((1,), (1,)), ((), ())),
                                preferred_element_type=jnp.float32) * inv_sqrt_dk
            s = jnp.where(pad, NEG_INF, s)                      # masked_fill_
            s = s - jnp.max(s, axis=-1, keepdims=True)
            e = jnp.exp(s)
            attn = e * pl.reciprocal(jnp.sum(e, axis=-1, keepdims=True), approx=True)
            ctx_h = jnp.dot(attn.astype(jnp.bfloat16), v_h.astype(jnp.bfloat16),
                            preferred_element_type=jnp.float32)        # [Lq, dv]
            attn_out = attn_out + jnp.dot(ctx_h.astype(jnp.bfloat16), wo[h],
                                          preferred_element_type=jnp.float32)
        # output projection bias + residual + LayerNorm
        o = _layernorm(attn_out + bo + x, ln1g, ln1b)
        # position-wise FFN (Conv1d k=1 == Linear), GELU after both convs (per spec)
        h1 = _gelu(jnp.dot(o.astype(jnp.bfloat16), w1,
                           preferred_element_type=jnp.float32) + b1)
        h2 = _gelu(jnp.dot(h1.astype(jnp.bfloat16), w2,
                           preferred_element_type=jnp.float32) + b2)
        return _layernorm(h2 + o, ln2g, ln2b)

    pep_out_ref[0] = direction(pep_state_ref[0], hla_emb_ref[0],
                               pep_pad_col_ref[0], hla_pad_row_ref[0])
    hla_out_ref[0] = direction(hla_state_ref[0], pep_emb_ref[0],
                               hla_pad_col_ref[0], pep_pad_row_ref[0])


def _proj_kernel(pep_ref, hla_ref, w1p_ref, w1h_ref, b1_ref,
                 w2_ref, b2_ref, w3_ref, b3_ref, o_ref):
    """Projection head: (split-w1 Linear)->GELU->(BN folded into w2)->Linear->GELU->Linear."""
    B = pep_ref.shape[0]
    pflat = pep_ref[...].reshape(B, PEP_LEN * D_MODEL).astype(jnp.bfloat16)
    hflat = hla_ref[...].reshape(B, HLA_LEN * D_MODEL).astype(jnp.bfloat16)
    h = (jnp.dot(pflat, w1p_ref[...], preferred_element_type=jnp.float32)
         + jnp.dot(hflat, w1h_ref[...], preferred_element_type=jnp.float32))
    h = _gelu(h + b1_ref[...])
    h = _gelu(jnp.dot(h.astype(jnp.bfloat16), w2_ref[...],
                      preferred_element_type=jnp.float32) + b2_ref[...])
    o_ref[...] = jnp.dot(h.astype(jnp.bfloat16), w3_ref[...],
                         preferred_element_type=jnp.float32) + b3_ref[...]


# ------------------------------ wrappers (glue) --------------------------------
def make_positional_encoding(max_len, d_model):
    pos = jnp.arange(max_len, dtype=jnp.float32)[:, None]
    div = jnp.exp(jnp.arange(0, d_model, 2, dtype=jnp.float32)
                  * (-math.log(10000.0) / d_model))
    pe = jnp.zeros((max_len, d_model), jnp.float32)
    pe = pe.at[:, 0::2].set(jnp.sin(pos * div))
    pe = pe.at[:, 1::2].set(jnp.cos(pos * div))
    return pe


def _full_spec(a):
    return pl.BlockSpec(a.shape, lambda b, _nd=a.ndim: (0,) * _nd)


def embed_pair(pep_tok, hla_tok, params):
    B = pep_tok.shape[0]
    pe, he = params["pep_emb"], params["hla_emb"]
    args = (pep_tok[:, :, None], hla_tok[:, :, None], params["tok_table"],
            pe["l1_w"], pe["l1_b"], he["l1_w"], he["l1_b"], pe["pe"], he["pe"])
    in_specs = [pl.BlockSpec((1, PEP_LEN, 1), lambda b: (b, 0, 0)),
                pl.BlockSpec((1, HLA_LEN, 1), lambda b: (b, 0, 0))] \
               + [_full_spec(a) for a in args[2:]]
    out_specs = (pl.BlockSpec((1, PEP_LEN, D_MODEL), lambda b: (b, 0, 0)),
                 pl.BlockSpec((1, HLA_LEN, D_MODEL), lambda b: (b, 0, 0)))
    out_shape = (jax.ShapeDtypeStruct((B, PEP_LEN, D_MODEL), jnp.float32),
                 jax.ShapeDtypeStruct((B, HLA_LEN, D_MODEL), jnp.float32))
    return pl.pallas_call(
        _embed_pair_kernel, grid=(B,), in_specs=in_specs, out_specs=out_specs,
        out_shape=out_shape, compiler_params=_PARALLEL)(*args)


def make_pad_arrays(pep_tok, hla_tok):
    pep_pad = (pep_tok == PAD_ID).astype(jnp.float32)      # [B, Lp]
    hla_pad = (hla_tok == PAD_ID).astype(jnp.float32)      # [B, Lh]
    return (pep_pad[:, :, None], pep_pad[:, None, :],
            hla_pad[:, :, None], hla_pad[:, None, :])


def cross_attention_layer_pair(pep_state, hla_state, pep_emb, hla_emb, pads, lp):
    B = pep_state.shape[0]
    pep_pad_col, pep_pad_row, hla_pad_col, hla_pad_row = pads
    mha, ffn = lp["mha"], lp["ffn"]
    args = (pep_state, hla_state, pep_emb, hla_emb,
            pep_pad_col, pep_pad_row, hla_pad_col, hla_pad_row,
            mha["wq"], mha["bq"], mha["wk"], mha["bk"], mha["wv"], mha["bv"],
            mha["wo"], mha["bo"], mha["ln_g"], mha["ln_b"],
            ffn["w1"], ffn["b1"], ffn["w2"], ffn["b2"], ffn["ln_g"], ffn["ln_b"])

    def batched(L, W):
        return pl.BlockSpec((1, L, W), lambda b: (b, 0, 0))

    in_specs = [batched(PEP_LEN, D_MODEL), batched(HLA_LEN, D_MODEL),
                batched(PEP_LEN, D_MODEL), batched(HLA_LEN, D_MODEL),
                batched(PEP_LEN, 1), pl.BlockSpec((1, 1, PEP_LEN), lambda b: (b, 0, 0)),
                batched(HLA_LEN, 1), pl.BlockSpec((1, 1, HLA_LEN), lambda b: (b, 0, 0))] \
               + [_full_spec(a) for a in args[8:]]
    out_specs = (batched(PEP_LEN, D_MODEL), batched(HLA_LEN, D_MODEL))
    out_shape = (jax.ShapeDtypeStruct((B, PEP_LEN, D_MODEL), jnp.float32),
                 jax.ShapeDtypeStruct((B, HLA_LEN, D_MODEL), jnp.float32))
    return pl.pallas_call(
        _layer_pair_kernel, grid=(B,), in_specs=in_specs, out_specs=out_specs,
        out_shape=out_shape, compiler_params=_PARALLEL)(*args)


def projection(pep_feats, hla_feats, p):
    B = pep_feats.shape[0]
    args = (pep_feats, hla_feats, p["w1_pep"], p["w1_hla"], p["b1"],
            p["w2"], p["b2"], p["w3"], p["b3"])
    return pl.pallas_call(
        _proj_kernel,
        in_specs=[_VMEM] * len(args),
        out_specs=_VMEM,
        out_shape=jax.ShapeDtypeStruct((B, 1), jnp.float32),
    )(*args)


def phlaformer_forward(pep_tok, hla_tok, params):
    # Embeddings computed once and reused for both directions (identical to the
    # torch module, which recomputes them deterministically in eval mode).
    pep_emb, hla_emb = embed_pair(pep_tok, hla_tok, params)
    pads = make_pad_arrays(pep_tok, hla_tok)

    pep_state, hla_state = pep_emb, hla_emb
    for lp in params["layers"]:                # shared weights across directions
        pep_state, hla_state = cross_attention_layer_pair(
            pep_state, hla_state, pep_emb, hla_emb, pads, lp)

    score = projection(pep_state, hla_state, params["proj"])
    return score, pep_state, hla_state


# -------------------------------- parameters ----------------------------------
def init_params(key):
    ks = iter(jax.random.split(key, 64))

    def w(shape, scale=0.05):
        return jax.random.normal(next(ks), shape, jnp.float32) * scale

    def emb_params(max_len):
        return {"l1_w": w((ONEHOT_H, D_MODEL)), "l1_b": w((D_MODEL,)),
                "pe": make_positional_encoding(max_len, D_MODEL)}

    def layer_params():
        mha = {"wq": w((D_MODEL, N_HEADS * D_K)), "bq": w((N_HEADS * D_K,)),
               "wk": w((D_MODEL, N_HEADS * D_K)), "bk": w((N_HEADS * D_K,)),
               "wv": w((D_MODEL, N_HEADS * D_V)), "bv": w((N_HEADS * D_V,)),
               "wo": w((N_HEADS * D_V, D_MODEL)), "bo": w((D_MODEL,)),
               "ln_g": jnp.ones((D_MODEL,), jnp.float32),
               "ln_b": jnp.zeros((D_MODEL,), jnp.float32)}
        ffn = {"w1": w((D_MODEL, D_FF)), "b1": w((D_FF,)),
               "w2": w((D_FF, D_MODEL)), "b2": w((D_MODEL,)),
               "ln_g": jnp.ones((D_MODEL,), jnp.float32),
               "ln_b": jnp.zeros((D_MODEL,), jnp.float32)}
        return {"mha": mha, "ffn": ffn}

    cat_dim = (PEP_LEN + HLA_LEN) * D_MODEL
    proj = {"w1": w((cat_dim, PROJ_H1)), "b1": w((PROJ_H1,)),
            "bn_g": 1.0 + w((PROJ_H1,), 0.01), "bn_b": w((PROJ_H1,), 0.01),
            "bn_mean": w((PROJ_H1,), 0.01),
            "bn_var": 1.0 + jnp.abs(w((PROJ_H1,), 0.01)),
            "w2": w((PROJ_H1, PROJ_H2)), "b2": w((PROJ_H2,)),
            "w3": w((PROJ_H2, 1)), "b3": w((1,))}

    # TODO(synk): real model loads token embeddings from './one-hot.csv' via an ESM
    # tokenizer; replaced here by a deterministic synthetic [VOCAB, ONEHOT_H] table.
    tok_table = jax.random.normal(next(ks), (VOCAB, ONEHOT_H), jnp.float32) * 0.5

    return {"tok_table": tok_table,
            "pep_emb": emb_params(PEP_LEN), "hla_emb": emb_params(HLA_LEN),
            "layers": [layer_params() for _ in range(N_LAYERS)],
            "proj": proj}


def prepare_params(p):
    """One-time parameter preprocessing, hoisted OUT of the jitted forward:
    per-head weight blocks, bf16 MXU operands, BN folding, w1 split, table pad."""
    bf16 = jnp.bfloat16

    def emb(e):
        return {"l1_w": e["l1_w"].astype(bf16),
                "l1_b": e["l1_b"].reshape(1, -1),
                "pe": e["pe"]}

    def layer(lp):
        mha, ffn = lp["mha"], lp["ffn"]

        def heads_in(wmat, bias, dh):        # [D, H*dh] -> [H, D, dh]
            w_h = wmat.reshape(D_MODEL, N_HEADS, dh).transpose(1, 0, 2)
            return w_h.astype(bf16), bias.reshape(N_HEADS, 1, dh)

        wq, bq = heads_in(mha["wq"], mha["bq"], D_K)
        wk, bk = heads_in(mha["wk"], mha["bk"], D_K)
        wv, bv = heads_in(mha["wv"], mha["bv"], D_V)
        wo = mha["wo"].reshape(N_HEADS, D_V, D_MODEL).astype(bf16)   # [H, dv, D]
        return {"mha": {"wq": wq, "bq": bq, "wk": wk, "bk": bk, "wv": wv, "bv": bv,
                        "wo": wo, "bo": mha["bo"].reshape(1, -1),
                        "ln_g": mha["ln_g"].reshape(1, -1),
                        "ln_b": mha["ln_b"].reshape(1, -1)},
                "ffn": {"w1": ffn["w1"].astype(bf16), "b1": ffn["b1"].reshape(1, -1),
                        "w2": ffn["w2"].astype(bf16), "b2": ffn["b2"].reshape(1, -1),
                        "ln_g": ffn["ln_g"].reshape(1, -1),
                        "ln_b": ffn["ln_b"].reshape(1, -1)}}

    pr = p["proj"]
    # Fold eval-mode BatchNorm1d into the following linear: head is
    # Linear -> GELU -> BN -> Linear, so folding into w2 is exact.
    scale = pr["bn_g"] * jax.lax.rsqrt(pr["bn_var"] + BN_EPS)
    shift = pr["bn_b"] - pr["bn_mean"] * scale
    w2_eff = scale[:, None] * pr["w2"]
    b2_eff = pr["b2"] + shift @ pr["w2"]
    split = PEP_LEN * D_MODEL
    proj = {"w1_pep": pr["w1"][:split].astype(bf16),   # pep rows of cat-dim w1
            "w1_hla": pr["w1"][split:].astype(bf16),   # hla rows of cat-dim w1
            "b1": pr["b1"].reshape(1, -1),
            "w2": w2_eff.astype(bf16), "b2": b2_eff.reshape(1, -1),
            "w3": pr["w3"].astype(bf16), "b3": pr["b3"].reshape(1, -1)}

    # Zero-pad the token table so the in-kernel one-hot gather contracts over an
    # aligned 128-wide dimension (token ids < VOCAB so padding rows never hit).
    table = jnp.zeros((VOCAB_PAD, ONEHOT_H), jnp.float32).at[:VOCAB].set(p["tok_table"])

    return {"tok_table": table,
            "pep_emb": emb(p["pep_emb"]), "hla_emb": emb(p["hla_emb"]),
            "layers": [layer(lp) for lp in p["layers"]],
            "proj": proj}


# ----------------------------------- main --------------------------------------
if __name__ == "__main__":
    key = jax.random.PRNGKey(0)
    k_params, k_pep, k_hla = jax.random.split(key, 3)

    params = prepare_params(init_params(k_params))

    B = 2
    pep_tok = jax.random.randint(k_pep, (B, PEP_LEN), 2, VOCAB, dtype=jnp.int32)
    hla_tok = jax.random.randint(k_hla, (B, HLA_LEN), 2, VOCAB, dtype=jnp.int32)
    # deterministic padding (token id 1) to exercise the attention pad mask
    pep_tok = pep_tok.at[0, -2:].set(PAD_ID).at[1, -3:].set(PAD_ID)
    hla_tok = hla_tok.at[0, -4:].set(PAD_ID).at[1, -1:].set(PAD_ID)

    fwd = jax.jit(phlaformer_forward)
    score, pep_feats, hla_feats = fwd(pep_tok, hla_tok, params)
    jax.block_until_ready(score)

    assert score.shape == (B, 1)
    assert pep_feats.shape == (B, PEP_LEN, D_MODEL)
    assert hla_feats.shape == (B, HLA_LEN, D_MODEL)
    assert bool(jnp.all(jnp.isfinite(score)))
    print("KERNEL_OK")
</pallas_src>

<mosaic_0001>
module attributes {stable_mosaic.version = 11 : i64} {
  func.func @_proj_kernel(%arg0: memref<2x8x128xf32, #tpu.memory_space<vmem>>, %arg1: memref<2x16x128xf32, #tpu.memory_space<vmem>>, %arg2: memref<1024x256xbf16, #tpu.memory_space<vmem>>, %arg3: memref<2048x256xbf16, #tpu.memory_space<vmem>>, %arg4: memref<1x256xf32, #tpu.memory_space<vmem>>, %arg5: memref<256x128xbf16, #tpu.memory_space<vmem>>, %arg6: memref<1x128xf32, #tpu.memory_space<vmem>>, %arg7: memref<128x1xbf16, #tpu.memory_space<vmem>>, %arg8: memref<1x1xf32, #tpu.memory_space<vmem>>, %arg9: memref<2x1xf32, #tpu.memory_space<vmem>>) attributes {dimension_semantics = [], scalar_prefetch = 0 : i64, scratch_operands = 0 : i64, tpu.core_type = #tpu.core_type<tc>} {
    %c0 = arith.constant 0 : index
    %c0_0 = arith.constant 0 : index
    %c0_1 = arith.constant 0 : index
    %0 = vector.load %arg0[%c0, %c0_0, %c0_1] : memref<2x8x128xf32, #tpu.memory_space<vmem>>, vector<2x8x128xf32>
    %1 = vector.shape_cast %0 : vector<2x8x128xf32> to vector<2x1024xf32>
    %2 = arith.truncf %1 : vector<2x1024xf32> to vector<2x1024xbf16>
    %c0_2 = arith.constant 0 : index
    %c0_3 = arith.constant 0 : index
    %c0_4 = arith.constant 0 : index
    %3 = vector.load %arg1[%c0_2, %c0_3, %c0_4] : memref<2x16x128xf32, #tpu.memory_space<vmem>>, vector<2x16x128xf32>
    %4 = vector.shape_cast %3 : vector<2x16x128xf32> to vector<2x2048xf32>
    %5 = arith.truncf %4 : vector<2x2048xf32> to vector<2x2048xbf16>
    %c0_5 = arith.constant 0 : index
    %c0_6 = arith.constant 0 : index
    %6 = vector.load %arg2[%c0_5, %c0_6] : memref<1024x256xbf16, #tpu.memory_space<vmem>>, vector<1024x256xbf16>
    %cst = arith.constant dense<0.000000e+00> : vector<2x256xf32>
    %7 = tpu.matmul %2, %6, %cst {dimension_numbers = #tpu.dot_dimension_numbers<[1], [0], [0], [1], [0, 0, 1, 1], [], []>} : vector<2x1024xbf16>, vector<1024x256xbf16>, vector<2x256xf32> -> vector<2x256xf32>
    %c0_7 = arith.constant 0 : index
    %c0_8 = arith.constant 0 : index
    %8 = vector.load %arg3[%c0_7, %c0_8] : memref<2048x256xbf16, #tpu.memory_space<vmem>>, vector<2048x256xbf16>
    %cst_9 = arith.constant dense<0.000000e+00> : vector<2x256xf32>
    %9 = tpu.matmul %5, %8, %cst_9 {dimension_numbers = #tpu.dot_dimension_numbers<[1], [0], [0], [1], [0, 0, 1, 1], [], []>} : vector<2x2048xbf16>, vector<2048x256xbf16>, vector<2x256xf32> -> vector<2x256xf32>
    %10 = arith.addf %7, %9 : vector<2x256xf32>
    %c0_10 = arith.constant 0 : index
    %c0_11 = arith.constant 0 : index
    %11 = vector.load %arg4[%c0_10, %c0_11] : memref<1x256xf32, #tpu.memory_space<vmem>>, vector<1x256xf32>
    %12 = vector.broadcast %11 : vector<1x256xf32> to vector<2x256xf32>
    %13 = arith.addf %10, %12 : vector<2x256xf32>
    %cst_12 = arith.constant 5.000000e-01 : f32
    %14 = vector.broadcast %cst_12 : f32 to vector<2x256xf32>
    %15 = arith.mulf %14, %13 : vector<2x256xf32>
    %cst_13 = arith.constant 0.707106769 : f32
    %16 = vector.broadcast %cst_13 : f32 to vector<2x256xf32>
    %17 = arith.mulf %13, %16 : vector<2x256xf32>
    %cst_14 = arith.constant 0.000000e+00 : f32
    %18 = vector.broadcast %cst_14 : f32 to vector<2x256xf32>
    %19 = arith.cmpf oge, %17, %18 : vector<2x256xf32>
    %cst_15 = arith.constant 1.000000e+00 : f32
    %cst_16 = arith.constant -1.000000e+00 : f32
    %20 = vector.broadcast %cst_15 : f32 to vector<2x256xf32>
    %21 = vector.broadcast %cst_16 : f32 to vector<2x256xf32>
    %22 = arith.select %19, %20, %21 : vector<2x256xi1>, vector<2x256xf32>
    %23 = math.absf %17 : vector<2x256xf32>
    %cst_17 = arith.constant 0.327591091 : f32
    %24 = vector.broadcast %cst_17 : f32 to vector<2x256xf32>
    %25 = arith.mulf %24, %23 : vector<2x256xf32>
    %cst_18 = arith.constant 1.000000e+00 : f32
    %26 = vector.broadcast %cst_18 : f32 to vector<2x256xf32>
    %27 = arith.addf %26, %25 : vector<2x256xf32>
    %cst_19 = arith.constant 1.000000e+00 : f32
    %28 = vector.broadcast %cst_19 : f32 to vector<2x256xf32>
    %29 = arith.divf %28, %27 : vector<2x256xf32>
    %cst_20 = arith.constant 1.06140542 : f32
    %30 = vector.broadcast %cst_20 : f32 to vector<2x256xf32>
    %31 = arith.mulf %30, %29 : vector<2x256xf32>
    %cst_21 = arith.constant -1.45315206 : f32
    %32 = vector.broadcast %cst_21 : f32 to vector<2x256xf32>
    %33 = arith.addf %31, %32 : vector<2x256xf32>
    %34 = arith.mulf %33, %29 : vector<2x256xf32>
    %cst_22 = arith.constant 1.42141378 : f32
    %35 = vector.broadcast %cst_22 : f32 to vector<2x256xf32>
    %36 = arith.addf %34, %35 : vector<2x256xf32>
    %37 = arith.mulf %36, %29 : vector<2x256xf32>
    %cst_23 = arith.constant -0.284496725 : f32
    %38 = vector.broadcast %cst_23 : f32 to vector<2x256xf32>
    %39 = arith.addf %37, %38 : vector<2x256xf32>
    %40 = arith.mulf %39, %29 : vector<2x256xf32>
    %cst_24 = arith.constant 0.254829586 : f32
    %41 = vector.broadcast %cst_24 : f32 to vector<2x256xf32>
    %42 = arith.addf %40, %41 : vector<2x256xf32>
    %43 = arith.mulf %42, %29 : vector<2x256xf32>
    %cst_25 = arith.constant 0.000000e+00 : f32
    %44 = vector.broadcast %cst_25 : f32 to vector<2x256xf32>
    %45 = arith.subf %44, %23 : vector<2x256xf32>
    %46 = arith.mulf %45, %23 : vector<2x256xf32>
    %47 = math.exp %46 : vector<2x256xf32>
    %48 = arith.mulf %43, %47 : vector<2x256xf32>
    %cst_26 = arith.constant 1.000000e+00 : f32
    %49 = vector.broadcast %cst_26 : f32 to vector<2x256xf32>
    %50 = arith.subf %49, %48 : vector<2x256xf32>
    %51 = arith.mulf %22, %50 : vector<2x256xf32>
    %cst_27 = arith.constant 1.000000e+00 : f32
    %52 = vector.broadcast %cst_27 : f32 to vector<2x256xf32>
    %53 = arith.addf %52, %51 : vector<2x256xf32>
    %54 = arith.mulf %15, %53 : vector<2x256xf32>
    %55 = arith.truncf %54 : vector<2x256xf32> to vector<2x256xbf16>
    %c0_28 = arith.constant 0 : index
    %c0_29 = arith.constant 0 : index
    %56 = vector.load %arg5[%c0_28, %c0_29] : memref<256x128xbf16, #tpu.memory_space<vmem>>, vector<256x128xbf16>
    %cst_30 = arith.constant dense<0.000000e+00> : vector<2x128xf32>
    %57 = tpu.matmul %55, %56, %cst_30 {dimension_numbers = #tpu.dot_dimension_numbers<[1], [0], [0], [1], [0, 0, 1, 1], [], []>} : vector<2x256xbf16>, vector<256x128xbf16>, vector<2x128xf32> -> vector<2x128xf32>
    %c0_31 = arith.constant 0 : index
    %c0_32 = arith.constant 0 : index
    %58 = vector.load %arg6[%c0_31, %c0_32] : memref<1x128xf32, #tpu.memory_space<vmem>>, vector<1x128xf32>
    %59 = vector.broadcast %58 : vector<1x128xf32> to vector<2x128xf32>
    %60 = arith.addf %57, %59 : vector<2x128xf32>
    %cst_33 = arith.constant 5.000000e-01 : f32
    %61 = vector.broadcast %cst_33 : f32 to vector<2x128xf32>
    %62 = arith.mulf %61, %60 : vector<2x128xf32>
    %cst_34 = arith.constant 0.707106769 : f32
    %63 = vector.broadcast %cst_34 : f32 to vector<2x128xf32>
    %64 = arith.mulf %60, %63 : vector<2x128xf32>
    %cst_35 = arith.constant 0.000000e+00 : f32
    %65 = vector.broadcast %cst_35 : f32 to vector<2x128xf32>
    %66 = arith.cmpf oge, %64, %65 : vector<2x128xf32>
    %cst_36 = arith.constant 1.000000e+00 : f32
    %cst_37 = arith.constant -1.000000e+00 : f32
    %67 = vector.broadcast %cst_36 : f32 to vector<2x128xf32>
    %68 = vector.broadcast %cst_37 : f32 to vector<2x128xf32>
    %69 = arith.select %66, %67, %68 : vector<2x128xi1>, vector<2x128xf32>
    %70 = math.absf %64 : vector<2x128xf32>
    %cst_38 = arith.constant 0.327591091 : f32
    %71 = vector.broadcast %cst_38 : f32 to vector<2x128xf32>
    %72 = arith.mulf %71, %70 : vector<2x128xf32>
    %cst_39 = arith.constant 1.000000e+00 : f32
    %73 = vector.broadcast %cst_39 : f32 to vector<2x128xf32>
    %74 = arith.addf %73, %72 : vector<2x128xf32>
    %cst_40 = arith.constant 1.000000e+00 : f32
    %75 = vector.broadcast %cst_40 : f32 to vector<2x128xf32>
    %76 = arith.divf %75, %74 : vector<2x128xf32>
    %cst_41 = arith.constant 1.06140542 : f32
    %77 = vector.broadcast %cst_41 : f32 to vector<2x128xf32>
    %78 = arith.mulf %77, %76 : vector<2x128xf32>
    %cst_42 = arith.constant -1.45315206 : f32
    %79 = vector.broadcast %cst_42 : f32 to vector<2x128xf32>
    %80 = arith.addf %78, %79 : vector<2x128xf32>
    %81 = arith.mulf %80, %76 : vector<2x128xf32>
    %cst_43 = arith.constant 1.42141378 : f32
    %82 = vector.broadcast %cst_43 : f32 to vector<2x128xf32>
    %83 = arith.addf %81, %82 : vector<2x128xf32>
    %84 = arith.mulf %83, %76 : vector<2x128xf32>
    %cst_44 = arith.constant -0.284496725 : f32
    %85 = vector.broadcast %cst_44 : f32 to vector<2x128xf32>
    %86 = arith.addf %84, %85 : vector<2x128xf32>
    %87 = arith.mulf %86, %76 : vector<2x128xf32>
    %cst_45 = arith.constant 0.254829586 : f32
    %88 = vector.broadcast %cst_45 : f32 to vector<2x128xf32>
    %89 = arith.addf %87, %88 : vector<2x128xf32>
    %90 = arith.mulf %89, %76 : vector<2x128xf32>
    %cst_46 = arith.constant 0.000000e+00 : f32
    %91 = vector.broadcast %cst_46 : f32 to vector<2x128xf32>
    %92 = arith.subf %91, %70 : vector<2x128xf32>
    %93 = arith.mulf %92, %70 : vector<2x128xf32>
    %94 = math.exp %93 : vector<2x128xf32>
    %95 = arith.mulf %90, %94 : vector<2x128xf32>
    %cst_47 = arith.constant 1.000000e+00 : f32
    %96 = vector.broadcast %cst_47 : f32 to vector<2x128xf32>
    %97 = arith.subf %96, %95 : vector<2x128xf32>
    %98 = arith.mulf %69, %97 : vector<2x128xf32>
    %cst_48 = arith.constant 1.000000e+00 : f32
    %99 = vector.broadcast %cst_48 : f32 to vector<2x128xf32>
    %100 = arith.addf %99, %98 : vector<2x128xf32>
    %101 = arith.mulf %62, %100 : vector<2x128xf32>
    %102 = arith.truncf %101 : vector<2x128xf32> to vector<2x128xbf16>
    %c0_49 = arith.constant 0 : index
    %c0_50 = arith.constant 0 : index
    %103 = vector.load %arg7[%c0_49, %c0_50] : memref<128x1xbf16, #tpu.memory_space<vmem>>, vector<128x1xbf16>
    %cst_51 = arith.constant dense<0.000000e+00> : vector<2x1xf32>
    %104 = tpu.matmul %102, %103, %cst_51 {dimension_numbers = #tpu.dot_dimension_numbers<[1], [0], [0], [1], [0, 0, 1, 1], [], []>} : vector<2x128xbf16>, vector<128x1xbf16>, vector<2x1xf32> -> vector<2x1xf32>
    %c0_52 = arith.constant 0 : index
    %c0_53 = arith.constant 0 : index
    %105 = vector.load %arg8[%c0_52, %c0_53] : memref<1x1xf32, #tpu.memory_space<vmem>>, vector<1x1xf32>
    %106 = vector.broadcast %105 : vector<1x1xf32> to vector<2x1xf32>
    %107 = arith.addf %104, %106 : vector<2x1xf32>
    %c0_54 = arith.constant 0 : index
    %c0_55 = arith.constant 0 : index
    %108 = vector.load %arg9[%c0_54, %c0_55] : memref<2x1xf32, #tpu.memory_space<vmem>>, vector<2x1xf32>
    tpu.vector_store %arg9[%c0_54, %c0_55], %107 {strides = array<i32>} : memref<2x1xf32, #tpu.memory_space<vmem>>, vector<2x1xf32>,
    return
  }
}

module attributes {stable_mosaic.version = 11 : i64} {
  func.func @_embed_pair_kernel(%arg0: i32, %arg1: memref<1x8x1xi32, #tpu.memory_space<vmem>>, %arg2: memref<1x16x1xi32, #tpu.memory_space<vmem>>, %arg3: memref<128x32xf32, #tpu.memory_space<vmem>>, %arg4: memref<32x128xbf16, #tpu.memory_space<vmem>>, %arg5: memref<1x128xf32, #tpu.memory_space<vmem>>, %arg6: memref<32x128xbf16, #tpu.memory_space<vmem>>, %arg7: memref<1x128xf32, #tpu.memory_space<vmem>>, %arg8: memref<8x128xf32, #tpu.memory_space<vmem>>, %arg9: memref<16x128xf32, #tpu.memory_space<vmem>>, %arg10: memref<1x8x128xf32, #tpu.memory_space<vmem>>, %arg11: memref<1x16x128xf32, #tpu.memory_space<vmem>>) attributes {dimension_semantics = [#tpu.dimension_semantics<parallel>], iteration_bounds = array<i64: 2>, scalar_prefetch = 0 : i64, scratch_operands = 0 : i64, tpu.core_type = #tpu.core_type<tc>, window_params = [{transform_indices = @transform_0, window_bounds = array<i64: 1, 8, 1>}, {transform_indices = @transform_1, window_bounds = array<i64: 1, 16, 1>}, {pipeline_mode = #tpu.pipeline_mode<synchronous>, transform_indices = @transform_2, window_bounds = array<i64: 128, 32>}, {pipeline_mode = #tpu.pipeline_mode<synchronous>, transform_indices = @transform_3, window_bounds = array<i64: 32, 128>}, {pipeline_mode = #tpu.pipeline_mode<synchronous>, transform_indices = @transform_4, window_bounds = array<i64: 1, 128>}, {pipeline_mode = #tpu.pipeline_mode<synchronous>, transform_indices = @transform_5, window_bounds = array<i64: 32, 128>}, {pipeline_mode = #tpu.pipeline_mode<synchronous>, transform_indices = @transform_6, window_bounds = array<i64: 1, 128>}, {pipeline_mode = #tpu.pipeline_mode<synchronous>, transform_indices = @transform_7, window_bounds = array<i64: 8, 128>}, {pipeline_mode = #tpu.pipeline_mode<synchronous>, transform_indices = @transform_8, window_bounds = array<i64: 16, 128>}, {transform_indices = @transform_9, window_bounds = array<i64: 1, 8, 128>}, {transform_indices = @transform_10, window_bounds = array<i64: 1, 16, 128>}]} {
    %c0 = arith.constant 0 : index
    %c0_0 = arith.constant 0 : index
    %0 = vector.load %arg3[%c0, %c0_0] : memref<128x32xf32, #tpu.memory_space<vmem>>, vector<128x32xf32>
    %c0_1 = arith.constant 0 : index
    %c0_2 = arith.constant 0 : index
    %c0_3 = arith.constant 0 : index
    %1 = vector.load %arg1[%c0_1, %c0_2, %c0_3] : memref<1x8x1xi32, #tpu.memory_space<vmem>>, vector<1x8x1xi32>
    %2 = vector.shape_cast %1 : vector<1x8x1xi32> to vector<8x1xi32>
    %3 = tpu.iota {dimensions = array<i32: 1>} : vector<8x128xi32>
    %4 = vector.broadcast %2 : vector<8x1xi32> to vector<8x128xi32>
    %5 = arith.cmpi eq, %4, %3 : vector<8x128xi32>
    %6 = arith.extui %5 : vector<8x128xi1> to vector<8x128xi32>
    %7 = arith.sitofp %6 : vector<8x128xi32> to vector<8x128xf32>
    %cst = arith.constant dense<0.000000e+00> : vector<8x32xf32>
    %8 = tpu.matmul %7, %0, %cst {dimension_numbers = #tpu.dot_dimension_numbers<[1], [0], [0], [1], [0, 0, 1, 1], [], []>} : vector<8x128xf32>, vector<128x32xf32>, vector<8x32xf32> -> vector<8x32xf32>
    %9 = arith.truncf %8 : vector<8x32xf32> to vector<8x32xbf16>
    %c0_4 = arith.constant 0 : index
    %c0_5 = arith.constant 0 : index
    %10 = vector.load %arg4[%c0_4, %c0_5] : memref<32x128xbf16, #tpu.memory_space<vmem>>, vector<32x128xbf16>
    %cst_6 = arith.constant dense<0.000000e+00> : vector<8x128xf32>
    %11 = tpu.matmul %9, %10, %cst_6 {dimension_numbers = #tpu.dot_dimension_numbers<[1], [0], [0], [1], [0, 0, 1, 1], [], []>} : vector<8x32xbf16>, vector<32x128xbf16>, vector<8x128xf32> -> vector<8x128xf32>
    %c0_7 = arith.constant 0 : index
    %c0_8 = arith.constant 0 : index
    %12 = vector.load %arg5[%c0_7, %c0_8] : memref<1x128xf32, #tpu.memory_space<vmem>>, vector<1x128xf32>
    %13 = vector.broadcast %12 : vector<1x128xf32> to vector<8x128xf32>
    %14 = arith.addf %11, %13 : vector<8x128xf32>
    %cst_9 = arith.constant 5.000000e-01 : f32
    %15 = vector.broadcast %cst_9 : f32 to vector<8x128xf32>
    %16 = arith.mulf %15, %14 : vector<8x128xf32>
    %cst_10 = arith.constant 0.707106769 : f32
    %17 = vector.broadcast %cst_10 : f32 to vector<8x128xf32>
    %18 = arith.mulf %14, %17 : vector<8x128xf32>
    %cst_11 = arith.constant 0.000000e+00 : f32
    %19 = vector.broadcast %cst_11 : f32 to vector<8x128xf32>
    %20 = arith.cmpf oge, %18, %19 : vector<8x128xf32>
    %cst_12 = arith.constant 1.000000e+00 : f32
    %cst_13 = arith.constant -1.000000e+00 : f32
    %21 = vector.broadcast %cst_12 : f32 to vector<8x128xf32>
    %22 = vector.broadcast %cst_13 : f32 to vector<8x128xf32>
    %23 = arith.select %20, %21, %22 : vector<8x128xi1>, vector<8x128xf32>
    %24 = math.absf %18 : vector<8x128xf32>
    %cst_14 = arith.constant 0.327591091 : f32
    %25 = vector.broadcast %cst_14 : f32 to vector<8x128xf32>
    %26 = arith.mulf %25, %24 : vector<8x128xf32>
    %cst_15 = arith.constant 1.000000e+00 : f32
    %27 = vector.broadcast %cst_15 : f32 to vector<8x128xf32>
    %28 = arith.addf %27, %26 : vector<8x128xf32>
    %cst_16 = arith.constant 1.000000e+00 : f32
    %29 = vector.broadcast %cst_16 : f32 to vector<8x128xf32>
    %30 = arith.divf %29, %28 : vector<8x128xf32>
    %cst_17 = arith.constant 1.06140542 : f32
    %31 = vector.broadcast %cst_17 : f32 to vector<8x128xf32>
    %32 = arith.mulf %31, %30 : vector<8x128xf32>
    %cst_18 = arith.constant -1.45315206 : f32
    %33 = vector.broadcast %cst_18 : f32 to vector<8x128xf32>
    %34 = arith.addf %32, %33 : vector<8x128xf32>
    %35 = arith.mulf %34, %30 : vector<8x128xf32>
    %cst_19 = arith.constant 1.42141378 : f32
    %36 = vector.broadcast %cst_19 : f32 to vector<8x128xf32>
    %37 = arith.addf %35, %36 : vector<8x128xf32>
    %38 = arith.mulf %37, %30 : vector<8x128xf32>
    %cst_20 = arith.constant -0.284496725 : f32
    %39 = vector.broadcast %cst_20 : f32 to vector<8x128xf32>
    %40 = arith.addf %38, %39 : vector<8x128xf32>
    %41 = arith.mulf %40, %30 : vector<8x128xf32>
    %cst_21 = arith.constant 0.254829586 : f32
    %42 = vector.broadcast %cst_21 : f32 to vector<8x128xf32>
    %43 = arith.addf %41, %42 : vector<8x128xf32>
    %44 = arith.mulf %43, %30 : vector<8x128xf32>
    %cst_22 = arith.constant 0.000000e+00 : f32
    %45 = vector.broadcast %cst_22 : f32 to vector<8x128xf32>
    %46 = arith.subf %45, %24 : vector<8x128xf32>
    %47 = arith.mulf %46, %24 : vector<8x128xf32>
    %48 = math.exp %47 : vector<8x128xf32>
    %49 = arith.mulf %44, %48 : vector<8x128xf32>
    %cst_23 = arith.constant 1.000000e+00 : f32
    %50 = vector.broadcast %cst_23 : f32 to vector<8x128xf32>
    %51 = arith.subf %50, %49 : vector<8x128xf32>
    %52 = arith.mulf %23, %51 : vector<8x128xf32>
    %cst_24 = arith.constant 1.000000e+00 : f32
    %53 = vector.broadcast %cst_24 : f32 to vector<8x128xf32>
    %54 = arith.addf %53, %52 : vector<8x128xf32>
    %55 = arith.mulf %16, %54 : vector<8x128xf32>
    %c0_25 = arith.constant 0 : index
    %c0_26 = arith.constant 0 : index
    %56 = vector.load %arg8[%c0_25, %c0_26] : memref<8x128xf32, #tpu.memory_space<vmem>>, vector<8x128xf32>
    %57 = arith.addf %55, %56 : vector<8x128xf32>
    %c0_27 = arith.constant 0 : index
    %c0_28 = arith.constant 0 : index
    %c0_29 = arith.constant 0 : index
    %58 = vector.load %arg10[%c0_27, %c0_28, %c0_29] : memref<1x8x128xf32, #tpu.memory_space<vmem>>, vector<1x8x128xf32>
    %59 = vector.shape_cast %58 : vector<1x8x128xf32> to vector<8x128xf32>
    %60 = vector.shape_cast %57 : vector<8x128xf32> to vector<1x8x128xf32>
    tpu.vector_store %arg10[%c0_27, %c0_28, %c0_29], %60 {strides = array<i32>} : memref<1x8x128xf32, #tpu.memory_space<vmem>>, vector<1x8x128xf32>,
    %c0_30 = arith.constant 0 : index
    %c0_31 = arith.constant 0 : index
    %c0_32 = arith.constant 0 : index
    %61 = vector.load %arg2[%c0_30, %c0_31, %c0_32] : memref<1x16x1xi32, #tpu.memory_space<vmem>>, vector<1x16x1xi32>
    %62 = vector.shape_cast %61 : vector<1x16x1xi32> to vector<16x1xi32>
    %63 = tpu.iota {dimensions = array<i32: 1>} : vector<16x128xi32>
    %64 = vector.broadcast %62 : vector<16x1xi32> to vector<16x128xi32>
    %65 = arith.cmpi eq, %64, %63 : vector<16x128xi32>
    %66 = arith.extui %65 : vector<16x128xi1> to vector<16x128xi32>
    %67 = arith.sitofp %66 : vector<16x128xi32> to vector<16x128xf32>
    %cst_33 = arith.constant dense<0.000000e+00> : vector<16x32xf32>
    %68 = tpu.matmul %67, %0, %cst_33 {dimension_numbers = #tpu.dot_dimension_numbers<[1], [0], [0], [1], [0, 0, 1, 1], [], []>} : vector<16x128xf32>, vector<128x32xf32>, vector<16x32xf32> -> vector<16x32xf32>
    %69 = arith.truncf %68 : vector<16x32xf32> to vector<16x32xbf16>
    %c0_34 = arith.constant 0 : index
    %c0_35 = arith.constant 0 : index
    %70 = vector.load %arg6[%c0_34, %c0_35] : memref<32x128xbf16, #tpu.memory_space<vmem>>, vector<32x128xbf16>
    %cst_36 = arith.constant dense<0.000000e+00> : vector<16x128xf32>
    %71 = tpu.matmul %69, %70, %cst_36 {dimension_numbers = #tpu.dot_dimension_numbers<[1], [0], [0], [1], [0, 0, 1, 1], [], []>} : vector<16x32xbf16>, vector<32x128xbf16>, vector<16x128xf32> -> vector<16x128xf32>
    %c0_37 = arith.constant 0 : index
    %c0_38 = arith.constant 0 : index
    %72 = vector.load %arg7[%c0_37, %c0_38] : memref<1x128xf32, #tpu.memory_space<vmem>>, vector<1x128xf32>
    %73 = vector.broadcast %72 : vector<1x128xf32> to vector<16x128xf32>
    %74 = arith.addf %71, %73 : vector<16x128xf32>
    %cst_39 = arith.constant 5.000000e-01 : f32
    %75 = vector.broadcast %cst_39 : f32 to vector<16x128xf32>
    %76 = arith.mulf %75, %74 : vector<16x128xf32>
    %cst_40 = arith.constant 0.707106769 : f32
    %77 = vector.broadcast %cst_40 : f32 to vector<16x128xf32>
    %78 = arith.mulf %74, %77 : vector<16x128xf32>
    %cst_41 = arith.constant 0.000000e+00 : f32
    %79 = vector.broadcast %cst_41 : f32 to vector<16x128xf32>
    %80 = arith.cmpf oge, %78, %79 : vector<16x128xf32>
    %cst_42 = arith.constant 1.000000e+00 : f32
    %cst_43 = arith.constant -1.000000e+00 : f32
    %81 = vector.broadcast %cst_42 : f32 to vector<16x128xf32>
    %82 = vector.broadcast %cst_43 : f32 to vector<16x128xf32>
    %83 = arith.select %80, %81, %82 : vector<16x128xi1>, vector<16x128xf32>
    %84 = math.absf %78 : vector<16x128xf32>
    %cst_44 = arith.constant 0.327591091 : f32
    %85 = vector.broadcast %cst_44 : f32 to vector<16x128xf32>
    %86 = arith.mulf %85, %84 : vector<16x128xf32>
    %cst_45 = arith.constant 1.000000e+00 : f32
    %87 = vector.broadcast %cst_45 : f32 to vector<16x128xf32>
    %88 = arith.addf %87, %86 : vector<16x128xf32>
    %cst_46 = arith.constant 1.000000e+00 : f32
    %89 = vector.broadcast %cst_46 : f32 to vector<16x128xf32>
    %90 = arith.divf %89, %88 : vector<16x128xf32>
    %cst_47 = arith.constant 1.06140542 : f32
    %91 = vector.broadcast %cst_47 : f32 to vector<16x128xf32>
    %92 = arith.mulf %91, %90 : vector<16x128xf32>
    %cst_48 = arith.constant -1.45315206 : f32
    %93 = vector.broadcast %cst_48 : f32 to vector<16x128xf32>
    %94 = arith.addf %92, %93 : vector<16x128xf32>
    %95 = arith.mulf %94, %90 : vector<16x128xf32>
    %cst_49 = arith.constant 1.42141378 : f32
    %96 = vector.broadcast %cst_49 : f32 to vector<16x128xf32>
    %97 = arith.addf %95, %96 : vector<16x128xf32>
    %98 = arith.mulf %97, %90 : vector<16x128xf32>
    %cst_50 = arith.constant -0.284496725 : f32
    %99 = vector.broadcast %cst_50 : f32 to vector<16x128xf32>
    %100 = arith.addf %98, %99 : vector<16x128xf32>
    %101 = arith.mulf %100, %90 : vector<16x128xf32>
    %cst_51 = arith.constant 0.254829586 : f32
    %102 = vector.broadcast %cst_51 : f32 to vector<16x128xf32>
    %103 = arith.addf %101, %102 : vector<16x128xf32>
    %104 = arith.mulf %103, %90 : vector<16x128xf32>
    %cst_52 = arith.constant 0.000000e+00 : f32
    %105 = vector.broadcast %cst_52 : f32 to vector<16x128xf32>
    %106 = arith.subf %105, %84 : vector<16x128xf32>
    %107 = arith.mulf %106, %84 : vector<16x128xf32>
    %108 = math.exp %107 : vector<16x128xf32>
    %109 = arith.mulf %104, %108 : vector<16x128xf32>
    %cst_53 = arith.constant 1.000000e+00 : f32
    %110 = vector.broadcast %cst_53 : f32 to vector<16x128xf32>
    %111 = arith.subf %110, %109 : vector<16x128xf32>
    %112 = arith.mulf %83, %111 : vector<16x128xf32>
    %cst_54 = arith.constant 1.000000e+00 : f32
    %113 = vector.broadcast %cst_54 : f32 to vector<16x128xf32>
    %114 = arith.addf %113, %112 : vector<16x128xf32>
    %115 = arith.mulf %76, %114 : vector<16x128xf32>
    %c0_55 = arith.constant 0 : index
    %c0_56 = arith.constant 0 : index
    %116 = vector.load %arg9[%c0_55, %c0_56] : memref<16x128xf32, #tpu.memory_space<vmem>>, vector<16x128xf32>
    %117 = arith.addf %115, %116 : vector<16x128xf32>
    %c0_57 = arith.constant 0 : index
    %c0_58 = arith.constant 0 : index
    %c0_59 = arith.constant 0 : index
    %118 = vector.load %arg11[%c0_57, %c0_58, %c0_59] : memref<1x16x128xf32, #tpu.memory_space<vmem>>, vector<1x16x128xf32>
    %119 = vector.shape_cast %118 : vector<1x16x128xf32> to vector<16x128xf32>
    %120 = vector.shape_cast %117 : vector<16x128xf32> to vector<1x16x128xf32>
    tpu.vector_store %arg11[%c0_57, %c0_58, %c0_59], %120 {strides = array<i32>} : memref<1x16x128xf32, #tpu.memory_space<vmem>>, vector<1x16x128xf32>,
    return
  }
  func.func @transform_0(%arg0: i32) -> (i32, i32, i32) {
    %c0_i32 = arith.constant 0 : i32
    %c0_i32_0 = arith.constant 0 : i32
    %c0_i32_1 = arith.constant 0 : i32
    return %arg0, %c0_i32, %c0_i32_0 : i32, i32, i32
  }
  func.func @transform_1(%arg0: i32) -> (i32, i32, i32) {
    %c0_i32 = arith.constant 0 : i32
    %c0_i32_0 = arith.constant 0 : i32
    %c0_i32_1 = arith.constant 0 : i32
    return %arg0, %c0_i32, %c0_i32_0 : i32, i32, i32
  }
  func.func @transform_2(%arg0: i32) -> (i32, i32) {
    %c0_i32 = arith.constant 0 : i32
    %c0_i32_0 = arith.constant 0 : i32
    %c0_i32_1 = arith.constant 0 : i32
    return %c0_i32, %c0_i32_0 : i32, i32
  }
  func.func @transform_3(%arg0: i32) -> (i32, i32) {
    %c0_i32 = arith.constant 0 : i32
    %c0_i32_0 = arith.constant 0 : i32
    %c0_i32_1 = arith.constant 0 : i32
    return %c0_i32, %c0_i32_0 : i32, i32
  }
  func.func @transform_4(%arg0: i32) -> (i32, i32) {
    %c0_i32 = arith.constant 0 : i32
    %c0_i32_0 = arith.constant 0 : i32
    %c0_i32_1 = arith.constant 0 : i32
    return %c0_i32, %c0_i32_0 : i32, i32
  }
  func.func @transform_5(%arg0: i32) -> (i32, i32) {
    %c0_i32 = arith.constant 0 : i32
    %c0_i32_0 = arith.constant 0 : i32
    %c0_i32_1 = arith.constant 0 : i32
    return %c0_i32, %c0_i32_0 : i32, i32
  }
  func.func @transform_6(%arg0: i32) -> (i32, i32) {
    %c0_i32 = arith.constant 0 : i32
    %c0_i32_0 = arith.constant 0 : i32
    %c0_i32_1 = arith.constant 0 : i32
    return %c0_i32, %c0_i32_0 : i32, i32
  }
  func.func @transform_7(%arg0: i32) -> (i32, i32) {
    %c0_i32 = arith.constant 0 : i32
    %c0_i32_0 = arith.constant 0 : i32
    %c0_i32_1 = arith.constant 0 : i32
    return %c0_i32, %c0_i32_0 : i32, i32
  }
  func.func @transform_8(%arg0: i32) -> (i32, i32) {
    %c0_i32 = arith.constant 0 : i32
    %c0_i32_0 = arith.constant 0 : i32
    %c0_i32_1 = arith.constant 0 : i32
    return %c0_i32, %c0_i32_0 : i32, i32
  }
  func.func @transform_9(%arg0: i32) -> (i32, i32, i32) {
    %c0_i32 = arith.constant 0 : i32
    %c0_i32_0 = arith.constant 0 : i32
    %c0_i32_1 = arith.constant 0 : i32
    return %arg0, %c0_i32, %c0_i32_0 : i32, i32, i32
  }
  func.func @transform_10(%arg0: i32) -> (i32, i32, i32) {
    %c0_i32 = arith.constant 0 : i32
    %c0_i32_0 = arith.constant 0 : i32
    %c0_i32_1 = arith.constant 0 : i32
    return %arg0, %c0_i32, %c0_i32_0 : i32, i32, i32
  }
}

module attributes {stable_mosaic.version = 11 : i64} {
  func.func @_layer_pair_kernel(%arg0: i32, %arg1: memref<1x8x128xf32, #tpu.memory_space<vmem>>, %arg2: memref<1x16x128xf32, #tpu.memory_space<vmem>>, %arg3: memref<1x8x128xf32, #tpu.memory_space<vmem>>, %arg4: memref<1x16x128xf32, #tpu.memory_space<vmem>>, %arg5: memref<1x8x1xf32, #tpu.memory_space<vmem>>, %arg6: memref<1x1x8xf32, #tpu.memory_space<vmem>>, %arg7: memref<1x16x1xf32, #tpu.memory_space<vmem>>, %arg8: memref<1x1x16xf32, #tpu.memory_space<vmem>>, %arg9: memref<4x128x32xbf16, #tpu.memory_space<vmem>>, %arg10: memref<4x1x32xf32, #tpu.memory_space<vmem>>, %arg11: memref<4x128x32xbf16, #tpu.memory_space<vmem>>, %arg12: memref<4x1x32xf32, #tpu.memory_space<vmem>>, %arg13: memref<4x128x32xbf16, #tpu.memory_space<vmem>>, %arg14: memref<4x1x32xf32, #tpu.memory_space<vmem>>, %arg15: memref<4x32x128xbf16, #tpu.memory_space<vmem>>, %arg16: memref<1x128xf32, #tpu.memory_space<vmem>>, %arg17: memref<1x128xf32, #tpu.memory_space<vmem>>, %arg18: memref<1x128xf32, #tpu.memory_space<vmem>>, %arg19: memref<128x256xbf16, #tpu.memory_space<vmem>>, %arg20: memref<1x256xf32, #tpu.memory_space<vmem>>, %arg21: memref<256x128xbf16, #tpu.memory_space<vmem>>, %arg22: memref<1x128xf32, #tpu.memory_space<vmem>>, %arg23: memref<1x128xf32, #tpu.memory_space<vmem>>, %arg24: memref<1x128xf32, #tpu.memory_space<vmem>>, %arg25: memref<1x8x128xf32, #tpu.memory_space<vmem>>, %arg26: memref<1x16x128xf32, #tpu.memory_space<vmem>>) attributes {dimension_semantics = [#tpu.dimension_semantics<parallel>], iteration_bounds = array<i64: 2>, scalar_prefetch = 0 : i64, scratch_operands = 0 : i64, tpu.core_type = #tpu.core_type<tc>, window_params = [{transform_indices = @transform_0, window_bounds = array<i64: 1, 8, 128>}, {transform_indices = @transform_1, window_bounds = array<i64: 1, 16, 128>}, {transform_indices = @transform_2, window_bounds = array<i64: 1, 8, 128>}, {transform_indices = @transform_3, window_bounds = array<i64: 1, 16, 128>}, {transform_indices = @transform_4, window_bounds = array<i64: 1, 8, 1>}, {transform_indices = @transform_5, window_bounds = array<i64: 1, 1, 8>}, {transform_indices = @transform_6, window_bounds = array<i64: 1, 16, 1>}, {transform_indices = @transform_7, window_bounds = array<i64: 1, 1, 16>}, {pipeline_mode = #tpu.pipeline_mode<synchronous>, transform_indices = @transform_8, window_bounds = array<i64: 4, 128, 32>}, {pipeline_mode = #tpu.pipeline_mode<synchronous>, transform_indices = @transform_9, window_bounds = array<i64: 4, 1, 32>}, {pipeline_mode = #tpu.pipeline_mode<synchronous>, transform_indices = @transform_10, window_bounds = array<i64: 4, 128, 32>}, {pipeline_mode = #tpu.pipeline_mode<synchronous>, transform_indices = @transform_11, window_bounds = array<i64: 4, 1, 32>}, {pipeline_mode = #tpu.pipeline_mode<synchronous>, transform_indices = @transform_12, window_bounds = array<i64: 4, 128, 32>}, {pipeline_mode = #tpu.pipeline_mode<synchronous>, transform_indices = @transform_13, window_bounds = array<i64: 4, 1, 32>}, {pipeline_mode = #tpu.pipeline_mode<synchronous>, transform_indices = @transform_14, window_bounds = array<i64: 4, 32, 128>}, {pipeline_mode = #tpu.pipeline_mode<synchronous>, transform_indices = @transform_15, window_bounds = array<i64: 1, 128>}, {pipeline_mode = #tpu.pipeline_mode<synchronous>, transform_indices = @transform_16, window_bounds = array<i64: 1, 128>}, {pipeline_mode = #tpu.pipeline_mode<synchronous>, transform_indices = @transform_17, window_bounds = array<i64: 1, 128>}, {pipeline_mode = #tpu.pipeline_mode<synchronous>, transform_indices = @transform_18, window_bounds = array<i64: 128, 256>}, {pipeline_mode = #tpu.pipeline_mode<synchronous>, transform_indices = @transform_19, window_bounds = array<i64: 1, 256>}, {pipeline_mode = #tpu.pipeline_mode<synchronous>, transform_indices = @transform_20, window_bounds = array<i64: 256, 128>}, {pipeline_mode = #tpu.pipeline_mode<synchronous>, transform_indices = @transform_21, window_bounds = array<i64: 1, 128>}, {pipeline_mode = #tpu.pipeline_mode<synchronous>, transform_indices = @transform_22, window_bounds = array<i64: 1, 128>}, {pipeline_mode = #tpu.pipeline_mode<synchronous>, transform_indices = @transform_23, window_bounds = array<i64: 1, 128>}, {transform_indices = @transform_24, window_bounds = array<i64: 1, 8, 128>}, {transform_indices = @transform_25, window_bounds = array<i64: 1, 16, 128>}]} {
    %c0 = arith.constant 0 : index
    %c0_0 = arith.constant 0 : index
    %c0_1 = arith.constant 0 : index
    %0 = vector.load %arg9[%c0, %c0_0, %c0_1] : memref<4x128x32xbf16, #tpu.memory_space<vmem>>, vector<4x128x32xbf16>
    %c0_2 = arith.constant 0 : index
    %c0_3 = arith.constant 0 : index
    %c0_4 = arith.constant 0 : index
    %1 = vector.load %arg10[%c0_2, %c0_3, %c0_4] : memref<4x1x32xf32, #tpu.memory_space<vmem>>, vector<4x1x32xf32>
    %c0_5 = arith.constant 0 : index
    %c0_6 = arith.constant 0 : index
    %c0_7 = arith.constant 0 : index
    %2 = vector.load %arg11[%c0_5, %c0_6, %c0_7] : memref<4x128x32xbf16, #tpu.memory_space<vmem>>, vector<4x128x32xbf16>
    %c0_8 = arith.constant 0 : index
    %c0_9 = arith.constant 0 : index
    %c0_10 = arith.constant 0 : index
    %3 = vector.load %arg12[%c0_8, %c0_9, %c0_10] : memref<4x1x32xf32, #tpu.memory_space<vmem>>, vector<4x1x32xf32>
    %c0_11 = arith.constant 0 : index
    %c0_12 = arith.constant 0 : index
    %c0_13 = arith.constant 0 : index
    %4 = vector.load %arg13[%c0_11, %c0_12, %c0_13] : memref<4x128x32xbf16, #tpu.memory_space<vmem>>, vector<4x128x32xbf16>
    %c0_14 = arith.constant 0 : index
    %c0_15 = arith.constant 0 : index
    %c0_16 = arith.constant 0 : index
    %5 = vector.load %arg14[%c0_14, %c0_15, %c0_16] : memref<4x1x32xf32, #tpu.memory_space<vmem>>, vector<4x1x32xf32>
    %c0_17 = arith.constant 0 : index
    %c0_18 = arith.constant 0 : index
    %c0_19 = arith.constant 0 : index
    %6 = vector.load %arg15[%c0_17, %c0_18, %c0_19] : memref<4x32x128xbf16, #tpu.memory_space<vmem>>, vector<4x32x128xbf16>
    %c0_20 = arith.constant 0 : index
    %c0_21 = arith.constant 0 : index
    %7 = vector.load %arg16[%c0_20, %c0_21] : memref<1x128xf32, #tpu.memory_space<vmem>>, vector<1x128xf32>
    %c0_22 = arith.constant 0 : index
    %c0_23 = arith.constant 0 : index
    %8 = vector.load %arg17[%c0_22, %c0_23] : memref<1x128xf32, #tpu.memory_space<vmem>>, vector<1x128xf32>
    %c0_24 = arith.constant 0 : index
    %c0_25 = arith.constant 0 : index
    %9 = vector.load %arg18[%c0_24, %c0_25] : memref<1x128xf32, #tpu.memory_space<vmem>>, vector<1x128xf32>
    %c0_26 = arith.constant 0 : index
    %c0_27 = arith.constant 0 : index
    %10 = vector.load %arg19[%c0_26, %c0_27] : memref<128x256xbf16, #tpu.memory_space<vmem>>, vector<128x256xbf16>
    %c0_28 = arith.constant 0 : index
    %c0_29 = arith.constant 0 : index
    %11 = vector.load %arg20[%c0_28, %c0_29] : memref<1x256xf32, #tpu.memory_space<vmem>>, vector<1x256xf32>
    %c0_30 = arith.constant 0 : index
    %c0_31 = arith.constant 0 : index
    %12 = vector.load %arg21[%c0_30, %c0_31] : memref<256x128xbf16, #tpu.memory_space<vmem>>, vector<256x128xbf16>
    %c0_32 = arith.constant 0 : index
    %c0_33 = arith.constant 0 : index
    %13 = vector.load %arg22[%c0_32, %c0_33] : memref<1x128xf32, #tpu.memory_space<vmem>>, vector<1x128xf32>
    %c0_34 = arith.constant 0 : index
    %c0_35 = arith.constant 0 : index
    %14 = vector.load %arg23[%c0_34, %c0_35] : memref<1x128xf32, #tpu.memory_space<vmem>>, vector<1x128xf32>
    %c0_36 = arith.constant 0 : index
    %c0_37 = arith.constant 0 : index
    %15 = vector.load %arg24[%c0_36, %c0_37] : memref<1x128xf32, #tpu.memory_space<vmem>>, vector<1x128xf32>
    %c0_38 = arith.constant 0 : index
    %c0_39 = arith.constant 0 : index
    %c0_40 = arith.constant 0 : index
    %16 = vector.load %arg1[%c0_38, %c0_39, %c0_40] : memref<1x8x128xf32, #tpu.memory_space<vmem>>, vector<1x8x128xf32>
    %17 = vector.shape_cast %16 : vector<1x8x128xf32> to vector<8x128xf32>
    %c0_41 = arith.constant 0 : index
    %c0_42 = arith.constant 0 : index
    %c0_43 = arith.constant 0 : index
    %18 = vector.load %arg4[%c0_41, %c0_42, %c0_43] : memref<1x16x128xf32, #tpu.memory_space<vmem>>, vector<1x16x128xf32>
    %19 = vector.shape_cast %18 : vector<1x16x128xf32> to vector<16x128xf32>
    %c0_44 = arith.constant 0 : index
    %c0_45 = arith.constant 0 : index
    %c0_46 = arith.constant 0 : index
    %20 = vector.load %arg5[%c0_44, %c0_45, %c0_46] : memref<1x8x1xf32, #tpu.memory_space<vmem>>, vector<1x8x1xf32>
    %21 = vector.shape_cast %20 : vector<1x8x1xf32> to vector<8x1xf32>
    %c0_47 = arith.constant 0 : index
    %c0_48 = arith.constant 0 : index
    %c0_49 = arith.constant 0 : index
    %22 = vector.load %arg8[%c0_47, %c0_48, %c0_49] : memref<1x1x16xf32, #tpu.memory_space<vmem>>, vector<1x1x16xf32>
    %23 = vector.shape_cast %22 : vector<1x1x16xf32> to vector<1x16xf32>
    %24 = arith.truncf %17 : vector<8x128xf32> to vector<8x128xbf16>
    %25 = arith.truncf %19 : vector<16x128xf32> to vector<16x128xbf16>
    %26 = vector.broadcast %21 : vector<8x1xf32> to vector<8x16xf32>
    %27 = vector.broadcast %23 : vector<1x16xf32> to vector<8x16xf32>
    %28 = arith.addf %26, %27 : vector<8x16xf32>
    %cst = arith.constant 5.000000e-01 : f32
    %29 = vector.broadcast %cst : f32 to vector<8x16xf32>
    %30 = arith.cmpf ogt, %28, %29 : vector<8x16xf32>
    %cst_50 = arith.constant 0.000000e+00 : f32
    %31 = vector.broadcast %cst_50 : f32 to vector<8x128xf32>
    %32 = vector.extract_strided_slice %0 {offsets = [0, 0, 0], sizes = [1, 128, 32], strides = [1, 1, 1]} : vector<4x128x32xbf16> to vector<1x128x32xbf16>
    %33 = vector.shape_cast %32 : vector<1x128x32xbf16> to vector<128x32xbf16>
    %cst_51 = arith.constant dense<0.000000e+00> : vector<8x32xf32>
    %34 = tpu.matmul %24, %33, %cst_51 {dimension_numbers = #tpu.dot_dimension_numbers<[1], [0], [0], [1], [0, 0, 1, 1], [], []>} : vector<8x128xbf16>, vector<128x32xbf16>, vector<8x32xf32> -> vector<8x32xf32>
    %35 = vector.extract_strided_slice %1 {offsets = [0, 0, 0], sizes = [1, 1, 32], strides = [1, 1, 1]} : vector<4x1x32xf32> to vector<1x1x32xf32>
    %36 = vector.shape_cast %35 : vector<1x1x32xf32> to vector<1x32xf32>
    %37 = vector.broadcast %36 : vector<1x32xf32> to vector<8x32xf32>
    %38 = arith.addf %34, %37 : vector<8x32xf32>
    %39 = vector.extract_strided_slice %2 {offsets = [0, 0, 0], sizes = [1, 128, 32], strides = [1, 1, 1]} : vector<4x128x32xbf16> to vector<1x128x32xbf16>
    %40 = vector.shape_cast %39 : vector<1x128x32xbf16> to vector<128x32xbf16>
    %cst_52 = arith.constant dense<0.000000e+00> : vector<16x32xf32>
    %41 = tpu.matmul %25, %40, %cst_52 {dimension_numbers = #tpu.dot_dimension_numbers<[1], [0], [0], [1], [0, 0, 1, 1], [], []>} : vector<16x128xbf16>, vector<128x32xbf16>, vector<16x32xf32> -> vector<16x32xf32>
    %42 = vector.extract_strided_slice %3 {offsets = [0, 0, 0], sizes = [1, 1, 32], strides = [1, 1, 1]} : vector<4x1x32xf32> to vector<1x1x32xf32>
    %43 = vector.shape_cast %42 : vector<1x1x32xf32> to vector<1x32xf32>
    %44 = vector.broadcast %43 : vector<1x32xf32> to vector<16x32xf32>
    %45 = arith.addf %41, %44 : vector<16x32xf32>
    %46 = vector.extract_strided_slice %4 {offsets = [0, 0, 0], sizes = [1, 128, 32], strides = [1, 1, 1]} : vector<4x128x32xbf16> to vector<1x128x32xbf16>
    %47 = vector.shape_cast %46 : vector<1x128x32xbf16> to vector<128x32xbf16>
    %cst_53 = arith.constant dense<0.000000e+00> : vector<16x32xf32>
    %48 = tpu.matmul %25, %47, %cst_53 {dimension_numbers = #tpu.dot_dimension_numbers<[1], [0], [0], [1], [0, 0, 1, 1], [], []>} : vector<16x128xbf16>, vector<128x32xbf16>, vector<16x32xf32> -> vector<16x32xf32>
    %49 = vector.extract_strided_slice %5 {offsets = [0, 0, 0], sizes = [1, 1, 32], strides = [1, 1, 1]} : vector<4x1x32xf32> to vector<1x1x32xf32>
    %50 = vector.shape_cast %49 : vector<1x1x32xf32> to vector<1x32xf32>
    %51 = vector.broadcast %50 : vector<1x32xf32> to vector<16x32xf32>
    %52 = arith.addf %48, %51 : vector<16x32xf32>
    %53 = arith.truncf %38 : vector<8x32xf32> to vector<8x32xbf16>
    %54 = arith.truncf %45 : vector<16x32xf32> to vector<16x32xbf16>
    %cst_54 = arith.constant dense<0.000000e+00> : vector<8x16xf32>
    %55 = tpu.matmul %53, %54, %cst_54 {dimension_numbers = #tpu.dot_dimension_numbers<[1], [1], [0], [0], [0, 0, 1, 0], [], []>} : vector<8x32xbf16>, vector<16x32xbf16>, vector<8x16xf32> -> vector<8x16xf32>
    %cst_55 = arith.constant 0.176776692 : f32
    %56 = vector.broadcast %cst_55 : f32 to vector<8x16xf32>
    %57 = arith.mulf %55, %56 : vector<8x16xf32>
    %cst_56 = arith.constant -1.000000e+09 : f32
    %58 = vector.broadcast %cst_56 : f32 to vector<8x16xf32>
    %59 = arith.select %30, %58, %57 : vector<8x16xi1>, vector<8x16xf32>
    %cst_57 = arith.constant dense<0xFF800000> : vector<8xf32>
    %60 = vector.multi_reduction <maximumf>, %59, %cst_57 [1] : vector<8x16xf32> to vector<8xf32>
    %61 = vector.shape_cast %60 : vector<8xf32> to vector<8x1xf32>
    %62 = vector.broadcast %61 : vector<8x1xf32> to vector<8x16xf32>
    %63 = arith.subf %59, %62 : vector<8x16xf32>
    %64 = math.exp %63 : vector<8x16xf32>
    %cst_58 = arith.constant dense<0.000000e+00> : vector<8xf32>
    %65 = vector.multi_reduction <add>, %64, %cst_58 [1] : vector<8x16xf32> to vector<8xf32>
    %66 = vector.shape_cast %65 : vector<8xf32> to vector<8x1xf32>
    %67 = tpu.reciprocal %66 {approx = true} : vector<8x1xf32> -> vector<8x1xf32>
    %68 = vector.broadcast %67 : vector<8x1xf32> to vector<8x16xf32>
    %69 = arith.mulf %64, %68 : vector<8x16xf32>
    %70 = arith.truncf %69 : vector<8x16xf32> to vector<8x16xbf16>
    %71 = arith.truncf %52 : vector<16x32xf32> to vector<16x32xbf16>
    %cst_59 = arith.constant dense<0.000000e+00> : vector<8x32xf32>
    %72 = tpu.matmul %70, %71, %cst_59 {dimension_numbers = #tpu.dot_dimension_numbers<[1], [0], [0], [1], [0, 0, 1, 1], [], []>} : vector<8x16xbf16>, vector<16x32xbf16>, vector<8x32xf32> -> vector<8x32xf32>
    %73 = arith.truncf %72 : vector<8x32xf32> to vector<8x32xbf16>
    %74 = vector.extract_strided_slice %6 {offsets = [0, 0, 0], sizes = [1, 32, 128], strides = [1, 1, 1]} : vector<4x32x128xbf16> to vector<1x32x128xbf16>
    %75 = vector.shape_cast %74 : vector<1x32x128xbf16> to vector<32x128xbf16>
    %cst_60 = arith.constant dense<0.000000e+00> : vector<8x128xf32>
    %76 = tpu.matmul %73, %75, %cst_60 {dimension_numbers = #tpu.dot_dimension_numbers<[1], [0], [0], [1], [0, 0, 1, 1], [], []>} : vector<8x32xbf16>, vector<32x128xbf16>, vector<8x128xf32> -> vector<8x128xf32>
    %77 = arith.addf %31, %76 : vector<8x128xf32>
    %78 = vector.extract_strided_slice %0 {offsets = [1, 0, 0], sizes = [1, 128, 32], strides = [1, 1, 1]} : vector<4x128x32xbf16> to vector<1x128x32xbf16>
    %79 = vector.shape_cast %78 : vector<1x128x32xbf16> to vector<128x32xbf16>
    %cst_61 = arith.constant dense<0.000000e+00> : vector<8x32xf32>
    %80 = tpu.matmul %24, %79, %cst_61 {dimension_numbers = #tpu.dot_dimension_numbers<[1], [0], [0], [1], [0, 0, 1, 1], [], []>} : vector<8x128xbf16>, vector<128x32xbf16>, vector<8x32xf32> -> vector<8x32xf32>
    %81 = vector.extract_strided_slice %1 {offsets = [1, 0, 0], sizes = [1, 1, 32], strides = [1, 1, 1]} : vector<4x1x32xf32> to vector<1x1x32xf32>
    %82 = vector.shape_cast %81 : vector<1x1x32xf32> to vector<1x32xf32>
    %83 = vector.broadcast %82 : vector<1x32xf32> to vector<8x32xf32>
    %84 = arith.addf %80, %83 : vector<8x32xf32>
    %85 = vector.extract_strided_slice %2 {offsets = [1, 0, 0], sizes = [1, 128, 32], strides = [1, 1, 1]} : vector<4x128x32xbf16> to vector<1x128x32xbf16>
    %86 = vector.shape_cast %85 : vector<1x128x32xbf16> to vector<128x32xbf16>
    %cst_62 = arith.constant dense<0.000000e+00> : vector<16x32xf32>
    %87 = tpu.matmul %25, %86, %cst_62 {dimension_numbers = #tpu.dot_dimension_numbers<[1], [0], [0], [1], [0, 0, 1, 1], [], []>} : vector<16x128xbf16>, vector<128x32xbf16>, vector<16x32xf32> -> vector<16x32xf32>
    %88 = vector.extract_strided_slice %3 {offsets = [1, 0, 0], sizes = [1, 1, 32], strides = [1, 1, 1]} : vector<4x1x32xf32> to vector<1x1x32xf32>
    %89 = vector.shape_cast %88 : vector<1x1x32xf32> to vector<1x32xf32>
    %90 = vector.broadcast %89 : vector<1x32xf32> to vector<16x32xf32>
    %91 = arith.addf %87, %90 : vector<16x32xf32>
    %92 = vector.extract_strided_slice %4 {offsets = [1, 0, 0], sizes = [1, 128, 32], strides = [1, 1, 1]} : vector<4x128x32xbf16> to vector<1x128x32xbf16>
    %93 = vector.shape_cast %92 : vector<1x128x32xbf16> to vector<128x32xbf16>
    %cst_63 = arith.constant dense<0.000000e+00> : vector<16x32xf32>
    %94 = tpu.matmul %25, %93, %cst_63 {dimension_numbers = #tpu.dot_dimension_numbers<[1], [0], [0], [1], [0, 0, 1, 1], [], []>} : vector<16x128xbf16>, vector<128x32xbf16>, vector<16x32xf32> -> vector<16x32xf32>
    %95 = vector.extract_strided_slice %5 {offsets = [1, 0, 0], sizes = [1, 1, 32], strides = [1, 1, 1]} : vector<4x1x32xf32> to vector<1x1x32xf32>
    %96 = vector.shape_cast %95 : vector<1x1x32xf32> to vector<1x32xf32>
    %97 = vector.broadcast %96 : vector<1x32xf32> to vector<16x32xf32>
    %98 = arith.addf %94, %97 : vector<16x32xf32>
    %99 = arith.truncf %84 : vector<8x32xf32> to vector<8x32xbf16>
    %100 = arith.truncf %91 : vector<16x32xf32> to vector<16x32xbf16>
    %cst_64 = arith.constant dense<0.000000e+00> : vector<8x16xf32>
    %101 = tpu.matmul %99, %100, %cst_64 {dimension_numbers = #tpu.dot_dimension_numbers<[1], [1], [0], [0], [0, 0, 1, 0], [], []>} : vector<8x32xbf16>, vector<16x32xbf16>, vector<8x16xf32> -> vector<8x16xf32>
    %cst_65 = arith.constant 0.176776692 : f32
    %102 = vector.broadcast %cst_65 : f32 to vector<8x16xf32>
    %103 = arith.mulf %101, %102 : vector<8x16xf32>
    %cst_66 = arith.constant -1.000000e+09 : f32
    %104 = vector.broadcast %cst_66 : f32 to vector<8x16xf32>
    %105 = arith.select %30, %104, %103 : vector<8x16xi1>, vector<8x16xf32>
    %cst_67 = arith.constant dense<0xFF800000> : vector<8xf32>
    %106 = vector.multi_reduction <maximumf>, %105, %cst_67 [1] : vector<8x16xf32> to vector<8xf32>
    %107 = vector.shape_cast %106 : vector<8xf32> to vector<8x1xf32>
    %108 = vector.broadcast %107 : vector<8x1xf32> to vector<8x16xf32>
    %109 = arith.subf %105, %108 : vector<8x16xf32>
    %110 = math.exp %109 : vector<8x16xf32>
    %cst_68 = arith.constant dense<0.000000e+00> : vector<8xf32>
    %111 = vector.multi_reduction <add>, %110, %cst_68 [1] : vector<8x16xf32> to vector<8xf32>
    %112 = vector.shape_cast %111 : vector<8xf32> to vector<8x1xf32>
    %113 = tpu.reciprocal %112 {approx = true} : vector<8x1xf32> -> vector<8x1xf32>
    %114 = vector.broadcast %113 : vector<8x1xf32> to vector<8x16xf32>
    %115 = arith.mulf %110, %114 : vector<8x16xf32>
    %116 = arith.truncf %115 : vector<8x16xf32> to vector<8x16xbf16>
    %117 = arith.truncf %98 : vector<16x32xf32> to vector<16x32xbf16>
    %cst_69 = arith.constant dense<0.000000e+00> : vector<8x32xf32>
    %118 = tpu.matmul %116, %117, %cst_69 {dimension_numbers = #tpu.dot_dimension_numbers<[1], [0], [0], [1], [0, 0, 1, 1], [], []>} : vector<8x16xbf16>, vector<16x32xbf16>, vector<8x32xf32> -> vector<8x32xf32>
    %119 = arith.truncf %118 : vector<8x32xf32> to vector<8x32xbf16>
    %120 = vector.extract_strided_slice %6 {offsets = [1, 0, 0], sizes = [1, 32, 128], strides = [1, 1, 1]} : vector<4x32x128xbf16> to vector<1x32x128xbf16>
    %121 = vector.shape_cast %120 : vector<1x32x128xbf16> to vector<32x128xbf16>
    %cst_70 = arith.constant dense<0.000000e+00> : vector<8x128xf32>
    %122 = tpu.matmul %119, %121, %cst_70 {dimension_numbers = #tpu.dot_dimension_numbers<[1], [0], [0], [1], [0, 0, 1, 1], [], []>} : vector<8x32xbf16>, vector<32x128xbf16>, vector<8x128xf32> -> vector<8x128xf32>
    %123 = arith.addf %77, %122 : vector<8x128xf32>
    %124 = vector.extract_strided_slice %0 {offsets = [2, 0, 0], sizes = [1, 128, 32], strides = [1, 1, 1]} : vector<4x128x32xbf16> to vector<1x128x32xbf16>
    %125 = vector.shape_cast %124 : vector<1x128x32xbf16> to vector<128x32xbf16>
    %cst_71 = arith.constant dense<0.000000e+00> : vector<8x32xf32>
    %126 = tpu.matmul %24, %125, %cst_71 {dimension_numbers = #tpu.dot_dimension_numbers<[1], [0], [0], [1], [0, 0, 1, 1], [], []>} : vector<8x128xbf16>, vector<128x32xbf16>, vector<8x32xf32> -> vector<8x32xf32>
    %127 = vector.extract_strided_slice %1 {offsets = [2, 0, 0], sizes = [1, 1, 32], strides = [1, 1, 1]} : vector<4x1x32xf32> to vector<1x1x32xf32>
    %128 = vector.shape_cast %127 : vector<1x1x32xf32> to vector<1x32xf32>
    %129 = vector.broadcast %128 : vector<1x32xf32> to vector<8x32xf32>
    %130 = arith.addf %126, %129 : vector<8x32xf32>
    %131 = vector.extract_strided_slice %2 {offsets = [2, 0, 0], sizes = [1, 128, 32], strides = [1, 1, 1]} : vector<4x128x32xbf16> to vector<1x128x32xbf16>
    %132 = vector.shape_cast %131 : vector<1x128x32xbf16> to vector<128x32xbf16>
    %cst_72 = arith.constant dense<0.000000e+00> : vector<16x32xf32>
    %133 = tpu.matmul %25, %132, %cst_72 {dimension_numbers = #tpu.dot_dimension_numbers<[1], [0], [0], [1], [0, 0, 1, 1], [], []>} : vector<16x128xbf16>, vector<128x32xbf16>, vector<16x32xf32> -> vector<16x32xf32>
    %134 = vector.extract_strided_slice %3 {offsets = [2, 0, 0], sizes = [1, 1, 32], strides = [1, 1, 1]} : vector<4x1x32xf32> to vector<1x1x32xf32>
    %135 = vector.shape_cast %134 : vector<1x1x32xf32> to vector<1x32xf32>
    %136 = vector.broadcast %135 : vector<1x32xf32> to vector<16x32xf32>
    %137 = arith.addf %133, %136 : vector<16x32xf32>
    %138 = vector.extract_strided_slice %4 {offsets = [2, 0, 0], sizes = [1, 128, 32], strides = [1, 1, 1]} : vector<4x128x32xbf16> to vector<1x128x32xbf16>
    %139 = vector.shape_cast %138 : vector<1x128x32xbf16> to vector<128x32xbf16>
    %cst_73 = arith.constant dense<0.000000e+00> : vector<16x32xf32>
    %140 = tpu.matmul %25, %139, %cst_73 {dimension_numbers = #tpu.dot_dimension_numbers<[1], [0], [0], [1], [0, 0, 1, 1], [], []>} : vector<16x128xbf16>, vector<128x32xbf16>, vector<16x32xf32> -> vector<16x32xf32>
    %141 = vector.extract_strided_slice %5 {offsets = [2, 0, 0], sizes = [1, 1, 32], strides = [1, 1, 1]} : vector<4x1x32xf32> to vector<1x1x32xf32>
    %142 = vector.shape_cast %141 : vector<1x1x32xf32> to vector<1x32xf32>
    %143 = vector.broadcast %142 : vector<1x32xf32> to vector<16x32xf32>
    %144 = arith.addf %140, %143 : vector<16x32xf32>
    %145 = arith.truncf %130 : vector<8x32xf32> to vector<8x32xbf16>
    %146 = arith.truncf %137 : vector<16x32xf32> to vector<16x32xbf16>
    %cst_74 = arith.constant dense<0.000000e+00> : vector<8x16xf32>
    %147 = tpu.matmul %145, %146, %cst_74 {dimension_numbers = #tpu.dot_dimension_numbers<[1], [1], [0], [0], [0, 0, 1, 0], [], []>} : vector<8x32xbf16>, vector<16x32xbf16>, vector<8x16xf32> -> vector<8x16xf32>
    %cst_75 = arith.constant 0.176776692 : f32
    %148 = vector.broadcast %cst_75 : f32 to vector<8x16xf32>
    %149 = arith.mulf %147, %148 : vector<8x16xf32>
    %cst_76 = arith.constant -1.000000e+09 : f32
    %150 = vector.broadcast %cst_76 : f32 to vector<8x16xf32>
    %151 = arith.select %30, %150, %149 : vector<8x16xi1>, vector<8x16xf32>
    %cst_77 = arith.constant dense<0xFF800000> : vector<8xf32>
    %152 = vector.multi_reduction <maximumf>, %151, %cst_77 [1] : vector<8x16xf32> to vector<8xf32>
    %153 = vector.shape_cast %152 : vector<8xf32> to vector<8x1xf32>
    %154 = vector.broadcast %153 : vector<8x1xf32> to vector<8x16xf32>
    %155 = arith.subf %151, %154 : vector<8x16xf32>
    %156 = math.exp %155 : vector<8x16xf32>
    %cst_78 = arith.constant dense<0.000000e+00> : vector<8xf32>
    %157 = vector.multi_reduction <add>, %156, %cst_78 [1] : vector<8x16xf32> to vector<8xf32>
    %158 = vector.shape_cast %157 : vector<8xf32> to vector<8x1xf32>
    %159 = tpu.reciprocal %158 {approx = true} : vector<8x1xf32> -> vector<8x1xf32>
    %160 = vector.broadcast %159 : vector<8x1xf32> to vector<8x16xf32>
    %161 = arith.mulf %156, %160 : vector<8x16xf32>
    %162 = arith.truncf %161 : vector<8x16xf32> to vector<8x16xbf16>
    %163 = arith.truncf %144 : vector<16x32xf32> to vector<16x32xbf16>
    %cst_79 = arith.constant dense<0.000000e+00> : vector<8x32xf32>
    %164 = tpu.matmul %162, %163, %cst_79 {dimension_numbers = #tpu.dot_dimension_numbers<[1], [0], [0], [1], [0, 0, 1, 1], [], []>} : vector<8x16xbf16>, vector<16x32xbf16>, vector<8x32xf32> -> vector<8x32xf32>
    %165 = arith.truncf %164 : vector<8x32xf32> to vector<8x32xbf16>
    %166 = vector.extract_strided_slice %6 {offsets = [2, 0, 0], sizes = [1, 32, 128], strides = [1, 1, 1]} : vector<4x32x128xbf16> to vector<1x32x128xbf16>
    %167 = vector.shape_cast %166 : vector<1x32x128xbf16> to vector<32x128xbf16>
    %cst_80 = arith.constant dense<0.000000e+00> : vector<8x128xf32>
    %168 = tpu.matmul %165, %167, %cst_80 {dimension_numbers = #tpu.dot_dimension_numbers<[1], [0], [0], [1], [0, 0, 1, 1], [], []>} : vector<8x32xbf16>, vector<32x128xbf16>, vector<8x128xf32> -> vector<8x128xf32>
    %169 = arith.addf %123, %168 : vector<8x128xf32>
    %170 = vector.extract_strided_slice %0 {offsets = [3, 0, 0], sizes = [1, 128, 32], strides = [1, 1, 1]} : vector<4x128x32xbf16> to vector<1x128x32xbf16>
    %171 = vector.shape_cast %170 : vector<1x128x32xbf16> to vector<128x32xbf16>
    %cst_81 = arith.constant dense<0.000000e+00> : vector<8x32xf32>
    %172 = tpu.matmul %24, %171, %cst_81 {dimension_numbers = #tpu.dot_dimension_numbers<[1], [0], [0], [1], [0, 0, 1, 1], [], []>} : vector<8x128xbf16>, vector<128x32xbf16>, vector<8x32xf32> -> vector<8x32xf32>
    %173 = vector.extract_strided_slice %1 {offsets = [3, 0, 0], sizes = [1, 1, 32], strides = [1, 1, 1]} : vector<4x1x32xf32> to vector<1x1x32xf32>
    %174 = vector.shape_cast %173 : vector<1x1x32xf32> to vector<1x32xf32>
    %175 = vector.broadcast %174 : vector<1x32xf32> to vector<8x32xf32>
    %176 = arith.addf %172, %175 : vector<8x32xf32>
    %177 = vector.extract_strided_slice %2 {offsets = [3, 0, 0], sizes = [1, 128, 32], strides = [1, 1, 1]} : vector<4x128x32xbf16> to vector<1x128x32xbf16>
    %178 = vector.shape_cast %177 : vector<1x128x32xbf16> to vector<128x32xbf16>
    %cst_82 = arith.constant dense<0.000000e+00> : vector<16x32xf32>
    %179 = tpu.matmul %25, %178, %cst_82 {dimension_numbers = #tpu.dot_dimension_numbers<[1], [0], [0], [1], [0, 0, 1, 1], [], []>} : vector<16x128xbf16>, vector<128x32xbf16>, vector<16x32xf32> -> vector<16x32xf32>
    %180 = vector.extract_strided_slice %3 {offsets = [3, 0, 0], sizes = [1, 1, 32], strides = [1, 1, 1]} : vector<4x1x32xf32> to vector<1x1x32xf32>
    %181 = vector.shape_cast %180 : vector<1x1x32xf32> to vector<1x32xf32>
    %182 = vector.broadcast %181 : vector<1x32xf32> to vector<16x32xf32>
    %183 = arith.addf %179, %182 : vector<16x32xf32>
    %184 = vector.extract_strided_slice %4 {offsets = [3, 0, 0], sizes = [1, 128, 32], strides = [1, 1, 1]} : vector<4x128x32xbf16> to vector<1x128x32xbf16>
    %185 = vector.shape_cast %184 : vector<1x128x32xbf16> to vector<128x32xbf16>
    %cst_83 = arith.constant dense<0.000000e+00> : vector<16x32xf32>
    %186 = tpu.matmul %25, %185, %cst_83 {dimension_numbers = #tpu.dot_dimension_numbers<[1], [0], [0], [1], [0, 0, 1, 1], [], []>} : vector<16x128xbf16>, vector<128x32xbf16>, vector<16x32xf32> -> vector<16x32xf32>
    %187 = vector.extract_strided_slice %5 {offsets = [3, 0, 0], sizes = [1, 1, 32], strides = [1, 1, 1]} : vector<4x1x32xf32> to vector<1x1x32xf32>
    %188 = vector.shape_cast %187 : vector<1x1x32xf32> to vector<1x32xf32>
    %189 = vector.broadcast %188 : vector<1x32xf32> to vector<16x32xf32>
    %190 = arith.addf %186, %189 : vector<16x32xf32>
    %191 = arith.truncf %176 : vector<8x32xf32> to vector<8x32xbf16>
    %192 = arith.truncf %183 : vector<16x32xf32> to vector<16x32xbf16>
    %cst_84 = arith.constant dense<0.000000e+00> : vector<8x16xf32>
    %193 = tpu.matmul %191, %192, %cst_84 {dimension_numbers = #tpu.dot_dimension_numbers<[1], [1], [0], [0], [0, 0, 1, 0], [], []>} : vector<8x32xbf16>, vector<16x32xbf16>, vector<8x16xf32> -> vector<8x16xf32>
    %cst_85 = arith.constant 0.176776692 : f32
    %194 = vector.broadcast %cst_85 : f32 to vector<8x16xf32>
    %195 = arith.mulf %193, %194 : vector<8x16xf32>
    %cst_86 = arith.constant -1.000000e+09 : f32
    %196 = vector.broadcast %cst_86 : f32 to vector<8x16xf32>
    %197 = arith.select %30, %196, %195 : vector<8x16xi1>, vector<8x16xf32>
    %cst_87 = arith.constant dense<0xFF800000> : vector<8xf32>
    %198 = vector.multi_reduction <maximumf>, %197, %cst_87 [1] : vector<8x16xf32> to vector<8xf32>
    %199 = vector.shape_cast %198 : vector<8xf32> to vector<8x1xf32>
    %200 = vector.broadcast %199 : vector<8x1xf32> to vector<8x16xf32>
    %201 = arith.subf %197, %200 : vector<8x16xf32>
    %202 = math.exp %201 : vector<8x16xf32>
    %cst_88 = arith.constant dense<0.000000e+00> : vector<8xf32>
    %203 = vector.multi_reduction <add>, %202, %cst_88 [1] : vector<8x16xf32> to vector<8xf32>
    %204 = vector.shape_cast %203 : vector<8xf32> to vector<8x1xf32>
    %205 = tpu.reciprocal %204 {approx = true} : vector<8x1xf32> -> vector<8x1xf32>
    %206 = vector.broadcast %205 : vector<8x1xf32> to vector<8x16xf32>
    %207 = arith.mulf %202, %206 : vector<8x16xf32>
    %208 = arith.truncf %207 : vector<8x16xf32> to vector<8x16xbf16>
    %209 = arith.truncf %190 : vector<16x32xf32> to vector<16x32xbf16>
    %cst_89 = arith.constant dense<0.000000e+00> : vector<8x32xf32>
    %210 = tpu.matmul %208, %209, %cst_89 {dimension_numbers = #tpu.dot_dimension_numbers<[1], [0], [0], [1], [0, 0, 1, 1], [], []>} : vector<8x16xbf16>, vector<16x32xbf16>, vector<8x32xf32> -> vector<8x32xf32>
    %211 = arith.truncf %210 : vector<8x32xf32> to vector<8x32xbf16>
    %212 = vector.extract_strided_slice %6 {offsets = [3, 0, 0], sizes = [1, 32, 128], strides = [1, 1, 1]} : vector<4x32x128xbf16> to vector<1x32x128xbf16>
    %213 = vector.shape_cast %212 : vector<1x32x128xbf16> to vector<32x128xbf16>
    %cst_90 = arith.constant dense<0.000000e+00> : vector<8x128xf32>
    %214 = tpu.matmul %211, %213, %cst_90 {dimension_numbers = #tpu.dot_dimension_numbers<[1], [0], [0], [1], [0, 0, 1, 1], [], []>} : vector<8x32xbf16>, vector<32x128xbf16>, vector<8x128xf32> -> vector<8x128xf32>
    %215 = arith.addf %169, %214 : vector<8x128xf32>
    %216 = vector.broadcast %7 : vector<1x128xf32> to vector<8x128xf32>
    %217 = arith.addf %215, %216 : vector<8x128xf32>
    %218 = arith.addf %217, %17 : vector<8x128xf32>
    %cst_91 = arith.constant dense<0.000000e+00> : vector<8xf32>
    %219 = vector.multi_reduction <add>, %218, %cst_91 [1] : vector<8x128xf32> to vector<8xf32>
    %220 = vector.shape_cast %219 : vector<8xf32> to vector<8x1xf32>
    %cst_92 = arith.constant 1.280000e+02 : f32
    %221 = vector.broadcast %cst_92 : f32 to vector<8x1xf32>
    %222 = arith.divf %220, %221 : vector<8x1xf32>
    %223 = vector.broadcast %222 : vector<8x1xf32> to vector<8x128xf32>
    %224 = arith.subf %218, %223 : vector<8x128xf32>
    %225 = arith.mulf %224, %224 : vector<8x128xf32>
    %cst_93 = arith.constant dense<0.000000e+00> : vector<8xf32>
    %226 = vector.multi_reduction <add>, %225, %cst_93 [1] : vector<8x128xf32> to vector<8xf32>
    %227 = vector.shape_cast %226 : vector<8xf32> to vector<8x1xf32>
    %cst_94 = arith.constant 1.280000e+02 : f32
    %228 = vector.broadcast %cst_94 : f32 to vector<8x1xf32>
    %229 = arith.divf %227, %228 : vector<8x1xf32>
    %cst_95 = arith.constant 9.99999974E-6 : f32
    %230 = vector.broadcast %cst_95 : f32 to vector<8x1xf32>
    %231 = arith.addf %229, %230 : vector<8x1xf32>
    %232 = math.rsqrt %231 : vector<8x1xf32>
    %233 = vector.broadcast %232 : vector<8x1xf32> to vector<8x128xf32>
    %234 = arith.mulf %224, %233 : vector<8x128xf32>
    %235 = vector.broadcast %8 : vector<1x128xf32> to vector<8x128xf32>
    %236 = arith.mulf %234, %235 : vector<8x128xf32>
    %237 = vector.broadcast %9 : vector<1x128xf32> to vector<8x128xf32>
    %238 = arith.addf %236, %237 : vector<8x128xf32>
    %239 = arith.truncf %238 : vector<8x128xf32> to vector<8x128xbf16>
    %cst_96 = arith.constant dense<0.000000e+00> : vector<8x256xf32>
    %240 = tpu.matmul %239, %10, %cst_96 {dimension_numbers = #tpu.dot_dimension_numbers<[1], [0], [0], [1], [0, 0, 1, 1], [], []>} : vector<8x128xbf16>, vector<128x256xbf16>, vector<8x256xf32> -> vector<8x256xf32>
    %241 = vector.broadcast %11 : vector<1x256xf32> to vector<8x256xf32>
    %242 = arith.addf %240, %241 : vector<8x256xf32>
    %cst_97 = arith.constant 5.000000e-01 : f32
    %243 = vector.broadcast %cst_97 : f32 to vector<8x256xf32>
    %244 = arith.mulf %243, %242 : vector<8x256xf32>
    %cst_98 = arith.constant 0.707106769 : f32
    %245 = vector.broadcast %cst_98 : f32 to vector<8x256xf32>
    %246 = arith.mulf %242, %245 : vector<8x256xf32>
    %cst_99 = arith.constant 0.000000e+00 : f32
    %247 = vector.broadcast %cst_99 : f32 to vector<8x256xf32>
    %248 = arith.cmpf oge, %246, %247 : vector<8x256xf32>
    %cst_100 = arith.constant 1.000000e+00 : f32
    %cst_101 = arith.constant -1.000000e+00 : f32
    %249 = vector.broadcast %cst_100 : f32 to vector<8x256xf32>
    %250 = vector.broadcast %cst_101 : f32 to vector<8x256xf32>
    %251 = arith.select %248, %249, %250 : vector<8x256xi1>, vector<8x256xf32>
    %252 = math.absf %246 : vector<8x256xf32>
    %cst_102 = arith.constant 0.327591091 : f32
    %253 = vector.broadcast %cst_102 : f32 to vector<8x256xf32>
    %254 = arith.mulf %253, %252 : vector<8x256xf32>
    %cst_103 = arith.constant 1.000000e+00 : f32
    %255 = vector.broadcast %cst_103 : f32 to vector<8x256xf32>
    %256 = arith.addf %255, %254 : vector<8x256xf32>
    %cst_104 = arith.constant 1.000000e+00 : f32
    %257 = vector.broadcast %cst_104 : f32 to vector<8x256xf32>
    %258 = arith.divf %257, %256 : vector<8x256xf32>
    %cst_105 = arith.constant 1.06140542 : f32
    %259 = vector.broadcast %cst_105 : f32 to vector<8x256xf32>
    %260 = arith.mulf %259, %258 : vector<8x256xf32>
    %cst_106 = arith.constant -1.45315206 : f32
    %261 = vector.broadcast %cst_106 : f32 to vector<8x256xf32>
    %262 = arith.addf %260, %261 : vector<8x256xf32>
    %263 = arith.mulf %262, %258 : vector<8x256xf32>
    %cst_107 = arith.constant 1.42141378 : f32
    %264 = vector.broadcast %cst_107 : f32 to vector<8x256xf32>
    %265 = arith.addf %263, %264 : vector<8x256xf32>
    %266 = arith.mulf %265, %258 : vector<8x256xf32>
    %cst_108 = arith.constant -0.284496725 : f32
    %267 = vector.broadcast %cst_108 : f32 to vector<8x256xf32>
    %268 = arith.addf %266, %267 : vector<8x256xf32>
    %269 = arith.mulf %268, %258 : vector<8x256xf32>
    %cst_109 = arith.constant 0.254829586 : f32
    %270 = vector.broadcast %cst_109 : f32 to vector<8x256xf32>
    %271 = arith.addf %269, %270 : vector<8x256xf32>
    %272 = arith.mulf %271, %258 : vector<8x256xf32>
    %cst_110 = arith.constant 0.000000e+00 : f32
    %273 = vector.broadcast %cst_110 : f32 to vector<8x256xf32>
    %274 = arith.subf %273, %252 : vector<8x256xf32>
    %275 = arith.mulf %274, %252 : vector<8x256xf32>
    %276 = math.exp %275 : vector<8x256xf32>
    %277 = arith.mulf %272, %276 : vector<8x256xf32>
    %cst_111 = arith.constant 1.000000e+00 : f32
    %278 = vector.broadcast %cst_111 : f32 to vector<8x256xf32>
    %279 = arith.subf %278, %277 : vector<8x256xf32>
    %280 = arith.mulf %251, %279 : vector<8x256xf32>
    %cst_112 = arith.constant 1.000000e+00 : f32
    %281 = vector.broadcast %cst_112 : f32 to vector<8x256xf32>
    %282 = arith.addf %281, %280 : vector<8x256xf32>
    %283 = arith.mulf %244, %282 : vector<8x256xf32>
    %284 = arith.truncf %283 : vector<8x256xf32> to vector<8x256xbf16>
    %cst_113 = arith.constant dense<0.000000e+00> : vector<8x128xf32>
    %285 = tpu.matmul %284, %12, %cst_113 {dimension_numbers = #tpu.dot_dimension_numbers<[1], [0], [0], [1], [0, 0, 1, 1], [], []>} : vector<8x256xbf16>, vector<256x128xbf16>, vector<8x128xf32> -> vector<8x128xf32>
    %286 = vector.broadcast %13 : vector<1x128xf32> to vector<8x128xf32>
    %287 = arith.addf %285, %286 : vector<8x128xf32>
    %cst_114 = arith.constant 5.000000e-01 : f32
    %288 = vector.broadcast %cst_114 : f32 to vector<8x128xf32>
    %289 = arith.mulf %288, %287 : vector<8x128xf32>
    %cst_115 = arith.constant 0.707106769 : f32
    %290 = vector.broadcast %cst_115 : f32 to vector<8x128xf32>
    %291 = arith.mulf %287, %290 : vector<8x128xf32>
    %cst_116 = arith.constant 0.000000e+00 : f32
    %292 = vector.broadcast %cst_116 : f32 to vector<8x128xf32>
    %293 = arith.cmpf oge, %291, %292 : vector<8x128xf32>
    %cst_117 = arith.constant 1.000000e+00 : f32
    %cst_118 = arith.constant -1.000000e+00 : f32
    %294 = vector.broadcast %cst_117 : f32 to vector<8x128xf32>
    %295 = vector.broadcast %cst_118 : f32 to vector<8x128xf32>
    %296 = arith.select %293, %294, %295 : vector<8x128xi1>, vector<8x128xf32>
    %297 = math.absf %291 : vector<8x128xf32>
    %cst_119 = arith.constant 0.327591091 : f32
    %298 = vector.broadcast %cst_119 : f32 to vector<8x128xf32>
    %299 = arith.mulf %298, %297 : vector<8x128xf32>
    %cst_120 = arith.constant 1.000000e+00 : f32
    %300 = vector.broadcast %cst_120 : f32 to vector<8x128xf32>
    %301 = arith.addf %300, %299 : vector<8x128xf32>
    %cst_121 = arith.constant 1.000000e+00 : f32
    %302 = vector.broadcast %cst_121 : f32 to vector<8x128xf32>
    %303 = arith.divf %302, %301 : vector<8x128xf32>
    %cst_122 = arith.constant 1.06140542 : f32
    %304 = vector.broadcast %cst_122 : f32 to vector<8x128xf32>
    %305 = arith.mulf %304, %303 : vector<8x128xf32>
    %cst_123 = arith.constant -1.45315206 : f32
    %306 = vector.broadcast %cst_123 : f32 to vector<8x128xf32>
    %307 = arith.addf %305, %306 : vector<8x128xf32>
    %308 = arith.mulf %307, %303 : vector<8x128xf32>
    %cst_124 = arith.constant 1.42141378 : f32
    %309 = vector.broadcast %cst_124 : f32 to vector<8x128xf32>
    %310 = arith.addf %308, %309 : vector<8x128xf32>
    %311 = arith.mulf %310, %303 : vector<8x128xf32>
    %cst_125 = arith.constant -0.284496725 : f32
    %312 = vector.broadcast %cst_125 : f32 to vector<8x128xf32>
    %313 = arith.addf %311, %312 : vector<8x128xf32>
    %314 = arith.mulf %313, %303 : vector<8x128xf32>
    %cst_126 = arith.constant 0.254829586 : f32
    %315 = vector.broadcast %cst_126 : f32 to vector<8x128xf32>
    %316 = arith.addf %314, %315 : vector<8x128xf32>
    %317 = arith.mulf %316, %303 : vector<8x128xf32>
    %cst_127 = arith.constant 0.000000e+00 : f32
    %318 = vector.broadcast %cst_127 : f32 to vector<8x128xf32>
    %319 = arith.subf %318, %297 : vector<8x128xf32>
    %320 = arith.mulf %319, %297 : vector<8x128xf32>
    %321 = math.exp %320 : vector<8x128xf32>
    %322 = arith.mulf %317, %321 : vector<8x128xf32>
    %cst_128 = arith.constant 1.000000e+00 : f32
    %323 = vector.broadcast %cst_128 : f32 to vector<8x128xf32>
    %324 = arith.subf %323, %322 : vector<8x128xf32>
    %325 = arith.mulf %296, %324 : vector<8x128xf32>
    %cst_129 = arith.constant 1.000000e+00 : f32
    %326 = vector.broadcast %cst_129 : f32 to vector<8x128xf32>
    %327 = arith.addf %326, %325 : vector<8x128xf32>
    %328 = arith.mulf %289, %327 : vector<8x128xf32>
    %329 = arith.addf %328, %238 : vector<8x128xf32>
    %cst_130 = arith.constant dense<0.000000e+00> : vector<8xf32>
    %330 = vector.multi_reduction <add>, %329, %cst_130 [1] : vector<8x128xf32> to vector<8xf32>
    %331 = vector.shape_cast %330 : vector<8xf32> to vector<8x1xf32>
    %cst_131 = arith.constant 1.280000e+02 : f32
    %332 = vector.broadcast %cst_131 : f32 to vector<8x1xf32>
    %333 = arith.divf %331, %332 : vector<8x1xf32>
    %334 = vector.broadcast %333 : vector<8x1xf32> to vector<8x128xf32>
    %335 = arith.subf %329, %334 : vector<8x128xf32>
    %336 = arith.mulf %335, %335 : vector<8x128xf32>
    %cst_132 = arith.constant dense<0.000000e+00> : vector<8xf32>
    %337 = vector.multi_reduction <add>, %336, %cst_132 [1] : vector<8x128xf32> to vector<8xf32>
    %338 = vector.shape_cast %337 : vector<8xf32> to vector<8x1xf32>
    %cst_133 = arith.constant 1.280000e+02 : f32
    %339 = vector.broadcast %cst_133 : f32 to vector<8x1xf32>
    %340 = arith.divf %338, %339 : vector<8x1xf32>
    %cst_134 = arith.constant 9.99999974E-6 : f32
    %341 = vector.broadcast %cst_134 : f32 to vector<8x1xf32>
    %342 = arith.addf %340, %341 : vector<8x1xf32>
    %343 = math.rsqrt %342 : vector<8x1xf32>
    %344 = vector.broadcast %343 : vector<8x1xf32> to vector<8x128xf32>
    %345 = arith.mulf %335, %344 : vector<8x128xf32>
    %346 = vector.broadcast %14 : vector<1x128xf32> to vector<8x128xf32>
    %347 = arith.mulf %345, %346 : vector<8x128xf32>
    %348 = vector.broadcast %15 : vector<1x128xf32> to vector<8x128xf32>
    %349 = arith.addf %347, %348 : vector<8x128xf32>
    %c0_135 = arith.constant 0 : index
    %c0_136 = arith.constant 0 : index
    %c0_137 = arith.constant 0 : index
    %350 = vector.load %arg25[%c0_135, %c0_136, %c0_137] : memref<1x8x128xf32, #tpu.memory_space<vmem>>, vector<1x8x128xf32>
    %351 = vector.shape_cast %350 : vector<1x8x128xf32> to vector<8x128xf32>
    %352 = vector.shape_cast %349 : vector<8x128xf32> to vector<1x8x128xf32>
    tpu.vector_store %arg25[%c0_135, %c0_136, %c0_137], %352 {strides = array<i32>} : memref<1x8x128xf32, #tpu.memory_space<vmem>>, vector<1x8x128xf32>,
    %c0_138 = arith.constant 0 : index
    %c0_139 = arith.constant 0 : index
    %c0_140 = arith.constant 0 : index
    %353 = vector.load %arg2[%c0_138, %c0_139, %c0_140] : memref<1x16x128xf32, #tpu.memory_space<vmem>>, vector<1x16x128xf32>
    %354 = vector.shape_cast %353 : vector<1x16x128xf32> to vector<16x128xf32>
    %c0_141 = arith.constant 0 : index
    %c0_142 = arith.constant 0 : index
    %c0_143 = arith.constant 0 : index
    %355 = vector.load %arg3[%c0_141, %c0_142, %c0_143] : memref<1x8x128xf32, #tpu.memory_space<vmem>>, vector<1x8x128xf32>
    %356 = vector.shape_cast %355 : vector<1x8x128xf32> to vector<8x128xf32>
    %c0_144 = arith.constant 0 : index
    %c0_145 = arith.constant 0 : index
    %c0_146 = arith.constant 0 : index
    %357 = vector.load %arg7[%c0_144, %c0_145, %c0_146] : memref<1x16x1xf32, #tpu.memory_space<vmem>>, vector<1x16x1xf32>
    %358 = vector.shape_cast %357 : vector<1x16x1xf32> to vector<16x1xf32>
    %c0_147 = arith.constant 0 : index
    %c0_148 = arith.constant 0 : index
    %c0_149 = arith.constant 0 : index
    %359 = vector.load %arg6[%c0_147, %c0_148, %c0_149] : memref<1x1x8xf32, #tpu.memory_space<vmem>>, vector<1x1x8xf32>
    %360 = vector.shape_cast %359 : vector<1x1x8xf32> to vector<1x8xf32>
    %361 = arith.truncf %354 : vector<16x128xf32> to vector<16x128xbf16>
    %362 = arith.truncf %356 : vector<8x128xf32> to vector<8x128xbf16>
    %363 = vector.broadcast %358 : vector<16x1xf32> to vector<16x8xf32>
    %364 = vector.broadcast %360 : vector<1x8xf32> to vector<16x8xf32>
    %365 = arith.addf %363, %364 : vector<16x8xf32>
    %cst_150 = arith.constant 5.000000e-01 : f32
    %366 = vector.broadcast %cst_150 : f32 to vector<16x8xf32>
    %367 = arith.cmpf ogt, %365, %366 : vector<16x8xf32>
    %cst_151 = arith.constant 0.000000e+00 : f32
    %368 = vector.broadcast %cst_151 : f32 to vector<16x128xf32>
    %369 = vector.extract_strided_slice %0 {offsets = [0, 0, 0], sizes = [1, 128, 32], strides = [1, 1, 1]} : vector<4x128x32xbf16> to vector<1x128x32xbf16>
    %370 = vector.shape_cast %369 : vector<1x128x32xbf16> to vector<128x32xbf16>
    %cst_152 = arith.constant dense<0.000000e+00> : vector<16x32xf32>
    %371 = tpu.matmul %361, %370, %cst_152 {dimension_numbers = #tpu.dot_dimension_numbers<[1], [0], [0], [1], [0, 0, 1, 1], [], []>} : vector<16x128xbf16>, vector<128x32xbf16>, vector<16x32xf32> -> vector<16x32xf32>
    %372 = vector.extract_strided_slice %1 {offsets = [0, 0, 0], sizes = [1, 1, 32], strides = [1, 1, 1]} : vector<4x1x32xf32> to vector<1x1x32xf32>
    %373 = vector.shape_cast %372 : vector<1x1x32xf32> to vector<1x32xf32>
    %374 = vector.broadcast %373 : vector<1x32xf32> to vector<16x32xf32>
    %375 = arith.addf %371, %374 : vector<16x32xf32>
    %376 = vector.extract_strided_slice %2 {offsets = [0, 0, 0], sizes = [1, 128, 32], strides = [1, 1, 1]} : vector<4x128x32xbf16> to vector<1x128x32xbf16>
    %377 = vector.shape_cast %376 : vector<1x128x32xbf16> to vector<128x32xbf16>
    %cst_153 = arith.constant dense<0.000000e+00> : vector<8x32xf32>
    %378 = tpu.matmul %362, %377, %cst_153 {dimension_numbers = #tpu.dot_dimension_numbers<[1], [0], [0], [1], [0, 0, 1, 1], [], []>} : vector<8x128xbf16>, vector<128x32xbf16>, vector<8x32xf32> -> vector<8x32xf32>
    %379 = vector.extract_strided_slice %3 {offsets = [0, 0, 0], sizes = [1, 1, 32], strides = [1, 1, 1]} : vector<4x1x32xf32> to vector<1x1x32xf32>
    %380 = vector.shape_cast %379 : vector<1x1x32xf32> to vector<1x32xf32>
    %381 = vector.broadcast %380 : vector<1x32xf32> to vector<8x32xf32>
    %382 = arith.addf %378, %381 : vector<8x32xf32>
    %383 = vector.extract_strided_slice %4 {offsets = [0, 0, 0], sizes = [1, 128, 32], strides = [1, 1, 1]} : vector<4x128x32xbf16> to vector<1x128x32xbf16>
    %384 = vector.shape_cast %383 : vector<1x128x32xbf16> to vector<128x32xbf16>
    %cst_154 = arith.constant dense<0.000000e+00> : vector<8x32xf32>
    %385 = tpu.matmul %362, %384, %cst_154 {dimension_numbers = #tpu.dot_dimension_numbers<[1], [0], [0], [1], [0, 0, 1, 1], [], []>} : vector<8x128xbf16>, vector<128x32xbf16>, vector<8x32xf32> -> vector<8x32xf32>
    %386 = vector.extract_strided_slice %5 {offsets = [0, 0, 0], sizes = [1, 1, 32], strides = [1, 1, 1]} : vector<4x1x32xf32> to vector<1x1x32xf32>
    %387 = vector.shape_cast %386 : vector<1x1x32xf32> to vector<1x32xf32>
    %388 = vector.broadcast %387 : vector<1x32xf32> to vector<8x32xf32>
    %389 = arith.addf %385, %388 : vector<8x32xf32>
    %390 = arith.truncf %375 : vector<16x32xf32> to vector<16x32xbf16>
    %391 = arith.truncf %382 : vector<8x32xf32> to vector<8x32xbf16>
    %cst_155 = arith.constant dense<0.000000e+00> : vector<16x8xf32>
    %392 = tpu.matmul %390, %391, %cst_155 {dimension_numbers = #tpu.dot_dimension_numbers<[1], [1], [0], [0], [0, 0, 1, 0], [], []>} : vector<16x32xbf16>, vector<8x32xbf16>, vector<16x8xf32> -> vector<16x8xf32>
    %cst_156 = arith.constant 0.176776692 : f32
    %393 = vector.broadcast %cst_156 : f32 to vector<16x8xf32>
    %394 = arith.mulf %392, %393 : vector<16x8xf32>
    %cst_157 = arith.constant -1.000000e+09 : f32
    %395 = vector.broadcast %cst_157 : f32 to vector<16x8xf32>
    %396 = arith.select %367, %395, %394 : vector<16x8xi1>, vector<16x8xf32>
    %cst_158 = arith.constant dense<0xFF800000> : vector<16xf32>
    %397 = vector.multi_reduction <maximumf>, %396, %cst_158 [1] : vector<16x8xf32> to vector<16xf32>
    %398 = vector.shape_cast %397 : vector<16xf32> to vector<16x1xf32>
    %399 = vector.broadcast %398 : vector<16x1xf32> to vector<16x8xf32>
    %400 = arith.subf %396, %399 : vector<16x8xf32>
    %401 = math.exp %400 : vector<16x8xf32>
    %cst_159 = arith.constant dense<0.000000e+00> : vector<16xf32>
    %402 = vector.multi_reduction <add>, %401, %cst_159 [1] : vector<16x8xf32> to vector<16xf32>
    %403 = vector.shape_cast %402 : vector<16xf32> to vector<16x1xf32>
    %404 = tpu.reciprocal %403 {approx = true} : vector<16x1xf32> -> vector<16x1xf32>
    %405 = vector.broadcast %404 : vector<16x1xf32> to vector<16x8xf32>
    %406 = arith.mulf %401, %405 : vector<16x8xf32>
    %407 = arith.truncf %406 : vector<16x8xf32> to vector<16x8xbf16>
    %408 = arith.truncf %389 : vector<8x32xf32> to vector<8x32xbf16>
    %cst_160 = arith.constant dense<0.000000e+00> : vector<16x32xf32>
    %409 = tpu.matmul %407, %408, %cst_160 {dimension_numbers = #tpu.dot_dimension_numbers<[1], [0], [0], [1], [0, 0, 1, 1], [], []>} : vector<16x8xbf16>, vector<8x32xbf16>, vector<16x32xf32> -> vector<16x32xf32>
    %410 = arith.truncf %409 : vector<16x32xf32> to vector<16x32xbf16>
    %411 = vector.extract_strided_slice %6 {offsets = [0, 0, 0], sizes = [1, 32, 128], strides = [1, 1, 1]} : vector<4x32x128xbf16> to vector<1x32x128xbf16>
    %412 = vector.shape_cast %411 : vector<1x32x128xbf16> to vector<32x128xbf16>
    %cst_161 = arith.constant dense<0.000000e+00> : vector<16x128xf32>
    %413 = tpu.matmul %410, %412, %cst_161 {dimension_numbers = #tpu.dot_dimension_numbers<[1], [0], [0], [1], [0, 0, 1, 1], [], []>} : vector<16x32xbf16>, vector<32x128xbf16>, vector<16x128xf32> -> vector<16x128xf32>
    %414 = arith.addf %368, %413 : vector<16x128xf32>
    %415 = vector.extract_strided_slice %0 {offsets = [1, 0, 0], sizes = [1, 128, 32], strides = [1, 1, 1]} : vector<4x128x32xbf16> to vector<1x128x32xbf16>
    %416 = vector.shape_cast %415 : vector<1x128x32xbf16> to vector<128x32xbf16>
    %cst_162 = arith.constant dense<0.000000e+00> : vector<16x32xf32>
    %417 = tpu.matmul %361, %416, %cst_162 {dimension_numbers = #tpu.dot_dimension_numbers<[1], [0], [0], [1], [0, 0, 1, 1], [], []>} : vector<16x128xbf16>, vector<128x32xbf16>, vector<16x32xf32> -> vector<16x32xf32>
    %418 = vector.extract_strided_slice %1 {offsets = [1, 0, 0], sizes = [1, 1, 32], strides = [1, 1, 1]} : vector<4x1x32xf32> to vector<1x1x32xf32>
    %419 = vector.shape_cast %418 : vector<1x1x32xf32> to vector<1x32xf32>
    %420 = vector.broadcast %419 : vector<1x32xf32> to vector<16x32xf32>
    %421 = arith.addf %417, %420 : vector<16x32xf32>
    %422 = vector.extract_strided_slice %2 {offsets = [1, 0, 0], sizes = [1, 128, 32], strides = [1, 1, 1]} : vector<4x128x32xbf16> to vector<1x128x32xbf16>
    %423 = vector.shape_cast %422 : vector<1x128x32xbf16> to vector<128x32xbf16>
    %cst_163 = arith.constant dense<0.000000e+00> : vector<8x32xf32>
    %424 = tpu.matmul %362, %423, %cst_163 {dimension_numbers = #tpu.dot_dimension_numbers<[1], [0], [0], [1], [0, 0, 1, 1], [], []>} : vector<8x128xbf16>, vector<128x32xbf16>, vector<8x32xf32> -> vector<8x32xf32>
    %425 = vector.extract_strided_slice %3 {offsets = [1, 0, 0], sizes = [1, 1, 32], strides = [1, 1, 1]} : vector<4x1x32xf32> to vector<1x1x32xf32>
    %426 = vector.shape_cast %425 : vector<1x1x32xf32> to vector<1x32xf32>
    %427 = vector.broadcast %426 : vector<1x32xf32> to vector<8x32xf32>
    %428 = arith.addf %424, %427 : vector<8x32xf32>
    %429 = vector.extract_strided_slice %4 {offsets = [1, 0, 0], sizes = [1, 128, 32], strides = [1, 1, 1]} : vector<4x128x32xbf16> to vector<1x128x32xbf16>
    %430 = vector.shape_cast %429 : vector<1x128x32xbf16> to vector<128x32xbf16>
    %cst_164 = arith.constant dense<0.000000e+00> : vector<8x32xf32>
    %431 = tpu.matmul %362, %430, %cst_164 {dimension_numbers = #tpu.dot_dimension_numbers<[1], [0], [0], [1], [0, 0, 1, 1], [], []>} : vector<8x128xbf16>, vector<128x32xbf16>, vector<8x32xf32> -> vector<8x32xf32>
    %432 = vector.extract_strided_slice %5 {offsets = [1, 0, 0], sizes = [1, 1, 32], strides = [1, 1, 1]} : vector<4x1x32xf32> to vector<1x1x32xf32>
    %433 = vector.shape_cast %432 : vector<1x1x32xf32> to vector<1x32xf32>
    %434 = vector.broadcast %433 : vector<1x32xf32> to vector<8x32xf32>
    %435 = arith.addf %431, %434 : vector<8x32xf32>
    %436 = arith.truncf %421 : vector<16x32xf32> to vector<16x32xbf16>
    %437 = arith.truncf %428 : vector<8x32xf32> to vector<8x32xbf16>
    %cst_165 = arith.constant dense<0.000000e+00> : vector<16x8xf32>
    %438 = tpu.matmul %436, %437, %cst_165 {dimension_numbers = #tpu.dot_dimension_numbers<[1], [1], [0], [0], [0, 0, 1, 0], [], []>} : vector<16x32xbf16>, vector<8x32xbf16>, vector<16x8xf32> -> vector<16x8xf32>
    %cst_166 = arith.constant 0.176776692 : f32
    %439 = vector.broadcast %cst_166 : f32 to vector<16x8xf32>
    %440 = arith.mulf %438, %439 : vector<16x8xf32>
    %cst_167 = arith.constant -1.000000e+09 : f32
    %441 = vector.broadcast %cst_167 : f32 to vector<16x8xf32>
    %442 = arith.select %367, %441, %440 : vector<16x8xi1>, vector<16x8xf32>
    %cst_168 = arith.constant dense<0xFF800000> : vector<16xf32>
    %443 = vector.multi_reduction <maximumf>, %442, %cst_168 [1] : vector<16x8xf32> to vector<16xf32>
    %444 = vector.shape_cast %443 : vector<16xf32> to vector<16x1xf32>
    %445 = vector.broadcast %444 : vector<16x1xf32> to vector<16x8xf32>
    %446 = arith.subf %442, %445 : vector<16x8xf32>
    %447 = math.exp %446 : vector<16x8xf32>
    %cst_169 = arith.constant dense<0.000000e+00> : vector<16xf32>
    %448 = vector.multi_reduction <add>, %447, %cst_169 [1] : vector<16x8xf32> to vector<16xf32>
    %449 = vector.shape_cast %448 : vector<16xf32> to vector<16x1xf32>
    %450 = tpu.reciprocal %449 {approx = true} : vector<16x1xf32> -> vector<16x1xf32>
    %451 = vector.broadcast %450 : vector<16x1xf32> to vector<16x8xf32>
    %452 = arith.mulf %447, %451 : vector<16x8xf32>
    %453 = arith.truncf %452 : vector<16x8xf32> to vector<16x8xbf16>
    %454 = arith.truncf %435 : vector<8x32xf32> to vector<8x32xbf16>
    %cst_170 = arith.constant dense<0.000000e+00> : vector<16x32xf32>
    %455 = tpu.matmul %453, %454, %cst_170 {dimension_numbers = #tpu.dot_dimension_numbers<[1], [0], [0], [1], [0, 0, 1, 1], [], []>} : vector<16x8xbf16>, vector<8x32xbf16>, vector<16x32xf32> -> vector<16x32xf32>
    %456 = arith.truncf %455 : vector<16x32xf32> to vector<16x32xbf16>
    %457 = vector.extract_strided_slice %6 {offsets = [1, 0, 0], sizes = [1, 32, 128], strides = [1, 1, 1]} : vector<4x32x128xbf16> to vector<1x32x128xbf16>
    %458 = vector.shape_cast %457 : vector<1x32x128xbf16> to vector<32x128xbf16>
    %cst_171 = arith.constant dense<0.000000e+00> : vector<16x128xf32>
    %459 = tpu.matmul %456, %458, %cst_171 {dimension_numbers = #tpu.dot_dimension_numbers<[1], [0], [0], [1], [0, 0, 1, 1], [], []>} : vector<16x32xbf16>, vector<32x128xbf16>, vector<16x128xf32> -> vector<16x128xf32>
    %460 = arith.addf %414, %459 : vector<16x128xf32>
    %461 = vector.extract_strided_slice %0 {offsets = [2, 0, 0], sizes = [1, 128, 32], strides = [1, 1, 1]} : vector<4x128x32xbf16> to vector<1x128x32xbf16>
    %462 = vector.shape_cast %461 : vector<1x128x32xbf16> to vector<128x32xbf16>
    %cst_172 = arith.constant dense<0.000000e+00> : vector<16x32xf32>
    %463 = tpu.matmul %361, %462, %cst_172 {dimension_numbers = #tpu.dot_dimension_numbers<[1], [0], [0], [1], [0, 0, 1, 1], [], []>} : vector<16x128xbf16>, vector<128x32xbf16>, vector<16x32xf32> -> vector<16x32xf32>
    %464 = vector.extract_strided_slice %1 {offsets = [2, 0, 0], sizes = [1, 1, 32], strides = [1, 1, 1]} : vector<4x1x32xf32> to vector<1x1x32xf32>
    %465 = vector.shape_cast %464 : vector<1x1x32xf32> to vector<1x32xf32>
    %466 = vector.broadcast %465 : vector<1x32xf32> to vector<16x32xf32>
    %467 = arith.addf %463, %466 : vector<16x32xf32>
    %468 = vector.extract_strided_slice %2 {offsets = [2, 0, 0], sizes = [1, 128, 32], strides = [1, 1, 1]} : vector<4x128x32xbf16> to vector<1x128x32xbf16>
    %469 = vector.shape_cast %468 : vector<1x128x32xbf16> to vector<128x32xbf16>
    %cst_173 = arith.constant dense<0.000000e+00> : vector<8x32xf32>
    %470 = tpu.matmul %362, %469, %cst_173 {dimension_numbers = #tpu.dot_dimension_numbers<[1], [0], [0], [1], [0, 0, 1, 1], [], []>} : vector<8x128xbf16>, vector<128x32xbf16>, vector<8x32xf32> -> vector<8x32xf32>
    %471 = vector.extract_strided_slice %3 {offsets = [2, 0, 0], sizes = [1, 1, 32], strides = [1, 1, 1]} : vector<4x1x32xf32> to vector<1x1x32xf32>
    %472 = vector.shape_cast %471 : vector<1x1x32xf32> to vector<1x32xf32>
    %473 = vector.broadcast %472 : vector<1x32xf32> to vector<8x32xf32>
    %474 = arith.addf %470, %473 : vector<8x32xf32>
    %475 = vector.extract_strided_slice %4 {offsets = [2, 0, 0], sizes = [1, 128, 32], strides = [1, 1, 1]} : vector<4x128x32xbf16> to vector<1x128x32xbf16>
    %476 = vector.shape_cast %475 : vector<1x128x32xbf16> to vector<128x32xbf16>
    %cst_174 = arith.constant dense<0.000000e+00> : vector<8x32xf32>
    %477 = tpu.matmul %362, %476, %cst_174 {dimension_numbers = #tpu.dot_dimension_numbers<[1], [0], [0], [1], [0, 0, 1, 1], [], []>} : vector<8x128xbf16>, vector<128x32xbf16>, vector<8x32xf32> -> vector<8x32xf32>
    %478 = vector.extract_strided_slice %5 {offsets = [2, 0, 0], sizes = [1, 1, 32], strides = [1, 1, 1]} : vector<4x1x32xf32> to vector<1x1x32xf32>
    %479 = vector.shape_cast %478 : vector<1x1x32xf32> to vector<1x32xf32>
    %480 = vector.broadcast %479 : vector<1x32xf32> to vector<8x32xf32>
    %481 = arith.addf %477, %480 : vector<8x32xf32>
    %482 = arith.truncf %467 : vector<16x32xf32> to vector<16x32xbf16>
    %483 = arith.truncf %474 : vector<8x32xf32> to vector<8x32xbf16>
    %cst_175 = arith.constant dense<0.000000e+00> : vector<16x8xf32>
    %484 = tpu.matmul %482, %483, %cst_175 {dimension_numbers = #tpu.dot_dimension_numbers<[1], [1], [0], [0], [0, 0, 1, 0], [], []>} : vector<16x32xbf16>, vector<8x32xbf16>, vector<16x8xf32> -> vector<16x8xf32>
    %cst_176 = arith.constant 0.176776692 : f32
    %485 = vector.broadcast %cst_176 : f32 to vector<16x8xf32>
    %486 = arith.mulf %484, %485 : vector<16x8xf32>
    %cst_177 = arith.constant -1.000000e+09 : f32
    %487 = vector.broadcast %cst_177 : f32 to vector<16x8xf32>
    %488 = arith.select %367, %487, %486 : vector<16x8xi1>, vector<16x8xf32>
    %cst_178 = arith.constant dense<0xFF800000> : vector<16xf32>
    %489 = vector.multi_reduction <maximumf>, %488, %cst_178 [1] : vector<16x8xf32> to vector<16xf32>
    %490 = vector.shape_cast %489 : vector<16xf32> to vector<16x1xf32>
    %491 = vector.broadcast %490 : vector<16x1xf32> to vector<16x8xf32>
    %492 = arith.subf %488, %491 : vector<16x8xf32>
    %493 = math.exp %492 : vector<16x8xf32>
    %cst_179 = arith.constant dense<0.000000e+00> : vector<16xf32>
    %494 = vector.multi_reduction <add>, %493, %cst_179 [1] : vector<16x8xf32> to vector<16xf32>
    %495 = vector.shape_cast %494 : vector<16xf32> to vector<16x1xf32>
    %496 = tpu.reciprocal %495 {approx = true} : vector<16x1xf32> -> vector<16x1xf32>
    %497 = vector.broadcast %496 : vector<16x1xf32> to vector<16x8xf32>
    %498 = arith.mulf %493, %497 : vector<16x8xf32>
    %499 = arith.truncf %498 : vector<16x8xf32> to vector<16x8xbf16>
    %500 = arith.truncf %481 : vector<8x32xf32> to vector<8x32xbf16>
    %cst_180 = arith.constant dense<0.000000e+00> : vector<16x32xf32>
    %501 = tpu.matmul %499, %500, %cst_180 {dimension_numbers = #tpu.dot_dimension_numbers<[1], [0], [0], [1], [0, 0, 1, 1], [], []>} : vector<16x8xbf16>, vector<8x32xbf16>, vector<16x32xf32> -> vector<16x32xf32>
    %502 = arith.truncf %501 : vector<16x32xf32> to vector<16x32xbf16>
    %503 = vector.extract_strided_slice %6 {offsets = [2, 0, 0], sizes = [1, 32, 128], strides = [1, 1, 1]} : vector<4x32x128xbf16> to vector<1x32x128xbf16>
    %504 = vector.shape_cast %503 : vector<1x32x128xbf16> to vector<32x128xbf16>
    %cst_181 = arith.constant dense<0.000000e+00> : vector<16x128xf32>
    %505 = tpu.matmul %502, %504, %cst_181 {dimension_numbers = #tpu.dot_dimension_numbers<[1], [0], [0], [1], [0, 0, 1, 1], [], []>} : vector<16x32xbf16>, vector<32x128xbf16>, vector<16x128xf32> -> vector<16x128xf32>
    %506 = arith.addf %460, %505 : vector<16x128xf32>
    %507 = vector.extract_strided_slice %0 {offsets = [3, 0, 0], sizes = [1, 128, 32], strides = [1, 1, 1]} : vector<4x128x32xbf16> to vector<1x128x32xbf16>
    %508 = vector.shape_cast %507 : vector<1x128x32xbf16> to vector<128x32xbf16>
    %cst_182 = arith.constant dense<0.000000e+00> : vector<16x32xf32>
    %509 = tpu.matmul %361, %508, %cst_182 {dimension_numbers = #tpu.dot_dimension_numbers<[1], [0], [0], [1], [0, 0, 1, 1], [], []>} : vector<16x128xbf16>, vector<128x32xbf16>, vector<16x32xf32> -> vector<16x32xf32>
    %510 = vector.extract_strided_slice %1 {offsets = [3, 0, 0], sizes = [1, 1, 32], strides = [1, 1, 1]} : vector<4x1x32xf32> to vector<1x1x32xf32>
    %511 = vector.shape_cast %510 : vector<1x1x32xf32> to vector<1x32xf32>
    %512 = vector.broadcast %511 : vector<1x32xf32> to vector<16x32xf32>
    %513 = arith.addf %509, %512 : vector<16x32xf32>
    %514 = vector.extract_strided_slice %2 {offsets = [3, 0, 0], sizes = [1, 128, 32], strides = [1, 1, 1]} : vector<4x128x32xbf16> to vector<1x128x32xbf16>
    %515 = vector.shape_cast %514 : vector<1x128x32xbf16> to vector<128x32xbf16>
    %cst_183 = arith.constant dense<0.000000e+00> : vector<8x32xf32>
    %516 = tpu.matmul %362, %515, %cst_183 {dimension_numbers = #tpu.dot_dimension_numbers<[1], [0], [0], [1], [0, 0, 1, 1], [], []>} : vector<8x128xbf16>, vector<128x32xbf16>, vector<8x32xf32> -> vector<8x32xf32>
    %517 = vector.extract_strided_slice %3 {offsets = [3, 0, 0], sizes = [1, 1, 32], strides = [1, 1, 1]} : vector<4x1x32xf32> to vector<1x1x32xf32>
    %518 = vector.shape_cast %517 : vector<1x1x32xf32> to vector<1x32xf32>
    %519 = vector.broadcast %518 : vector<1x32xf32> to vector<8x32xf32>
    %520 = arith.addf %516, %519 : vector<8x32xf32>
    %521 = vector.extract_strided_slice %4 {offsets = [3, 0, 0], sizes = [1, 128, 32], strides = [1, 1, 1]} : vector<4x128x32xbf16> to vector<1x128x32xbf16>
    %522 = vector.shape_cast %521 : vector<1x128x32xbf16> to vector<128x32xbf16>
    %cst_184 = arith.constant dense<0.000000e+00> : vector<8x32xf32>
    %523 = tpu.matmul %362, %522, %cst_184 {dimension_numbers = #tpu.dot_dimension_numbers<[1], [0], [0], [1], [0, 0, 1, 1], [], []>} : vector<8x128xbf16>, vector<128x32xbf16>, vector<8x32xf32> -> vector<8x32xf32>
    %524 = vector.extract_strided_slice %5 {offsets = [3, 0, 0], sizes = [1, 1, 32], strides = [1, 1, 1]} : vector<4x1x32xf32> to vector<1x1x32xf32>
    %525 = vector.shape_cast %524 : vector<1x1x32xf32> to vector<1x32xf32>
    %526 = vector.broadcast %525 : vector<1x32xf32> to vector<8x32xf32>
    %527 = arith.addf %523, %526 : vector<8x32xf32>
    %528 = arith.truncf %513 : vector<16x32xf32> to vector<16x32xbf16>
    %529 = arith.truncf %520 : vector<8x32xf32> to vector<8x32xbf16>
    %cst_185 = arith.constant dense<0.000000e+00> : vector<16x8xf32>
    %530 = tpu.matmul %528, %529, %cst_185 {dimension_numbers = #tpu.dot_dimension_numbers<[1], [1], [0], [0], [0, 0, 1, 0], [], []>} : vector<16x32xbf16>, vector<8x32xbf16>, vector<16x8xf32> -> vector<16x8xf32>
    %cst_186 = arith.constant 0.176776692 : f32
    %531 = vector.broadcast %cst_186 : f32 to vector<16x8xf32>
    %532 = arith.mulf %530, %531 : vector<16x8xf32>
    %cst_187 = arith.constant -1.000000e+09 : f32
    %533 = vector.broadcast %cst_187 : f32 to vector<16x8xf32>
    %534 = arith.select %367, %533, %532 : vector<16x8xi1>, vector<16x8xf32>
    %cst_188 = arith.constant dense<0xFF800000> : vector<16xf32>
    %535 = vector.multi_reduction <maximumf>, %534, %cst_188 [1] : vector<16x8xf32> to vector<16xf32>
    %536 = vector.shape_cast %535 : vector<16xf32> to vector<16x1xf32>
    %537 = vector.broadcast %536 : vector<16x1xf32> to vector<16x8xf32>
    %538 = arith.subf %534, %537 : vector<16x8xf32>
    %539 = math.exp %538 : vector<16x8xf32>
    %cst_189 = arith.constant dense<0.000000e+00> : vector<16xf32>
    %540 = vector.multi_reduction <add>, %539, %cst_189 [1] : vector<16x8xf32> to vector<16xf32>
    %541 = vector.shape_cast %540 : vector<16xf32> to vector<16x1xf32>
    %542 = tpu.reciprocal %541 {approx = true} : vector<16x1xf32> -> vector<16x1xf32>
    %543 = vector.broadcast %542 : vector<16x1xf32> to vector<16x8xf32>
    %544 = arith.mulf %539, %543 : vector<16x8xf32>
    %545 = arith.truncf %544 : vector<16x8xf32> to vector<16x8xbf16>
    %546 = arith.truncf %527 : vector<8x32xf32> to vector<8x32xbf16>
    %cst_190 = arith.constant dense<0.000000e+00> : vector<16x32xf32>
    %547 = tpu.matmul %545, %546, %cst_190 {dimension_numbers = #tpu.dot_dimension_numbers<[1], [0], [0], [1], [0, 0, 1, 1], [], []>} : vector<16x8xbf16>, vector<8x32xbf16>, vector<16x32xf32> -> vector<16x32xf32>
    %548 = arith.truncf %547 : vector<16x32xf32> to vector<16x32xbf16>
    %549 = vector.extract_strided_slice %6 {offsets = [3, 0, 0], sizes = [1, 32, 128], strides = [1, 1, 1]} : vector<4x32x128xbf16> to vector<1x32x128xbf16>
    %550 = vector.shape_cast %549 : vector<1x32x128xbf16> to vector<32x128xbf16>
    %cst_191 = arith.constant dense<0.000000e+00> : vector<16x128xf32>
    %551 = tpu.matmul %548, %550, %cst_191 {dimension_numbers = #tpu.dot_dimension_numbers<[1], [0], [0], [1], [0, 0, 1, 1], [], []>} : vector<16x32xbf16>, vector<32x128xbf16>, vector<16x128xf32> -> vector<16x128xf32>
    %552 = arith.addf %506, %551 : vector<16x128xf32>
    %553 = vector.broadcast %7 : vector<1x128xf32> to vector<16x128xf32>
    %554 = arith.addf %552, %553 : vector<16x128xf32>
    %555 = arith.addf %554, %354 : vector<16x128xf32>
    %cst_192 = arith.constant dense<0.000000e+00> : vector<16xf32>
    %556 = vector.multi_reduction <add>, %555, %cst_192 [1] : vector<16x128xf32> to vector<16xf32>
    %557 = vector.shape_cast %556 : vector<16xf32> to vector<16x1xf32>
    %cst_193 = arith.constant 1.280000e+02 : f32
    %558 = vector.broadcast %cst_193 : f32 to vector<16x1xf32>
    %559 = arith.divf %557, %558 : vector<16x1xf32>
    %560 = vector.broadcast %559 : vector<16x1xf32> to vector<16x128xf32>
    %561 = arith.subf %555, %560 : vector<16x128xf32>
    %562 = arith.mulf %561, %561 : vector<16x128xf32>
    %cst_194 = arith.constant dense<0.000000e+00> : vector<16xf32>
    %563 = vector.multi_reduction <add>, %562, %cst_194 [1] : vector<16x128xf32> to vector<16xf32>
    %564 = vector.shape_cast %563 : vector<16xf32> to vector<16x1xf32>
    %cst_195 = arith.constant 1.280000e+02 : f32
    %565 = vector.broadcast %cst_195 : f32 to vector<16x1xf32>
    %566 = arith.divf %564, %565 : vector<16x1xf32>
    %cst_196 = arith.constant 9.99999974E-6 : f32
    %567 = vector.broadcast %cst_196 : f32 to vector<16x1xf32>
    %568 = arith.addf %566, %567 : vector<16x1xf32>
    %569 = math.rsqrt %568 : vector<16x1xf32>
    %570 = vector.broadcast %569 : vector<16x1xf32> to vector<16x128xf32>
    %571 = arith.mulf %561, %570 : vector<16x128xf32>
    %572 = vector.broadcast %8 : vector<1x128xf32> to vector<16x128xf32>
    %573 = arith.mulf %571, %572 : vector<16x128xf32>
    %574 = vector.broadcast %9 : vector<1x128xf32> to vector<16x128xf32>
    %575 = arith.addf %573, %574 : vector<16x128xf32>
    %576 = arith.truncf %575 : vector<16x128xf32> to vector<16x128xbf16>
    %cst_197 = arith.constant dense<0.000000e+00> : vector<16x256xf32>
    %577 = tpu.matmul %576, %10, %cst_197 {dimension_numbers = #tpu.dot_dimension_numbers<[1], [0], [0], [1], [0, 0, 1, 1], [], []>} : vector<16x128xbf16>, vector<128x256xbf16>, vector<16x256xf32> -> vector<16x256xf32>
    %578 = vector.broadcast %11 : vector<1x256xf32> to vector<16x256xf32>
    %579 = arith.addf %577, %578 : vector<16x256xf32>
    %cst_198 = arith.constant 5.000000e-01 : f32
    %580 = vector.broadcast %cst_198 : f32 to vector<16x256xf32>
    %581 = arith.mulf %580, %579 : vector<16x256xf32>
    %cst_199 = arith.constant 0.707106769 : f32
    %582 = vector.broadcast %cst_199 : f32 to vector<16x256xf32>
    %583 = arith.mulf %579, %582 : vector<16x256xf32>
    %cst_200 = arith.constant 0.000000e+00 : f32
    %584 = vector.broadcast %cst_200 : f32 to vector<16x256xf32>
    %585 = arith.cmpf oge, %583, %584 : vector<16x256xf32>
    %cst_201 = arith.constant 1.000000e+00 : f32
    %cst_202 = arith.constant -1.000000e+00 : f32
    %586 = vector.broadcast %cst_201 : f32 to vector<16x256xf32>
    %587 = vector.broadcast %cst_202 : f32 to vector<16x256xf32>
    %588 = arith.select %585, %586, %587 : vector<16x256xi1>, vector<16x256xf32>
    %589 = math.absf %583 : vector<16x256xf32>
    %cst_203 = arith.constant 0.327591091 : f32
    %590 = vector.broadcast %cst_203 : f32 to vector<16x256xf32>
    %591 = arith.mulf %590, %589 : vector<16x256xf32>
    %cst_204 = arith.constant 1.000000e+00 : f32
    %592 = vector.broadcast %cst_204 : f32 to vector<16x256xf32>
    %593 = arith.addf %592, %591 : vector<16x256xf32>
    %cst_205 = arith.constant 1.000000e+00 : f32
    %594 = vector.broadcast %cst_205 : f32 to vector<16x256xf32>
    %595 = arith.divf %594, %593 : vector<16x256xf32>
    %cst_206 = arith.constant 1.06140542 : f32
    %596 = vector.broadcast %cst_206 : f32 to vector<16x256xf32>
    %597 = arith.mulf %596, %595 : vector<16x256xf32>
    %cst_207 = arith.constant -1.45315206 : f32
    %598 = vector.broadcast %cst_207 : f32 to vector<16x256xf32>
    %599 = arith.addf %597, %598 : vector<16x256xf32>
    %600 = arith.mulf %599, %595 : vector<16x256xf32>
    %cst_208 = arith.constant 1.42141378 : f32
    %601 = vector.broadcast %cst_208 : f32 to vector<16x256xf32>
    %602 = arith.addf %600, %601 : vector<16x256xf32>
    %603 = arith.mulf %602, %595 : vector<16x256xf32>
    %cst_209 = arith.constant -0.284496725 : f32
    %604 = vector.broadcast %cst_209 : f32 to vector<16x256xf32>
    %605 = arith.addf %603, %604 : vector<16x256xf32>
    %606 = arith.mulf %605, %595 : vector<16x256xf32>
    %cst_210 = arith.constant 0.254829586 : f32
    %607 = vector.broadcast %cst_210 : f32 to vector<16x256xf32>
    %608 = arith.addf %606, %607 : vector<16x256xf32>
    %609 = arith.mulf %608, %595 : vector<16x256xf32>
    %cst_211 = arith.constant 0.000000e+00 : f32
    %610 = vector.broadcast %cst_211 : f32 to vector<16x256xf32>
    %611 = arith.subf %610, %589 : vector<16x256xf32>
    %612 = arith.mulf %611, %589 : vector<16x256xf32>
    %613 = math.exp %612 : vector<16x256xf32>
    %614 = arith.mulf %609, %613 : vector<16x256xf32>
    %cst_212 = arith.constant 1.000000e+00 : f32
    %615 = vector.broadcast %cst_212 : f32 to vector<16x256xf32>
    %616 = arith.subf %615, %614 : vector<16x256xf32>
    %617 = arith.mulf %588, %616 : vector<16x256xf32>
    %cst_213 = arith.constant 1.000000e+00 : f32
    %618 = vector.broadcast %cst_213 : f32 to vector<16x256xf32>
    %619 = arith.addf %618, %617 : vector<16x256xf32>
    %620 = arith.mulf %581, %619 : vector<16x256xf32>
    %621 = arith.truncf %620 : vector<16x256xf32> to vector<16x256xbf16>
    %cst_214 = arith.constant dense<0.000000e+00> : vector<16x128xf32>
    %622 = tpu.matmul %621, %12, %cst_214 {dimension_numbers = #tpu.dot_dimension_numbers<[1], [0], [0], [1], [0, 0, 1, 1], [], []>} : vector<16x256xbf16>, vector<256x128xbf16>, vector<16x128xf32> -> vector<16x128xf32>
    %623 = vector.broadcast %13 : vector<1x128xf32> to vector<16x128xf32>
    %624 = arith.addf %622, %623 : vector<16x128xf32>
    %cst_215 = arith.constant 5.000000e-01 : f32
    %625 = vector.broadcast %cst_215 : f32 to vector<16x128xf32>
    %626 = arith.mulf %625, %624 : vector<16x128xf32>
    %cst_216 = arith.constant 0.707106769 : f32
    %627 = vector.broadcast %cst_216 : f32 to vector<16x128xf32>
    %628 = arith.mulf %624, %627 : vector<16x128xf32>
    %cst_217 = arith.constant 0.000000e+00 : f32
    %629 = vector.broadcast %cst_217 : f32 to vector<16x128xf32>
    %630 = arith.cmpf oge, %628, %629 : vector<16x128xf32>
    %cst_218 = arith.constant 1.000000e+00 : f32
    %cst_219 = arith.constant -1.000000e+00 : f32
    %631 = vector.broadcast %cst_218 : f32 to vector<16x128xf32>
    %632 = vector.broadcast %cst_219 : f32 to vector<16x128xf32>
    %633 = arith.select %630, %631, %632 : vector<16x128xi1>, vector<16x128xf32>
    %634 = math.absf %628 : vector<16x128xf32>
    %cst_220 = arith.constant 0.327591091 : f32
    %635 = vector.broadcast %cst_220 : f32 to vector<16x128xf32>
    %636 = arith.mulf %635, %634 : vector<16x128xf32>
    %cst_221 = arith.constant 1.000000e+00 : f32
    %637 = vector.broadcast %cst_221 : f32 to vector<16x128xf32>
    %638 = arith.addf %637, %636 : vector<16x128xf32>
    %cst_222 = arith.constant 1.000000e+00 : f32
    %639 = vector.broadcast %cst_222 : f32 to vector<16x128xf32>
    %640 = arith.divf %639, %638 : vector<16x128xf32>
    %cst_223 = arith.constant 1.06140542 : f32
    %641 = vector.broadcast %cst_223 : f32 to vector<16x128xf32>
    %642 = arith.mulf %641, %640 : vector<16x128xf32>
    %cst_224 = arith.constant -1.45315206 : f32
    %643 = vector.broadcast %cst_224 : f32 to vector<16x128xf32>
    %644 = arith.addf %642, %643 : vector<16x128xf32>
    %645 = arith.mulf %644, %640 : vector<16x128xf32>
    %cst_225 = arith.constant 1.42141378 : f32
    %646 = vector.broadcast %cst_225 : f32 to vector<16x128xf32>
    %647 = arith.addf %645, %646 : vector<16x128xf32>
    %648 = arith.mulf %647, %640 : vector<16x128xf32>
    %cst_226 = arith.constant -0.284496725 : f32
    %649 = vector.broadcast %cst_226 : f32 to vector<16x128xf32>
    %650 = arith.addf %648, %649 : vector<16x128xf32>
    %651 = arith.mulf %650, %640 : vector<16x128xf32>
    %cst_227 = arith.constant 0.254829586 : f32
    %652 = vector.broadcast %cst_227 : f32 to vector<16x128xf32>
    %653 = arith.addf %651, %652 : vector<16x128xf32>
    %654 = arith.mulf %653, %640 : vector<16x128xf32>
    %cst_228 = arith.constant 0.000000e+00 : f32
    %655 = vector.broadcast %cst_228 : f32 to vector<16x128xf32>
    %656 = arith.subf %655, %634 : vector<16x128xf32>
    %657 = arith.mulf %656, %634 : vector<16x128xf32>
    %658 = math.exp %657 : vector<16x128xf32>
    %659 = arith.mulf %654, %658 : vector<16x128xf32>
    %cst_229 = arith.constant 1.000000e+00 : f32
    %660 = vector.broadcast %cst_229 : f32 to vector<16x128xf32>
    %661 = arith.subf %660, %659 : vector<16x128xf32>
    %662 = arith.mulf %633, %661 : vector<16x128xf32>
    %cst_230 = arith.constant 1.000000e+00 : f32
    %663 = vector.broadcast %cst_230 : f32 to vector<16x128xf32>
    %664 = arith.addf %663, %662 : vector<16x128xf32>
    %665 = arith.mulf %626, %664 : vector<16x128xf32>
    %666 = arith.addf %665, %575 : vector<16x128xf32>
    %cst_231 = arith.constant dense<0.000000e+00> : vector<16xf32>
    %667 = vector.multi_reduction <add>, %666, %cst_231 [1] : vector<16x128xf32> to vector<16xf32>
    %668 = vector.shape_cast %667 : vector<16xf32> to vector<16x1xf32>
    %cst_232 = arith.constant 1.280000e+02 : f32
    %669 = vector.broadcast %cst_232 : f32 to vector<16x1xf32>
    %670 = arith.divf %668, %669 : vector<16x1xf32>
    %671 = vector.broadcast %670 : vector<16x1xf32> to vector<16x128xf32>
    %672 = arith.subf %666, %671 : vector<16x128xf32>
    %673 = arith.mulf %672, %672 : vector<16x128xf32>
    %cst_233 = arith.constant dense<0.000000e+00> : vector<16xf32>
    %674 = vector.multi_reduction <add>, %673, %cst_233 [1] : vector<16x128xf32> to vector<16xf32>
    %675 = vector.shape_cast %674 : vector<16xf32> to vector<16x1xf32>
    %cst_234 = arith.constant 1.280000e+02 : f32
    %676 = vector.broadcast %cst_234 : f32 to vector<16x1xf32>
    %677 = arith.divf %675, %676 : vector<16x1xf32>
    %cst_235 = arith.constant 9.99999974E-6 : f32
    %678 = vector.broadcast %cst_235 : f32 to vector<16x1xf32>
    %679 = arith.addf %677, %678 : vector<16x1xf32>
    %680 = math.rsqrt %679 : vector<16x1xf32>
    %681 = vector.broadcast %680 : vector<16x1xf32> to vector<16x128xf32>
    %682 = arith.mulf %672, %681 : vector<16x128xf32>
    %683 = vector.broadcast %14 : vector<1x128xf32> to vector<16x128xf32>
    %684 = arith.mulf %682, %683 : vector<16x128xf32>
    %685 = vector.broadcast %15 : vector<1x128xf32> to vector<16x128xf32>
    %686 = arith.addf %684, %685 : vector<16x128xf32>
    %c0_236 = arith.constant 0 : index
    %c0_237 = arith.constant 0 : index
    %c0_238 = arith.constant 0 : index
    %687 = vector.load %arg26[%c0_236, %c0_237, %c0_238] : memref<1x16x128xf32, #tpu.memory_space<vmem>>, vector<1x16x128xf32>
    %688 = vector.shape_cast %687 : vector<1x16x128xf32> to vector<16x128xf32>
    %689 = vector.shape_cast %686 : vector<16x128xf32> to vector<1x16x128xf32>
    tpu.vector_store %arg26[%c0_236, %c0_237, %c0_238], %689 {strides = array<i32>} : memref<1x16x128xf32, #tpu.memory_space<vmem>>, vector<1x16x128xf32>,
    return
  }
  func.func @transform_0(%arg0: i32) -> (i32, i32, i32) {
    %c0_i32 = arith.constant 0 : i32
    %c0_i32_0 = arith.constant 0 : i32
    %c0_i32_1 = arith.constant 0 : i32
    return %arg0, %c0_i32, %c0_i32_0 : i32, i32, i32
  }
  func.func @transform_1(%arg0: i32) -> (i32, i32, i32) {
    %c0_i32 = arith.constant 0 : i32
    %c0_i32_0 = arith.constant 0 : i32
    %c0_i32_1 = arith.constant 0 : i32
    return %arg0, %c0_i32, %c0_i32_0 : i32, i32, i32
  }
  func.func @transform_2(%arg0: i32) -> (i32, i32, i32) {
    %c0_i32 = arith.constant 0 : i32
    %c0_i32_0 = arith.constant 0 : i32
    %c0_i32_1 = arith.constant 0 : i32
    return %arg0, %c0_i32, %c0_i32_0 : i32, i32, i32
  }
  func.func @transform_3(%arg0: i32) -> (i32, i32, i32) {
    %c0_i32 = arith.constant 0 : i32
    %c0_i32_0 = arith.constant 0 : i32
    %c0_i32_1 = arith.constant 0 : i32
    return %arg0, %c0_i32, %c0_i32_0 : i32, i32, i32
  }
  func.func @transform_4(%arg0: i32) -> (i32, i32, i32) {
    %c0_i32 = arith.constant 0 : i32
    %c0_i32_0 = arith.constant 0 : i32
    %c0_i32_1 = arith.constant 0 : i32
    return %arg0, %c0_i32, %c0_i32_0 : i32, i32, i32
  }
  func.func @transform_5(%arg0: i32) -> (i32, i32, i32) {
    %c0_i32 = arith.constant 0 : i32
    %c0_i32_0 = arith.constant 0 : i32
    %c0_i32_1 = arith.constant 0 : i32
    return %arg0, %c0_i32, %c0_i32_0 : i32, i32, i32
  }
  func.func @transform_6(%arg0: i32) -> (i32, i32, i32) {
    %c0_i32 = arith.constant 0 : i32
    %c0_i32_0 = arith.constant 0 : i32
    %c0_i32_1 = arith.constant 0 : i32
    return %arg0, %c0_i32, %c0_i32_0 : i32, i32, i32
  }
  func.func @transform_7(%arg0: i32) -> (i32, i32, i32) {
    %c0_i32 = arith.constant 0 : i32
    %c0_i32_0 = arith.constant 0 : i32
    %c0_i32_1 = arith.constant 0 : i32
    return %arg0, %c0_i32, %c0_i32_0 : i32, i32, i32
  }
  func.func @transform_8(%arg0: i32) -> (i32, i32, i32) {
    %c0_i32 = arith.constant 0 : i32
    %c0_i32_0 = arith.constant 0 : i32
    %c0_i32_1 = arith.constant 0 : i32
    %c0_i32_2 = arith.constant 0 : i32
    return %c0_i32, %c0_i32_0, %c0_i32_1 : i32, i32, i32
  }
  func.func @transform_9(%arg0: i32) -> (i32, i32, i32) {
    %c0_i32 = arith.constant 0 : i32
    %c0_i32_0 = arith.constant 0 : i32
    %c0_i32_1 = arith.constant 0 : i32
    %c0_i32_2 = arith.constant 0 : i32
    return %c0_i32, %c0_i32_0, %c0_i32_1 : i32, i32, i32
  }
  func.func @transform_10(%arg0: i32) -> (i32, i32, i32) {
    %c0_i32 = arith.constant 0 : i32
    %c0_i32_0 = arith.constant 0 : i32
    %c0_i32_1 = arith.constant 0 : i32
    %c0_i32_2 = arith.constant 0 : i32
    return %c0_i32, %c0_i32_0, %c0_i32_1 : i32, i32, i32
  }
  func.func @transform_11(%arg0: i32) -> (i32, i32, i32) {
    %c0_i32 = arith.constant 0 : i32
    %c0_i32_0 = arith.constant 0 : i32
    %c0_i32_1 = arith.constant 0 : i32
    %c0_i32_2 = arith.constant 0 : i32
    return %c0_i32, %c0_i32_0, %c0_i32_1 : i32, i32, i32
  }
  func.func @transform_12(%arg0: i32) -> (i32, i32, i32) {
    %c0_i32 = arith.constant 0 : i32
    %c0_i32_0 = arith.constant 0 : i32
    %c0_i32_1 = arith.constant 0 : i32
    %c0_i32_2 = arith.constant 0 : i32
    return %c0_i32, %c0_i32_0, %c0_i32_1 : i32, i32, i32
  }
  func.func @transform_13(%arg0: i32) -> (i32, i32, i32) {
    %c0_i32 = arith.constant 0 : i32
    %c0_i32_0 = arith.constant 0 : i32
    %c0_i32_1 = arith.constant 0 : i32
    %c0_i32_2 = arith.constant 0 : i32
    return %c0_i32, %c0_i32_0, %c0_i32_1 : i32, i32, i32
  }
  func.func @transform_14(%arg0: i32) -> (i32, i32, i32) {
    %c0_i32 = arith.constant 0 : i32
    %c0_i32_0 = arith.constant 0 : i32
    %c0_i32_1 = arith.constant 0 : i32
    %c0_i32_2 = arith.constant 0 : i32
    return %c0_i32, %c0_i32_0, %c0_i32_1 : i32, i32, i32
  }
  func.func @transform_15(%arg0: i32) -> (i32, i32) {
    %c0_i32 = arith.constant 0 : i32
    %c0_i32_0 = arith.constant 0 : i32
    %c0_i32_1 = arith.constant 0 : i32
    return %c0_i32, %c0_i32_0 : i32, i32
  }
  func.func @transform_16(%arg0: i32) -> (i32, i32) {
    %c0_i32 = arith.constant 0 : i32
    %c0_i32_0 = arith.constant 0 : i32
    %c0_i32_1 = arith.constant 0 : i32
    return %c0_i32, %c0_i32_0 : i32, i32
  }
  func.func @transform_17(%arg0: i32) -> (i32, i32) {
    %c0_i32 = arith.constant 0 : i32
    %c0_i32_0 = arith.constant 0 : i32
    %c0_i32_1 = arith.constant 0 : i32
    return %c0_i32, %c0_i32_0 : i32, i32
  }
  func.func @transform_18(%arg0: i32) -> (i32, i32) {
    %c0_i32 = arith.constant 0 : i32
    %c0_i32_0 = arith.constant 0 : i32
    %c0_i32_1 = arith.constant 0 : i32
    return %c0_i32, %c0_i32_0 : i32, i32
  }
  func.func @transform_19(%arg0: i32) -> (i32, i32) {
    %c0_i32 = arith.constant 0 : i32
    %c0_i32_0 = arith.constant 0 : i32
    %c0_i32_1 = arith.constant 0 : i32
    return %c0_i32, %c0_i32_0 : i32, i32
  }
  func.func @transform_20(%arg0: i32) -> (i32, i32) {
    %c0_i32 = arith.constant 0 : i32
    %c0_i32_0 = arith.constant 0 : i32
    %c0_i32_1 = arith.constant 0 : i32
    return %c0_i32, %c0_i32_0 : i32, i32
  }
  func.func @transform_21(%arg0: i32) -> (i32, i32) {
    %c0_i32 = arith.constant 0 : i32
    %c0_i32_0 = arith.constant 0 : i32
    %c0_i32_1 = arith.constant 0 : i32
    return %c0_i32, %c0_i32_0 : i32, i32
  }
  func.func @transform_22(%arg0: i32) -> (i32, i32) {
    %c0_i32 = arith.constant 0 : i32
    %c0_i32_0 = arith.constant 0 : i32
    %c0_i32_1 = arith.constant 0 : i32
    return %c0_i32, %c0_i32_0 : i32, i32
  }
  func.func @transform_23(%arg0: i32) -> (i32, i32) {
    %c0_i32 = arith.constant 0 : i32
    %c0_i32_0 = arith.constant 0 : i32
    %c0_i32_1 = arith.constant 0 : i32
    return %c0_i32, %c0_i32_0 : i32, i32
  }
  func.func @transform_24(%arg0: i32) -> (i32, i32, i32) {
    %c0_i32 = arith.constant 0 : i32
    %c0_i32_0 = arith.constant 0 : i32
    %c0_i32_1 = arith.constant 0 : i32
    return %arg0, %c0_i32, %c0_i32_0 : i32, i32, i32
  }
  func.func @transform_25(%arg0: i32) -> (i32, i32, i32) {
    %c0_i32 = arith.constant 0 : i32
    %c0_i32_0 = arith.constant 0 : i32
    %c0_i32_1 = arith.constant 0 : i32
    return %arg0, %c0_i32, %c0_i32_0 : i32, i32, i32
  }
}

</mosaic_0001>

<bundles_post_ra>
// kernel: phlaformer_forward.3
= control target key start
LH: loop header
LB: loop body
LE: loop exit
PB: predicated region body
PF: predicated region fallthrough
CT: control target
= control target key end

     0   :  { %s1152_s13 = smov 0   ;;  %s1323_s0 = inlined_call_operand.vmem [shape: s32[2,8,1], index: 0, kind: input, shape index: {}]   ;;  %s1324_s1 = inlined_call_operand.vmem [shape: s32[2,16,1], index: 1, kind: input, shape index: {}]   ;;  %s1325_s2 = inlined_call_operand.vmem [shape: f32[128,32], index: 2, kind: input, shape index: {}]   ;;  %s1326_s3 = inlined_call_operand.vmem [shape: bf16[32,128], index: 3, kind: input, shape index: {}]   ;;  %s1327_s4 = inlined_call_operand.vmem [shape: f32[1,128], index: 4, kind: input, shape index: {}]   ;;  %s1328_s5 = inlined_call_operand.vmem [shape: bf16[32,128], index: 5, kind: input, shape index: {}]   ;;  %s1329_s6 = inlined_call_operand.vmem [shape: f32[1,128], index: 6, kind: input, shape index: {}]   ;;  %s1330_s7 = inlined_call_operand.vmem [shape: f32[8,128], index: 7, kind: input, shape index: {}]   ;;  %s1331_s8 = inlined_call_operand.vmem [shape: f32[16,128], index: 8, kind: input, shape index: {}]   ;;  %s1332_s9 = inlined_call_operand.vmem [shape: f32[2,8,128], index: 9, kind: output, shape index: {0}]   ;;  %s1333_s10 = inlined_call_operand.vmem [shape: f32[2,16,128], index: 10, kind: output, shape index: {1}]  }
   0x1 LB: > { %s897_s14 = sadd.s32 4294967295, %s1090_s13   ;;  %p901_p0 = scmp.ge.s32.totalorder %s1090_s13, 1  ;;  %s1090_s13 = sphi %s1152_s13, %s21_s13  }
   0x2   : > { %p324_p1 = scmp.lt.s32.totalorder %s1090_s13, 3 }
   0x4   : > { %p325_p2 = pnand %p901_p0, %p324_p1 }
   0x5   : > { %p370_p3 = scmp.lt.s32.totalorder (!%p325_p2), %s897_s14, 1 }
   0x6   : > { %328 = sbr.rel (%p325_p2) target bundleno = 818 (0x332), region = 56 }
   0xb   : > { %v1163_v0 = vld [vmem:[%s1325_s2 + $0x78] sm:$0xff]  ;;  %v1092_v1 = vmov 0   ;;  %v1093_v2 = vmov 0.0   ;;  %v1169_v3 = vld [vmem:[%s1325_s2 + $0x70] sm:$0xff]  ;;  %s1335_s14 = smov (!%p370_p3, %s897_s14), 1  ;;  %v1178_v4 = vld [vmem:[%s1325_s2 + $0x68] sm:$0xff]  ;;  %v406_v23 = vlaneseq }
   0xc   : > { %1066 = vset.pattern.permute.xlu0 %v1092_v1  ;;  %967 = vmatprep.subr.mxu0 %v1093_v2  ;;  %vm1094_vm0 = vmmov 0   ;;  %s902_s21 = sshll.u32 %s1335_s14, 3  ;;  %s924_s22 = sshll.u32 %s1335_s14, 4  ;;  %v1188_v5 = vld [vmem:[%s1325_s2 + $0x60] sm:$0xff]  ;;  %v1200_v6 = vld [vmem:[%s1325_s2 + $0x58] sm:$0xff]  ;;  %v1214_v8 = vld [vmem:[%s1325_s2 + $0x50] sm:$0xff] }
   0xd   : > { %968 = vmatpush3.msra.mxu0 %v1163_v0  ;;  %1067 = vset.pattern.permute.xlu1 %v1092_v1  ;;  %s373_s27 = scalar_lea.vmem %s1323_s0, %s902_s21  ;;  %s378_s12 = scalar_lea.vmem %s1324_s1, %s924_s22  ;;  %v1068_v10 = vld [vmem:[%s1326_s3 + $0x8] sm:$0xff]   ;;  %v1069_v12 = vld [vmem:[%s1326_s3] sm:$0xff]   ;;  %v396_v15 = vld [vmem:[%s1325_s2 + $0x38] sm:$0xff]  ;;  %v407_v24 = vand.u32 127, %v406_v23  ;;  %v1095_v26 = vmov 1.0   ;;  %vm508_vm2 = vcmask 261120  }
   0xe   : > { %969 = vmatprep.subr.mxu0 %v1093_v2  ;;  %999 = vmatprep.mubr.msk.f32.mxu0 %vm1094_vm0, %v1093_v2  ;;  %v405_v7 = vld [vmem:[%s373_s27] sm:$0xff]  ;;  %v583_v9 = vld [vmem:[%s378_s12 + $0x8] sm:$0xff]  ;;  %v395_v16 = vld [vmem:[%s1325_s2 + $0x30] sm:$0xff]  ;;  %v1096_v63 = vmov -1.0   ;;  %s382_s19 = scalar_lea.vmem %s1332_s9, %s902_s21  ;;  %s387_s27 = scalar_lea.vmem %s1333_s10, %s924_s22 }
   0xf   : > { %970 = vmatpush3.msra.mxu0 %v1169_v3  ;;  %1002 = vmatprep.subr.bf16.mxu1 %v1093_v2  ;;  %v582_v11 = vld [vmem:[%s378_s12] sm:$0xff]  ;;  %v398_v13 = vld [vmem:[%s1325_s2 + $0x48] sm:$0xff]  ;;  %v392_v19 = vld [vmem:[%s1325_s2 + $0x18] sm:$0xff] }
  0x10   : > { %971 = vmatprep.subr.mxu0 %v1093_v2  ;;  %1006 = vmatprep.mubr.msk.bf16.mxu1 %vm1094_vm0, %v1093_v2  ;;  %v397_v14 = vld [vmem:[%s1325_s2 + $0x40] sm:$0xff]  ;;  %v394_v17 = vld [vmem:[%s1325_s2 + $0x28] sm:$0xff]  ;;  %v391_v20 = vld [vmem:[%s1325_s2 + $0x10] sm:$0xff] }
  0x11   : > { %972 = vmatpush3.msra.mxu0 %v1178_v4  ;;  %409 = vperm.xlu0 %1066, %v405_v7   ;;  %v393_v18 = vld [vmem:[%s1325_s2 + $0x20] sm:$0xff]  ;;  %v390_v21 = vld [vmem:[%s1325_s2 + $0x8] sm:$0xff] }
  0x12   : > { %973 = vmatprep.subr.mxu0 %v1093_v2  ;;  %588 = vperm.xlu1 %1067, %v583_v9   ;;  %v389_v22 = vld [vmem:[%s1325_s2] sm:$0xff]  ;;  %v1070_v32 = vld [vmem:[%s1328_s5 + $0x8] sm:$0xff]  }
  0x13   : > { %974 = vmatpush3.msra.mxu0 %v1188_v5  ;;  %1003 = vmatpush3.bf16.msra.mxu1 %v1068_v10  ;;  %v1071_v33 = vld [vmem:[%s1328_s5] sm:$0xff]  }
  0x14   : > { %975 = vmatprep.subr.mxu0 %v1093_v2  ;;  %1004 = vmatprep.subr.bf16.mxu1 %v1093_v2  ;;  %v910_v34 = vld [vmem:[%s1327_s4] ss:$0 sm:$0xff] }
  0x15   : > { %976 = vmatpush3.msra.mxu0 %v1200_v6  ;;  %585 = vperm.xlu0 %1066, %v582_v11   ;;  %v918_v7 = vld [vmem:[%s1329_s6] ss:$0 sm:$0xff] }
  0x16   : > { %977 = vmatprep.subr.mxu0 %v1093_v2 }
  0x17   : > { %978 = vmatpush3.msra.mxu0 %v1214_v8  ;;  %1005 = vmatpush3.bf16.msra.mxu1 %v1069_v12 }
  0x18   : > { %979 = vmatprep.subr.mxu0 %v1093_v2  ;;  %1010 = vmatprep.subr.mxu1 %v1163_v0 }
  0x19   : > { %980 = vmatpush3.msra.mxu0 %v398_v13 }
  0x1a   : > { %981 = vmatprep.subr.mxu0 %v1093_v2 }
  0x1b   : > { %982 = vmatpush3.msra.mxu0 %v397_v14 }
  0x1c   : > { %983 = vmatprep.subr.mxu0 %v1093_v2 }
  0x1d   : > { %984 = vmatpush3.msra.mxu0 %v396_v15 }
  0x1e   : > { %985 = vmatprep.subr.mxu0 %v1093_v2 }
  0x1f   : > { %986 = vmatpush3.msra.mxu0 %v395_v16 }
  0x20   : > { %987 = vmatprep.subr.mxu0 %v1093_v2 }
  0x21   : > { %988 = vmatpush3.msra.mxu0 %v394_v17 }
  0x22   : > { %989 = vmatprep.subr.mxu0 %v1093_v2 }
  0x23   : > { %990 = vmatpush3.msra.mxu0 %v393_v18 }
  0x24   : > { %991 = vmatprep.subr.mxu0 %v1093_v2 }
  0x25   : > { %992 = vmatpush3.msra.mxu0 %v392_v19 }
  0x26   : > { %993 = vmatprep.subr.mxu0 %v1093_v2 }
  0x27   : > { %994 = vmatpush3.msra.mxu0 %v391_v20 }
  0x28   : > { %995 = vmatprep.subr.mxu0 %v1093_v2 }
  0x29   : > { %996 = vmatpush3.msra.mxu0 %v390_v21 }
  0x2a   : > { %997 = vmatprep.subr.mxu0 %v1093_v2 }
  0x2b   : > { %998 = vmatpush3.msra.mxu0 %v389_v22 }
  0x2c   : > { %1045 = vmatprep.subr.bf16.mxu0 %v1093_v2 }
  0x8c   : > { %v410_v25 = vpop.permute.xlu0 %409 }
  0x8d   : > { %vm411_vm1 = vcmp.eq.s32.totalorder %v410_v25, %v407_v24  ;;  %v589_v31 = vpop.permute.xlu1 %588 }
  0x8e   : > { %1000 = vmatmul.mubr.msk.f32.vlgmr.msra.gmra.mxu0 %vm411_vm1, %v1095_v26  ;;  %vm591_vm4 = vcmp.eq.s32.totalorder %v589_v31, %v407_v24 }
  0x8f   : > { %1049 = vmatprep.mubr.msk.bf16.mxu0 %vm1094_vm0, %v1093_v2  ;;  %1046 = vmatpush3.bf16.msra.mxu0 %v1070_v32 }
  0x90   : > { %v586_v27 = vpop.permute.xlu0 %585  ;;  %1047 = vmatprep.subr.bf16.mxu0 %v1093_v2 }
  0x91   : > { %vm590_vm3 = vcmp.eq.s32.totalorder %v586_v27, %v407_v24 }
  0x93   : > { %1048 = vmatpush3.bf16.msra.mxu0 %v1071_v33 }
 0x14e   : > { %v480_v28 = vpop.f32.mrf.mxu0 }
 0x14f   : > { %v484_v29 = vpack.c.bf16 %v480_v28, %v480_v28 }
 0x150   : > { %v1001_v30 = vpop.f32.mrf.mxu0 }
 0x151   : > { %1007 = vmatmul.mubr.msk.bf16.vlgmr.msra.gmra.mxu1 %vm508_vm2, %v484_v29 }
 0x152   : > { %1011 = vmatpush3.msra.mxu1 %v1163_v0  ;;  %1042 = vmatprep.mubr.msk.f32.mxu1 %vm590_vm3, %v1095_v26 }
 0x153   : > { %1012 = vmatprep.subr.mxu1 %v1169_v3 }
 0x154   : > { %1013 = vmatpush3.msra.mxu1 %v1169_v3 }
 0x155   : > { %1014 = vmatprep.subr.mxu1 %v1178_v4 }
 0x156   : > { %1015 = vmatpush3.msra.mxu1 %v1178_v4  ;;  %v579_v4 = vld [vmem:[%s1330_s7] sm:$0xff] }
 0x157   : > { %1016 = vmatprep.subr.mxu1 %v1188_v5 }
 0x158   : > { %1017 = vmatpush3.msra.mxu1 %v1188_v5 }
 0x159   : > { %1018 = vmatprep.subr.mxu1 %v1200_v6 }
 0x15a   : > { %1019 = vmatpush3.msra.mxu1 %v1200_v6 }
 0x15b   : > { %1020 = vmatprep.subr.mxu1 %v1214_v8 }
 0x15c   : > { %1021 = vmatpush3.msra.mxu1 %v1214_v8 }
 0x15d   : > { %1022 = vmatprep.subr.mxu1 %v398_v13 }
 0x15e   : > { %1023 = vmatpush3.msra.mxu1 %v398_v13 }
 0x15f   : > { %1024 = vmatprep.subr.mxu1 %v397_v14 }
 0x160   : > { %1025 = vmatpush3.msra.mxu1 %v397_v14 }
 0x161   : > { %1026 = vmatprep.subr.mxu1 %v396_v15 }
 0x162   : > { %1027 = vmatpush3.msra.mxu1 %v396_v15 }
 0x163   : > { %1028 = vmatprep.subr.mxu1 %v395_v16 }
 0x164   : > { %1029 = vmatpush3.msra.mxu1 %v395_v16 }
 0x165   : > { %1030 = vmatprep.subr.mxu1 %v394_v17 }
 0x166   : > { %1031 = vmatpush3.msra.mxu1 %v394_v17 }
 0x167   : > { %1032 = vmatprep.subr.mxu1 %v393_v18 }
 0x168   : > { %1033 = vmatpush3.msra.mxu1 %v393_v18 }
 0x169   : > { %1034 = vmatprep.subr.mxu1 %v392_v19 }
 0x16a   : > { %1035 = vmatpush3.msra.mxu1 %v392_v19 }
 0x16b   : > { %1036 = vmatprep.subr.mxu1 %v391_v20 }
 0x16c   : > { %1037 = vmatpush3.msra.mxu1 %v391_v20 }
 0x16d   : > { %1038 = vmatprep.subr.mxu1 %v390_v21 }
 0x16e   : > { %1039 = vmatpush3.msra.mxu1 %v390_v21 }
 0x16f   : > { %1040 = vmatprep.subr.mxu1 %v389_v22 }
 0x170   : > { %1041 = vmatpush3.msra.mxu1 %v389_v22 }
 0x171   : > { %1043 = vmatmul.mubr.msk.f32.vlgmr.msra.gmra.mxu1 %vm591_vm4, %v1095_v26 }
 0x211   : > { %v546_v35 = vpop.f32.mrf.mxu1 }
 0x212   : > { %v547_v36 = vadd.f32 %v910_v34, %v546_v35 }
 0x213   : > { %v1008_v37 = vpop.f32.mrf.mxu1 }
 0x214   : > { %v553_v38 = vmul.f32 0.70710677, %v547_v36  ;;  %v552_v2 = vmul.f32 0.5, %v547_v36 }
 0x215   : > { %v549_v39 = vpop.f32.mrf.mxu1 }
 0x216   : > { %v556_v40 = vand.u32 2147483647, %v553_v38  ;;  %vm554_vm5 = vcmp.ge.f32.partialorder %v553_v38, 0.0 }
 0x217   : > { %v1009_v41 = vpop.f32.mrf.mxu1  ;;  %v555_v0 = vsel %vm554_vm5, 1.0, %v1096_v63 }
 0x218   : > { %v557_v42 = vmul.f32 0.3275911, %v556_v40  ;;  %v570_v44 = vsub.f32 0.0, %v556_v40 }
 0x21a   : > { %v558_v43 = vadd.f32 1.0, %v557_v42  ;;  %v571_v45 = vmul.f32 %v570_v44, %v556_v40 }
 0x21c   : > { %1072 = vrcp.f32 %v558_v43  ;;  %v572_v48 = vmul.f32 1.442695, %v571_v45 }
 0x21e   : > { %1074 = vpow2.f32 %v572_v48 }
 0x229   : > { %v1073_v46 = vpop.eup %1072 }
 0x22a   : > { %v561_v47 = vmul.f32 1.0614054, %v1073_v46 }
 0x22b   : > { %v1075_v60 = vpop.eup %1074 }
 0x22c   : > { %v562_v49 = vadd.f32 -1.4531521, %v561_v47 }
 0x22e   : > { %v563_v50 = vmul.f32 %v1073_v46, %v562_v49 }
 0x230   : > { %v564_v51 = vadd.f32 1.4214138, %v563_v50 }
 0x231   : > { %v1044_v52 = vpop.f32.mrf.mxu1 }
 0x232   : > { %v565_v53 = vmul.f32 %v1073_v46, %v564_v51 }
 0x233   : > { %v662_v54 = vpop.f32.mrf.mxu1 }
 0x234   : > { %v566_v55 = vadd.f32 -0.28449672, %v565_v53  ;;  %v671_v56 = vpack.c.bf16 %v1044_v52, %v662_v54 }
 0x236   : > { %v567_v57 = vmul.f32 %v1073_v46, %v566_v55  ;;  %1050 = vmatmul.mubr.msk.bf16.vlgmr.msra.gmra.mxu0 %vm508_vm2, %v671_v56 }
 0x238   : > { %v568_v58 = vadd.f32 0.2548296, %v567_v57 }
 0x23a   : > { %v569_v59 = vmul.f32 %v1073_v46, %v568_v58  ;;  %v793_v58 = vld [vmem:[%s1331_s8] sm:$0xff] }
 0x23c   : > { %v574_v61 = vmul.f32 %v1075_v60, %v569_v59 }
 0x23e   : > { %v575_v62 = vsub.f32 1.0, %v574_v61 }
 0x240   : > { %v576_v1 = vmul.f32 %v575_v62, %v555_v0 }
 0x242   : > { %v577_v3 = vadd.f32 1.0, %v576_v1 }
 0x244   : > { %v578_v5 = vmul.f32 %v577_v3, %v552_v2  ;;  %v794_v2 = vld [vmem:[%s1331_s8 + $0x8] sm:$0xff] }
 0x246   : > { %v580_v6 = vadd.f32 %v579_v4, %v578_v5 }
 0x248   : > { %581 = vst [vmem:[%s382_s19] sm:$0xff] %v580_v6 }
 0x2f6   : > { %v732_v8 = vpop.f32.mrf.mxu0 }
 0x2f7   : > { %v733_v9 = vadd.f32 %v918_v7, %v732_v8 }
 0x2f8   : > { %v1051_v10 = vpop.f32.mrf.mxu0 }
 0x2f9   : > { %v741_v11 = vmul.f32 0.70710677, %v733_v9  ;;  %v739_v55 = vmul.f32 0.5, %v733_v9 }
 0x2fa   : > { %v735_v12 = vpop.f32.mrf.mxu0 }
 0x2fb   : > { %v747_v13 = vand.u32 2147483647, %v741_v11  ;;  %v736_v14 = vadd.f32 %v918_v7, %v735_v12  ;;  %vm743_vm6 = vcmp.ge.f32.partialorder %v741_v11, 0.0 }
 0x2fc   : > { %v1052_v15 = vpop.f32.mrf.mxu0  ;;  %v745_v52 = vsel %vm743_vm6, 1.0, %v1096_v63 }
 0x2fd   : > { %v749_v16 = vmul.f32 0.3275911, %v747_v13  ;;  %v742_v17 = vmul.f32 0.70710677, %v736_v14  ;;  %v775_v22 = vsub.f32 0.0, %v747_v13  ;;  %v740_v0 = vmul.f32 0.5, %v736_v14 }
 0x2ff   : > { %v751_v18 = vadd.f32 1.0, %v749_v16  ;;  %v748_v19 = vand.u32 2147483647, %v742_v17  ;;  %v777_v23 = vmul.f32 %v775_v22, %v747_v13  ;;  %vm744_vm7 = vcmp.ge.f32.partialorder %v742_v17, 0.0 }
 0x300   : > { %v746_v59 = vsel %vm744_vm7, 1.0, %v1096_v63 }
 0x301   : > { %1076 = vrcp.f32 %v751_v18  ;;  %v750_v20 = vmul.f32 0.3275911, %v748_v19  ;;  %v776_v24 = vsub.f32 0.0, %v748_v19  ;;  %v779_v27 = vmul.f32 1.442695, %v777_v23 }
 0x303   : > { %v752_v21 = vadd.f32 1.0, %v750_v20  ;;  %v778_v28 = vmul.f32 %v776_v24, %v748_v19 }
 0x305   : > { %1078 = vrcp.f32 %v752_v21  ;;  %v781_v33 = vmul.f32 1.442695, %v778_v28 }
 0x306   : > { %1080 = vpow2.f32 %v779_v27 }
 0x307   : > { %1082 = vpow2.f32 %v781_v33 }
 0x30e   : > { %v1077_v25 = vpop.eup %1076 }
 0x30f   : > { %v757_v26 = vmul.f32 1.0614054, %v1077_v25 }
 0x311   : > { %v759_v29 = vadd.f32 -1.4531521, %v757_v26 }
 0x312   : > { %v1079_v30 = vpop.eup %1078 }
 0x313   : > { %v761_v31 = vmul.f32 %v1077_v25, %v759_v29  ;;  %v758_v32 = vmul.f32 1.0614054, %v1079_v30  ;;  %v1081_v46 = vpop.eup %1080 }
 0x314   : > { %v1083_v51 = vpop.eup %1082 }
 0x315   : > { %v763_v34 = vadd.f32 1.4214138, %v761_v31  ;;  %v760_v35 = vadd.f32 -1.4531521, %v758_v32 }
 0x317   : > { %v765_v36 = vmul.f32 %v1077_v25, %v763_v34  ;;  %v762_v37 = vmul.f32 %v1079_v30, %v760_v35 }
 0x319   : > { %v767_v38 = vadd.f32 -0.28449672, %v765_v36  ;;  %v764_v39 = vadd.f32 1.4214138, %v762_v37 }
 0x31b   : > { %v769_v40 = vmul.f32 %v1077_v25, %v767_v38  ;;  %v766_v41 = vmul.f32 %v1079_v30, %v764_v39 }
 0x31d   : > { %v771_v42 = vadd.f32 0.2548296, %v769_v40  ;;  %v768_v43 = vadd.f32 -0.28449672, %v766_v41 }
 0x31f   : > { %v773_v44 = vmul.f32 %v1077_v25, %v771_v42  ;;  %v770_v45 = vmul.f32 %v1079_v30, %v768_v43 }
 0x321   : > { %v783_v47 = vmul.f32 %v1081_v46, %v773_v44  ;;  %v772_v48 = vadd.f32 0.2548296, %v770_v45 }
 0x323   : > { %v785_v49 = vsub.f32 1.0, %v783_v47  ;;  %v774_v50 = vmul.f32 %v1079_v30, %v772_v48 }
 0x325   : > { %v787_v53 = vmul.f32 %v785_v49, %v745_v52  ;;  %v784_v54 = vmul.f32 %v1083_v51, %v774_v50 }
 0x327   : > { %v789_v56 = vadd.f32 1.0, %v787_v53  ;;  %v786_v57 = vsub.f32 1.0, %v784_v54 }
 0x329   : > { %v791_v60 = vmul.f32 %v789_v56, %v739_v55  ;;  %v788_v61 = vmul.f32 %v786_v57, %v746_v59 }
 0x32b   : > { %v795_v62 = vadd.f32 %v793_v58, %v791_v60  ;;  %v790_v1 = vadd.f32 1.0, %v788_v61 }
 0x32d   : > { %797 = vst [vmem:[%s387_s27] sm:$0xff] %v795_v62  ;;  %v792_v3 = vmul.f32 %v790_v1, %v740_v0 }
 0x32f   : > { %v796_v4 = vadd.f32 %v794_v2, %v792_v3 }
 0x331   : > { %798 = vst [vmem:[%s387_s27 + $0x8] sm:$0xff] %v796_v4 }
 0x332 PF: > { %s21_s13 = sadd.s32 1, %s1090_s13  }
 0x333   : > { %p18_p4 = scmp.ge.s32.totalorder %s21_s13, 4  }
 0x335   :  { %20 = sbr.rel (!%p18_p4) target bundleno = 1 (0x1), region = 101 }

// kernel: phlaformer_forward.5
= control target key start
LH: loop header
LB: loop body
LE: loop exit
PB: predicated region body
PF: predicated region fallthrough
CT: control target
= control target key end

     0   :  { %s5451_s0 = inlined_call_operand.vmem [shape: f32[2,8,128], index: 0, kind: input, shape index: {}]   ;;  %s5452_s1 = inlined_call_operand.vmem [shape: f32[2,16,128], index: 1, kind: input, shape index: {}]   ;;  %s5453_s2 = inlined_call_operand.hbm [shape: bf16[1024,256], index: 2, kind: input, shape index: {}]   ;;  %s5454_s3 = inlined_call_operand.vmem [shape: bf16[2048,256], index: 3, kind: input, shape index: {}]   ;;  %s5455_s4 = inlined_call_operand.vmem [shape: f32[1,256], index: 4, kind: input, shape index: {}]   ;;  %s5456_s5 = inlined_call_operand.vmem [shape: bf16[256,128], index: 5, kind: input, shape index: {}]   ;;  %s5457_s6 = inlined_call_operand.vmem [shape: f32[1,128], index: 6, kind: input, shape index: {}]   ;;  %s5458_s7 = inlined_call_operand.vmem [shape: bf16[128,1], index: 7, kind: input, shape index: {}]   ;;  %s5459_s8 = inlined_call_operand.<no memory space> [shape: f32[1,1], index: 8, kind: input, shape index: {}]   ;;  %s5460_s9 = inlined_call_operand.vmem [shape: f32[2,1], index: 9, kind: output, shape index: {}]  }
   0x1   :  { %v14_v0 = vstv %s5459_s8 }
   0x2   :  { %15 = vst [vmem:[#allocation2] sm:$0x1] %v14_v0 }
   0x3   :  { %16 = vsyncpa [#allocation4], 0  ;;  %s4453_s11 = smov [#allocation3]  }
   0x4   :  { %s26_s12 = sshll.u32 %s4453_s11, 4  ;;  %s27_s12 = int_to_ptr.vmem [resolvable:$true] %s26_s12 }
   0x5   :  { %s4439_s13 = scalar_lea.vmem %s27_s12, 16384  ;;  %p4444_p1 = scmp.lt.s32.totalorder %s27_s12, %s27_s12 }
   0x6   :  { %p4440_p0 = scmp.ne.s32.totalorder %s27_s12, %s4439_s13  ;;  %p4445_p2 = scmp.lt.s32.totalorder %s4439_s13, %s4439_s13 }
   0x8   :  { %p4446_p3 = por %p4445_p2, %p4444_p1 }
   0xa   :  { %p4447_p4 = pnand %p4446_p3, %p4440_p0 }
   0xc   :  { %4450 = shalt.err (!%p4447_p4)
}
   0xd   :  { %s4454_s14 = smov 128   ;;  %s4455_s15 = smov 8  }
   0xe   :  { %32 = dma.hbm_to_vmem [thread:$0]  %s5453_s2, 16384, %s27_s12, [#allocation4], %s4454_s14, %s4454_s14, %s4455_s15  }
   0xf   :  { %4451 = dma.done.wait [#allocation4], 16384  }
  0x10   :  { %4452 = vsyncadd [#allocation4], 4294950912  ;;  %v3819_v1 = vld [vmem:[%s5454_s3 + $0x74] ss:$8 sps:$4 sm:$0xff]   ;;  %v3823_v3 = vld [vmem:[%s5454_s3 + $0x70] ss:$8 sps:$4 sm:$0xff]  }
  0x11   :  { %v3821_v2 = vld [vmem:[%s5454_s3 + $0x174] ss:$8 sps:$4 sm:$0xff]   ;;  %1807 = vmatprep.subr.bf16.mxu0 %v3819_v1  ;;  %v3824_v4 = vld [vmem:[%s5454_s3 + $0x170] ss:$8 sps:$4 sm:$0xff]   ;;  %v3825_v5 = vld [vmem:[%s5454_s3 + $0x64] ss:$8 sps:$4 sm:$0xff]  }
  0x12   :  { %1848 = vmatprep.subr.bf16.mxu1 %v3821_v2  ;;  %1808 = vmatpush1.bf16.msra.mxu0 %v3823_v3  ;;  %v3827_v6 = vld [vmem:[%s5454_s3 + $0x164] ss:$8 sps:$4 sm:$0xff]   ;;  %v3829_v7 = vld [vmem:[%s5454_s3 + $0x60] ss:$8 sps:$4 sm:$0xff]   ;;  %v3831_v9 = vld [vmem:[%s5454_s3 + $0x54] ss:$8 sps:$4 sm:$0xff]  }
  0x13   :  { %1849 = vmatpush1.bf16.msra.mxu1 %v3824_v4  ;;  %1809 = vmatprep.subr.bf16.mxu0 %v3825_v5  ;;  %v3830_v8 = vld [vmem:[%s5454_s3 + $0x160] ss:$8 sps:$4 sm:$0xff]   ;;  %v3833_v10 = vld [vmem:[%s5454_s3 + $0x154] ss:$8 sps:$4 sm:$0xff]   ;;  %v3835_v11 = vld [vmem:[%s5454_s3 + $0x50] ss:$8 sps:$4 sm:$0xff]  }
  0x14   :  { %1850 = vmatprep.subr.bf16.mxu1 %v3827_v6  ;;  %v3836_v12 = vld [vmem:[%s5454_s3 + $0x150] ss:$8 sps:$4 sm:$0xff]   ;;  %v3837_v13 = vld [vmem:[%s5454_s3 + $0x44] ss:$8 sps:$4 sm:$0xff]   ;;  %v3841_v15 = vld [vmem:[%s5454_s3 + $0x40] ss:$8 sps:$4 sm:$0xff]  }
  0x15   :  { %v3839_v14 = vld [vmem:[%s5454_s3 + $0x144] ss:$8 sps:$4 sm:$0xff]   ;;  %v3842_v16 = vld [vmem:[%s5454_s3 + $0x140] ss:$8 sps:$4 sm:$0xff]   ;;  %v3843_v17 = vld [vmem:[%s5454_s3 + $0x34] ss:$8 sps:$4 sm:$0xff]  }
  0x16   :  { %1810 = vmatpush1.bf16.msra.mxu0 %v3829_v7  ;;  %v3845_v18 = vld [vmem:[%s5454_s3 + $0x134] ss:$8 sps:$4 sm:$0xff]   ;;  %v3847_v19 = vld [vmem:[%s5454_s3 + $0x30] ss:$8 sps:$4 sm:$0xff]   ;;  %v3849_v21 = vld [vmem:[%s5454_s3 + $0x24] ss:$8 sps:$4 sm:$0xff]  }
  0x17   :  { %1851 = vmatpush1.bf16.msra.mxu1 %v3830_v8  ;;  %1811 = vmatprep.subr.bf16.mxu0 %v3831_v9  ;;  %v3848_v20 = vld [vmem:[%s5454_s3 + $0x130] ss:$8 sps:$4 sm:$0xff]   ;;  %v3851_v22 = vld [vmem:[%s5454_s3 + $0x124] ss:$8 sps:$4 sm:$0xff]   ;;  %v3853_v23 = vld [vmem:[%s5454_s3 + $0x20] ss:$8 sps:$4 sm:$0xff]  }
  0x18   :  { %1852 = vmatprep.subr.bf16.mxu1 %v3833_v10  ;;  %v3854_v24 = vld [vmem:[%s5454_s3 + $0x120] ss:$8 sps:$4 sm:$0xff]   ;;  %v3855_v25 = vld [vmem:[%s5454_s3 + $0x14] ss:$8 sps:$4 sm:$0xff]   ;;  %v3859_v27 = vld [vmem:[%s5454_s3 + $0x10] ss:$8 sps:$4 sm:$0xff]  }
  0x19   :  { %v3857_v26 = vld [vmem:[%s5454_s3 + $0x114] ss:$8 sps:$4 sm:$0xff]   ;;  %v3860_v28 = vld [vmem:[%s5454_s3 + $0x110] ss:$8 sps:$4 sm:$0xff]   ;;  %v3861_v29 = vld [vmem:[%s5454_s3 + $0x4] ss:$8 sps:$4 sm:$0xff]  }
  0x1a   :  { %1812 = vmatpush1.bf16.msra.mxu0 %v3835_v11  ;;  %v3863_v30 = vld [vmem:[%s5454_s3 + $0x104] ss:$8 sps:$4 sm:$0xff]   ;;  %v3865_v31 = vld [vmem:[%s5454_s3] ss:$8 sps:$4 sm:$0xff]   ;;  %v3867_v33 = vld [vmem:[%s5454_s3 + $0xf4] ss:$8 sps:$4 sm:$0xff]  }
  0x1b   :  { %1853 = vmatpush1.bf16.msra.mxu1 %v3836_v12  ;;  %1813 = vmatprep.subr.bf16.mxu0 %v3837_v13  ;;  %v3866_v32 = vld [vmem:[%s5454_s3 + $0x100] ss:$8 sps:$4 sm:$0xff]   ;;  %v3869_v34 = vld [vmem:[%s5454_s3 + $0x1f4] ss:$8 sps:$4 sm:$0xff]   ;;  %v3871_v35 = vld [vmem:[%s5454_s3 + $0xf0] ss:$8 sps:$4 sm:$0xff]  }
  0x1c   :  { %1854 = vmatprep.subr.bf16.mxu1 %v3839_v14  ;;  %v3872_v36 = vld [vmem:[%s5454_s3 + $0x1f0] ss:$8 sps:$4 sm:$0xff]   ;;  %v3873_v37 = vld [vmem:[%s5454_s3 + $0xe4] ss:$8 sps:$4 sm:$0xff]   ;;  %v3877_v39 = vld [vmem:[%s5454_s3 + $0xe0] ss:$8 sps:$4 sm:$0xff]  }
  0x1d   :  { %v3875_v38 = vld [vmem:[%s5454_s3 + $0x1e4] ss:$8 sps:$4 sm:$0xff]   ;;  %v3878_v40 = vld [vmem:[%s5454_s3 + $0x1e0] ss:$8 sps:$4 sm:$0xff]   ;;  %v3879_v41 = vld [vmem:[%s5454_s3 + $0xd4] ss:$8 sps:$4 sm:$0xff]  }
  0x1e   :  { %1814 = vmatpush1.bf16.msra.mxu0 %v3841_v15  ;;  %v3881_v42 = vld [vmem:[%s5454_s3 + $0x1d4] ss:$8 sps:$4 sm:$0xff]   ;;  %v3883_v43 = vld [vmem:[%s5454_s3 + $0xd0] ss:$8 sps:$4 sm:$0xff]   ;;  %v3885_v45 = vld [vmem:[%s5454_s3 + $0xc4] ss:$8 sps:$4 sm:$0xff]  }
  0x1f   :  { %1855 = vmatpush1.bf16.msra.mxu1 %v3842_v16  ;;  %1815 = vmatprep.subr.bf16.mxu0 %v3843_v17  ;;  %v3884_v44 = vld [vmem:[%s5454_s3 + $0x1d0] ss:$8 sps:$4 sm:$0xff]   ;;  %v3887_v46 = vld [vmem:[%s5454_s3 + $0x1c4] ss:$8 sps:$4 sm:$0xff]   ;;  %v3889_v49 = vld [vmem:[%s5454_s3 + $0xc0] ss:$8 sps:$4 sm:$0xff]  }
  0x20   :  { %1856 = vmatprep.subr.bf16.mxu1 %v3845_v18  ;;  %v3337_v47 = vld [vmem:[%s5452_s1 + $0x1] ss:$16 sm:$0x3]  ;;  %v3339_v48 = vld [vmem:[%s5452_s1 + $0x3] ss:$16 sm:$0x3] }
  0x21   :  { %v3890_v50 = vld [vmem:[%s5454_s3 + $0x1c0] ss:$8 sps:$4 sm:$0xff]   ;;  %v128_v51 = vpack.c.bf16 %v3337_v47, %v3337_v47  ;;  %v130_v52 = vpack.c.bf16 %v3339_v48, %v3339_v48  ;;  %v3891_v53 = vld [vmem:[%s5454_s3 + $0xb4] ss:$8 sps:$4 sm:$0xff]   ;;  %v3895_v55 = vld [vmem:[%s5454_s3 + $0xb0] ss:$8 sps:$4 sm:$0xff]  }
  0x22   :  { %1816 = vmatpush1.bf16.msra.mxu0 %v3847_v19  ;;  %v3893_v54 = vld [vmem:[%s5454_s3 + $0x1b4] ss:$8 sps:$4 sm:$0xff]   ;;  %v3896_v56 = vld [vmem:[%s5454_s3 + $0x1b0] ss:$8 sps:$4 sm:$0xff]   ;;  %v3897_v57 = vld [vmem:[%s5454_s3 + $0xa4] ss:$8 sps:$4 sm:$0xff]  }
  0x23   :  { %1857 = vmatpush1.bf16.msra.mxu1 %v3848_v20  ;;  %1817 = vmatprep.subr.bf16.mxu0 %v3849_v21  ;;  %v3899_v58 = vld [vmem:[%s5454_s3 + $0x1a4] ss:$8 sps:$4 sm:$0xff]   ;;  %v3901_v59 = vld [vmem:[%s5454_s3 + $0xa0] ss:$8 sps:$4 sm:$0xff]   ;;  %v3903_v61 = vld [vmem:[%s5454_s3 + $0x94] ss:$8 sps:$4 sm:$0xff]  }
  0x24   :  { %1858 = vmatprep.subr.bf16.mxu1 %v3851_v22  ;;  %1839 = vmatprep.mubr.bf16.mxu0 %v128_v51  ;;  %v3902_v60 = vld [vmem:[%s5454_s3 + $0x1a0] ss:$8 sps:$4 sm:$0xff]   ;;  %v3905_v62 = vld [vmem:[%s5454_s3 + $0x194] ss:$8 sps:$4 sm:$0xff]   ;;  %v3907_v63 = vld [vmem:[%s5454_s3 + $0x90] ss:$8 sps:$4 sm:$0xff]  }
  0x25   :  { %1880 = vmatprep.mubr.bf16.mxu1 %v130_v52  ;;  %v3908_v0 = vld [vmem:[%s5454_s3 + $0x190] ss:$8 sps:$4 sm:$0xff]   ;;  %v3909_v1 = vld [vmem:[%s5454_s3 + $0x84] ss:$8 sps:$4 sm:$0xff]   ;;  %v3913_v3 = vld [vmem:[%s5454_s3 + $0x80] ss:$8 sps:$4 sm:$0xff]  }
  0x26   :  { %1818 = vmatpush1.bf16.msra.mxu0 %v3853_v23  ;;  %v3911_v2 = vld [vmem:[%s5454_s3 + $0x184] ss:$8 sps:$4 sm:$0xff]   ;;  %v80_v4 = vld [vmem:[%s5452_s1] ss:$16 sm:$0x3]  ;;  %vm4458_vm2 = vmmov 0  }
  0x27   :  { %1859 = vmatpush1.bf16.msra.mxu1 %v3854_v24  ;;  %1819 = vmatprep.subr.bf16.mxu0 %v3855_v25  ;;  %v3914_v5 = vld [vmem:[%s5454_s3 + $0x180] ss:$8 sps:$4 sm:$0xff]   ;;  %v3917_v7 = vld [vmem:[%s5454_s3 + $0x274] ss:$8 sps:$4 sm:$0xff]   ;;  %v127_v9 = vpack.c.bf16 %v80_v4, %v80_v4  ;;  %v3915_v11 = vld [vmem:[%s5454_s3 + $0x270] ss:$8 sps:$4 sm:$0xff]  }
  0x28   :  { %1860 = vmatprep.subr.bf16.mxu1 %v3857_v26  ;;  %v3338_v6 = vld [vmem:[%s5452_s1 + $0x2] ss:$16 sm:$0x3]  ;;  %v3920_v8 = vld [vmem:[%s5454_s3 + $0x374] ss:$8 sps:$4 sm:$0xff]   ;;  %vm3323_vm4 = vcmask 1024  }
  0x29   :  { %v129_v10 = vpack.c.bf16 %v3338_v6, %v3338_v6  ;;  %v3918_v12 = vld [vmem:[%s5454_s3 + $0x370] ss:$8 sps:$4 sm:$0xff]   ;;  %v3923_v13 = vld [vmem:[%s5454_s3 + $0x264] ss:$8 sps:$4 sm:$0xff]   ;;  %v3921_v15 = vld [vmem:[%s5454_s3 + $0x260] ss:$8 sps:$4 sm:$0xff]  }
  0x2a   :  { %1820 = vmatpush1.bf16.msra.mxu0 %v3859_v27  ;;  %v3926_v14 = vld [vmem:[%s5454_s3 + $0x364] ss:$8 sps:$4 sm:$0xff]   ;;  %v3924_v16 = vld [vmem:[%s5454_s3 + $0x360] ss:$8 sps:$4 sm:$0xff]   ;;  %v3929_v17 = vld [vmem:[%s5454_s3 + $0x254] ss:$8 sps:$4 sm:$0xff]  }
  0x2b   :  { %1861 = vmatpush1.bf16.msra.mxu1 %v3860_v28  ;;  %1821 = vmatprep.subr.bf16.mxu0 %v3861_v29  ;;  %v3932_v18 = vld [vmem:[%s5454_s3 + $0x354] ss:$8 sps:$4 sm:$0xff]   ;;  %v3927_v19 = vld [vmem:[%s5454_s3 + $0x250] ss:$8 sps:$4 sm:$0xff]   ;;  %v3935_v21 = vld [vmem:[%s5454_s3 + $0x244] ss:$8 sps:$4 sm:$0xff]  }
  0x2c   :  { %1862 = vmatprep.subr.bf16.mxu1 %v3863_v30  ;;  %v3930_v20 = vld [vmem:[%s5454_s3 + $0x350] ss:$8 sps:$4 sm:$0xff]   ;;  %v3938_v22 = vld [vmem:[%s5454_s3 + $0x344] ss:$8 sps:$4 sm:$0xff]   ;;  %v3933_v23 = vld [vmem:[%s5454_s3 + $0x240] ss:$8 sps:$4 sm:$0xff]  }
  0x2d   :  { %v3936_v24 = vld [vmem:[%s5454_s3 + $0x340] ss:$8 sps:$4 sm:$0xff]   ;;  %v3941_v25 = vld [vmem:[%s5454_s3 + $0x234] ss:$8 sps:$4 sm:$0xff]   ;;  %v3939_v27 = vld [vmem:[%s5454_s3 + $0x230] ss:$8 sps:$4 sm:$0xff]  }
  0x2e   :  { %1822 = vmatpush1.bf16.msra.mxu0 %v3865_v31  ;;  %v3944_v26 = vld [vmem:[%s5454_s3 + $0x334] ss:$8 sps:$4 sm:$0xff]   ;;  %v3942_v28 = vld [vmem:[%s5454_s3 + $0x330] ss:$8 sps:$4 sm:$0xff]   ;;  %v3947_v29 = vld [vmem:[%s5454_s3 + $0x224] ss:$8 sps:$4 sm:$0xff]  }
  0x2f   :  { %1863 = vmatpush1.bf16.msra.mxu1 %v3866_v32  ;;  %1823 = vmatprep.subr.bf16.mxu0 %v3867_v33  ;;  %v3950_v30 = vld [vmem:[%s5454_s3 + $0x324] ss:$8 sps:$4 sm:$0xff]   ;;  %v3945_v31 = vld [vmem:[%s5454_s3 + $0x220] ss:$8 sps:$4 sm:$0xff]   ;;  %v3953_v33 = vld [vmem:[%s5454_s3 + $0x214] ss:$8 sps:$4 sm:$0xff]  }
  0x30   :  { %1864 = vmatprep.subr.bf16.mxu1 %v3869_v34  ;;  %v3948_v32 = vld [vmem:[%s5454_s3 + $0x320] ss:$8 sps:$4 sm:$0xff]   ;;  %v3956_v34 = vld [vmem:[%s5454_s3 + $0x314] ss:$8 sps:$4 sm:$0xff]   ;;  %v3963_v47 = vld [vmem:[%s5454_s3 + $0x2f0] ss:$8 sps:$4 sm:$0xff]  }
  0x31   :  { %v3966_v48 = vld [vmem:[%s5454_s3 + $0x3f0] ss:$8 sps:$4 sm:$0xff]   ;;  %v3969_v51 = vld [vmem:[%s5454_s3 + $0x2e0] ss:$8 sps:$4 sm:$0xff]   ;;  %v4004_v6 = vld [vmem:[%s5454_s3 + $0x394] ss:$8 sps:$4 sm:$0xff]  }
  0x32   :  { %1824 = vmatpush2.bf16.msra.mxu0 %v3871_v35  ;;  %v3951_v35 = vld [vmem:[%s5454_s3 + $0x210] ss:$8 sps:$4 sm:$0xff]   ;;  %v3972_v52 = vld [vmem:[%s5454_s3 + $0x3e0] ss:$8 sps:$4 sm:$0xff]  }
  0x33   :  { %1865 = vmatpush2.bf16.msra.mxu1 %v3872_v36  ;;  %1825 = vmatprep.subr.bf16.mxu0 %v3873_v37  ;;  %v3341_v36 = vld [vmem:[%s5452_s1 + $0x5] ss:$16 sm:$0x3]  ;;  %v3954_v37 = vld [vmem:[%s5454_s3 + $0x310] ss:$8 sps:$4 sm:$0xff]  }
  0x34   :  { %1866 = vmatprep.subr.bf16.mxu1 %v3875_v38  ;;  %v132_v38 = vpack.c.bf16 %v3341_v36, %v3341_v36  ;;  %v3996_v4 = vld [vmem:[%s5454_s3 + $0x3a0] ss:$8 sps:$4 sm:$0xff]  }
  0x35   :  { %v4032_v36 = vld [vmem:[%s5454_s3 + $0x540] ss:$8 sps:$4 sm:$0xff]  }
  0x36   :  { %1826 = vmatpush2.bf16.msra.mxu0 %v3877_v39  ;;  %v3343_v39 = vld [vmem:[%s5452_s1 + $0x7] ss:$16 sm:$0x3] }
  0x37   :  { %1867 = vmatpush2.bf16.msra.mxu1 %v3878_v40  ;;  %1827 = vmatprep.subr.bf16.mxu0 %v3879_v41  ;;  %v3959_v40 = vld [vmem:[%s5454_s3 + $0x204] ss:$8 sps:$4 sm:$0xff]  }
  0x38   :  { %1868 = vmatprep.subr.bf16.mxu1 %v3881_v42  ;;  %v3962_v41 = vld [vmem:[%s5454_s3 + $0x304] ss:$8 sps:$4 sm:$0xff]   ;;  %v134_v42 = vpack.c.bf16 %v3343_v39, %v3343_v39  ;;  %v4035_v39 = vld [vmem:[%s5454_s3 + $0x430] ss:$8 sps:$4 sm:$0xff]  }
  0x3a   :  { %1828 = vmatpush2.bf16.msra.mxu0 %v3883_v43  ;;  %v3957_v43 = vld [vmem:[%s5454_s3 + $0x200] ss:$8 sps:$4 sm:$0xff]  }
  0x3b   :  { %1869 = vmatpush2.bf16.msra.mxu1 %v3884_v44  ;;  %1829 = vmatprep.subr.bf16.mxu0 %v3885_v45  ;;  %v3960_v44 = vld [vmem:[%s5454_s3 + $0x300] ss:$8 sps:$4 sm:$0xff]   ;;  %v3965_v45 = vld [vmem:[%s5454_s3 + $0x2f4] ss:$8 sps:$4 sm:$0xff]  }
  0x3c   :  { %1870 = vmatprep.subr.bf16.mxu1 %v3887_v46  ;;  %v3968_v46 = vld [vmem:[%s5454_s3 + $0x3f4] ss:$8 sps:$4 sm:$0xff]  }
  0x3e   :  { %1830 = vmatpush2.bf16.msra.mxu0 %v3889_v49  ;;  %v3971_v49 = vld [vmem:[%s5454_s3 + $0x2e4] ss:$8 sps:$4 sm:$0xff]  }
  0x3f   :  { %1871 = vmatpush2.bf16.msra.mxu1 %v3890_v50  ;;  %1831 = vmatprep.subr.bf16.mxu0 %v3891_v53  ;;  %v3974_v50 = vld [vmem:[%s5454_s3 + $0x3e4] ss:$8 sps:$4 sm:$0xff]   ;;  %v3977_v53 = vld [vmem:[%s5454_s3 + $0x2d4] ss:$8 sps:$4 sm:$0xff]  }
  0x40   :  { %1872 = vmatprep.subr.bf16.mxu1 %v3893_v54  ;;  %v3980_v54 = vld [vmem:[%s5454_s3 + $0x3d4] ss:$8 sps:$4 sm:$0xff]  }
  0x42   :  { %1832 = vmatpush2.bf16.msra.mxu0 %v3895_v55  ;;  %v3975_v55 = vld [vmem:[%s5454_s3 + $0x2d0] ss:$8 sps:$4 sm:$0xff]  }
  0x43   :  { %1873 = vmatpush2.bf16.msra.mxu1 %v3896_v56  ;;  %1833 = vmatprep.subr.bf16.mxu0 %v3897_v57  ;;  %v3978_v56 = vld [vmem:[%s5454_s3 + $0x3d0] ss:$8 sps:$4 sm:$0xff]   ;;  %v3983_v57 = vld [vmem:[%s5454_s3 + $0x2c4] ss:$8 sps:$4 sm:$0xff]  }
  0x44   :  { %1874 = vmatprep.subr.bf16.mxu1 %v3899_v58  ;;  %v3986_v58 = vld [vmem:[%s5454_s3 + $0x3c4] ss:$8 sps:$4 sm:$0xff]  }
  0x46   :  { %1834 = vmatpush2.bf16.msra.mxu0 %v3901_v59  ;;  %v3981_v59 = vld [vmem:[%s5454_s3 + $0x2c0] ss:$8 sps:$4 sm:$0xff]  }
  0x47   :  { %1875 = vmatpush2.bf16.msra.mxu1 %v3902_v60  ;;  %1835 = vmatprep.subr.bf16.mxu0 %v3903_v61  ;;  %v3984_v60 = vld [vmem:[%s5454_s3 + $0x3c0] ss:$8 sps:$4 sm:$0xff]   ;;  %v3989_v61 = vld [vmem:[%s5454_s3 + $0x2b4] ss:$8 sps:$4 sm:$0xff]  }
  0x48   :  { %1876 = vmatprep.subr.bf16.mxu1 %v3905_v62  ;;  %v3992_v62 = vld [vmem:[%s5454_s3 + $0x3b4] ss:$8 sps:$4 sm:$0xff]  }
  0x4a   :  { %1836 = vmatpush2.bf16.msra.mxu0 %v3907_v63  ;;  %v3987_v63 = vld [vmem:[%s5454_s3 + $0x2b0] ss:$8 sps:$4 sm:$0xff]  }
  0x4b   :  { %1877 = vmatpush2.bf16.msra.mxu1 %v3908_v0  ;;  %1837 = vmatprep.subr.bf16.mxu0 %v3909_v1  ;;  %v3990_v0 = vld [vmem:[%s5454_s3 + $0x3b0] ss:$8 sps:$4 sm:$0xff]   ;;  %v3995_v1 = vld [vmem:[%s5454_s3 + $0x2a4] ss:$8 sps:$4 sm:$0xff]  }
  0x4c   :  { %1878 = vmatprep.subr.bf16.mxu1 %v3911_v2  ;;  %v3998_v2 = vld [vmem:[%s5454_s3 + $0x3a4] ss:$8 sps:$4 sm:$0xff]  }
  0x4e   :  { %1838 = vmatpush2.bf16.msra.mxu0 %v3913_v3  ;;  %v3993_v3 = vld [vmem:[%s5454_s3 + $0x2a0] ss:$8 sps:$4 sm:$0xff]  }
  0x4f   :  { %1879 = vmatpush2.bf16.msra.mxu1 %v3914_v5  ;;  %1889 = vmatprep.subr.bf16.mxu0 %v3917_v7  ;;  %v4001_v5 = vld [vmem:[%s5454_s3 + $0x294] ss:$8 sps:$4 sm:$0xff]   ;;  %v3999_v7 = vld [vmem:[%s5454_s3 + $0x290] ss:$8 sps:$4 sm:$0xff]  }
  0x50   :  { %1930 = vmatprep.subr.bf16.mxu1 %v3920_v8  ;;  %v4002_v8 = vld [vmem:[%s5454_s3 + $0x390] ss:$8 sps:$4 sm:$0xff]  }
  0x51   :  { %1840 = vmatmul.mubr.bf16.vlgmr.msra.gmra.mxu0 %v127_v9  ;;  %v4007_v9 = vld [vmem:[%s5454_s3 + $0x284] ss:$8 sps:$4 sm:$0xff]  }
  0x52   :  { %1881 = vmatmul.mubr.bf16.vlgmr.msra.gmra.mxu1 %v129_v10  ;;  %1890 = vmatpush1.bf16.msra.mxu0 %v3915_v11  ;;  %v4010_v10 = vld [vmem:[%s5454_s3 + $0x384] ss:$8 sps:$4 sm:$0xff]   ;;  %v4005_v11 = vld [vmem:[%s5454_s3 + $0x280] ss:$8 sps:$4 sm:$0xff]  }
  0x53   :  { %1931 = vmatpush1.bf16.msra.mxu1 %v3918_v12  ;;  %1891 = vmatprep.subr.bf16.mxu0 %v3923_v13  ;;  %v4008_v12 = vld [vmem:[%s5454_s3 + $0x380] ss:$8 sps:$4 sm:$0xff]   ;;  %v3340_v13 = vld [vmem:[%s5452_s1 + $0x4] ss:$16 sm:$0x3] }
  0x54   :  { %1932 = vmatprep.subr.bf16.mxu1 %v3926_v14  ;;  %1921 = vmatprep.mubr.bf16.mxu0 %v132_v38  ;;  %v3342_v14 = vld [vmem:[%s5452_s1 + $0x6] ss:$16 sm:$0x3] }
  0x55   :  { %1962 = vmatprep.mubr.bf16.mxu1 %v134_v42  ;;  %v4040_v38 = vld [vmem:[%s5454_s3 + $0x534] ss:$8 sps:$4 sm:$0xff]   ;;  %v4046_v42 = vld [vmem:[%s5454_s3 + $0x524] ss:$8 sps:$4 sm:$0xff]  }
  0x56   :  { %1892 = vmatpush1.bf16.msra.mxu0 %v3921_v15  ;;  %v4013_v15 = vld [vmem:[%s5454_s3 + $0x474] ss:$8 sps:$4 sm:$0xff]  }
  0x57   :  { %1933 = vmatpush1.bf16.msra.mxu1 %v3924_v16  ;;  %1893 = vmatprep.subr.bf16.mxu0 %v3929_v17  ;;  %v4016_v16 = vld [vmem:[%s5454_s3 + $0x574] ss:$8 sps:$4 sm:$0xff]   ;;  %v131_v17 = vpack.c.bf16 %v3340_v13, %v3340_v13 }
  0x58   :  { %1934 = vmatprep.subr.bf16.mxu1 %v3932_v18  ;;  %v133_v18 = vpack.c.bf16 %v3342_v14, %v3342_v14  ;;  %v4097_v13 = vld [vmem:[%s5454_s3 + $0x494] ss:$8 sps:$4 sm:$0xff]  }
  0x59   :  { %v4100_v14 = vld [vmem:[%s5454_s3 + $0x594] ss:$8 sps:$4 sm:$0xff]  }
  0x5a   :  { %1894 = vmatpush1.bf16.msra.mxu0 %v3927_v19  ;;  %v4011_v19 = vld [vmem:[%s5454_s3 + $0x470] ss:$8 sps:$4 sm:$0xff]  }
  0x5b   :  { %1935 = vmatpush1.bf16.msra.mxu1 %v3930_v20  ;;  %1895 = vmatprep.subr.bf16.mxu0 %v3935_v21  ;;  %v4014_v20 = vld [vmem:[%s5454_s3 + $0x570] ss:$8 sps:$4 sm:$0xff]   ;;  %v4019_v21 = vld [vmem:[%s5454_s3 + $0x464] ss:$8 sps:$4 sm:$0xff]  }
  0x5c   :  { %1936 = vmatprep.subr.bf16.mxu1 %v3938_v22  ;;  %v4022_v22 = vld [vmem:[%s5454_s3 + $0x564] ss:$8 sps:$4 sm:$0xff]  }
  0x5e   :  { %1896 = vmatpush1.bf16.msra.mxu0 %v3933_v23  ;;  %v4017_v23 = vld [vmem:[%s5454_s3 + $0x460] ss:$8 sps:$4 sm:$0xff]  }
  0x5f   :  { %1937 = vmatpush1.bf16.msra.mxu1 %v3936_v24  ;;  %1897 = vmatprep.subr.bf16.mxu0 %v3941_v25  ;;  %v4020_v24 = vld [vmem:[%s5454_s3 + $0x560] ss:$8 sps:$4 sm:$0xff]  }
  0x60   :  { %1938 = vmatprep.subr.bf16.mxu1 %v3944_v26  ;;  %v3345_v25 = vld [vmem:[%s5452_s1 + $0x9] ss:$16 sm:$0x3]  ;;  %v3347_v26 = vld [vmem:[%s5452_s1 + $0xb] ss:$16 sm:$0x3] }
  0x62   :  { %1898 = vmatpush1.bf16.msra.mxu0 %v3939_v27  ;;  %v4025_v27 = vld [vmem:[%s5454_s3 + $0x454] ss:$8 sps:$4 sm:$0xff]  }
  0x63   :  { %1939 = vmatpush1.bf16.msra.mxu1 %v3942_v28  ;;  %1899 = vmatprep.subr.bf16.mxu0 %v3947_v29  ;;  %v4028_v28 = vld [vmem:[%s5454_s3 + $0x554] ss:$8 sps:$4 sm:$0xff]   ;;  %v136_v29 = vpack.c.bf16 %v3345_v25, %v3345_v25 }
  0x64   :  { %1940 = vmatprep.subr.bf16.mxu1 %v3950_v30  ;;  %v138_v30 = vpack.c.bf16 %v3347_v26, %v3347_v26  ;;  %v3349_v25 = vld [vmem:[%s5452_s1 + $0xd] ss:$16 sm:$0x3] }
  0x66   :  { %1900 = vmatpush1.bf16.msra.mxu0 %v3945_v31  ;;  %v4023_v31 = vld [vmem:[%s5454_s3 + $0x450] ss:$8 sps:$4 sm:$0xff]  }
  0x67   :  { %1941 = vmatpush1.bf16.msra.mxu1 %v3948_v32  ;;  %1901 = vmatprep.subr.bf16.mxu0 %v3953_v33  ;;  %v4026_v32 = vld [vmem:[%s5454_s3 + $0x550] ss:$8 sps:$4 sm:$0xff]   ;;  %v4031_v33 = vld [vmem:[%s5454_s3 + $0x444] ss:$8 sps:$4 sm:$0xff]  }
  0x68   :  { %1942 = vmatprep.subr.bf16.mxu1 %v3956_v34  ;;  %v4034_v34 = vld [vmem:[%s5454_s3 + $0x544] ss:$8 sps:$4 sm:$0xff]  }
  0x6a   :  { %1902 = vmatpush1.bf16.msra.mxu0 %v3951_v35  ;;  %v4029_v35 = vld [vmem:[%s5454_s3 + $0x440] ss:$8 sps:$4 sm:$0xff]  }
  0x6b   :  { %1943 = vmatpush1.bf16.msra.mxu1 %v3954_v37  ;;  %1903 = vmatprep.subr.bf16.mxu0 %v3959_v40  ;;  %v4037_v37 = vld [vmem:[%s5454_s3 + $0x434] ss:$8 sps:$4 sm:$0xff]   ;;  %v4038_v40 = vld [vmem:[%s5454_s3 + $0x530] ss:$8 sps:$4 sm:$0xff]  }
  0x6c   :  { %1944 = vmatprep.subr.bf16.mxu1 %v3962_v41  ;;  %v4043_v41 = vld [vmem:[%s5454_s3 + $0x424] ss:$8 sps:$4 sm:$0xff]  }
  0x6e   :  { %1904 = vmatpush1.bf16.msra.mxu0 %v3957_v43  ;;  %v4041_v43 = vld [vmem:[%s5454_s3 + $0x420] ss:$8 sps:$4 sm:$0xff]  }
  0x6f   :  { %1945 = vmatpush1.bf16.msra.mxu1 %v3960_v44  ;;  %1905 = vmatprep.subr.bf16.mxu0 %v3965_v45  ;;  %v4044_v44 = vld [vmem:[%s5454_s3 + $0x520] ss:$8 sps:$4 sm:$0xff]   ;;  %v4049_v45 = vld [vmem:[%s5454_s3 + $0x414] ss:$8 sps:$4 sm:$0xff]  }
  0x70   :  { %1946 = vmatprep.subr.bf16.mxu1 %v3968_v46  ;;  %v4052_v46 = vld [vmem:[%s5454_s3 + $0x514] ss:$8 sps:$4 sm:$0xff]  }
  0x72   :  { %1906 = vmatpush2.bf16.msra.mxu0 %v3963_v47  ;;  %v4047_v47 = vld [vmem:[%s5454_s3 + $0x410] ss:$8 sps:$4 sm:$0xff]  }
  0x73   :  { %1947 = vmatpush2.bf16.msra.mxu1 %v3966_v48  ;;  %1907 = vmatprep.subr.bf16.mxu0 %v3971_v49  ;;  %v4050_v48 = vld [vmem:[%s5454_s3 + $0x510] ss:$8 sps:$4 sm:$0xff]   ;;  %v4055_v49 = vld [vmem:[%s5454_s3 + $0x404] ss:$8 sps:$4 sm:$0xff]  }
  0x74   :  { %1948 = vmatprep.subr.bf16.mxu1 %v3974_v50  ;;  %v4058_v50 = vld [vmem:[%s5454_s3 + $0x504] ss:$8 sps:$4 sm:$0xff]  }
  0x76   :  { %1908 = vmatpush2.bf16.msra.mxu0 %v3969_v51  ;;  %v4053_v51 = vld [vmem:[%s5454_s3 + $0x400] ss:$8 sps:$4 sm:$0xff]  }
  0x77   :  { %1949 = vmatpush2.bf16.msra.mxu1 %v3972_v52  ;;  %1909 = vmatprep.subr.bf16.mxu0 %v3977_v53  ;;  %v4056_v52 = vld [vmem:[%s5454_s3 + $0x500] ss:$8 sps:$4 sm:$0xff]   ;;  %v4061_v53 = vld [vmem:[%s5454_s3 + $0x4f4] ss:$8 sps:$4 sm:$0xff]  }
  0x78   :  { %1950 = vmatprep.subr.bf16.mxu1 %v3980_v54  ;;  %v4064_v54 = vld [vmem:[%s5454_s3 + $0x5f4] ss:$8 sps:$4 sm:$0xff]  }
  0x7a   :  { %1910 = vmatpush2.bf16.msra.mxu0 %v3975_v55  ;;  %v4059_v55 = vld [vmem:[%s5454_s3 + $0x4f0] ss:$8 sps:$4 sm:$0xff]  }
  0x7b   :  { %1951 = vmatpush2.bf16.msra.mxu1 %v3978_v56  ;;  %1911 = vmatprep.subr.bf16.mxu0 %v3983_v57  ;;  %v4062_v56 = vld [vmem:[%s5454_s3 + $0x5f0] ss:$8 sps:$4 sm:$0xff]   ;;  %v4067_v57 = vld [vmem:[%s5454_s3 + $0x4e4] ss:$8 sps:$4 sm:$0xff]  }
  0x7c   :  { %1952 = vmatprep.subr.bf16.mxu1 %v3986_v58  ;;  %v4070_v58 = vld [vmem:[%s5454_s3 + $0x5e4] ss:$8 sps:$4 sm:$0xff]  }
  0x7e   :  { %1912 = vmatpush2.bf16.msra.mxu0 %v3981_v59  ;;  %v4065_v59 = vld [vmem:[%s5454_s3 + $0x4e0] ss:$8 sps:$4 sm:$0xff]  }
  0x7f   :  { %1953 = vmatpush2.bf16.msra.mxu1 %v3984_v60  ;;  %1913 = vmatprep.subr.bf16.mxu0 %v3989_v61  ;;  %v4068_v60 = vld [vmem:[%s5454_s3 + $0x5e0] ss:$8 sps:$4 sm:$0xff]   ;;  %v4073_v61 = vld [vmem:[%s5454_s3 + $0x4d4] ss:$8 sps:$4 sm:$0xff]  }
  0x80   :  { %1954 = vmatprep.subr.bf16.mxu1 %v3992_v62  ;;  %v4076_v62 = vld [vmem:[%s5454_s3 + $0x5d4] ss:$8 sps:$4 sm:$0xff]  }
  0x82   :  { %1914 = vmatpush2.bf16.msra.mxu0 %v3987_v63  ;;  %v4071_v63 = vld [vmem:[%s5454_s3 + $0x4d0] ss:$8 sps:$4 sm:$0xff]  }
  0x83   :  { %1955 = vmatpush2.bf16.msra.mxu1 %v3990_v0  ;;  %1915 = vmatprep.subr.bf16.mxu0 %v3995_v1  ;;  %v4074_v0 = vld [vmem:[%s5454_s3 + $0x5d0] ss:$8 sps:$4 sm:$0xff]   ;;  %v4079_v1 = vld [vmem:[%s5454_s3 + $0x4c4] ss:$8 sps:$4 sm:$0xff]  }
  0x84   :  { %1956 = vmatprep.subr.bf16.mxu1 %v3998_v2  ;;  %v4082_v2 = vld [vmem:[%s5454_s3 + $0x5c4] ss:$8 sps:$4 sm:$0xff]  }
  0x86   :  { %1916 = vmatpush2.bf16.msra.mxu0 %v3993_v3  ;;  %v4077_v3 = vld [vmem:[%s5454_s3 + $0x4c0] ss:$8 sps:$4 sm:$0xff]  }
  0x87   :  { %1957 = vmatpush2.bf16.msra.mxu1 %v3996_v4  ;;  %1917 = vmatprep.subr.bf16.mxu0 %v4001_v5  ;;  %v4080_v4 = vld [vmem:[%s5454_s3 + $0x5c0] ss:$8 sps:$4 sm:$0xff]   ;;  %v4085_v5 = vld [vmem:[%s5454_s3 + $0x4b4] ss:$8 sps:$4 sm:$0xff]  }
  0x88   :  { %1958 = vmatprep.subr.bf16.mxu1 %v4004_v6  ;;  %v4088_v6 = vld [vmem:[%s5454_s3 + $0x5b4] ss:$8 sps:$4 sm:$0xff]  }
  0x8a   :  { %1918 = vmatpush2.bf16.msra.mxu0 %v3999_v7  ;;  %v4083_v7 = vld [vmem:[%s5454_s3 + $0x4b0] ss:$8 sps:$4 sm:$0xff]  }
  0x8b   :  { %1959 = vmatpush2.bf16.msra.mxu1 %v4002_v8  ;;  %1919 = vmatprep.subr.bf16.mxu0 %v4007_v9  ;;  %v4086_v8 = vld [vmem:[%s5454_s3 + $0x5b0] ss:$8 sps:$4 sm:$0xff]   ;;  %v4091_v9 = vld [vmem:[%s5454_s3 + $0x4a4] ss:$8 sps:$4 sm:$0xff]  }
  0x8c   :  { %1960 = vmatprep.subr.bf16.mxu1 %v4010_v10  ;;  %v4094_v10 = vld [vmem:[%s5454_s3 + $0x5a4] ss:$8 sps:$4 sm:$0xff]  }
  0x8e   :  { %1920 = vmatpush2.bf16.msra.mxu0 %v4005_v11  ;;  %v4089_v11 = vld [vmem:[%s5454_s3 + $0x4a0] ss:$8 sps:$4 sm:$0xff]  }
  0x8f   :  { %1961 = vmatpush2.bf16.msra.mxu1 %v4008_v12  ;;  %1971 = vmatprep.subr.bf16.mxu0 %v4013_v15  ;;  %v4092_v12 = vld [vmem:[%s5454_s3 + $0x5a0] ss:$8 sps:$4 sm:$0xff]   ;;  %v4095_v15 = vld [vmem:[%s5454_s3 + $0x490] ss:$8 sps:$4 sm:$0xff]  }
  0x90   :  { %2012 = vmatprep.subr.bf16.mxu1 %v4016_v16  ;;  %v4098_v16 = vld [vmem:[%s5454_s3 + $0x590] ss:$8 sps:$4 sm:$0xff]  }
  0x91   :  { %1922 = vmatmul.mubr.bf16.vlgmr.msra.gmra.mxu0 %v131_v17  ;;  %v4103_v17 = vld [vmem:[%s5454_s3 + $0x484] ss:$8 sps:$4 sm:$0xff]  }
  0x92   :  { %1963 = vmatmul.mubr.bf16.vlgmr.msra.gmra.mxu1 %v133_v18  ;;  %1972 = vmatpush1.bf16.msra.mxu0 %v4011_v19  ;;  %v4106_v18 = vld [vmem:[%s5454_s3 + $0x584] ss:$8 sps:$4 sm:$0xff]   ;;  %v4101_v19 = vld [vmem:[%s5454_s3 + $0x480] ss:$8 sps:$4 sm:$0xff]  }
  0x93   :  { %2013 = vmatpush1.bf16.msra.mxu1 %v4014_v20  ;;  %1973 = vmatprep.subr.bf16.mxu0 %v4019_v21  ;;  %v3344_v20 = vld [vmem:[%s5452_s1 + $0x8] ss:$16 sm:$0x3] }
  0x94   :  { %2014 = vmatprep.subr.bf16.mxu1 %v4022_v22  ;;  %2003 = vmatprep.mubr.bf16.mxu0 %v136_v29  ;;  %v4104_v21 = vld [vmem:[%s5454_s3 + $0x580] ss:$8 sps:$4 sm:$0xff]   ;;  %v135_v26 = vpack.c.bf16 %v3344_v20, %v3344_v20  ;;  %v4107_v29 = vld [vmem:[%s5454_s3 + $0x670] ss:$8 sps:$4 sm:$0xff]  }
  0x95   :  { %2044 = vmatprep.mubr.bf16.mxu1 %v138_v30  ;;  %v3346_v22 = vld [vmem:[%s5452_s1 + $0xa] ss:$16 sm:$0x3] }
  0x96   :  { %1974 = vmatpush1.bf16.msra.mxu0 %v4017_v23  ;;  %v4109_v23 = vld [vmem:[%s5454_s3 + $0x674] ss:$8 sps:$4 sm:$0xff]   ;;  %v4110_v30 = vld [vmem:[%s5454_s3 + $0x770] ss:$8 sps:$4 sm:$0xff]   ;;  %v4188_v20 = vld [vmem:[%s5454_s3 + $0x7a0] ss:$8 sps:$4 sm:$0xff]  }
  0x97   :  { %2015 = vmatpush1.bf16.msra.mxu1 %v4020_v24  ;;  %1975 = vmatprep.subr.bf16.mxu0 %v4025_v27  ;;  %v4112_v24 = vld [vmem:[%s5454_s3 + $0x774] ss:$8 sps:$4 sm:$0xff]   ;;  %v137_v27 = vpack.c.bf16 %v3346_v22, %v3346_v22 }
  0x98   :  { %2016 = vmatprep.subr.bf16.mxu1 %v4028_v28  ;;  %v3351_v28 = vld [vmem:[%s5452_s1 + $0xf] ss:$16 sm:$0x3] }
  0x99   :  { %v4196_v22 = vld [vmem:[%s5454_s3 + $0x794] ss:$8 sps:$4 sm:$0xff]  }
  0x9a   :  { %1976 = vmatpush1.bf16.msra.mxu0 %v4023_v31  ;;  %v4115_v31 = vld [vmem:[%s5454_s3 + $0x664] ss:$8 sps:$4 sm:$0xff]  }
  0x9b   :  { %2017 = vmatpush1.bf16.msra.mxu1 %v4026_v32  ;;  %1977 = vmatprep.subr.bf16.mxu0 %v4031_v33  ;;  %v4118_v32 = vld [vmem:[%s5454_s3 + $0x764] ss:$8 sps:$4 sm:$0xff]   ;;  %v140_v33 = vpack.c.bf16 %v3349_v25, %v3349_v25 }
  0x9c   :  { %2018 = vmatprep.subr.bf16.mxu1 %v4034_v34  ;;  %v142_v34 = vpack.c.bf16 %v3351_v28, %v3351_v28  ;;  %v4199_v25 = vld [vmem:[%s5454_s3 + $0x684] ss:$8 sps:$4 sm:$0xff]  }
  0x9d   :  { %v3348_v28 = vld [vmem:[%s5452_s1 + $0xc] ss:$16 sm:$0x3] }
  0x9e   :  { %1978 = vmatpush1.bf16.msra.mxu0 %v4029_v35  ;;  %v4113_v35 = vld [vmem:[%s5454_s3 + $0x660] ss:$8 sps:$4 sm:$0xff]  }
  0x9f   :  { %2019 = vmatpush1.bf16.msra.mxu1 %v4032_v36  ;;  %1979 = vmatprep.subr.bf16.mxu0 %v4037_v37  ;;  %v4116_v36 = vld [vmem:[%s5454_s3 + $0x760] ss:$8 sps:$4 sm:$0xff]   ;;  %v4121_v37 = vld [vmem:[%s5454_s3 + $0x654] ss:$8 sps:$4 sm:$0xff]  }
  0xa0   :  { %2020 = vmatprep.subr.bf16.mxu1 %v4040_v38  ;;  %v4124_v38 = vld [vmem:[%s5454_s3 + $0x754] ss:$8 sps:$4 sm:$0xff]  }
  0xa2   :  { %1980 = vmatpush1.bf16.msra.mxu0 %v4035_v39  ;;  %v4119_v39 = vld [vmem:[%s5454_s3 + $0x650] ss:$8 sps:$4 sm:$0xff]  }
  0xa3   :  { %2021 = vmatpush1.bf16.msra.mxu1 %v4038_v40  ;;  %1981 = vmatprep.subr.bf16.mxu0 %v4043_v41  ;;  %v4122_v40 = vld [vmem:[%s5454_s3 + $0x750] ss:$8 sps:$4 sm:$0xff]   ;;  %v4127_v41 = vld [vmem:[%s5454_s3 + $0x644] ss:$8 sps:$4 sm:$0xff]  }
  0xa4   :  { %2022 = vmatprep.subr.bf16.mxu1 %v4046_v42  ;;  %v4130_v42 = vld [vmem:[%s5454_s3 + $0x744] ss:$8 sps:$4 sm:$0xff]  }
  0xa6   :  { %1982 = vmatpush1.bf16.msra.mxu0 %v4041_v43  ;;  %v4125_v43 = vld [vmem:[%s5454_s3 + $0x640] ss:$8 sps:$4 sm:$0xff]  }
  0xa7   :  { %2023 = vmatpush1.bf16.msra.mxu1 %v4044_v44  ;;  %1983 = vmatprep.subr.bf16.mxu0 %v4049_v45  ;;  %v4128_v44 = vld [vmem:[%s5454_s3 + $0x740] ss:$8 sps:$4 sm:$0xff]   ;;  %v4133_v45 = vld [vmem:[%s5454_s3 + $0x634] ss:$8 sps:$4 sm:$0xff]  }
  0xa8   :  { %2024 = vmatprep.subr.bf16.mxu1 %v4052_v46  ;;  %v4136_v46 = vld [vmem:[%s5454_s3 + $0x734] ss:$8 sps:$4 sm:$0xff]  }
  0xaa   :  { %1984 = vmatpush1.bf16.msra.mxu0 %v4047_v47  ;;  %v4131_v47 = vld [vmem:[%s5454_s3 + $0x630] ss:$8 sps:$4 sm:$0xff]  }
  0xab   :  { %2025 = vmatpush1.bf16.msra.mxu1 %v4050_v48  ;;  %1985 = vmatprep.subr.bf16.mxu0 %v4055_v49  ;;  %v4134_v48 = vld [vmem:[%s5454_s3 + $0x730] ss:$8 sps:$4 sm:$0xff]   ;;  %v4139_v49 = vld [vmem:[%s5454_s3 + $0x624] ss:$8 sps:$4 sm:$0xff]  }
  0xac   :  { %2026 = vmatprep.subr.bf16.mxu1 %v4058_v50  ;;  %v4142_v50 = vld [vmem:[%s5454_s3 + $0x724] ss:$8 sps:$4 sm:$0xff]  }
  0xae   :  { %1986 = vmatpush1.bf16.msra.mxu0 %v4053_v51  ;;  %v4137_v51 = vld [vmem:[%s5454_s3 + $0x620] ss:$8 sps:$4 sm:$0xff]  }
  0xaf   :  { %2027 = vmatpush1.bf16.msra.mxu1 %v4056_v52  ;;  %1987 = vmatprep.subr.bf16.mxu0 %v4061_v53  ;;  %v4140_v52 = vld [vmem:[%s5454_s3 + $0x720] ss:$8 sps:$4 sm:$0xff]   ;;  %v4145_v53 = vld [vmem:[%s5454_s3 + $0x614] ss:$8 sps:$4 sm:$0xff]  }
  0xb0   :  { %2028 = vmatprep.subr.bf16.mxu1 %v4064_v54  ;;  %v4148_v54 = vld [vmem:[%s5454_s3 + $0x714] ss:$8 sps:$4 sm:$0xff]  }
  0xb2   :  { %1988 = vmatpush2.bf16.msra.mxu0 %v4059_v55  ;;  %v4143_v55 = vld [vmem:[%s5454_s3 + $0x610] ss:$8 sps:$4 sm:$0xff]  }
  0xb3   :  { %2029 = vmatpush2.bf16.msra.mxu1 %v4062_v56  ;;  %1989 = vmatprep.subr.bf16.mxu0 %v4067_v57  ;;  %v4146_v56 = vld [vmem:[%s5454_s3 + $0x710] ss:$8 sps:$4 sm:$0xff]   ;;  %v4151_v57 = vld [vmem:[%s5454_s3 + $0x604] ss:$8 sps:$4 sm:$0xff]  }
  0xb4   :  { %2030 = vmatprep.subr.bf16.mxu1 %v4070_v58  ;;  %v4154_v58 = vld [vmem:[%s5454_s3 + $0x704] ss:$8 sps:$4 sm:$0xff]  }
  0xb6   :  { %1990 = vmatpush2.bf16.msra.mxu0 %v4065_v59  ;;  %v4149_v59 = vld [vmem:[%s5454_s3 + $0x600] ss:$8 sps:$4 sm:$0xff]  }
  0xb7   :  { %2031 = vmatpush2.bf16.msra.mxu1 %v4068_v60  ;;  %1991 = vmatprep.subr.bf16.mxu0 %v4073_v61  ;;  %v4152_v60 = vld [vmem:[%s5454_s3 + $0x700] ss:$8 sps:$4 sm:$0xff]   ;;  %v4157_v61 = vld [vmem:[%s5454_s3 + $0x6f4] ss:$8 sps:$4 sm:$0xff]  }
  0xb8   :  { %2032 = vmatprep.subr.bf16.mxu1 %v4076_v62  ;;  %v4160_v62 = vld [vmem:[%s5454_s3 + $0x7f4] ss:$8 sps:$4 sm:$0xff]  }
  0xba   :  { %1992 = vmatpush2.bf16.msra.mxu0 %v4071_v63  ;;  %v4155_v63 = vld [vmem:[%s5454_s3 + $0x6f0] ss:$8 sps:$4 sm:$0xff]  }
  0xbb   :  { %2033 = vmatpush2.bf16.msra.mxu1 %v4074_v0  ;;  %1993 = vmatprep.subr.bf16.mxu0 %v4079_v1  ;;  %v4158_v0 = vld [vmem:[%s5454_s3 + $0x7f0] ss:$8 sps:$4 sm:$0xff]   ;;  %v4163_v1 = vld [vmem:[%s5454_s3 + $0x6e4] ss:$8 sps:$4 sm:$0xff]  }
  0xbc   :  { %2034 = vmatprep.subr.bf16.mxu1 %v4082_v2  ;;  %v4166_v2 = vld [vmem:[%s5454_s3 + $0x7e4] ss:$8 sps:$4 sm:$0xff]  }
  0xbe   :  { %1994 = vmatpush2.bf16.msra.mxu0 %v4077_v3  ;;  %v4161_v3 = vld [vmem:[%s5454_s3 + $0x6e0] ss:$8 sps:$4 sm:$0xff]  }
  0xbf   :  { %2035 = vmatpush2.bf16.msra.mxu1 %v4080_v4  ;;  %1995 = vmatprep.subr.bf16.mxu0 %v4085_v5  ;;  %v4164_v4 = vld [vmem:[%s5454_s3 + $0x7e0] ss:$8 sps:$4 sm:$0xff]   ;;  %v4169_v5 = vld [vmem:[%s5454_s3 + $0x6d4] ss:$8 sps:$4 sm:$0xff]  }
  0xc0   :  { %2036 = vmatprep.subr.bf16.mxu1 %v4088_v6  ;;  %v4172_v6 = vld [vmem:[%s5454_s3 + $0x7d4] ss:$8 sps:$4 sm:$0xff]  }
  0xc2   :  { %1996 = vmatpush2.bf16.msra.mxu0 %v4083_v7  ;;  %v4167_v7 = vld [vmem:[%s5454_s3 + $0x6d0] ss:$8 sps:$4 sm:$0xff]  }
  0xc3   :  { %2037 = vmatpush2.bf16.msra.mxu1 %v4086_v8  ;;  %1997 = vmatprep.subr.bf16.mxu0 %v4091_v9  ;;  %v4170_v8 = vld [vmem:[%s5454_s3 + $0x7d0] ss:$8 sps:$4 sm:$0xff]   ;;  %v4175_v9 = vld [vmem:[%s5454_s3 + $0x6c4] ss:$8 sps:$4 sm:$0xff]  }
  0xc4   :  { %2038 = vmatprep.subr.bf16.mxu1 %v4094_v10  ;;  %v4178_v10 = vld [vmem:[%s5454_s3 + $0x7c4] ss:$8 sps:$4 sm:$0xff]  }
  0xc6   :  { %1998 = vmatpush2.bf16.msra.mxu0 %v4089_v11  ;;  %v4173_v11 = vld [vmem:[%s5454_s3 + $0x6c0] ss:$8 sps:$4 sm:$0xff]  }
  0xc7   :  { %2039 = vmatpush2.bf16.msra.mxu1 %v4092_v12  ;;  %1999 = vmatprep.subr.bf16.mxu0 %v4097_v13  ;;  %v4176_v12 = vld [vmem:[%s5454_s3 + $0x7c0] ss:$8 sps:$4 sm:$0xff]   ;;  %v4181_v13 = vld [vmem:[%s5454_s3 + $0x6b4] ss:$8 sps:$4 sm:$0xff]  }
  0xc8   :  { %2040 = vmatprep.subr.bf16.mxu1 %v4100_v14  ;;  %v4184_v14 = vld [vmem:[%s5454_s3 + $0x7b4] ss:$8 sps:$4 sm:$0xff]  }
  0xca   :  { %2000 = vmatpush2.bf16.msra.mxu0 %v4095_v15  ;;  %v4179_v15 = vld [vmem:[%s5454_s3 + $0x6b0] ss:$8 sps:$4 sm:$0xff]  }
  0xcb   :  { %2041 = vmatpush2.bf16.msra.mxu1 %v4098_v16  ;;  %2001 = vmatprep.subr.bf16.mxu0 %v4103_v17  ;;  %v4182_v16 = vld [vmem:[%s5454_s3 + $0x7b0] ss:$8 sps:$4 sm:$0xff]   ;;  %v4187_v17 = vld [vmem:[%s5454_s3 + $0x6a4] ss:$8 sps:$4 sm:$0xff]  }
  0xcc   :  { %2042 = vmatprep.subr.bf16.mxu1 %v4106_v18  ;;  %v4190_v18 = vld [vmem:[%s5454_s3 + $0x7a4] ss:$8 sps:$4 sm:$0xff]  }
  0xce   :  { %2002 = vmatpush2.bf16.msra.mxu0 %v4101_v19  ;;  %v4185_v19 = vld [vmem:[%s5454_s3 + $0x6a0] ss:$8 sps:$4 sm:$0xff]  }
  0xcf   :  { %2043 = vmatpush2.bf16.msra.mxu1 %v4104_v21  ;;  %2053 = vmatprep.subr.bf16.mxu0 %v4109_v23  ;;  %v4193_v21 = vld [vmem:[%s5454_s3 + $0x694] ss:$8 sps:$4 sm:$0xff]   ;;  %v4191_v23 = vld [vmem:[%s5454_s3 + $0x690] ss:$8 sps:$4 sm:$0xff]  }
  0xd0   :  { %2094 = vmatprep.subr.bf16.mxu1 %v4112_v24  ;;  %v4194_v24 = vld [vmem:[%s5454_s3 + $0x790] ss:$8 sps:$4 sm:$0xff]  }
  0xd1   :  { %2004 = vmatmul.mubr.bf16.vlgmr.msra.gmra.mxu0 %v135_v26  ;;  %v4202_v26 = vld [vmem:[%s5454_s3 + $0x784] ss:$8 sps:$4 sm:$0xff]  }
  0xd2   :  { %2045 = vmatmul.mubr.bf16.vlgmr.msra.gmra.mxu1 %v137_v27  ;;  %2054 = vmatpush1.bf16.msra.mxu0 %v4107_v29  ;;  %v4197_v27 = vld [vmem:[%s5454_s3 + $0x680] ss:$8 sps:$4 sm:$0xff]  }
  0xd3   :  { %2095 = vmatpush1.bf16.msra.mxu1 %v4110_v30  ;;  %2055 = vmatprep.subr.bf16.mxu0 %v4115_v31  ;;  %v4200_v29 = vld [vmem:[%s5454_s3 + $0x780] ss:$8 sps:$4 sm:$0xff]   ;;  %v3350_v30 = vld [vmem:[%s5452_s1 + $0xe] ss:$16 sm:$0x3] }
  0xd4   :  { %2096 = vmatprep.subr.bf16.mxu1 %v4118_v32  ;;  %2085 = vmatprep.mubr.bf16.mxu0 %v140_v33  ;;  %v4205_v31 = vld [vmem:[#allocation3 + $0x74] ss:$8 sps:$4 sm:$0xff]   ;;  %v4203_v33 = vld [vmem:[#allocation3 + $0x70] ss:$8 sps:$4 sm:$0xff]  }
  0xd5   :  { %2126 = vmatprep.mubr.bf16.mxu1 %v142_v34  ;;  %v4208_v32 = vld [vmem:[#allocation3 + $0x174] ss:$8 sps:$4 sm:$0xff]   ;;  %v3330_v34 = vld [vmem:[%s5451_s0 + $0x1] ss:$8 sm:$0x3] }
  0xd6   :  { %2056 = vmatpush1.bf16.msra.mxu0 %v4113_v35  ;;  %v139_v35 = vpack.c.bf16 %v3348_v28, %v3348_v28  ;;  %v4274_v28 = vld [vmem:[#allocation3 + $0x1c4] ss:$8 sps:$4 sm:$0xff]  }
  0xd7   :  { %2097 = vmatpush1.bf16.msra.mxu1 %v4116_v36  ;;  %2057 = vmatprep.subr.bf16.mxu0 %v4121_v37  ;;  %v141_v36 = vpack.c.bf16 %v3350_v30, %v3350_v30  ;;  %v4206_v37 = vld [vmem:[#allocation3 + $0x170] ss:$8 sps:$4 sm:$0xff]   ;;  %v4272_v30 = vld [vmem:[#allocation3 + $0x1c0] ss:$8 sps:$4 sm:$0xff]  }
  0xd8   :  { %2098 = vmatprep.subr.bf16.mxu1 %v4124_v38  ;;  %v3332_v38 = vld [vmem:[%s5451_s0 + $0x3] ss:$8 sm:$0x3] }
  0xda   :  { %2058 = vmatpush1.bf16.msra.mxu0 %v4119_v39  ;;  %v4211_v39 = vld [vmem:[#allocation3 + $0x64] ss:$8 sps:$4 sm:$0xff]  }
  0xdb   :  { %2099 = vmatpush1.bf16.msra.mxu1 %v4122_v40  ;;  %2059 = vmatprep.subr.bf16.mxu0 %v4127_v41  ;;  %v4214_v40 = vld [vmem:[#allocation3 + $0x164] ss:$8 sps:$4 sm:$0xff]   ;;  %v73_v41 = vpack.c.bf16 %v3330_v34, %v3330_v34  ;;  %v4278_v34 = vld [vmem:[#allocation3 + $0x1b0] ss:$8 sps:$4 sm:$0xff]  }
  0xdc   :  { %2100 = vmatprep.subr.bf16.mxu1 %v4130_v42  ;;  %v75_v42 = vpack.c.bf16 %v3332_v38, %v3332_v38  ;;  %v4284_v38 = vld [vmem:[#allocation3 + $0x1a0] ss:$8 sps:$4 sm:$0xff]  }
  0xde   :  { %2060 = vmatpush1.bf16.msra.mxu0 %v4125_v43 }
  0xdf   :  { %2101 = vmatpush1.bf16.msra.mxu1 %v4128_v44  ;;  %2061 = vmatprep.subr.bf16.mxu0 %v4133_v45  ;;  %v4209_v45 = vld [vmem:[#allocation3 + $0x60] ss:$8 sps:$4 sm:$0xff]  }
  0xe0   :  { %2102 = vmatprep.subr.bf16.mxu1 %v4136_v46  ;;  %v4212_v46 = vld [vmem:[#allocation3 + $0x160] ss:$8 sps:$4 sm:$0xff]  }
  0xe2   :  { %2062 = vmatpush1.bf16.msra.mxu0 %v4131_v47 }
  0xe3   :  { %2103 = vmatpush1.bf16.msra.mxu1 %v4134_v48  ;;  %2063 = vmatprep.subr.bf16.mxu0 %v4139_v49  ;;  %v4217_v48 = vld [vmem:[#allocation3 + $0x54] ss:$8 sps:$4 sm:$0xff]  }
  0xe4   :  { %2104 = vmatprep.subr.bf16.mxu1 %v4142_v50 }
  0xe6   :  { %2064 = vmatpush1.bf16.msra.mxu0 %v4137_v51  ;;  %v4220_v51 = vld [vmem:[#allocation3 + $0x154] ss:$8 sps:$4 sm:$0xff]  }
  0xe7   :  { %2105 = vmatpush1.bf16.msra.mxu1 %v4140_v52  ;;  %2065 = vmatprep.subr.bf16.mxu0 %v4145_v53 }
  0xe8   :  { %2106 = vmatprep.subr.bf16.mxu1 %v4148_v54 }
  0xea   :  { %2066 = vmatpush1.bf16.msra.mxu0 %v4143_v55  ;;  %v4215_v55 = vld [vmem:[#allocation3 + $0x50] ss:$8 sps:$4 sm:$0xff]  }
  0xeb   :  { %2107 = vmatpush1.bf16.msra.mxu1 %v4146_v56  ;;  %2067 = vmatprep.subr.bf16.mxu0 %v4151_v57  ;;  %v4218_v56 = vld [vmem:[#allocation3 + $0x150] ss:$8 sps:$4 sm:$0xff]  }
  0xec   :  { %2108 = vmatprep.subr.bf16.mxu1 %v4154_v58 }
  0xee   :  { %2068 = vmatpush1.bf16.msra.mxu0 %v4149_v59  ;;  %v4223_v59 = vld [vmem:[#allocation3 + $0x44] ss:$8 sps:$4 sm:$0xff]  }
  0xef   :  { %2109 = vmatpush1.bf16.msra.mxu1 %v4152_v60  ;;  %2069 = vmatprep.subr.bf16.mxu0 %v4157_v61  ;;  %v4226_v60 = vld [vmem:[#allocation3 + $0x144] ss:$8 sps:$4 sm:$0xff]   ;;  %v4221_v61 = vld [vmem:[#allocation3 + $0x40] ss:$8 sps:$4 sm:$0xff]  }
  0xf0   :  { %2110 = vmatprep.subr.bf16.mxu1 %v4160_v62  ;;  %v4224_v62 = vld [vmem:[#allocation3 + $0x140] ss:$8 sps:$4 sm:$0xff]  }
  0xf2   :  { %2070 = vmatpush2.bf16.msra.mxu0 %v4155_v63  ;;  %v4229_v63 = vld [vmem:[#allocation3 + $0x34] ss:$8 sps:$4 sm:$0xff]  }
  0xf3   :  { %2111 = vmatpush2.bf16.msra.mxu1 %v4158_v0  ;;  %2071 = vmatprep.subr.bf16.mxu0 %v4163_v1  ;;  %v4232_v0 = vld [vmem:[#allocation3 + $0x134] ss:$8 sps:$4 sm:$0xff]   ;;  %v4227_v1 = vld [vmem:[#allocation3 + $0x30] ss:$8 sps:$4 sm:$0xff]  }
  0xf4   :  { %2112 = vmatprep.subr.bf16.mxu1 %v4166_v2  ;;  %v4230_v2 = vld [vmem:[#allocation3 + $0x130] ss:$8 sps:$4 sm:$0xff]  }
  0xf6   :  { %2072 = vmatpush2.bf16.msra.mxu0 %v4161_v3  ;;  %v4235_v3 = vld [vmem:[#allocation3 + $0x24] ss:$8 sps:$4 sm:$0xff]  }
  0xf7   :  { %2113 = vmatpush2.bf16.msra.mxu1 %v4164_v4  ;;  %2073 = vmatprep.subr.bf16.mxu0 %v4169_v5  ;;  %v4238_v4 = vld [vmem:[#allocation3 + $0x124] ss:$8 sps:$4 sm:$0xff]   ;;  %v4233_v5 = vld [vmem:[#allocation3 + $0x20] ss:$8 sps:$4 sm:$0xff]  }
  0xf8   :  { %2114 = vmatprep.subr.bf16.mxu1 %v4172_v6  ;;  %v4236_v6 = vld [vmem:[#allocation3 + $0x120] ss:$8 sps:$4 sm:$0xff]  }
  0xfa   :  { %2074 = vmatpush2.bf16.msra.mxu0 %v4167_v7  ;;  %v4241_v7 = vld [vmem:[#allocation3 + $0x14] ss:$8 sps:$4 sm:$0xff]  }
  0xfb   :  { %2115 = vmatpush2.bf16.msra.mxu1 %v4170_v8  ;;  %2075 = vmatprep.subr.bf16.mxu0 %v4175_v9  ;;  %v4244_v8 = vld [vmem:[#allocation3 + $0x114] ss:$8 sps:$4 sm:$0xff]   ;;  %v4239_v9 = vld [vmem:[#allocation3 + $0x10] ss:$8 sps:$4 sm:$0xff]  }
  0xfc   :  { %2116 = vmatprep.subr.bf16.mxu1 %v4178_v10  ;;  %v4242_v10 = vld [vmem:[#allocation3 + $0x110] ss:$8 sps:$4 sm:$0xff]  }
  0xfe   :  { %2076 = vmatpush2.bf16.msra.mxu0 %v4173_v11  ;;  %v4247_v11 = vld [vmem:[#allocation3 + $0x4] ss:$8 sps:$4 sm:$0xff]  }
  0xff   :  { %2117 = vmatpush2.bf16.msra.mxu1 %v4176_v12  ;;  %2077 = vmatprep.subr.bf16.mxu0 %v4181_v13  ;;  %v4250_v12 = vld [vmem:[#allocation3 + $0x104] ss:$8 sps:$4 sm:$0xff]   ;;  %v4245_v13 = vld [vmem:[#allocation3] ss:$8 sps:$4 sm:$0xff]  }
 0x100   :  { %2118 = vmatprep.subr.bf16.mxu1 %v4184_v14  ;;  %v4248_v14 = vld [vmem:[#allocation3 + $0x100] ss:$8 sps:$4 sm:$0xff]  }
 0x102   :  { %2078 = vmatpush2.bf16.msra.mxu0 %v4179_v15  ;;  %v4253_v15 = vld [vmem:[#allocation3 + $0xf4] ss:$8 sps:$4 sm:$0xff]  }
 0x103   :  { %2119 = vmatpush2.bf16.msra.mxu1 %v4182_v16  ;;  %2079 = vmatprep.subr.bf16.mxu0 %v4187_v17  ;;  %v4256_v16 = vld [vmem:[#allocation3 + $0x1f4] ss:$8 sps:$4 sm:$0xff]   ;;  %v4251_v17 = vld [vmem:[#allocation3 + $0xf0] ss:$8 sps:$4 sm:$0xff]  }
 0x104   :  { %2120 = vmatprep.subr.bf16.mxu1 %v4190_v18  ;;  %v4254_v18 = vld [vmem:[#allocation3 + $0x1f0] ss:$8 sps:$4 sm:$0xff]  }
 0x106   :  { %2080 = vmatpush2.bf16.msra.mxu0 %v4185_v19  ;;  %v4259_v19 = vld [vmem:[#allocation3 + $0xe4] ss:$8 sps:$4 sm:$0xff]  }
 0x107   :  { %2121 = vmatpush2.bf16.msra.mxu1 %v4188_v20  ;;  %2081 = vmatprep.subr.bf16.mxu0 %v4193_v21  ;;  %v4262_v20 = vld [vmem:[#allocation3 + $0x1e4] ss:$8 sps:$4 sm:$0xff]   ;;  %v4257_v21 = vld [vmem:[#allocation3 + $0xe0] ss:$8 sps:$4 sm:$0xff]  }
 0x108   :  { %2122 = vmatprep.subr.bf16.mxu1 %v4196_v22  ;;  %v4260_v22 = vld [vmem:[#allocation3 + $0x1e0] ss:$8 sps:$4 sm:$0xff]  }
 0x10a   :  { %2082 = vmatpush2.bf16.msra.mxu0 %v4191_v23  ;;  %v4265_v23 = vld [vmem:[#allocation3 + $0xd4] ss:$8 sps:$4 sm:$0xff]  }
 0x10b   :  { %2123 = vmatpush2.bf16.msra.mxu1 %v4194_v24  ;;  %2083 = vmatprep.subr.bf16.mxu0 %v4199_v25  ;;  %v4268_v24 = vld [vmem:[#allocation3 + $0x1d4] ss:$8 sps:$4 sm:$0xff]   ;;  %v4263_v25 = vld [vmem:[#allocation3 + $0xd0] ss:$8 sps:$4 sm:$0xff]  }
 0x10c   :  { %2124 = vmatprep.subr.bf16.mxu1 %v4202_v26  ;;  %v4266_v26 = vld [vmem:[#allocation3 + $0x1d0] ss:$8 sps:$4 sm:$0xff]  }
 0x10e   :  { %2084 = vmatpush2.bf16.msra.mxu0 %v4197_v27  ;;  %v4271_v27 = vld [vmem:[#allocation3 + $0xc4] ss:$8 sps:$4 sm:$0xff]  }
 0x10f   :  { %2125 = vmatpush2.bf16.msra.mxu1 %v4200_v29  ;;  %2775 = vmatprep.subr.bf16.mxu0 %v4205_v31  ;;  %v4269_v29 = vld [vmem:[#allocation3 + $0xc0] ss:$8 sps:$4 sm:$0xff]   ;;  %v4277_v31 = vld [vmem:[#allocation3 + $0xb4] ss:$8 sps:$4 sm:$0xff]  }
 0x110   :  { %2816 = vmatprep.subr.bf16.mxu1 %v4208_v32  ;;  %v4280_v32 = vld [vmem:[#allocation3 + $0x1b4] ss:$8 sps:$4 sm:$0xff]  }
 0x111   :  { %v1841_v43 = vpop.f32.mrf.mxu0  ;;  %2086 = vmatmul.mubr.bf16.vlgmr.msra.gmra.mxu0 %v139_v35  ;;  %v4283_v35 = vld [vmem:[#allocation3 + $0xa4] ss:$8 sps:$4 sm:$0xff]  }
 0x112   :  { %v1882_v44 = vpop.f32.mrf.mxu1  ;;  %2127 = vmatmul.mubr.bf16.vlgmr.msra.gmra.mxu1 %v141_v36  ;;  %2776 = vmatpush1.bf16.msra.mxu0 %v4203_v33  ;;  %v4275_v33 = vld [vmem:[#allocation3 + $0xb0] ss:$8 sps:$4 sm:$0xff]   ;;  %v4286_v36 = vld [vmem:[#allocation3 + $0x1a4] ss:$8 sps:$4 sm:$0xff]  }
 0x113   :  { %v5337_v47 = vadd.f32 %v1882_v44, %v1841_v43  ;;  %2817 = vmatpush1.bf16.msra.mxu1 %v4206_v37  ;;  %v1843_v49 = vpop.f32.mrf.mxu0  ;;  %2777 = vmatprep.subr.bf16.mxu0 %v4211_v39  ;;  %v4281_v37 = vld [vmem:[#allocation3 + $0xa0] ss:$8 sps:$4 sm:$0xff]   ;;  %v4289_v39 = vld [vmem:[#allocation3 + $0x94] ss:$8 sps:$4 sm:$0xff]   ;;  %v4295_v43 = vld [vmem:[#allocation3 + $0x84] ss:$8 sps:$4 sm:$0xff]  }
 0x114   :  { %v1884_v50 = vpop.f32.mrf.mxu1  ;;  %2818 = vmatprep.subr.bf16.mxu1 %v4214_v40  ;;  %2807 = vmatprep.mubr.bf16.mxu0 %v73_v41  ;;  %v4292_v40 = vld [vmem:[#allocation3 + $0x194] ss:$8 sps:$4 sm:$0xff]   ;;  %v4287_v41 = vld [vmem:[#allocation3 + $0x90] ss:$8 sps:$4 sm:$0xff]   ;;  %v4298_v44 = vld [vmem:[#allocation3 + $0x184] ss:$8 sps:$4 sm:$0xff]  }
 0x115   :  { %v5339_v52 = vadd.f32 %v1884_v50, %v1843_v49  ;;  %2848 = vmatprep.mubr.bf16.mxu1 %v75_v42  ;;  %v1845_v53 = vpop.f32.mrf.mxu0  ;;  %v4290_v42 = vld [vmem:[#allocation3 + $0x190] ss:$8 sps:$4 sm:$0xff]   ;;  %v3331_v49 = vld [vmem:[%s5451_s0 + $0x2] ss:$8 sm:$0x3] }
 0x116   :  { %v1886_v54 = vpop.f32.mrf.mxu1  ;;  %2778 = vmatpush1.bf16.msra.mxu0 %v4209_v45  ;;  %v4293_v45 = vld [vmem:[#allocation3 + $0x80] ss:$8 sps:$4 sm:$0xff]   ;;  %v4301_v50 = vld [vmem:[#allocation3 + $0x274] ss:$8 sps:$4 sm:$0xff]  }
 0x117   :  { %2819 = vmatpush1.bf16.msra.mxu1 %v4212_v46  ;;  %v1846_v57 = vpop.f32.mrf.mxu0  ;;  %2779 = vmatprep.subr.bf16.mxu0 %v4217_v48  ;;  %v4296_v46 = vld [vmem:[#allocation3 + $0x180] ss:$8 sps:$4 sm:$0xff]   ;;  %v49_v48 = vld [vmem:[%s5451_s0] ss:$8 sm:$0x3]  ;;  %v74_v54 = vpack.c.bf16 %v3331_v49, %v3331_v49 }
 0x118   :  { %v1887_v58 = vpop.f32.mrf.mxu1  ;;  %2820 = vmatprep.subr.bf16.mxu1 %v4220_v51  ;;  %v4304_v51 = vld [vmem:[#allocation3 + $0x374] ss:$8 sps:$4 sm:$0xff]   ;;  %v72_v53 = vpack.c.bf16 %v49_v48, %v49_v48  ;;  %v4299_v57 = vld [vmem:[#allocation3 + $0x270] ss:$8 sps:$4 sm:$0xff]   ;;  %v4367_v48 = vld [vmem:[#allocation3 + $0x2c4] ss:$8 sps:$4 sm:$0xff]  }
 0x119   :  { %v4302_v58 = vld [vmem:[#allocation3 + $0x370] ss:$8 sps:$4 sm:$0xff]   ;;  %v4370_v49 = vld [vmem:[#allocation3 + $0x3c4] ss:$8 sps:$4 sm:$0xff]  }
 0x11a   :  { %2780 = vmatpush1.bf16.msra.mxu0 %v4215_v55  ;;  %v3334_v55 = vld [vmem:[%s5451_s0 + $0x5] ss:$8 sm:$0x3] }
 0x11b   :  { %2821 = vmatpush1.bf16.msra.mxu1 %v4218_v56  ;;  %2781 = vmatprep.subr.bf16.mxu0 %v4223_v59  ;;  %v3336_v56 = vld [vmem:[%s5451_s0 + $0x7] ss:$8 sm:$0x3] }
 0x11c   :  { %2822 = vmatprep.subr.bf16.mxu1 %v4226_v60  ;;  %v4307_v59 = vld [vmem:[#allocation3 + $0x264] ss:$8 sps:$4 sm:$0xff]  }
 0x11d   :  { %v4310_v60 = vld [vmem:[#allocation3 + $0x364] ss:$8 sps:$4 sm:$0xff]  }
 0x11e   :  { %2782 = vmatpush1.bf16.msra.mxu0 %v4221_v61  ;;  %v77_v61 = vpack.c.bf16 %v3334_v55, %v3334_v55  ;;  %v4371_v55 = vld [vmem:[#allocation3 + $0x2b0] ss:$8 sps:$4 sm:$0xff]  }
 0x11f   :  { %2823 = vmatpush1.bf16.msra.mxu1 %v4224_v62  ;;  %2783 = vmatprep.subr.bf16.mxu0 %v4229_v63  ;;  %v79_v62 = vpack.c.bf16 %v3336_v56, %v3336_v56  ;;  %v4374_v56 = vld [vmem:[#allocation3 + $0x3b0] ss:$8 sps:$4 sm:$0xff]  }
 0x120   :  { %2824 = vmatprep.subr.bf16.mxu1 %v4232_v0 }
 0x122   :  { %2784 = vmatpush1.bf16.msra.mxu0 %v4227_v1 }
 0x123   :  { %2825 = vmatpush1.bf16.msra.mxu1 %v4230_v2  ;;  %2785 = vmatprep.subr.bf16.mxu0 %v4235_v3  ;;  %v4305_v2 = vld [vmem:[#allocation3 + $0x260] ss:$8 sps:$4 sm:$0xff]  }
 0x124   :  { %2826 = vmatprep.subr.bf16.mxu1 %v4238_v4  ;;  %v4308_v3 = vld [vmem:[#allocation3 + $0x360] ss:$8 sps:$4 sm:$0xff]  }
 0x126   :  { %2786 = vmatpush1.bf16.msra.mxu0 %v4233_v5 }
 0x127   :  { %2827 = vmatpush1.bf16.msra.mxu1 %v4236_v6  ;;  %2787 = vmatprep.subr.bf16.mxu0 %v4241_v7  ;;  %v4313_v6 = vld [vmem:[#allocation3 + $0x254] ss:$8 sps:$4 sm:$0xff]  }
 0x128   :  { %2828 = vmatprep.subr.bf16.mxu1 %v4244_v8  ;;  %v4316_v7 = vld [vmem:[#allocation3 + $0x354] ss:$8 sps:$4 sm:$0xff]  }
 0x12a   :  { %2788 = vmatpush1.bf16.msra.mxu0 %v4239_v9 }
 0x12b   :  { %2829 = vmatpush1.bf16.msra.mxu1 %v4242_v10  ;;  %2789 = vmatprep.subr.bf16.mxu0 %v4247_v11 }
 0x12c   :  { %2830 = vmatprep.subr.bf16.mxu1 %v4250_v12 }
 0x12e   :  { %2790 = vmatpush1.bf16.msra.mxu0 %v4245_v13  ;;  %v4314_v13 = vld [vmem:[#allocation3 + $0x350] ss:$8 sps:$4 sm:$0xff]  }
 0x12f   :  { %2831 = vmatpush1.bf16.msra.mxu1 %v4248_v14  ;;  %2791 = vmatprep.subr.bf16.mxu0 %v4253_v15 }
 0x130   :  { %2832 = vmatprep.subr.bf16.mxu1 %v4256_v16  ;;  %v4319_v16 = vld [vmem:[#allocation3 + $0x244] ss:$8 sps:$4 sm:$0xff]  }
 0x132   :  { %2792 = vmatpush2.bf16.msra.mxu0 %v4251_v17  ;;  %v4322_v17 = vld [vmem:[#allocation3 + $0x344] ss:$8 sps:$4 sm:$0xff]  }
 0x133   :  { %2833 = vmatpush2.bf16.msra.mxu1 %v4254_v18  ;;  %2793 = vmatprep.subr.bf16.mxu0 %v4259_v19  ;;  %v4317_v18 = vld [vmem:[#allocation3 + $0x240] ss:$8 sps:$4 sm:$0xff]   ;;  %v4325_v19 = vld [vmem:[#allocation3 + $0x234] ss:$8 sps:$4 sm:$0xff]  }
 0x134   :  { %2834 = vmatprep.subr.bf16.mxu1 %v4262_v20  ;;  %v4328_v20 = vld [vmem:[#allocation3 + $0x334] ss:$8 sps:$4 sm:$0xff]  }
 0x136   :  { %2794 = vmatpush2.bf16.msra.mxu0 %v4257_v21  ;;  %v4323_v21 = vld [vmem:[#allocation3 + $0x230] ss:$8 sps:$4 sm:$0xff]  }
 0x137   :  { %2835 = vmatpush2.bf16.msra.mxu1 %v4260_v22  ;;  %2795 = vmatprep.subr.bf16.mxu0 %v4265_v23  ;;  %v4326_v22 = vld [vmem:[#allocation3 + $0x330] ss:$8 sps:$4 sm:$0xff]   ;;  %v4331_v23 = vld [vmem:[#allocation3 + $0x224] ss:$8 sps:$4 sm:$0xff]  }
 0x138   :  { %2836 = vmatprep.subr.bf16.mxu1 %v4268_v24  ;;  %v4334_v24 = vld [vmem:[#allocation3 + $0x324] ss:$8 sps:$4 sm:$0xff]  }
 0x13a   :  { %2796 = vmatpush2.bf16.msra.mxu0 %v4263_v25  ;;  %v4329_v25 = vld [vmem:[#allocation3 + $0x220] ss:$8 sps:$4 sm:$0xff]  }
 0x13b   :  { %2837 = vmatpush2.bf16.msra.mxu1 %v4266_v26  ;;  %2797 = vmatprep.subr.bf16.mxu0 %v4271_v27  ;;  %v4332_v26 = vld [vmem:[#allocation3 + $0x320] ss:$8 sps:$4 sm:$0xff]   ;;  %v4337_v27 = vld [vmem:[#allocation3 + $0x214] ss:$8 sps:$4 sm:$0xff]  }
 0x13c   :  { %2838 = vmatprep.subr.bf16.mxu1 %v4274_v28  ;;  %v4340_v28 = vld [vmem:[#allocation3 + $0x314] ss:$8 sps:$4 sm:$0xff]  }
 0x13e   :  { %2798 = vmatpush2.bf16.msra.mxu0 %v4269_v29  ;;  %v4335_v29 = vld [vmem:[#allocation3 + $0x210] ss:$8 sps:$4 sm:$0xff]  }
 0x13f   :  { %2839 = vmatpush2.bf16.msra.mxu1 %v4272_v30  ;;  %2799 = vmatprep.subr.bf16.mxu0 %v4277_v31  ;;  %v4338_v30 = vld [vmem:[#allocation3 + $0x310] ss:$8 sps:$4 sm:$0xff]   ;;  %v4343_v31 = vld [vmem:[#allocation3 + $0x204] ss:$8 sps:$4 sm:$0xff]  }
 0x140   :  { %2840 = vmatprep.subr.bf16.mxu1 %v4280_v32  ;;  %v4346_v32 = vld [vmem:[#allocation3 + $0x304] ss:$8 sps:$4 sm:$0xff]  }
 0x142   :  { %2800 = vmatpush2.bf16.msra.mxu0 %v4275_v33  ;;  %v4341_v33 = vld [vmem:[#allocation3 + $0x200] ss:$8 sps:$4 sm:$0xff]  }
 0x143   :  { %2841 = vmatpush2.bf16.msra.mxu1 %v4278_v34  ;;  %2801 = vmatprep.subr.bf16.mxu0 %v4283_v35  ;;  %v4344_v34 = vld [vmem:[#allocation3 + $0x300] ss:$8 sps:$4 sm:$0xff]   ;;  %v4349_v35 = vld [vmem:[#allocation3 + $0x2f4] ss:$8 sps:$4 sm:$0xff]  }
 0x144   :  { %2842 = vmatprep.subr.bf16.mxu1 %v4286_v36  ;;  %v4352_v36 = vld [vmem:[#allocation3 + $0x3f4] ss:$8 sps:$4 sm:$0xff]  }
 0x146   :  { %2802 = vmatpush2.bf16.msra.mxu0 %v4281_v37  ;;  %v4347_v37 = vld [vmem:[#allocation3 + $0x2f0] ss:$8 sps:$4 sm:$0xff]  }
 0x147   :  { %2843 = vmatpush2.bf16.msra.mxu1 %v4284_v38  ;;  %2803 = vmatprep.subr.bf16.mxu0 %v4289_v39  ;;  %v4350_v38 = vld [vmem:[#allocation3 + $0x3f0] ss:$8 sps:$4 sm:$0xff]   ;;  %v4355_v39 = vld [vmem:[#allocation3 + $0x2e4] ss:$8 sps:$4 sm:$0xff]  }
 0x148   :  { %2844 = vmatprep.subr.bf16.mxu1 %v4292_v40  ;;  %v4358_v40 = vld [vmem:[#allocation3 + $0x3e4] ss:$8 sps:$4 sm:$0xff]  }
 0x14a   :  { %2804 = vmatpush2.bf16.msra.mxu0 %v4287_v41  ;;  %v4353_v41 = vld [vmem:[#allocation3 + $0x2e0] ss:$8 sps:$4 sm:$0xff]  }
 0x14b   :  { %2845 = vmatpush2.bf16.msra.mxu1 %v4290_v42  ;;  %2805 = vmatprep.subr.bf16.mxu0 %v4295_v43  ;;  %v4356_v42 = vld [vmem:[#allocation3 + $0x3e0] ss:$8 sps:$4 sm:$0xff]   ;;  %v4361_v43 = vld [vmem:[#allocation3 + $0x2d4] ss:$8 sps:$4 sm:$0xff]  }
 0x14c   :  { %2846 = vmatprep.subr.bf16.mxu1 %v4298_v44  ;;  %v4364_v44 = vld [vmem:[#allocation3 + $0x3d4] ss:$8 sps:$4 sm:$0xff]  }
 0x14e   :  { %2806 = vmatpush2.bf16.msra.mxu0 %v4293_v45  ;;  %v4359_v45 = vld [vmem:[#allocation3 + $0x2d0] ss:$8 sps:$4 sm:$0xff]  }
 0x14f   :  { %2847 = vmatpush2.bf16.msra.mxu1 %v4296_v46  ;;  %2857 = vmatprep.subr.bf16.mxu0 %v4301_v50  ;;  %v4362_v46 = vld [vmem:[#allocation3 + $0x3d0] ss:$8 sps:$4 sm:$0xff]   ;;  %v4365_v50 = vld [vmem:[#allocation3 + $0x2c0] ss:$8 sps:$4 sm:$0xff]  }
 0x150   :  { %2898 = vmatprep.subr.bf16.mxu1 %v4304_v51  ;;  %v4368_v51 = vld [vmem:[#allocation3 + $0x3c0] ss:$8 sps:$4 sm:$0xff]  }
 0x151   :  { %v1923_v63 = vpop.f32.mrf.mxu0  ;;  %2808 = vmatmul.mubr.bf16.vlgmr.msra.gmra.mxu0 %v72_v53  ;;  %v4373_v53 = vld [vmem:[#allocation3 + $0x2b4] ss:$8 sps:$4 sm:$0xff]  }
 0x152   :  { %v1964_v0 = vpop.f32.mrf.mxu1  ;;  %2849 = vmatmul.mubr.bf16.vlgmr.msra.gmra.mxu1 %v74_v54  ;;  %v1924_v1 = vadd.f32 %v1923_v63, %v5337_v47  ;;  %2858 = vmatpush1.bf16.msra.mxu0 %v4299_v57  ;;  %v4311_v47 = vld [vmem:[#allocation3 + $0x250] ss:$8 sps:$4 sm:$0xff]   ;;  %v4376_v54 = vld [vmem:[#allocation3 + $0x3b4] ss:$8 sps:$4 sm:$0xff]   ;;  %v4379_v57 = vld [vmem:[#allocation3 + $0x2a4] ss:$8 sps:$4 sm:$0xff]  }
 0x153   :  { %2899 = vmatpush1.bf16.msra.mxu1 %v4302_v58  ;;  %v1925_v4 = vpop.f32.mrf.mxu0  ;;  %2859 = vmatprep.subr.bf16.mxu0 %v4307_v59  ;;  %v4382_v58 = vld [vmem:[#allocation3 + $0x3a4] ss:$8 sps:$4 sm:$0xff]   ;;  %v4377_v59 = vld [vmem:[#allocation3 + $0x2a0] ss:$8 sps:$4 sm:$0xff]   ;;  %v4383_v63 = vld [vmem:[#allocation3 + $0x290] ss:$8 sps:$4 sm:$0xff]  }
 0x154   :  { %v1966_v5 = vpop.f32.mrf.mxu1  ;;  %2900 = vmatprep.subr.bf16.mxu1 %v4310_v60  ;;  %v5354_v8 = vadd.f32 %v1964_v0, %v1924_v1  ;;  %v1926_v9 = vadd.f32 %v1925_v4, %v5339_v52  ;;  %2889 = vmatprep.mubr.bf16.mxu0 %v77_v61  ;;  %v4320_v52 = vld [vmem:[#allocation3 + $0x340] ss:$8 sps:$4 sm:$0xff]   ;;  %v4385_v61 = vld [vmem:[#allocation3 + $0x294] ss:$8 sps:$4 sm:$0xff]   ;;  %v4386_v0 = vld [vmem:[#allocation3 + $0x390] ss:$8 sps:$4 sm:$0xff]  }
 0x155   :  { %2930 = vmatprep.mubr.bf16.mxu1 %v79_v62  ;;  %v1927_v10 = vpop.f32.mrf.mxu0  ;;  %v4380_v60 = vld [vmem:[#allocation3 + $0x3a0] ss:$8 sps:$4 sm:$0xff]   ;;  %v4388_v62 = vld [vmem:[#allocation3 + $0x394] ss:$8 sps:$4 sm:$0xff]   ;;  %v4391_v1 = vld [vmem:[#allocation3 + $0x284] ss:$8 sps:$4 sm:$0xff]  }
 0x156   :  { %v1968_v11 = vpop.f32.mrf.mxu1  ;;  %v5357_v12 = vadd.f32 %v1966_v5, %v1926_v9  ;;  %2860 = vmatpush1.bf16.msra.mxu0 %v4305_v2  ;;  %v4394_v2 = vld [vmem:[#allocation3 + $0x384] ss:$8 sps:$4 sm:$0xff]   ;;  %v4392_v4 = vld [vmem:[#allocation3 + $0x380] ss:$8 sps:$4 sm:$0xff]  }
 0x157   :  { %2901 = vmatpush1.bf16.msra.mxu1 %v4308_v3  ;;  %v1928_v14 = vpop.f32.mrf.mxu0  ;;  %2861 = vmatprep.subr.bf16.mxu0 %v4313_v6  ;;  %v4389_v3 = vld [vmem:[#allocation3 + $0x280] ss:$8 sps:$4 sm:$0xff]   ;;  %v3335_v6 = vld [vmem:[%s5451_s0 + $0x6] ss:$8 sm:$0x3] }
 0x158   :  { %v1969_v15 = vpop.f32.mrf.mxu1  ;;  %2902 = vmatprep.subr.bf16.mxu1 %v4316_v7  ;;  %v3333_v5 = vld [vmem:[%s5451_s0 + $0x4] ss:$8 sm:$0x3]  ;;  %v78_v9 = vpack.c.bf16 %v3335_v6, %v3335_v6 }
 0x159   :  { %v76_v7 = vpack.c.bf16 %v3333_v5, %v3333_v5 }
 0x15a   :  { %2862 = vmatpush1.bf16.msra.mxu0 %v4311_v47 }
 0x15b   :  { %2903 = vmatpush1.bf16.msra.mxu1 %v4314_v13  ;;  %2863 = vmatprep.subr.bf16.mxu0 %v4319_v16 }
 0x15c   :  { %2904 = vmatprep.subr.bf16.mxu1 %v4322_v17 }
 0x15e   :  { %2864 = vmatpush1.bf16.msra.mxu0 %v4317_v18 }
 0x15f   :  { %2905 = vmatpush1.bf16.msra.mxu1 %v4320_v52  ;;  %2865 = vmatprep.subr.bf16.mxu0 %v4325_v19 }
 0x160   :  { %2906 = vmatprep.subr.bf16.mxu1 %v4328_v20 }
 0x162   :  { %2866 = vmatpush1.bf16.msra.mxu0 %v4323_v21 }
 0x163   :  { %2907 = vmatpush1.bf16.msra.mxu1 %v4326_v22  ;;  %2867 = vmatprep.subr.bf16.mxu0 %v4331_v23 }
 0x164   :  { %2908 = vmatprep.subr.bf16.mxu1 %v4334_v24 }
 0x166   :  { %2868 = vmatpush1.bf16.msra.mxu0 %v4329_v25 }
 0x167   :  { %2909 = vmatpush1.bf16.msra.mxu1 %v4332_v26  ;;  %2869 = vmatprep.subr.bf16.mxu0 %v4337_v27 }
 0x168   :  { %2910 = vmatprep.subr.bf16.mxu1 %v4340_v28 }
 0x16a   :  { %2870 = vmatpush1.bf16.msra.mxu0 %v4335_v29 }
 0x16b   :  { %2911 = vmatpush1.bf16.msra.mxu1 %v4338_v30  ;;  %2871 = vmatprep.subr.bf16.mxu0 %v4343_v31 }
 0x16c   :  { %2912 = vmatprep.subr.bf16.mxu1 %v4346_v32  ;;  %v4396_v32 = vld [vmem:[%s5456_s5 + $0x38] sm:$0xff]  }
 0x16e   :  { %2872 = vmatpush1.bf16.msra.mxu0 %v4341_v33  ;;  %v4397_v33 = vld [vmem:[%s5456_s5 + $0x70] sm:$0xff]  }
 0x16f   :  { %2913 = vmatpush1.bf16.msra.mxu1 %v4344_v34  ;;  %2873 = vmatprep.subr.bf16.mxu0 %v4349_v35  ;;  %v4398_v34 = vld [vmem:[%s5456_s5 + $0x30] sm:$0xff]   ;;  %v4399_v35 = vld [vmem:[%s5456_s5 + $0x68] sm:$0xff]  }
 0x170   :  { %2914 = vmatprep.subr.bf16.mxu1 %v4352_v36  ;;  %v4400_v36 = vld [vmem:[%s5456_s5 + $0x28] sm:$0xff]  }
 0x172   :  { %2874 = vmatpush2.bf16.msra.mxu0 %v4347_v37  ;;  %v4401_v37 = vld [vmem:[%s5456_s5 + $0x60] sm:$0xff]  }
 0x173   :  { %2915 = vmatpush2.bf16.msra.mxu1 %v4350_v38  ;;  %2875 = vmatprep.subr.bf16.mxu0 %v4355_v39  ;;  %v4402_v38 = vld [vmem:[%s5456_s5 + $0x20] sm:$0xff]   ;;  %v4403_v39 = vld [vmem:[%s5456_s5 + $0x58] sm:$0xff]  }
 0x174   :  { %2916 = vmatprep.subr.bf16.mxu1 %v4358_v40  ;;  %v4404_v40 = vld [vmem:[%s5456_s5 + $0x18] sm:$0xff]  }
 0x176   :  { %2876 = vmatpush2.bf16.msra.mxu0 %v4353_v41  ;;  %v4405_v41 = vld [vmem:[%s5456_s5 + $0x50] sm:$0xff]  }
 0x177   :  { %2917 = vmatpush2.bf16.msra.mxu1 %v4356_v42  ;;  %2877 = vmatprep.subr.bf16.mxu0 %v4361_v43  ;;  %v4406_v42 = vld [vmem:[%s5456_s5 + $0x10] sm:$0xff]   ;;  %v4407_v43 = vld [vmem:[%s5456_s5 + $0x48] sm:$0xff]  }
 0x178   :  { %2918 = vmatprep.subr.bf16.mxu1 %v4364_v44  ;;  %v4408_v44 = vld [vmem:[%s5456_s5 + $0x8] sm:$0xff]  }
 0x17a   :  { %2878 = vmatpush2.bf16.msra.mxu0 %v4359_v45  ;;  %v4409_v45 = vld [vmem:[%s5456_s5 + $0x40] sm:$0xff]  }
 0x17b   :  { %2919 = vmatpush2.bf16.msra.mxu1 %v4362_v46  ;;  %2879 = vmatprep.subr.bf16.mxu0 %v4367_v48  ;;  %v4410_v46 = vld [vmem:[%s5456_s5] sm:$0xff]  }
 0x17c   :  { %2920 = vmatprep.subr.bf16.mxu1 %v4370_v49 }
 0x17e   :  { %2880 = vmatpush2.bf16.msra.mxu0 %v4365_v50 }
 0x17f   :  { %2921 = vmatpush2.bf16.msra.mxu1 %v4368_v51  ;;  %2881 = vmatprep.subr.bf16.mxu0 %v4373_v53 }
 0x180   :  { %2922 = vmatprep.subr.bf16.mxu1 %v4376_v54 }
 0x182   :  { %2882 = vmatpush2.bf16.msra.mxu0 %v4371_v55 }
 0x183   :  { %2923 = vmatpush2.bf16.msra.mxu1 %v4374_v56  ;;  %2883 = vmatprep.subr.bf16.mxu0 %v4379_v57 }
 0x184   :  { %2924 = vmatprep.subr.bf16.mxu1 %v4382_v58 }
 0x186   :  { %2884 = vmatpush2.bf16.msra.mxu0 %v4377_v59  ;;  %v2941_v59 = vlaneseq }
 0x187   :  { %2925 = vmatpush2.bf16.msra.mxu1 %v4380_v60  ;;  %2885 = vmatprep.subr.bf16.mxu0 %v4385_v61 }
 0x188   :  { %2926 = vmatprep.subr.bf16.mxu1 %v4388_v62  ;;  %v2942_v60 = vshrl.u32 %v2941_v59, 7 }
 0x18a   :  { %2886 = vmatpush2.bf16.msra.mxu0 %v4383_v63  ;;  %v2943_v62 = vsub.s32 0, %v2942_v60  ;;  %v2939_v63 = vld [vmem:[%s5455_s4] sm:$0x3] }
 0x18b   :  { %2927 = vmatpush2.bf16.msra.mxu1 %v4386_v0  ;;  %2887 = vmatprep.subr.bf16.mxu0 %v4391_v1  ;;  %v2947_v0 = vsub.s32 1, %v2942_v60 }
 0x18c   :  { %2928 = vmatprep.subr.bf16.mxu1 %v4394_v2  ;;  %v2944_v5 = vrot.slane %v2939_v63, %v2943_v62 }
 0x18e   :  { %2888 = vmatpush2.bf16.msra.mxu0 %v4389_v3 }
 0x18f   :  { %2929 = vmatpush2.bf16.msra.mxu1 %v4392_v4 }
 0x191   :  { %v2005_v10 = vpop.f32.mrf.mxu0  ;;  %2890 = vmatmul.mubr.bf16.vlgmr.msra.gmra.mxu0 %v76_v7 }
 0x192   :  { %v2046_v11 = vpop.f32.mrf.mxu1  ;;  %2931 = vmatmul.mubr.bf16.vlgmr.msra.gmra.mxu1 %v78_v9  ;;  %v2006_v47 = vadd.f32 %v2005_v10, %v5354_v8 }
 0x193   :  { %v2007_v13 = vpop.f32.mrf.mxu0 }
 0x194   :  { %v2048_v14 = vpop.f32.mrf.mxu1  ;;  %v2047_v15 = vadd.f32 %v2046_v11, %v2006_v47  ;;  %v2008_v16 = vadd.f32 %v2007_v13, %v5357_v12  ;;  %v4395_v12 = vld [vmem:[%s5456_s5 + $0x78] sm:$0xff]   ;;  %v2948_v11 = vrot.slane %v2939_v63, %v2947_v0 }
 0x195   :  { %v2009_v17 = vpop.f32.mrf.mxu0  ;;  %3762 = vmatprep.subr.bf16.mxu0 %v4395_v12 }
 0x196   :  { %v2050_v18 = vpop.f32.mrf.mxu1  ;;  %v2049_v52 = vadd.f32 %v2048_v14, %v2008_v16  ;;  %3763 = vmatpush3.bf16.msra.mxu0 %v4396_v32 }
 0x197   :  { %v2010_v19 = vpop.f32.mrf.mxu0  ;;  %3764 = vmatprep.subr.bf16.mxu0 %v4397_v33 }
 0x198   :  { %v2051_v20 = vpop.f32.mrf.mxu1 }
 0x19a   :  { %3765 = vmatpush3.bf16.msra.mxu0 %v4398_v34 }
 0x19b   :  { %3766 = vmatprep.subr.bf16.mxu0 %v4399_v35 }
 0x19e   :  { %3767 = vmatpush3.bf16.msra.mxu0 %v4400_v36 }
 0x19f   :  { %3768 = vmatprep.subr.bf16.mxu0 %v4401_v37 }
 0x1a2   :  { %3769 = vmatpush3.bf16.msra.mxu0 %v4402_v38 }
 0x1a3   :  { %3770 = vmatprep.subr.bf16.mxu0 %v4403_v39 }
 0x1a6   :  { %3771 = vmatpush3.bf16.msra.mxu0 %v4404_v40 }
 0x1a7   :  { %3772 = vmatprep.subr.bf16.mxu0 %v4405_v41 }
 0x1aa   :  { %3773 = vmatpush3.bf16.msra.mxu0 %v4406_v42 }
 0x1ab   :  { %3774 = vmatprep.subr.bf16.mxu0 %v4407_v43 }
 0x1ae   :  { %3775 = vmatpush3.bf16.msra.mxu0 %v4408_v44 }
 0x1af   :  { %3776 = vmatprep.subr.bf16.mxu0 %v4409_v45 }
 0x1b2   :  { %3777 = vmatpush3.bf16.msra.mxu0 %v4410_v46 }
 0x1d1   :  { %v2087_v21 = vpop.f32.mrf.mxu0 }
 0x1d2   :  { %v2128_v22 = vpop.f32.mrf.mxu1  ;;  %v2088_v23 = vadd.f32 %v2087_v21, %v2047_v15 }
 0x1d3   :  { %v2089_v24 = vpop.f32.mrf.mxu0 }
 0x1d4   :  { %v2130_v25 = vpop.f32.mrf.mxu1  ;;  %v2129_v26 = vadd.f32 %v2128_v22, %v2088_v23  ;;  %v2090_v27 = vadd.f32 %v2089_v24, %v2049_v52 }
 0x1d5   :  { %v2091_v28 = vpop.f32.mrf.mxu0 }
 0x1d6   :  { %v2132_v29 = vpop.f32.mrf.mxu1  ;;  %v2131_v8 = vadd.f32 %v2130_v25, %v2090_v27 }
 0x1d7   :  { %v2092_v30 = vpop.f32.mrf.mxu0 }
 0x1d8   :  { %v2133_v31 = vpop.f32.mrf.mxu1 }
 0x211   :  { %v2809_v48 = vpop.f32.mrf.mxu0 }
 0x212   :  { %v2850_v49 = vpop.f32.mrf.mxu1  ;;  %v2810_v50 = vadd.f32 %v2809_v48, %v2129_v26 }
 0x213   :  { %v2811_v51 = vpop.f32.mrf.mxu0 }
 0x214   :  { %v2852_v53 = vpop.f32.mrf.mxu1  ;;  %v2851_v54 = vadd.f32 %v2850_v49, %v2810_v50  ;;  %v2812_v61 = vadd.f32 %v2811_v51, %v2131_v8 }
 0x215   :  { %v2813_v55 = vpop.f32.mrf.mxu0 }
 0x216   :  { %v2854_v56 = vpop.f32.mrf.mxu1  ;;  %v2853_v3 = vadd.f32 %v2852_v53, %v2812_v61 }
 0x217   :  { %v2814_v57 = vpop.f32.mrf.mxu0  ;;  %v4456_v56 = vmov -1.0  }
 0x218   :  { %v2855_v58 = vpop.f32.mrf.mxu1 }
 0x251   :  { %v2891_v1 = vpop.f32.mrf.mxu0 }
 0x252   :  { %v2932_v2 = vpop.f32.mrf.mxu1  ;;  %v2892_v4 = vadd.f32 %v2891_v1, %v2851_v54 }
 0x253   :  { %v2893_v6 = vpop.f32.mrf.mxu0 }
 0x254   :  { %v2934_v7 = vpop.f32.mrf.mxu1  ;;  %v2933_v9 = vadd.f32 %v2932_v2, %v2892_v4  ;;  %v2894_v10 = vadd.f32 %v2893_v6, %v2853_v3 }
 0x255   :  { %v2895_v47 = vpop.f32.mrf.mxu0 }
 0x256   :  { %v2936_v13 = vpop.f32.mrf.mxu1  ;;  %v2951_v14 = vadd.f32 %v2944_v5, %v2933_v9  ;;  %v2935_v15 = vadd.f32 %v2934_v7, %v2894_v10  ;;  %v4411_v7 = vld [vmem:[%s5458_s7 + $0x38] sm:$0xff]   ;;  %v4457_v9 = vmov 0.0   ;;  %v4412_v10 = vld [vmem:[%s5458_s7 + $0x30] sm:$0xff]   ;;  %v4414_v47 = vld [vmem:[%s5458_s7 + $0x20] sm:$0xff]  }
 0x257   :  { %v2896_v16 = vpop.f32.mrf.mxu0  ;;  %3793 = vmatprep.subr.bf16.mxu1 %v4457_v9  ;;  %v4415_v13 = vld [vmem:[%s5458_s7 + $0x18] sm:$0xff]   ;;  %3809 = vmatprep.mubr.msk.bf16.mxu1 %vm4458_vm2, %v4457_v9 }
 0x258   :  { %v2937_v17 = vpop.f32.mrf.mxu1  ;;  %v2955_v18 = vmul.f32 0.70710677, %v2951_v14  ;;  %v2952_v52 = vadd.f32 %v2948_v11, %v2935_v15  ;;  %v2953_v0 = vmul.f32 0.5, %v2951_v14  ;;  %3794 = vmatpush3.bf16.msra.mxu1 %v4411_v7  ;;  %v4413_v11 = vld [vmem:[%s5458_s7 + $0x28] sm:$0xff]   ;;  %v4416_v14 = vld [vmem:[%s5458_s7 + $0x10] sm:$0xff]   ;;  %v4418_v16 = vld [vmem:[%s5458_s7] sm:$0xff]  }
 0x259   :  { %3795 = vmatprep.subr.bf16.mxu1 %v4457_v9  ;;  %v4417_v15 = vld [vmem:[%s5458_s7 + $0x8] sm:$0xff]  }
 0x25a   :  { %v2961_v19 = vand.u32 2147483647, %v2955_v18  ;;  %v2956_v20 = vmul.f32 0.70710677, %v2952_v52  ;;  %vm2957_vm0 = vcmp.ge.f32.partialorder %v2955_v18, 0.0  ;;  %v2954_v1 = vmul.f32 0.5, %v2952_v52 }
 0x25b   :  { %v2959_v57 = vsel %vm2957_vm0, 1.0, %v4456_v56  ;;  %v3736_v18 = vld [vmem:[%s5457_s6] ss:$0 sm:$0xff] }
 0x25c   :  { %v2963_v21 = vmul.f32 0.3275911, %v2961_v19  ;;  %v2962_v22 = vand.u32 2147483647, %v2956_v20  ;;  %v2989_v26 = vsub.f32 0.0, %v2961_v19  ;;  %vm2958_vm1 = vcmp.ge.f32.partialorder %v2956_v20, 0.0  ;;  %3796 = vmatpush3.bf16.msra.mxu1 %v4412_v10 }
 0x25d   :  { %v2960_v62 = vsel %vm2958_vm1, 1.0, %v4456_v56  ;;  %3797 = vmatprep.subr.bf16.mxu1 %v4457_v9 }
 0x25e   :  { %v2965_v23 = vadd.f32 1.0, %v2963_v21  ;;  %v2964_v24 = vmul.f32 0.3275911, %v2962_v22  ;;  %v2990_v27 = vsub.f32 0.0, %v2962_v22  ;;  %v2991_v28 = vmul.f32 %v2989_v26, %v2961_v19 }
 0x260   :  { %4419 = vrcp.f32 %v2965_v23  ;;  %v2966_v25 = vadd.f32 1.0, %v2964_v24  ;;  %v2992_v8 = vmul.f32 %v2990_v27, %v2962_v22  ;;  %v2993_v31 = vmul.f32 1.442695, %v2991_v28  ;;  %3798 = vmatpush3.bf16.msra.mxu1 %v4413_v11 }
 0x261   :  { %3799 = vmatprep.subr.bf16.mxu1 %v4457_v9 }
 0x262   :  { %4421 = vrcp.f32 %v2966_v25  ;;  %v2995_v33 = vmul.f32 1.442695, %v2992_v8 }
 0x263   :  { %4423 = vpow2.f32 %v2993_v31 }
 0x264   :  { %4425 = vpow2.f32 %v2995_v33  ;;  %3800 = vmatpush3.bf16.msra.mxu1 %v4414_v47 }
 0x265   :  { %3801 = vmatprep.subr.bf16.mxu1 %v4457_v9 }
 0x268   :  { %3802 = vmatpush3.bf16.msra.mxu1 %v4415_v13 }
 0x269   :  { %3803 = vmatprep.subr.bf16.mxu1 %v4457_v9 }
 0x26c   :  { %3804 = vmatpush3.bf16.msra.mxu1 %v4416_v14 }
 0x26d   :  { %v4420_v29 = vpop.eup %4419  ;;  %3805 = vmatprep.subr.bf16.mxu1 %v4457_v9 }
 0x26e   :  { %v2971_v30 = vmul.f32 1.0614054, %v4420_v29 }
 0x26f   :  { %v4422_v12 = vpop.eup %4421 }
 0x270   :  { %v2973_v32 = vadd.f32 -1.4531521, %v2971_v30  ;;  %v2972_v34 = vmul.f32 1.0614054, %v4422_v12  ;;  %v4424_v49 = vpop.eup %4423  ;;  %3806 = vmatpush3.bf16.msra.mxu1 %v4417_v15 }
 0x271   :  { %v4426_v54 = vpop.eup %4425  ;;  %3807 = vmatprep.subr.bf16.mxu1 %v4457_v9 }
 0x272   :  { %v2975_v35 = vmul.f32 %v4420_v29, %v2973_v32  ;;  %v2974_v36 = vadd.f32 -1.4531521, %v2972_v34 }
 0x274   :  { %v2977_v37 = vadd.f32 1.4214138, %v2975_v35  ;;  %v2976_v38 = vmul.f32 %v4422_v12, %v2974_v36  ;;  %3808 = vmatpush3.bf16.msra.mxu1 %v4418_v16 }
 0x276   :  { %v2979_v39 = vmul.f32 %v4420_v29, %v2977_v37  ;;  %v2978_v40 = vadd.f32 1.4214138, %v2976_v38 }
 0x278   :  { %v2981_v41 = vadd.f32 -0.28449672, %v2979_v39  ;;  %v2980_v42 = vmul.f32 %v4422_v12, %v2978_v40 }
 0x27a   :  { %v2983_v43 = vmul.f32 %v4420_v29, %v2981_v41  ;;  %v2982_v44 = vadd.f32 -0.28449672, %v2980_v42 }
 0x27c   :  { %v2985_v45 = vadd.f32 0.2548296, %v2983_v43  ;;  %v2984_v46 = vmul.f32 %v4422_v12, %v2982_v44 }
 0x27e   :  { %v2987_v48 = vmul.f32 %v4420_v29, %v2985_v45  ;;  %v2986_v50 = vadd.f32 0.2548296, %v2984_v46 }
 0x280   :  { %v2997_v51 = vmul.f32 %v4424_v49, %v2987_v48  ;;  %v2988_v53 = vmul.f32 %v4422_v12, %v2986_v50  ;;  %v3753_v48 = vld [vmem:[#allocation2] ss:$0 sm:$0xff] }
 0x282   :  { %v2999_v55 = vsub.f32 1.0, %v2997_v51  ;;  %v2998_v58 = vmul.f32 %v4426_v54, %v2988_v53 }
 0x284   :  { %v3001_v59 = vmul.f32 %v2999_v55, %v2959_v57  ;;  %v3000_v60 = vsub.f32 1.0, %v2998_v58 }
 0x286   :  { %v3003_v61 = vadd.f32 1.0, %v3001_v59  ;;  %v3002_v63 = vmul.f32 %v3000_v60, %v2960_v62 }
 0x288   :  { %v3004_v2 = vadd.f32 1.0, %v3002_v63  ;;  %v3005_v3 = vmul.f32 %v3003_v61, %v2953_v0 }
 0x28a   :  { %v3006_v4 = vmul.f32 %v3004_v2, %v2954_v1  ;;  %v3007_v6 = vpack.c.bf16 %v3005_v3, %v3005_v3 }
 0x28c   :  { %v3008_v5 = vpack.c.bf16 %v3006_v4, %v3006_v4 }
 0x28e   :  { %3176 = vmatprep.mubr.bf16.mxu0 %v3008_v5 }
 0x28f   :  { %3177 = vmatmul.mubr.bf16.vlgmr.msra.gmra.mxu0 %v3007_v6 }
 0x34f   :  { %v3778_v17 = vpop.f32.mrf.mxu0 }
 0x351   :  { %v3779_v52 = vpop.f32.mrf.mxu0 }
 0x352   :  { %v3780_v19 = vadd.f32 %v3779_v52, %v3778_v17 }
 0x353   :  { %v3781_v20 = vpop.f32.mrf.mxu0 }
 0x354   :  { %v3179_v21 = vadd.f32 %v3780_v19, %v3736_v18 }
 0x355   :  { %v3782_v22 = vpop.f32.mrf.mxu0 }
 0x356   :  { %v3185_v23 = vmul.f32 0.70710677, %v3179_v21  ;;  %v3184_v43 = vmul.f32 0.5, %v3179_v21 }
 0x358   :  { %v3188_v24 = vand.u32 2147483647, %v3185_v23  ;;  %vm3186_vm3 = vcmp.ge.f32.partialorder %v3185_v23, 0.0 }
 0x359   :  { %v3187_v41 = vsel %vm3186_vm3, 1.0, %v4456_v56 }
 0x35a   :  { %v3189_v25 = vmul.f32 0.3275911, %v3188_v24  ;;  %v3202_v27 = vsub.f32 0.0, %v3188_v24 }
 0x35c   :  { %v3190_v26 = vadd.f32 1.0, %v3189_v25  ;;  %v3203_v28 = vmul.f32 %v3202_v27, %v3188_v24 }
 0x35e   :  { %4427 = vrcp.f32 %v3190_v26  ;;  %v3204_v30 = vmul.f32 1.442695, %v3203_v28 }
 0x360   :  { %4429 = vpow2.f32 %v3204_v30 }
 0x36b   :  { %v4428_v29 = vpop.eup %4427 }
 0x36c   :  { %v3193_v8 = vmul.f32 1.0614054, %v4428_v29 }
 0x36d   :  { %v4430_v38 = vpop.eup %4429 }
 0x36e   :  { %v3194_v31 = vadd.f32 -1.4531521, %v3193_v8 }
 0x370   :  { %v3195_v12 = vmul.f32 %v4428_v29, %v3194_v31 }
 0x372   :  { %v3196_v32 = vadd.f32 1.4214138, %v3195_v12 }
 0x374   :  { %v3197_v33 = vmul.f32 %v4428_v29, %v3196_v32 }
 0x376   :  { %v3198_v34 = vadd.f32 -0.28449672, %v3197_v33 }
 0x378   :  { %v3199_v35 = vmul.f32 %v4428_v29, %v3198_v34 }
 0x37a   :  { %v3200_v36 = vadd.f32 0.2548296, %v3199_v35 }
 0x37c   :  { %v3201_v37 = vmul.f32 %v4428_v29, %v3200_v36 }
 0x37e   :  { %v3206_v39 = vmul.f32 %v4430_v38, %v3201_v37 }
 0x380   :  { %v3207_v40 = vsub.f32 1.0, %v3206_v39 }
 0x382   :  { %v3208_v42 = vmul.f32 %v3207_v40, %v3187_v41 }
 0x384   :  { %v3209_v44 = vadd.f32 1.0, %v3208_v42 }
 0x386   :  { %v3210_v45 = vmul.f32 %v3209_v44, %v3184_v43 }
 0x388   :  { %v3211_v46 = vpack.c.bf16 %v3210_v45, %v3210_v45 }
 0x38a   :  { %3810 = vmatmul.mubr.bf16.vlgmr.msra.gmra.mxu1 %v3211_v46 }
 0x44a   :  { %v3317_v49 = vpop.f32.mrf.mxu1 }
 0x44b   :  { %v3318_v50 = vadd.f32 %v3753_v48, %v3317_v49 }
 0x44c   :  { %v3811_v51 = vpop.f32.mrf.mxu1 }
 0x44d   :  { %3324 = vst.msk [vmem:[%s5460_s9] sm:$0x3] %vm3323_vm4, %v3318_v50 }
 0x44e   :  { %v3320_v53 = vpop.f32.mrf.mxu1 }
 0x450   :  { %v3812_v54 = vpop.f32.mrf.mxu1 }
 0x451   :  { %3329 = vsyncpa [#allocation4], 1 }

// kernel: phlaformer_forward.4
= control target key start
LH: loop header
LB: loop body
LE: loop exit
PB: predicated region body
PF: predicated region fallthrough
CT: control target
= control target key end

     0   :  { %s8465_s0 = inlined_call_operand.vmem [shape: f32[2,8,128], index: 0, kind: input, shape index: {}, may-alias: {0,2}]   ;;  %s8466_s1 = inlined_call_operand.vmem [shape: f32[2,16,128], index: 1, kind: input, shape index: {}, may-alias: {1,3}]   ;;  %s8467_s2 = inlined_call_operand.vmem [shape: f32[2,8,128], index: 2, kind: input, shape index: {}, may-alias: {0,2}]   ;;  %s8468_s3 = inlined_call_operand.vmem [shape: f32[2,16,128], index: 3, kind: input, shape index: {}, may-alias: {1,3}]   ;;  %s8469_s4 = inlined_call_operand.vmem [shape: f32[2,8,1], index: 4, kind: input, shape index: {}]   ;;  %s8470_s5 = inlined_call_operand.vmem [shape: f32[2,1,8], index: 5, kind: input, shape index: {}]   ;;  %s8471_s6 = inlined_call_operand.vmem [shape: f32[2,16,1], index: 6, kind: input, shape index: {}]   ;;  %s8472_s7 = inlined_call_operand.vmem [shape: f32[2,1,16], index: 7, kind: input, shape index: {}]   ;;  %s8473_s8 = inlined_call_operand.vmem [shape: bf16[4,128,32], index: 8, kind: input, shape index: {}]   ;;  %s8474_s9 = inlined_call_operand.vmem [shape: f32[4,1,32], index: 9, kind: input, shape index: {}]   ;;  %s8475_s10 = inlined_call_operand.vmem [shape: bf16[4,128,32], index: 10, kind: input, shape index: {}]   ;;  %s8476_s11 = inlined_call_operand.vmem [shape: f32[4,1,32], index: 11, kind: input, shape index: {}]   ;;  %s8477_s12 = inlined_call_operand.vmem [shape: bf16[4,128,32], index: 12, kind: input, shape index: {}]   ;;  %s8478_s13 = inlined_call_operand.vmem [shape: f32[4,1,32], index: 13, kind: input, shape index: {}]   ;;  %s8479_s14 = inlined_call_operand.hbm [shape: bf16[4,32,128], index: 14, kind: input, shape index: {}]   ;;  %s8480_s15 = inlined_call_operand.vmem [shape: f32[1,128], index: 15, kind: input, shape index: {}]   ;;  %s8481_s16 = inlined_call_operand.hbm [shape: f32[1,128], index: 16, kind: input, shape index: {}]   ;;  %s8482_s17 = inlined_call_operand.vmem [shape: f32[1,128], index: 17, kind: input, shape index: {}]   ;;  %s8483_s18 = inlined_call_operand.vmem [shape: bf16[128,256], index: 18, kind: input, shape index: {}]   ;;  %s8484_s19 = inlined_call_operand.vmem [shape: f32[1,256], index: 19, kind: input, shape index: {}]   ;;  %s8485_s20 = inlined_call_operand.vmem [shape: bf16[256,128], index: 20, kind: input, shape index: {}]   ;;  %s8486_s21 = inlined_call_operand.vmem [shape: f32[1,128], index: 21, kind: input, shape index: {}]   ;;  %s8487_s22 = inlined_call_operand.vmem [shape: f32[1,128], index: 22, kind: input, shape index: {}]   ;;  %s8488_s23 = inlined_call_operand.vmem [shape: f32[1,128], index: 23, kind: input, shape index: {}]   ;;  %s8489_s24 = inlined_call_operand.vmem [shape: f32[2,8,128], index: 24, kind: output, shape index: {0}]   ;;  %s8490_s25 = inlined_call_operand.vmem [shape: f32[2,16,128], index: 25, kind: output, shape index: {1}]  }
   0x1   :  { %8494 = sst [smem:[#allocation9_spill]] %s8465_s0 }
   0x2   :  { %8495 = sst [smem:[#allocation10_spill]] %s8466_s1 }
   0x3   :  { %8496 = sst [smem:[#allocation11_spill]] %s8467_s2 }
   0x4   :  { %8497 = sst [smem:[#allocation12_spill]] %s8468_s3 }
   0x5   :  { %8498 = sst [smem:[#allocation13_spill]] %s8469_s4 }
   0x6   :  { %8499 = sst [smem:[#allocation14_spill]] %s8470_s5 }
   0x7   :  { %8500 = sst [smem:[#allocation15_spill]] %s8471_s6 }
   0x8   :  { %8501 = sst [smem:[#allocation16_spill]] %s8472_s7 }
   0x9   :  { %8502 = sst [smem:[#allocation17_spill]] %s8473_s8 }
   0xa   :  { %8503 = sst [smem:[#allocation18_spill]] %s8474_s9 }
   0xb   :  { %8504 = sst [smem:[#allocation19_spill]] %s8479_s14 }
   0xc   :  { %8505 = sst [smem:[#allocation20_spill]] %s8481_s16 }
   0xd   :  { %31 = vsyncpa [#allocation3], 0 }
   0xe   :  { %32 = vsyncpa [#allocation5], 0  ;;  %s6915_s29 = smov 0  }
   0xf LB: > { %8506 = sst [smem:[#allocation8_spill]] %s6775_s29  ;;  %s6921_s2 = sadd.s32 4294967295, %s6775_s29   ;;  %s6775_s29 = sphi %s6915_s29, %s38_s29  }
  0x10   : > { %p5117_p0 = scmp.ge.s32.totalorder %s6775_s29, 1  ;;  %p639_p1 = scmp.lt.s32.totalorder %s6775_s29, 3 }
  0x11   : > { %s6777_s6 = smov [#allocation2]   ;;  %p6293_p3 = scmp.eq.s32.totalorder %s6921_s2, 0 }
  0x12   : > { %s669_s30 = sshll.u32 %s6777_s6, 4  ;;  %p6925_p2 = pnand %p5117_p0, %p639_p1  ;;  %s670_s30 = int_to_ptr.vmem [resolvable:$true] %s669_s30 }
  0x13   : > { %s6778_s3 = smov [#allocation4]   ;;  %s6720_s8 = scalar_lea.vmem %s670_s30, 1024 }
  0x14   : > { %p6286_p4 = pneg %p6925_p2  ;;  %s686_s26 = sshll.u32 %s6778_s3, 4  ;;  %s687_s26 = int_to_ptr.vmem [resolvable:$true] %s686_s26 }
  0x15   : > { %p6721_p7 = scmp.ne.s32.totalorder %s670_s30, %s6720_s8  ;;  %p6728_p10 = scmp.lt.s32.totalorder %s670_s30, %s670_s30 }
  0x16   : > { %p6934_p5 = pnand %p6293_p3, %p6286_p4  ;;  %p6729_p11 = scmp.lt.s32.totalorder %s6720_s8, %s6720_s8 }
  0x18   : > { %p6711_p6 = pneg %p6934_p5  ;;  %p6730_p12 = por %p6729_p11, %p6728_p10 }
  0x1a   : > { %p6723_p8 = pnand %p6721_p7, %p6711_p6 }
  0x1c   : > { %p6724_p9 = pneg %p6723_p8 }
  0x1e   : > { %p6731_p13 = pnand %p6730_p12, %p6724_p9 }
  0x20   : > { %6734 = shalt.err (!%p6731_p13)
}
  0x21   : > { %s6779_s27 = smov 64   ;;  %s6780_s4 = smov 4  }
  0x22   : > { %s8509_s14 = sld [smem:[#allocation19_spill]]  ;;  %s6746_s5 = scalar_lea.vmem %s687_s26, 16 }
  0x23   : > { %p6747_p0 = scmp.ne.s32.totalorder %s687_s26, %s6746_s5  ;;  %s6753_s0 = scalar_lea.vmem %s687_s26, 32 }
  0x24   : > { %p6754_p7 = scmp.lt.s32.totalorder %s687_s26, %s687_s26  ;;  %p6755_p8 = scmp.lt.s32.totalorder %s6753_s0, %s6746_s5 }
  0x25   : > { %p6749_p1 = pnand %p6747_p0, %p6711_p6 }
  0x26   : > { %p6756_p9 = por %p6755_p8, %p6754_p7 }
  0x27   : > { %p6750_p4 = pneg %p6749_p1 }
  0x28   : > { %6289 = dma.hbm_to_vmem [thread:$0]  (!%p6934_p5), %s8509_s14, 1024, %s670_s30, [#allocation3], %s6779_s27, %s6779_s27, %s6780_s4  }
  0x29   : > { %p6757_p10 = pnand %p6756_p9, %p6750_p4 }
  0x2b   : > { %6760 = shalt.err (!%p6757_p10)
}
  0x2c   : > { %s8510_s16 = sld [smem:[#allocation20_spill]] }
  0x2e   : > { %777 = sbr.rel (%p6925_p2) target bundleno = 9283 (0x2443), region = 116 }
  0x32   : > { %6292 = dma.hbm_to_vmem [thread:$0]  (!%p6934_p5), %s8510_s16, 16, %s687_s26, [#allocation5]  }
  0x33   : > { %6766 = dma.done.wait (%p6293_p3), [#allocation3], 1024  }
  0x34   : > { %6768 = vsyncadd (%p6293_p3), [#allocation3], 4294966272 }
  0x35   : > { %6770 = dma.done.wait (%p6293_p3), [#allocation5], 16  }
  0x36   : > { %6772 = vsyncadd (%p6293_p3), [#allocation5], 4294967280  ;;  %v6781_v0 = vmov 0.0   ;;  %vm6782_vm0 = vmmov 0   ;;  %v6315_v1 = vld [vmem:[%s8475_s10 + $0x38] sm:$0xff]   ;;  %v6316_v2 = vld [vmem:[%s8475_s10 + $0x30] sm:$0xff]  }
  0x37   : > { %5658 = vmatprep.subr.bf16.mxu1 %v6781_v0  ;;  %5638 = vmatprep.subr.bf16.mxu0 %v6781_v0  ;;  %s8511_s4 = sld [smem:[#allocation17_spill]]  ;;  %v6318_v5 = vld [vmem:[%s8475_s10 + $0x28] sm:$0xff]   ;;  %p881_p2 = scmp.lt.s32.totalorder %s6921_s2, 1  ;;  %v6320_v7 = vld [vmem:[%s8475_s10 + $0x20] sm:$0xff]   ;;  %v6322_v9 = vld [vmem:[%s8475_s10 + $0x18] sm:$0xff]   ;;  %v6783_v22 = vmov 0  }
  0x38   : > { %5674 = vmatprep.mubr.msk.bf16.mxu1 %vm6782_vm0, %v6781_v0  ;;  %5654 = vmatprep.mubr.msk.bf16.mxu0 %vm6782_vm0, %v6781_v0  ;;  %v6324_v11 = vld [vmem:[%s8475_s10 + $0x10] sm:$0xff]   ;;  %v6326_v13 = vld [vmem:[%s8475_s10 + $0x8] sm:$0xff]   ;;  %s8512_s28 = sld [smem:[#allocation12_spill]]  ;;  %v6328_v15 = vld [vmem:[%s8475_s10] sm:$0xff]   ;;  %vm1505_vm1 = vcmask 261120   ;;  %vm1554_vm3 = vcmask 130048  }
  0x39   : > { %5659 = vmatpush3.bf16.msra.mxu1 %v6315_v1  ;;  %s8523_s2 = smov (!%p881_p2, %s6921_s2), 1  ;;  %s8513_s14 = sld [smem:[#allocation9_spill]]  ;;  %6313 = vset.pattern.permute.xlu0 %v6783_v22  ;;  %v5146_v25 = vld [vmem:[%s8476_s11] ss:$0 sm:$0xff]  ;;  %v6331_v40 = vld [vmem:[%s8477_s12 + $0x38] sm:$0xff]   ;;  %v6332_v41 = vld [vmem:[%s8477_s12 + $0x30] sm:$0xff]  }
  0x3a   : > { %5660 = vmatprep.subr.bf16.mxu1 %v6781_v0  ;;  %s7018_s6 = sshll.u32 %s8523_s2, 4  ;;  %s7021_s3 = sshll.u32 %s8523_s2, 3  ;;  %6314 = vset.pattern.permute.xlu1 %v6783_v22  ;;  %v6333_v42 = vld [vmem:[%s8477_s12 + $0x28] sm:$0xff]   ;;  %v6334_v43 = vld [vmem:[%s8477_s12 + $0x20] sm:$0xff]   ;;  %v6335_v44 = vld [vmem:[%s8477_s12 + $0x18] sm:$0xff]   ;;  %vm3628_vm6 = vcmask 64512  }
  0x3b   : > { %s8515_s1 = sld [smem:[#allocation18_spill]]  ;;  %v6336_v45 = vld [vmem:[%s8477_s12 + $0x10] sm:$0xff]   ;;  %v6337_v46 = vld [vmem:[%s8477_s12 + $0x8] sm:$0xff]   ;;  %v6338_v47 = vld [vmem:[%s8477_s12] sm:$0xff]   ;;  %vm3656_vm9 = vcmask 1043456   ;;  %s917_s27 = scalar_lea.vmem %s8489_s24, %s7021_s3 }
  0x3c   : > { %s8516_s7 = sld [smem:[#allocation16_spill]] }
  0x3d   : > { %v6317_v3 = vld [vmem:[%s8511_s4 + $0x38] sm:$0xff]   ;;  %v6319_v4 = vld [vmem:[%s8511_s4 + $0x30] sm:$0xff]   ;;  %5661 = vmatpush3.bf16.msra.mxu1 %v6316_v2  ;;  %v6321_v6 = vld [vmem:[%s8511_s4 + $0x28] sm:$0xff]  }
  0x3e   : > { %5639 = vmatpush3.bf16.msra.mxu0 %v6317_v3  ;;  %5662 = vmatprep.subr.bf16.mxu1 %v6781_v0  ;;  %v6323_v8 = vld [vmem:[%s8511_s4 + $0x20] sm:$0xff]   ;;  %v6325_v10 = vld [vmem:[%s8511_s4 + $0x18] sm:$0xff]   ;;  %v6327_v12 = vld [vmem:[%s8511_s4 + $0x10] sm:$0xff]   ;;  %s898_s9 = scalar_lea.vmem %s8512_s28, %s7018_s6 }
  0x3f   : > { %5640 = vmatprep.subr.bf16.mxu0 %v6781_v0  ;;  %v6329_v14 = vld [vmem:[%s8511_s4 + $0x8] sm:$0xff]   ;;  %s7043_s16 = scalar_lea.vmem %s8513_s14, %s7021_s3  ;;  %v1200_v16 = vld [vmem:[%s898_s9] sm:$0xff]  ;;  %s8517_s14 = sld [smem:[#allocation15_spill]] }
  0x40   : > { %v1201_v17 = vld [vmem:[%s898_s9 + $0x8] sm:$0xff]  ;;  %v6330_v18 = vld [vmem:[%s8511_s4] sm:$0xff]   ;;  %s8514_s9 = sld [smem:[#allocation13_spill]] }
  0x41   : > { %5663 = vmatpush3.bf16.msra.mxu1 %v6318_v5  ;;  %v1199_v19 = vld [vmem:[%s7043_s16] sm:$0xff]  ;;  %v7054_v20 = vpack.c.bf16 %v1201_v17, %v1200_v16 }
  0x42   : > { %5641 = vmatpush3.bf16.msra.mxu0 %v6319_v4  ;;  %5664 = vmatprep.subr.bf16.mxu1 %v6781_v0  ;;  %v7057_v21 = vpack.c.bf16 %v1199_v19, %v1199_v19  ;;  %v5137_v32 = vld [vmem:[%s8515_s1] ss:$0 sm:$0xff]  ;;  %s913_s26 = scalar_lea.vmem %s8516_s7, %s8523_s2  ;;  %v6339_v4 = vld [vmem:[%s8475_s10 + $0x78] sm:$0xff]  }
  0x43   : > { %5642 = vmatprep.subr.bf16.mxu0 %v6781_v0  ;;  %v5136_v48 = vld [vmem:[%s913_s26] ss:$0 sm:$0xff]  ;;  %s8519_s26 = sld [smem:[#allocation11_spill]] }
  0x44   : > { %v5155_v3 = vld [vmem:[%s8478_s13] ss:$0 sm:$0xff] }
  0x45   : > { %5665 = vmatpush3.bf16.msra.mxu1 %v6320_v7  ;;  %s7133_s28 = scalar_lea.vmem %s8517_s14, %s7018_s6  ;;  %v6340_v7 = vld [vmem:[%s8475_s10 + $0x70] sm:$0xff]   ;;  %v6349_v16 = vld [vmem:[%s8475_s10 + $0x40] sm:$0xff]   ;;  %s8518_s14 = sld [smem:[#allocation10_spill]] }
  0x46   : > { %5643 = vmatpush3.bf16.msra.mxu0 %v6321_v6  ;;  %5666 = vmatprep.subr.bf16.mxu1 %v6781_v0  ;;  %s902_s5 = scalar_lea.vmem %s8514_s9, %s7021_s3  ;;  %v3429_v58 = vld [vmem:[%s7133_s28] sm:$0xff] }
  0x47   : > { %5644 = vmatprep.subr.bf16.mxu0 %v6781_v0  ;;  %v1202_v23 = vld [vmem:[%s902_s5] sm:$0xff]  ;;  %s8520_s5 = sld [smem:[#allocation14_spill]] }
  0x48   : > { %1208 = vperm.xlu0 %6313, %v1202_v23   ;;  %v6344_v23 = vld [vmem:[%s8511_s4 + $0x78] sm:$0xff]  }
  0x49   : > { %5667 = vmatpush3.bf16.msra.mxu1 %v6322_v9  ;;  %s893_s8 = scalar_lea.vmem %s8519_s26, %s7021_s3 }
  0x4a   : > { %5645 = vmatpush3.bf16.msra.mxu0 %v6323_v8  ;;  %5668 = vmatprep.subr.bf16.mxu1 %v6781_v0 }
  0x4b   : > { %5646 = vmatprep.subr.bf16.mxu0 %v6781_v0  ;;  %s7696_s9 = scalar_lea.vmem %s8518_s14, %s7018_s6 }
  0x4d   : > { %5669 = vmatpush3.bf16.msra.mxu1 %v6324_v11  ;;  %v6341_v11 = vld [vmem:[%s8475_s10 + $0x68] sm:$0xff]   ;;  %s905_s0 = scalar_lea.vmem %s8520_s5, %s8523_s2  ;;  %s922_s5 = scalar_lea.vmem %s8490_s25, %s7018_s6 }
  0x4e   : > { %5647 = vmatpush3.bf16.msra.mxu0 %v6325_v10  ;;  %5670 = vmatprep.subr.bf16.mxu1 %v6781_v0 }
  0x4f   : > { %5648 = vmatprep.subr.bf16.mxu0 %v6781_v0 }
  0x51   : > { %5671 = vmatpush3.bf16.msra.mxu1 %v6326_v13  ;;  %v6343_v13 = vld [vmem:[%s8475_s10 + $0x58] sm:$0xff]  }
  0x52   : > { %5649 = vmatpush3.bf16.msra.mxu0 %v6327_v12  ;;  %5672 = vmatprep.subr.bf16.mxu1 %v6781_v0  ;;  %v6342_v12 = vld [vmem:[%s8475_s10 + $0x60] sm:$0xff]  }
  0x53   : > { %5650 = vmatprep.subr.bf16.mxu0 %v6781_v0 }
  0x55   : > { %5673 = vmatpush3.bf16.msra.mxu1 %v6328_v15  ;;  %v6347_v15 = vld [vmem:[%s8475_s10 + $0x48] sm:$0xff]  }
  0x56   : > { %5651 = vmatpush3.bf16.msra.mxu0 %v6329_v14  ;;  %5698 = vmatprep.subr.bf16.mxu1 %v6781_v0  ;;  %v6345_v14 = vld [vmem:[%s8475_s10 + $0x50] sm:$0xff]  }
  0x57   : > { %5652 = vmatprep.subr.bf16.mxu0 %v6781_v0 }
  0x58   : > { %5675 = vmatmul.mubr.bf16.vlgmr.msra.gmra.mxu1 %v7054_v20 }
  0x59   : > { %5700 = vmatprep.mubr.msk.bf16.mxu1 %vm6782_vm0, %v6781_v0 }
  0x5a   : > { %5653 = vmatpush3.bf16.msra.mxu0 %v6330_v18 }
  0x5b   : > { %5678 = vmatprep.subr.bf16.mxu0 %v6781_v0 }
  0x5d   : > { %5655 = vmatmul.mubr.bf16.vlgmr.msra.gmra.mxu0 %v7057_v21 }
  0x5e   : > { %5694 = vmatprep.mubr.msk.bf16.mxu0 %vm6782_vm0, %v6781_v0  ;;  %5679 = vmatpush3.bf16.msra.mxu0 %v6331_v40  ;;  %v6363_v40 = vld [vmem:[#allocation2 + $0x8] sm:$0xff]  }
  0x5f   : > { %5680 = vmatprep.subr.bf16.mxu0 %v6781_v0 }
  0x62   : > { %5681 = vmatpush3.bf16.msra.mxu0 %v6332_v41  ;;  %v6364_v41 = vld [vmem:[#allocation2] sm:$0xff]  }
  0x63   : > { %5682 = vmatprep.subr.bf16.mxu0 %v6781_v0 }
  0x66   : > { %5683 = vmatpush3.bf16.msra.mxu0 %v6333_v42  ;;  %v5175_v42 = vld [vmem:[%s8476_s11 + $0x1] ss:$0 sm:$0xff] }
  0x67   : > { %5684 = vmatprep.subr.bf16.mxu0 %v6781_v0 }
  0x6a   : > { %5685 = vmatpush3.bf16.msra.mxu0 %v6334_v43 }
  0x6b   : > { %5686 = vmatprep.subr.bf16.mxu0 %v6781_v0 }
  0x6e   : > { %5687 = vmatpush3.bf16.msra.mxu0 %v6335_v44 }
  0x6f   : > { %5688 = vmatprep.subr.bf16.mxu0 %v6781_v0 }
  0x72   : > { %5689 = vmatpush3.bf16.msra.mxu0 %v6336_v45 }
  0x73   : > { %5690 = vmatprep.subr.bf16.mxu0 %v6781_v0 }
  0x76   : > { %5691 = vmatpush3.bf16.msra.mxu0 %v6337_v46 }
  0x77   : > { %5692 = vmatprep.subr.bf16.mxu0 %v6781_v0 }
  0x7a   : > { %5693 = vmatpush3.bf16.msra.mxu0 %v6338_v47 }
  0x7b   : > { %5730 = vmatprep.subr.bf16.mxu0 %v6781_v0 }
  0x7d   : > { %5695 = vmatmul.mubr.bf16.vlgmr.msra.gmra.mxu0 %v7054_v20 }
  0x7e   : > { %5746 = vmatprep.mubr.msk.bf16.mxu0 %vm6782_vm0, %v6781_v0  ;;  %5731 = vmatpush3.bf16.msra.mxu0 %v6339_v4 }
  0x7f   : > { %5732 = vmatprep.subr.bf16.mxu0 %v6781_v0 }
  0x82   : > { %5733 = vmatpush3.bf16.msra.mxu0 %v6340_v7 }
  0x83   : > { %5734 = vmatprep.subr.bf16.mxu0 %v6781_v0 }
  0x86   : > { %5735 = vmatpush3.bf16.msra.mxu0 %v6341_v11 }
  0x87   : > { %5736 = vmatprep.subr.bf16.mxu0 %v6781_v0 }
  0x8a   : > { %5737 = vmatpush3.bf16.msra.mxu0 %v6342_v12 }
  0x8b   : > { %5738 = vmatprep.subr.bf16.mxu0 %v6781_v0 }
  0x8e   : > { %5739 = vmatpush3.bf16.msra.mxu0 %v6343_v13 }
  0x8f   : > { %5740 = vmatprep.subr.bf16.mxu0 %v6781_v0 }
  0x92   : > { %5741 = vmatpush3.bf16.msra.mxu0 %v6345_v14 }
  0x93   : > { %5742 = vmatprep.subr.bf16.mxu0 %v6781_v0 }
  0x96   : > { %5743 = vmatpush3.bf16.msra.mxu0 %v6347_v15 }
  0x97   : > { %5744 = vmatprep.subr.bf16.mxu0 %v6781_v0 }
  0x9a   : > { %5745 = vmatpush3.bf16.msra.mxu0 %v6349_v16 }
  0x9b   : > { %5770 = vmatprep.subr.bf16.mxu0 %v6781_v0 }
  0x9d   : > { %5747 = vmatmul.mubr.bf16.vlgmr.msra.gmra.mxu0 %v7054_v20 }
  0x9e   : > { %5772 = vmatprep.mubr.msk.bf16.mxu0 %vm6782_vm0, %v6781_v0 }
  0xc3   : > { %v1209_v49 = vpop.permute.xlu0 %1208 }
  0xc4   : > { %v7123_v50 = vadd.f32 %v5136_v48, %v1209_v49 }
  0xc6   : > { %vm1218_vm2 = vcmp.gt.f32.partialorder %v7123_v50, 0.5  ;;  %v5251_v50 = vld [vmem:[%s8478_s13 + $0x3] ss:$0 sm:$0xff] }
 0x118   : > { %v1401_v24 = vpop.f32.mrf.mxu1 }
 0x119   : > { %v1402_v30 = vadd.f32 %v5146_v25, %v1401_v24 }
 0x11a   : > { %v5676_v26 = vpop.f32.mrf.mxu1 }
 0x11b   : > { %v6348_v26 = vld [vmem:[%s8511_s4 + $0x68] sm:$0xff]  }
 0x11c   : > { %v1404_v28 = vpop.f32.mrf.mxu1 }
 0x11d   : > { %v1307_v27 = vpop.f32.mrf.mxu0  ;;  %v1405_v31 = vadd.f32 %v5146_v25, %v1404_v28  ;;  %v6346_v25 = vld [vmem:[%s8511_s4 + $0x70] sm:$0xff]   ;;  %v6351_v28 = vld [vmem:[%s8511_s4 + $0x58] sm:$0xff]  }
 0x11e   : > { %v5677_v33 = vpop.f32.mrf.mxu1  ;;  %v1308_v37 = vadd.f32 %v5137_v32, %v1307_v27  ;;  %v6350_v27 = vld [vmem:[%s8511_s4 + $0x60] sm:$0xff]   ;;  %v6355_v32 = vld [vmem:[%s8477_s12 + $0x78] sm:$0xff]  }
 0x11f   : > { %v5656_v29 = vpop.f32.mrf.mxu0  ;;  %v1504_v35 = vpack.c.bf16 %v1405_v31, %v1402_v30  ;;  %v6353_v30 = vld [vmem:[%s8511_s4 + $0x48] sm:$0xff]   ;;  %v6354_v31 = vld [vmem:[%s8511_s4 + $0x40] sm:$0xff]   ;;  %v6356_v33 = vld [vmem:[%s8477_s12 + $0x70] sm:$0xff]  }
 0x120   : > { %v1503_v39 = vpack.c.bf16 %v1308_v37, %v1308_v37  ;;  %v6352_v29 = vld [vmem:[%s8511_s4 + $0x50] sm:$0xff]  }
 0x121   : > { %v1310_v34 = vpop.f32.mrf.mxu0  ;;  %v1510_v38 = vsel %vm1505_vm1, %v1504_v35, 0  ;;  %v6358_v35 = vld [vmem:[%s8477_s12 + $0x60] sm:$0xff]   ;;  %v6360_v37 = vld [vmem:[%s8477_s12 + $0x50] sm:$0xff]  }
 0x122   : > { %5699 = vmatpush3.bf16.xpose.msra.mxu1 %v1510_v38  ;;  %v6357_v34 = vld [vmem:[%s8477_s12 + $0x68] sm:$0xff]  }
 0x123   : > { %v5657_v36 = vpop.f32.mrf.mxu0  ;;  %5704 = vmatprep.subr.bf16.mxu1 %v6781_v0  ;;  %v6361_v38 = vld [vmem:[%s8477_s12 + $0x48] sm:$0xff]  }
 0x124   : > { %v6359_v36 = vld [vmem:[%s8477_s12 + $0x58] sm:$0xff]  }
 0x129   : > { %5701 = vmatmul.mubr.msk.bf16.vlgmr.msra.gmra.mxu1 %vm1505_vm1, %v1503_v39  ;;  %v6362_v39 = vld [vmem:[%s8477_s12 + $0x40] sm:$0xff]  }
 0x12a   : > { %5706 = vmatprep.mubr.msk.bf16.mxu1 %vm6782_vm0, %v6781_v0 }
 0x13d   : > { %v1496_v59 = vpop.f32.mrf.mxu0 }
 0x13e   : > { %v1497_v5 = vadd.f32 %v5155_v3, %v1496_v59 }
 0x13f   : > { %v5696_v60 = vpop.f32.mrf.mxu0 }
 0x141   : > { %v1499_v6 = vpop.f32.mrf.mxu0 }
 0x142   : > { %v1500_v8 = vadd.f32 %v5155_v3, %v1499_v6 }
 0x143   : > { %v5697_v9 = vpop.f32.mrf.mxu0 }
 0x144   : > { %v1567_v10 = vpack.c.bf16 %v1500_v8, %v1497_v5 }
 0x146   : > { %5705 = vmatpush3.bf16.msra.mxu1 %v1567_v10 }
 0x147   : > { %5710 = vmatprep.subr.bf16.mxu1 %v6781_v0 }
 0x15d   : > { %v1794_v43 = vpop.f32.mrf.mxu0 }
 0x15e   : > { %v1795_v45 = vadd.f32 %v5175_v42, %v1794_v43  ;;  %v6372_v43 = vld [vmem:[%s8511_s4 + $0xb8] sm:$0xff]  }
 0x15f   : > { %v5748_v44 = vpop.f32.mrf.mxu0 }
 0x161   : > { %v1797_v46 = vpop.f32.mrf.mxu0 }
 0x162   : > { %v1798_v47 = vadd.f32 %v5175_v42, %v1797_v46 }
 0x163   : > { %v5749_v48 = vpop.f32.mrf.mxu0 }
 0x164   : > { %v1897_v49 = vpack.c.bf16 %v1798_v47, %v1795_v45  ;;  %v6374_v47 = vld [vmem:[%s8511_s4 + $0xb0] sm:$0xff]  }
 0x1e9   : > { %v1546_v51 = vpop.f32.mrf.mxu1 }
 0x1ea   : > { %v1552_v52 = vmul.f32 0.17677669, %v1546_v51  ;;  %v1902_v51 = vsel %vm1505_vm1, %v1897_v49, 0  ;;  %v6376_v49 = vld [vmem:[%s8511_s4 + $0xa8] sm:$0xff]  }
 0x1eb   : > { %v5702_v53 = vpop.f32.mrf.mxu1  ;;  %5771 = vmatpush3.bf16.xpose.msra.mxu0 %v1902_v51  ;;  %v6378_v51 = vld [vmem:[%s8511_s4 + $0xa0] sm:$0xff]  }
 0x1ec   : > { %v1553_v54 = vsel %vm1218_vm2, -1e+09, %v1552_v52  ;;  %5776 = vmatprep.subr.bf16.mxu0 %v6781_v0 }
 0x1ed   : > { %v1549_v55 = vpop.f32.mrf.mxu1  ;;  %v1555_v56 = vsel %vm1554_vm3, %v1553_v54, -inf }
 0x1ee   : > { %1556 = vmax.xlane.f32.xlu0 %v1555_v56 }
 0x1ef   : > { %v5703_v57 = vpop.f32.mrf.mxu1 }
 0x1f0   : > { %v5166_v57 = vld [vmem:[%s8515_s1 + $0x1] ss:$0 sm:$0xff] }
 0x204   : > { %3436 = vperm.xlu0 %6313, %v3429_v58  }
 0x277   : > { %v1557_v61 = vpop.xlane.xlu0 %1556 }
 0x278   : > { %v1558_v62 = vsub.f32 %v1553_v54, %v1557_v61 }
 0x27a   : > { %v1559_v63 = vmul.f32 1.442695, %v1558_v62 }
 0x27c   : > { %6459 = vpow2.f32 %v1559_v63 }
 0x289   : > { %v6460_v1 = vpop.eup %6459 }
 0x28a   : > { %v1561_v2 = vsel %vm1554_vm3, %v6460_v1, 0.0 }
 0x28b   : > { %1562 = vadd.xlane.f32.xlu1 %v1561_v2 }
 0x314   : > { %v1563_v17 = vpop.xlane.xlu1 %1562 }
 0x315   : > { %6461 = vrcp.f32 %v1563_v17 }
 0x322   : > { %v6462_v18 = vpop.eup %6461 }
 0x323   : > { %v1565_v19 = vmul.f32 %v6462_v18, %v6460_v1  ;;  %v5184_v1 = vld [vmem:[%s8478_s13 + $0x1] ss:$0 sm:$0xff] }
 0x325   : > { %v1566_v24 = vpack.c.bf16 %v1565_v19, %v1565_v19 }
 0x327   : > { %5707 = vmatmul.mubr.msk.bf16.vlgmr.msra.gmra.mxu1 %vm1554_vm3, %v1566_v24 }
 0x328   : > { %5711 = vmatpush3.bf16.msra.mxu1 %v6344_v23  ;;  %5726 = vmatprep.mubr.msk.bf16.mxu1 %vm6782_vm0, %v6781_v0 }
 0x329   : > { %5712 = vmatprep.subr.bf16.mxu1 %v6781_v0 }
 0x32c   : > { %5713 = vmatpush3.bf16.msra.mxu1 %v6346_v25 }
 0x32d   : > { %5714 = vmatprep.subr.bf16.mxu1 %v6781_v0 }
 0x330   : > { %5715 = vmatpush3.bf16.msra.mxu1 %v6348_v26 }
 0x331   : > { %5716 = vmatprep.subr.bf16.mxu1 %v6781_v0 }
 0x334   : > { %5717 = vmatpush3.bf16.msra.mxu1 %v6350_v27 }
 0x335   : > { %5718 = vmatprep.subr.bf16.mxu1 %v6781_v0 }
 0x338   : > { %5719 = vmatpush3.bf16.msra.mxu1 %v6351_v28  ;;  %v6365_v28 = vld [vmem:[%s8475_s10 + $0xb8] sm:$0xff]  }
 0x339   : > { %5720 = vmatprep.subr.bf16.mxu1 %v6781_v0 }
 0x33c   : > { %5721 = vmatpush3.bf16.msra.mxu1 %v6352_v29  ;;  %v6366_v29 = vld [vmem:[%s8475_s10 + $0xb0] sm:$0xff]  }
 0x33d   : > { %5722 = vmatprep.subr.bf16.mxu1 %v6781_v0 }
 0x340   : > { %5723 = vmatpush3.bf16.msra.mxu1 %v6353_v30  ;;  %v6367_v30 = vld [vmem:[%s8475_s10 + $0xa8] sm:$0xff]  }
 0x341   : > { %5724 = vmatprep.subr.bf16.mxu1 %v6781_v0 }
 0x344   : > { %5725 = vmatpush3.bf16.msra.mxu1 %v6354_v31  ;;  %v6369_v31 = vld [vmem:[%s8475_s10 + $0xa0] sm:$0xff]  }
 0x345   : > { %5750 = vmatprep.subr.bf16.mxu1 %v6781_v0 }
 0x347   : > { %5727 = vmatmul.mubr.bf16.vlgmr.msra.gmra.mxu1 %v7057_v21 }
 0x348   : > { %5751 = vmatpush3.bf16.msra.mxu1 %v6355_v32  ;;  %5766 = vmatprep.mubr.msk.bf16.mxu1 %vm6782_vm0, %v6781_v0 }
 0x349   : > { %5752 = vmatprep.subr.bf16.mxu1 %v6781_v0 }
 0x34c   : > { %5753 = vmatpush3.bf16.msra.mxu1 %v6356_v33 }
 0x34d   : > { %5754 = vmatprep.subr.bf16.mxu1 %v6781_v0 }
 0x350   : > { %5755 = vmatpush3.bf16.msra.mxu1 %v6357_v34 }
 0x351   : > { %5756 = vmatprep.subr.bf16.mxu1 %v6781_v0 }
 0x354   : > { %5757 = vmatpush3.bf16.msra.mxu1 %v6358_v35  ;;  %v6368_v35 = vld [vmem:[#allocation2 + $0x18] sm:$0xff]  }
 0x355   : > { %5758 = vmatprep.subr.bf16.mxu1 %v6781_v0 }
 0x358   : > { %5759 = vmatpush3.bf16.msra.mxu1 %v6359_v36 }
 0x359   : > { %5760 = vmatprep.subr.bf16.mxu1 %v6781_v0 }
 0x35c   : > { %5761 = vmatpush3.bf16.msra.mxu1 %v6360_v37  ;;  %v6370_v37 = vld [vmem:[#allocation2 + $0x10] sm:$0xff]  }
 0x35d   : > { %5762 = vmatprep.subr.bf16.mxu1 %v6781_v0 }
 0x360   : > { %5763 = vmatpush3.bf16.msra.mxu1 %v6361_v38  ;;  %v6371_v38 = vld [vmem:[%s8475_s10 + $0x98] sm:$0xff]  }
 0x361   : > { %5764 = vmatprep.subr.bf16.mxu1 %v6781_v0 }
 0x364   : > { %5765 = vmatpush3.bf16.msra.mxu1 %v6362_v39  ;;  %v6373_v39 = vld [vmem:[%s8475_s10 + $0x90] sm:$0xff]  }
 0x365   : > { %5790 = vmatprep.subr.bf16.mxu1 %v6781_v0 }
 0x367   : > { %5767 = vmatmul.mubr.bf16.vlgmr.msra.gmra.mxu1 %v7054_v20 }
 0x368   : > { %5791 = vmatpush3.bf16.msra.mxu1 %v6363_v40  ;;  %5794 = vmatprep.mubr.msk.bf16.mxu1 %vm6782_vm0, %v6781_v0  ;;  %v6375_v40 = vld [vmem:[%s8475_s10 + $0x88] sm:$0xff]  }
 0x369   : > { %5792 = vmatprep.subr.bf16.mxu1 %v6781_v0 }
 0x36c   : > { %5793 = vmatpush3.bf16.msra.mxu1 %v6364_v41  ;;  %v6377_v41 = vld [vmem:[%s8475_s10 + $0x80] sm:$0xff]  }
 0x36d   : > { %5818 = vmatprep.subr.bf16.mxu1 %v6781_v0 }
 0x3e7   : > { %v1605_v52 = vpop.f32.mrf.mxu1 }
 0x3e8   : > { %v1611_v53 = vpack.c.bf16 %v1605_v52, %v1605_v52  ;;  %v6379_v52 = vld [vmem:[%s8511_s4 + $0x98] sm:$0xff]  }
 0x3e9   : > { %v5708_v54 = vpop.f32.mrf.mxu1 }
 0x3ea   : > { %5795 = vmatmul.mubr.msk.bf16.vlgmr.msra.gmra.mxu1 %vm1505_vm1, %v1611_v53  ;;  %v6380_v53 = vld [vmem:[%s8511_s4 + $0x90] sm:$0xff]   ;;  %v6381_v54 = vld [vmem:[%s8511_s4 + $0x88] sm:$0xff]  }
 0x3eb   : > { %v1608_v55 = vpop.f32.mrf.mxu1  ;;  %5834 = vmatprep.mubr.msk.bf16.mxu1 %vm6782_vm0, %v6781_v0  ;;  %5819 = vmatpush3.bf16.msra.mxu1 %v6365_v28 }
 0x3ec   : > { %5820 = vmatprep.subr.bf16.mxu1 %v6781_v0  ;;  %v6382_v55 = vld [vmem:[%s8511_s4 + $0x80] sm:$0xff]  }
 0x3ed   : > { %v5709_v56 = vpop.f32.mrf.mxu1 }
 0x3ee   : > { %v5210_v56 = vld [vmem:[%s8476_s11 + $0x2] ss:$0 sm:$0xff] }
 0x3ef   : > { %5821 = vmatpush3.bf16.msra.mxu1 %v6366_v29 }
 0x3f0   : > { %5822 = vmatprep.subr.bf16.mxu1 %v6781_v0 }
 0x3f3   : > { %5823 = vmatpush3.bf16.msra.mxu1 %v6367_v30 }
 0x3f4   : > { %5824 = vmatprep.subr.bf16.mxu1 %v6781_v0 }
 0x3f7   : > { %5825 = vmatpush3.bf16.msra.mxu1 %v6369_v31 }
 0x3f8   : > { %5826 = vmatprep.subr.bf16.mxu1 %v6781_v0 }
 0x3fb   : > { %5827 = vmatpush3.bf16.msra.mxu1 %v6371_v38 }
 0x3fc   : > { %5828 = vmatprep.subr.bf16.mxu1 %v6781_v0 }
 0x3ff   : > { %5829 = vmatpush3.bf16.msra.mxu1 %v6373_v39  ;;  %v5219_v39 = vld [vmem:[%s8478_s13 + $0x2] ss:$0 sm:$0xff] }
 0x400   : > { %5830 = vmatprep.subr.bf16.mxu1 %v6781_v0 }
 0x403   : > { %5831 = vmatpush3.bf16.msra.mxu1 %v6375_v40 }
 0x404   : > { %5832 = vmatprep.subr.bf16.mxu1 %v6781_v0 }
 0x407   : > { %v1700_v58 = vpop.f32.mrf.mxu1  ;;  %5833 = vmatpush3.bf16.msra.mxu1 %v6377_v41 }
 0x408   : > { %v1701_v59 = vadd.f32 %v5166_v57, %v1700_v58  ;;  %5858 = vmatprep.subr.bf16.mxu1 %v6781_v0 }
 0x409   : > { %v5728_v60 = vpop.f32.mrf.mxu1 }
 0x40a   : > { %v1896_v61 = vpack.c.bf16 %v1701_v59, %v1701_v59  ;;  %5835 = vmatmul.mubr.bf16.vlgmr.msra.gmra.mxu1 %v7054_v20 }
 0x40b   : > { %v1703_v62 = vpop.f32.mrf.mxu1  ;;  %5860 = vmatprep.mubr.msk.bf16.mxu1 %vm6782_vm0, %v6781_v0 }
 0x40c   : > { %5773 = vmatmul.mubr.msk.bf16.vlgmr.msra.gmra.mxu0 %vm1505_vm1, %v1896_v61 }
 0x40d   : > { %v5729_v63 = vpop.f32.mrf.mxu1  ;;  %5778 = vmatprep.mubr.msk.bf16.mxu0 %vm6782_vm0, %v6781_v0 }
 0x427   : > { %v1889_v2 = vpop.f32.mrf.mxu1 }
 0x428   : > { %v1890_v4 = vadd.f32 %v5184_v1, %v1889_v2 }
 0x429   : > { %v5768_v3 = vpop.f32.mrf.mxu1 }
 0x42b   : > { %v1892_v5 = vpop.f32.mrf.mxu1 }
 0x42c   : > { %v1893_v6 = vadd.f32 %v5184_v1, %v1892_v5 }
 0x42d   : > { %v5769_v7 = vpop.f32.mrf.mxu1 }
 0x42e   : > { %v1958_v8 = vpack.c.bf16 %v1893_v6, %v1890_v4  ;;  %v5201_v6 = vld [vmem:[%s8515_s1 + $0x2] ss:$0 sm:$0xff] }
 0x430   : > { %5777 = vmatpush3.bf16.msra.mxu0 %v1958_v8 }
 0x431   : > { %5782 = vmatprep.subr.bf16.mxu0 %v6781_v0 }
 0x4aa   : > { %v7269_v9 = vpop.f32.mrf.mxu1 }
 0x4ac   : > { %v5796_v10 = vpop.f32.mrf.mxu1 }
 0x4ae   : > { %v2110_v11 = vpop.f32.mrf.mxu1 }
 0x4b0   : > { %v5797_v12 = vpop.f32.mrf.mxu1 }
 0x4ca   : > { %v2295_v57 = vpop.f32.mrf.mxu1 }
 0x4cb   : > { %v2296_v59 = vadd.f32 %v5210_v56, %v2295_v57  ;;  %v6399_v57 = vld [vmem:[%s8475_s10 + $0xd0] sm:$0xff]  }
 0x4cc   : > { %v1938_v13 = vpop.f32.mrf.mxu0  ;;  %v5836_v58 = vpop.f32.mrf.mxu1 }
 0x4cd   : > { %v1944_v14 = vmul.f32 0.17677669, %v1938_v13  ;;  %v6401_v58 = vld [vmem:[%s8475_s10 + $0xc8] sm:$0xff]  }
 0x4ce   : > { %v5774_v15 = vpop.f32.mrf.mxu0  ;;  %v2298_v60 = vpop.f32.mrf.mxu1 }
 0x4cf   : > { %v1945_v16 = vsel %vm1218_vm2, -1e+09, %v1944_v14  ;;  %v2299_v61 = vadd.f32 %v5210_v56, %v2298_v60  ;;  %v6383_v14 = vld [vmem:[%s8477_s12 + $0xb8] sm:$0xff]   ;;  %v6384_v15 = vld [vmem:[%s8477_s12 + $0xb0] sm:$0xff]  }
 0x4d0   : > { %v1941_v17 = vpop.f32.mrf.mxu0  ;;  %v1946_v18 = vsel %vm1554_vm3, %v1945_v16, -inf  ;;  %v5837_v62 = vpop.f32.mrf.mxu1  ;;  %v6397_v56 = vld [vmem:[%s8475_s10 + $0xd8] sm:$0xff]  }
 0x4d1   : > { %1947 = vmax.xlane.f32.xlu1 %v1946_v18  ;;  %v2398_v63 = vpack.c.bf16 %v2299_v61, %v2296_v59  ;;  %v6386_v17 = vld [vmem:[%s8477_s12 + $0xa0] sm:$0xff]   ;;  %v6387_v18 = vld [vmem:[%s8477_s12 + $0x98] sm:$0xff]  }
 0x4d2   : > { %v5775_v19 = vpop.f32.mrf.mxu0  ;;  %v6403_v59 = vld [vmem:[%s8475_s10 + $0xc0] sm:$0xff]   ;;  %v6398_v61 = vld [vmem:[%s8511_s4 + $0xf8] sm:$0xff]  }
 0x4d3   : > { %v2403_v1 = vsel %vm1505_vm1, %v2398_v63, 0  ;;  %v6388_v19 = vld [vmem:[%s8477_s12 + $0x90] sm:$0xff]  }
 0x4d4   : > { %5859 = vmatpush3.bf16.xpose.msra.mxu1 %v2403_v1 }
 0x4d5   : > { %5864 = vmatprep.subr.bf16.mxu1 %v6781_v0 }
 0x55a   : > { %v1948_v23 = vpop.xlane.xlu1 %1947 }
 0x55b   : > { %v1949_v24 = vsub.f32 %v1945_v16, %v1948_v23  ;;  %v6385_v16 = vld [vmem:[%s8477_s12 + $0xa8] sm:$0xff]  }
 0x55c   : > { %v6389_v23 = vld [vmem:[%s8477_s12 + $0x88] sm:$0xff]  }
 0x55d   : > { %v1950_v25 = vmul.f32 1.442695, %v1949_v24  ;;  %v6390_v24 = vld [vmem:[%s8477_s12 + $0x80] sm:$0xff]  }
 0x55f   : > { %6463 = vpow2.f32 %v1950_v25 }
 0x56c   : > { %v6464_v26 = vpop.eup %6463 }
 0x56d   : > { %v1952_v27 = vsel %vm1554_vm3, %v6464_v26, 0.0 }
 0x56e   : > { %1953 = vadd.xlane.f32.xlu1 %v1952_v27 }
 0x5f7   : > { %v1954_v32 = vpop.xlane.xlu1 %1953 }
 0x5f8   : > { %6465 = vrcp.f32 %v1954_v32 }
 0x605   : > { %v6466_v33 = vpop.eup %6465 }
 0x606   : > { %v1956_v34 = vmul.f32 %v6466_v33, %v6464_v26 }
 0x608   : > { %v1957_v36 = vpack.c.bf16 %v1956_v34, %v1956_v34 }
 0x60a   : > { %5779 = vmatmul.mubr.msk.bf16.vlgmr.msra.gmra.mxu0 %vm1554_vm3, %v1957_v36 }
 0x60b   : > { %5783 = vmatpush3.bf16.msra.mxu0 %v6368_v35  ;;  %5786 = vmatprep.mubr.msk.bf16.mxu0 %vm6782_vm0, %v6781_v0 }
 0x60c   : > { %5784 = vmatprep.subr.bf16.mxu0 %v6781_v0 }
 0x60f   : > { %5785 = vmatpush3.bf16.msra.mxu0 %v6370_v37 }
 0x610   : > { %5798 = vmatprep.subr.bf16.mxu0 %v6781_v0 }
 0x6ca   : > { %v1996_v42 = vpop.f32.mrf.mxu0 }
 0x6cb   : > { %v2002_v44 = vpack.c.bf16 %v1996_v42, %v1996_v42 }
 0x6cc   : > { %v5780_v45 = vpop.f32.mrf.mxu0 }
 0x6cd   : > { %5787 = vmatmul.mubr.msk.bf16.vlgmr.msra.gmra.mxu0 %vm1505_vm1, %v2002_v44  ;;  %v6391_v45 = vld [vmem:[%s8475_s10 + $0xf8] sm:$0xff]  }
 0x6ce   : > { %5799 = vmatpush3.bf16.msra.mxu0 %v6372_v43  ;;  %v1999_v46 = vpop.f32.mrf.mxu0  ;;  %5814 = vmatprep.mubr.msk.bf16.mxu0 %vm6782_vm0, %v6781_v0 }
 0x6cf   : > { %5800 = vmatprep.subr.bf16.mxu0 %v6781_v0  ;;  %v6392_v46 = vld [vmem:[%s8475_s10 + $0xf0] sm:$0xff]  }
 0x6d0   : > { %v5781_v48 = vpop.f32.mrf.mxu0 }
 0x6d1   : > { %v6395_v48 = vld [vmem:[%s8475_s10 + $0xe0] sm:$0xff]  }
 0x6d2   : > { %5801 = vmatpush3.bf16.msra.mxu0 %v6374_v47  ;;  %v6393_v47 = vld [vmem:[%s8475_s10 + $0xe8] sm:$0xff]  }
 0x6d3   : > { %5802 = vmatprep.subr.bf16.mxu0 %v6781_v0 }
 0x6d6   : > { %5803 = vmatpush3.bf16.msra.mxu0 %v6376_v49 }
 0x6d7   : > { %5804 = vmatprep.subr.bf16.mxu0 %v6781_v0 }
 0x6da   : > { %5805 = vmatpush3.bf16.msra.mxu0 %v6378_v51 }
 0x6db   : > { %5806 = vmatprep.subr.bf16.mxu0 %v6781_v0 }
 0x6de   : > { %5807 = vmatpush3.bf16.msra.mxu0 %v6379_v52 }
 0x6df   : > { %5808 = vmatprep.subr.bf16.mxu0 %v6781_v0 }
 0x6e2   : > { %5809 = vmatpush3.bf16.msra.mxu0 %v6380_v53  ;;  %v6394_v53 = vld [vmem:[#allocation2 + $0x28] sm:$0xff]  }
 0x6e3   : > { %5810 = vmatprep.subr.bf16.mxu0 %v6781_v0 }
 0x6e6   : > { %5811 = vmatpush3.bf16.msra.mxu0 %v6381_v54 }
 0x6e7   : > { %5812 = vmatprep.subr.bf16.mxu0 %v6781_v0 }
 0x6ea   : > { %5813 = vmatpush3.bf16.msra.mxu0 %v6382_v55  ;;  %v6396_v55 = vld [vmem:[#allocation2 + $0x20] sm:$0xff]  }
 0x6eb   : > { %5838 = vmatprep.subr.bf16.mxu0 %v6781_v0 }
 0x6ed   : > { %5815 = vmatmul.mubr.bf16.vlgmr.msra.gmra.mxu0 %v7057_v21 }
 0x6ee   : > { %5854 = vmatprep.mubr.msk.bf16.mxu0 %vm6782_vm0, %v6781_v0  ;;  %5839 = vmatpush3.bf16.msra.mxu0 %v6383_v14 }
 0x6ef   : > { %5840 = vmatprep.subr.bf16.mxu0 %v6781_v0 }
 0x6f2   : > { %5841 = vmatpush3.bf16.msra.mxu0 %v6384_v15 }
 0x6f3   : > { %5842 = vmatprep.subr.bf16.mxu0 %v6781_v0 }
 0x6f6   : > { %5843 = vmatpush3.bf16.msra.mxu0 %v6385_v16 }
 0x6f7   : > { %5844 = vmatprep.subr.bf16.mxu0 %v6781_v0 }
 0x6fa   : > { %5845 = vmatpush3.bf16.msra.mxu0 %v6386_v17 }
 0x6fb   : > { %5846 = vmatprep.subr.bf16.mxu0 %v6781_v0 }
 0x6fe   : > { %5847 = vmatpush3.bf16.msra.mxu0 %v6387_v18 }
 0x6ff   : > { %5848 = vmatprep.subr.bf16.mxu0 %v6781_v0 }
 0x702   : > { %5849 = vmatpush3.bf16.msra.mxu0 %v6388_v19 }
 0x703   : > { %5850 = vmatprep.subr.bf16.mxu0 %v6781_v0 }
 0x706   : > { %5851 = vmatpush3.bf16.msra.mxu0 %v6389_v23 }
 0x707   : > { %5852 = vmatprep.subr.bf16.mxu0 %v6781_v0 }
 0x70a   : > { %5853 = vmatpush3.bf16.msra.mxu0 %v6390_v24 }
 0x70b   : > { %5898 = vmatprep.subr.bf16.mxu0 %v6781_v0 }
 0x70d   : > { %5855 = vmatmul.mubr.bf16.vlgmr.msra.gmra.mxu0 %v7054_v20 }
 0x70e   : > { %5914 = vmatprep.mubr.msk.bf16.mxu0 %vm6782_vm0, %v6781_v0  ;;  %5899 = vmatpush3.bf16.msra.mxu0 %v6391_v45 }
 0x70f   : > { %5900 = vmatprep.subr.bf16.mxu0 %v6781_v0 }
 0x712   : > { %5901 = vmatpush3.bf16.msra.mxu0 %v6392_v46 }
 0x713   : > { %5902 = vmatprep.subr.bf16.mxu0 %v6781_v0 }
 0x716   : > { %5903 = vmatpush3.bf16.msra.mxu0 %v6393_v47 }
 0x717   : > { %5904 = vmatprep.subr.bf16.mxu0 %v6781_v0 }
 0x71a   : > { %5905 = vmatpush3.bf16.msra.mxu0 %v6395_v48 }
 0x71b   : > { %5906 = vmatprep.subr.bf16.mxu0 %v6781_v0 }
 0x71e   : > { %5907 = vmatpush3.bf16.msra.mxu0 %v6397_v56 }
 0x71f   : > { %5908 = vmatprep.subr.bf16.mxu0 %v6781_v0 }
 0x722   : > { %5909 = vmatpush3.bf16.msra.mxu0 %v6399_v57 }
 0x723   : > { %5910 = vmatprep.subr.bf16.mxu0 %v6781_v0 }
 0x726   : > { %5911 = vmatpush3.bf16.msra.mxu0 %v6401_v58 }
 0x727   : > { %5912 = vmatprep.subr.bf16.mxu0 %v6781_v0 }
 0x72a   : > { %5913 = vmatpush3.bf16.msra.mxu0 %v6403_v59 }
 0x72b   : > { %5938 = vmatprep.subr.bf16.mxu0 %v6781_v0 }
 0x72d   : > { %5915 = vmatmul.mubr.bf16.vlgmr.msra.gmra.mxu0 %v7054_v20 }
 0x72e   : > { %5940 = vmatprep.mubr.msk.bf16.mxu0 %vm6782_vm0, %v6781_v0 }
 0x78d   : > { %v7358_v2 = vpop.f32.mrf.mxu0 }
 0x78f   : > { %v5788_v3 = vpop.f32.mrf.mxu0 }
 0x790   : > { %v6400_v3 = vld [vmem:[%s8511_s4 + $0xf0] sm:$0xff]  }
 0x791   : > { %v2055_v4 = vpop.f32.mrf.mxu0 }
 0x793   : > { %v5789_v5 = vpop.f32.mrf.mxu0 }
 0x794   : > { %v6402_v5 = vld [vmem:[%s8511_s4 + $0xe8] sm:$0xff]  }
 0x7ad   : > { %v2201_v7 = vpop.f32.mrf.mxu0 }
 0x7ae   : > { %v2202_v8 = vadd.f32 %v5201_v6, %v2201_v7  ;;  %v6404_v6 = vld [vmem:[%s8511_s4 + $0xe0] sm:$0xff]   ;;  %v6405_v7 = vld [vmem:[%s8511_s4 + $0xd8] sm:$0xff]  }
 0x7af   : > { %v5816_v10 = vpop.f32.mrf.mxu0 }
 0x7b0   : > { %v2397_v11 = vpack.c.bf16 %v2202_v8, %v2202_v8  ;;  %v6406_v8 = vld [vmem:[%s8511_s4 + $0xd0] sm:$0xff]   ;;  %v6407_v10 = vld [vmem:[%s8511_s4 + $0xc8] sm:$0xff]  }
 0x7b1   : > { %v2204_v12 = vpop.f32.mrf.mxu0 }
 0x7b2   : > { %5861 = vmatmul.mubr.msk.bf16.vlgmr.msra.gmra.mxu1 %vm1505_vm1, %v2397_v11  ;;  %v6408_v11 = vld [vmem:[%s8511_s4 + $0xc0] sm:$0xff]  }
 0x7b3   : > { %v5817_v13 = vpop.f32.mrf.mxu0  ;;  %5866 = vmatprep.mubr.msk.bf16.mxu1 %vm6782_vm0, %v6781_v0  ;;  %v5242_v12 = vld [vmem:[%s8476_s11 + $0x3] ss:$0 sm:$0xff] }
 0x7cd   : > { %v2390_v32 = vpop.f32.mrf.mxu0 }
 0x7ce   : > { %v2391_v40 = vadd.f32 %v5219_v39, %v2390_v32 }
 0x7cf   : > { %v5856_v33 = vpop.f32.mrf.mxu0 }
 0x7d1   : > { %v2393_v41 = vpop.f32.mrf.mxu0 }
 0x7d2   : > { %v2394_v42 = vadd.f32 %v5219_v39, %v2393_v41  ;;  %v6414_v39 = vld [vmem:[%s8477_s12 + $0xd0] sm:$0xff]   ;;  %v6416_v41 = vld [vmem:[%s8477_s12 + $0xc0] sm:$0xff]  }
 0x7d3   : > { %v5857_v43 = vpop.f32.mrf.mxu0 }
 0x7d4   : > { %v2459_v44 = vpack.c.bf16 %v2394_v42, %v2391_v40  ;;  %v6415_v40 = vld [vmem:[%s8477_s12 + $0xc8] sm:$0xff]  }
 0x7d6   : > { %5865 = vmatpush3.bf16.msra.mxu1 %v2459_v44 }
 0x7d7   : > { %5870 = vmatprep.subr.bf16.mxu1 %v6781_v0 }
 0x7ed   : > { %v2742_v13 = vpop.f32.mrf.mxu0 }
 0x7ee   : > { %v2743_v15 = vadd.f32 %v5242_v12, %v2742_v13 }
 0x7ef   : > { %v5916_v14 = vpop.f32.mrf.mxu0 }
 0x7f1   : > { %v2745_v16 = vpop.f32.mrf.mxu0 }
 0x7f2   : > { %v2746_v17 = vadd.f32 %v5242_v12, %v2745_v16 }
 0x7f3   : > { %v5917_v18 = vpop.f32.mrf.mxu0 }
 0x7f4   : > { %v2845_v19 = vpack.c.bf16 %v2746_v17, %v2743_v15  ;;  %v6555_v17 = vld [vmem:[%s7043_s16] sm:$0xff] }
 0x7f6   : > { %v2850_v23 = vsel %vm1505_vm1, %v2845_v19, 0 }
 0x7f7   : > { %5939 = vmatpush3.bf16.xpose.msra.mxu0 %v2850_v23  ;;  %v6419_v23 = vld [vmem:[%s8483_s18 + $0x70] ss:$8 sps:$4 sm:$0xff]  }
 0x7f8   : > { %5944 = vmatprep.subr.bf16.mxu0 %v6781_v0 }
 0x872   : > { %v2439_v25 = vpop.f32.mrf.mxu1 }
 0x873   : > { %v2445_v26 = vmul.f32 0.17677669, %v2439_v25 }
 0x874   : > { %v5862_v27 = vpop.f32.mrf.mxu1 }
 0x875   : > { %v2446_v28 = vsel %vm1218_vm2, -1e+09, %v2445_v26 }
 0x876   : > { %v2442_v29 = vpop.f32.mrf.mxu1  ;;  %v2447_v30 = vsel %vm1554_vm3, %v2446_v28, -inf }
 0x877   : > { %2448 = vmax.xlane.f32.xlu1 %v2447_v30  ;;  %v5233_v29 = vld [vmem:[%s8515_s1 + $0x3] ss:$0 sm:$0xff] }
 0x878   : > { %v5863_v31 = vpop.f32.mrf.mxu1 }
 0x900   : > { %v2449_v34 = vpop.xlane.xlu1 %2448 }
 0x901   : > { %v2450_v35 = vsub.f32 %v2446_v28, %v2449_v34 }
 0x903   : > { %v2451_v36 = vmul.f32 1.442695, %v2450_v35 }
 0x905   : > { %6467 = vpow2.f32 %v2451_v36  ;;  %v6411_v36 = vld [vmem:[%s8477_s12 + $0xe8] sm:$0xff]  }
 0x912   : > { %v6468_v37 = vpop.eup %6467 }
 0x913   : > { %v2453_v38 = vsel %vm1554_vm3, %v6468_v37, 0.0 }
 0x914   : > { %2454 = vadd.xlane.f32.xlu1 %v2453_v38  ;;  %v6413_v38 = vld [vmem:[%s8477_s12 + $0xd8] sm:$0xff]  }
 0x99d   : > { %v2455_v49 = vpop.xlane.xlu1 %2454 }
 0x99e   : > { %6469 = vrcp.f32 %v2455_v49 }
 0x9ab   : > { %v6470_v51 = vpop.eup %6469 }
 0x9ac   : > { %v2457_v52 = vmul.f32 %v6470_v51, %v6468_v37  ;;  %v6412_v37 = vld [vmem:[%s8477_s12 + $0xe0] sm:$0xff]  }
 0x9ae   : > { %v2458_v54 = vpack.c.bf16 %v2457_v52, %v2457_v52 }
 0x9b0   : > { %5867 = vmatmul.mubr.msk.bf16.vlgmr.msra.gmra.mxu1 %vm1554_vm3, %v2458_v54 }
 0x9b1   : > { %5871 = vmatpush3.bf16.msra.mxu1 %v6394_v53  ;;  %5874 = vmatprep.mubr.msk.bf16.mxu1 %vm6782_vm0, %v6781_v0 }
 0x9b2   : > { %5872 = vmatprep.subr.bf16.mxu1 %v6781_v0 }
 0x9b5   : > { %5873 = vmatpush3.bf16.msra.mxu1 %v6396_v55 }
 0x9b6   : > { %5878 = vmatprep.subr.bf16.mxu1 %v6781_v0 }
 0xa70   : > { %v2497_v60 = vpop.f32.mrf.mxu1 }
 0xa71   : > { %v2503_v62 = vpack.c.bf16 %v2497_v60, %v2497_v60 }
 0xa72   : > { %v5868_v63 = vpop.f32.mrf.mxu1 }
 0xa73   : > { %5875 = vmatmul.mubr.msk.bf16.vlgmr.msra.gmra.mxu1 %vm1505_vm1, %v2503_v62 }
 0xa74   : > { %5879 = vmatpush3.bf16.msra.mxu1 %v6398_v61  ;;  %v2500_v1 = vpop.f32.mrf.mxu1  ;;  %5894 = vmatprep.mubr.msk.bf16.mxu1 %vm6782_vm0, %v6781_v0 }
 0xa75   : > { %5880 = vmatprep.subr.bf16.mxu1 %v6781_v0  ;;  %v6417_v1 = vld [vmem:[#allocation2 + $0x38] sm:$0xff]  }
 0xa76   : > { %v5869_v4 = vpop.f32.mrf.mxu1 }
 0xa77   : > { %v6418_v4 = vld [vmem:[#allocation2 + $0x30] sm:$0xff]  }
 0xa78   : > { %5881 = vmatpush3.bf16.msra.mxu1 %v6400_v3 }
 0xa79   : > { %5882 = vmatprep.subr.bf16.mxu1 %v6781_v0 }
 0xa7c   : > { %5883 = vmatpush3.bf16.msra.mxu1 %v6402_v5 }
 0xa7d   : > { %5884 = vmatprep.subr.bf16.mxu1 %v6781_v0 }
 0xa80   : > { %5885 = vmatpush3.bf16.msra.mxu1 %v6404_v6 }
 0xa81   : > { %5886 = vmatprep.subr.bf16.mxu1 %v6781_v0 }
 0xa84   : > { %5887 = vmatpush3.bf16.msra.mxu1 %v6405_v7 }
 0xa85   : > { %5888 = vmatprep.subr.bf16.mxu1 %v6781_v0 }
 0xa88   : > { %5889 = vmatpush3.bf16.msra.mxu1 %v6406_v8 }
 0xa89   : > { %5890 = vmatprep.subr.bf16.mxu1 %v6781_v0 }
 0xa8c   : > { %5891 = vmatpush3.bf16.msra.mxu1 %v6407_v10 }
 0xa8d   : > { %5892 = vmatprep.subr.bf16.mxu1 %v6781_v0 }
 0xa90   : > { %5893 = vmatpush3.bf16.msra.mxu1 %v6408_v11  ;;  %v5265_v11 = vld [vmem:[%s8480_s15] ss:$0 sm:$0xff] }
 0xa91   : > { %5918 = vmatprep.subr.bf16.mxu1 %v6781_v0 }
 0xa93   : > { %5895 = vmatmul.mubr.bf16.vlgmr.msra.gmra.mxu1 %v7057_v21  ;;  %v2108_v21 = vadd.f32 %v7269_v9, %v7358_v2  ;;  %v6409_v9 = vld [vmem:[%s8477_s12 + $0xf8] sm:$0xff]   ;;  %v6410_v2 = vld [vmem:[%s8477_s12 + $0xf0] sm:$0xff]  }
 0xa94   : > { %5934 = vmatprep.mubr.msk.bf16.mxu1 %vm6782_vm0, %v6781_v0  ;;  %5919 = vmatpush3.bf16.msra.mxu1 %v6409_v9  ;;  %v6436_v9 = vld [vmem:[%s8483_s18 + $0x24] ss:$8 sps:$4 sm:$0xff]  }
 0xa95   : > { %5920 = vmatprep.subr.bf16.mxu1 %v6781_v0 }
 0xa98   : > { %5921 = vmatpush3.bf16.msra.mxu1 %v6410_v2  ;;  %v6434_v2 = vld [vmem:[%s8483_s18 + $0x20] ss:$8 sps:$4 sm:$0xff]  }
 0xa99   : > { %5922 = vmatprep.subr.bf16.mxu1 %v6781_v0 }
 0xa9c   : > { %5923 = vmatpush3.bf16.msra.mxu1 %v6411_v36  ;;  %v6439_v36 = vld [vmem:[%s8483_s18 + $0x14] ss:$8 sps:$4 sm:$0xff]  }
 0xa9d   : > { %5924 = vmatprep.subr.bf16.mxu1 %v6781_v0 }
 0xaa0   : > { %5925 = vmatpush3.bf16.msra.mxu1 %v6412_v37  ;;  %v6437_v37 = vld [vmem:[%s8483_s18 + $0x10] ss:$8 sps:$4 sm:$0xff]  }
 0xaa1   : > { %5926 = vmatprep.subr.bf16.mxu1 %v6781_v0 }
 0xaa4   : > { %5927 = vmatpush3.bf16.msra.mxu1 %v6413_v38  ;;  %v6442_v38 = vld [vmem:[%s8483_s18 + $0x4] ss:$8 sps:$4 sm:$0xff]  }
 0xaa5   : > { %5928 = vmatprep.subr.bf16.mxu1 %v6781_v0 }
 0xaa8   : > { %5929 = vmatpush3.bf16.msra.mxu1 %v6414_v39  ;;  %v6440_v39 = vld [vmem:[%s8483_s18] ss:$8 sps:$4 sm:$0xff]  }
 0xaa9   : > { %5930 = vmatprep.subr.bf16.mxu1 %v6781_v0 }
 0xaac   : > { %5931 = vmatpush3.bf16.msra.mxu1 %v6415_v40 }
 0xaad   : > { %5932 = vmatprep.subr.bf16.mxu1 %v6781_v0 }
 0xab0   : > { %5933 = vmatpush3.bf16.msra.mxu1 %v6416_v41 }
 0xab3   : > { %5935 = vmatmul.mubr.bf16.vlgmr.msra.gmra.mxu1 %v7054_v20 }
 0xb33   : > { %v2553_v24 = vpop.f32.mrf.mxu1 }
 0xb34   : > { %v7494_v25 = vadd.f32 %v2553_v24, %v2108_v21  ;;  %v6421_v21 = vld [vmem:[%s8483_s18 + $0x74] ss:$8 sps:$4 sm:$0xff]   ;;  %v6424_v24 = vld [vmem:[%s8483_s18 + $0x64] ss:$8 sps:$4 sm:$0xff]  }
 0xb35   : > { %v5876_v26 = vpop.f32.mrf.mxu1 }
 0xb37   : > { %v2556_v27 = vpop.f32.mrf.mxu1 }
 0xb39   : > { %v5877_v28 = vpop.f32.mrf.mxu1 }
 0xb53   : > { %v2648_v30 = vpop.f32.mrf.mxu1 }
 0xb54   : > { %v2649_v31 = vadd.f32 %v5233_v29, %v2648_v30  ;;  %v6427_v30 = vld [vmem:[%s8483_s18 + $0x54] ss:$8 sps:$4 sm:$0xff]  }
 0xb55   : > { %v5896_v32 = vpop.f32.mrf.mxu1 }
 0xb56   : > { %v2844_v33 = vpack.c.bf16 %v2649_v31, %v2649_v31  ;;  %v6425_v31 = vld [vmem:[%s8483_s18 + $0x50] ss:$8 sps:$4 sm:$0xff]   ;;  %v6428_v32 = vld [vmem:[%s8483_s18 + $0x40] ss:$8 sps:$4 sm:$0xff]  }
 0xb57   : > { %v2651_v34 = vpop.f32.mrf.mxu1 }
 0xb58   : > { %5941 = vmatmul.mubr.msk.bf16.vlgmr.msra.gmra.mxu0 %vm1505_vm1, %v2844_v33  ;;  %v6430_v33 = vld [vmem:[%s8483_s18 + $0x44] ss:$8 sps:$4 sm:$0xff]   ;;  %v6433_v34 = vld [vmem:[%s8483_s18 + $0x34] ss:$8 sps:$4 sm:$0xff]  }
 0xb59   : > { %v5897_v35 = vpop.f32.mrf.mxu1  ;;  %5946 = vmatprep.mubr.msk.bf16.mxu0 %vm6782_vm0, %v6781_v0 }
 0xb5a   : > { %v6431_v35 = vld [vmem:[%s8483_s18 + $0x30] ss:$8 sps:$4 sm:$0xff]  }
 0xb73   : > { %v2837_v49 = vpop.f32.mrf.mxu1 }
 0xb74   : > { %v2838_v56 = vadd.f32 %v5251_v50, %v2837_v49 }
 0xb75   : > { %v5936_v51 = vpop.f32.mrf.mxu1 }
 0xb76   : > { %v6556_v51 = vld [vmem:[%s8511_s4 + $0x38] sm:$0xff]  }
 0xb77   : > { %v2840_v57 = vpop.f32.mrf.mxu1 }
 0xb78   : > { %v2841_v58 = vadd.f32 %v5251_v50, %v2840_v57  ;;  %v6562_v50 = vld [vmem:[%s8511_s4 + $0x8] sm:$0xff]   ;;  %v6443_v57 = vld [vmem:[%s8485_s20 + $0x78] sm:$0xff]  }
 0xb79   : > { %v5937_v59 = vpop.f32.mrf.mxu1  ;;  %5458 = vmatprep.subr.bf16.mxu1 %v6443_v57 }
 0xb7a   : > { %v2906_v60 = vpack.c.bf16 %v2841_v58, %v2838_v56  ;;  %v6563_v56 = vld [vmem:[%s8511_s4] sm:$0xff]   ;;  %v6444_v58 = vld [vmem:[%s8485_s20 + $0x38] sm:$0xff]   ;;  %v6445_v59 = vld [vmem:[%s8485_s20 + $0x70] sm:$0xff]  }
 0xb7b   : > { %5459 = vmatpush3.bf16.msra.mxu1 %v6444_v58 }
 0xb7c   : > { %5945 = vmatpush3.bf16.msra.mxu0 %v2906_v60  ;;  %v6446_v60 = vld [vmem:[%s8485_s20 + $0x30] sm:$0xff]   ;;  %5460 = vmatprep.subr.bf16.mxu1 %v6445_v59 }
 0xb7d   : > { %5950 = vmatprep.subr.bf16.mxu0 %v6781_v0 }
 0xb7f   : > { %5461 = vmatpush3.bf16.msra.mxu1 %v6446_v60 }
 0xc18   : > { %v2886_v42 = vpop.f32.mrf.mxu0 }
 0xc19   : > { %v2892_v43 = vmul.f32 0.17677669, %v2886_v42 }
 0xc1a   : > { %v5942_v44 = vpop.f32.mrf.mxu0 }
 0xc1b   : > { %v2893_v45 = vsel %vm1218_vm2, -1e+09, %v2892_v43  ;;  %v5266_v44 = vld [vmem:[#allocation4] ss:$0 sm:$0xff] }
 0xc1c   : > { %v2889_v46 = vpop.f32.mrf.mxu0  ;;  %v2894_v47 = vsel %vm1554_vm3, %v2893_v45, -inf }
 0xc1d   : > { %2895 = vmax.xlane.f32.xlu1 %v2894_v47  ;;  %v5267_v46 = vld [vmem:[%s8482_s17] ss:$0 sm:$0xff] }
 0xc1e   : > { %v5943_v48 = vpop.f32.mrf.mxu0 }
 0xca6   : > { %v2896_v52 = vpop.xlane.xlu1 %2895 }
 0xca7   : > { %v2897_v53 = vsub.f32 %v2893_v45, %v2896_v52  ;;  %v6557_v52 = vld [vmem:[%s8511_s4 + $0x30] sm:$0xff]  }
 0xca9   : > { %v2898_v54 = vmul.f32 1.442695, %v2897_v53  ;;  %v6558_v53 = vld [vmem:[%s8511_s4 + $0x28] sm:$0xff]  }
 0xcab   : > { %6471 = vpow2.f32 %v2898_v54  ;;  %v6559_v54 = vld [vmem:[%s8511_s4 + $0x20] sm:$0xff]  }
 0xcb8   : > { %v6472_v55 = vpop.eup %6471 }
 0xcb9   : > { %v2900_v20 = vsel %vm1554_vm3, %v6472_v55, 0.0 }
 0xcba   : > { %2901 = vadd.xlane.f32.xlu1 %v2900_v20  ;;  %v6561_v20 = vld [vmem:[%s8511_s4 + $0x10] sm:$0xff]  }
 0xd43   : > { %v2902_v61 = vpop.xlane.xlu1 %2901 }
 0xd44   : > { %6473 = vrcp.f32 %v2902_v61  ;;  %v6447_v61 = vld [vmem:[%s8485_s20 + $0x68] sm:$0xff]  }
 0xd45   : > { %5462 = vmatprep.subr.bf16.mxu1 %v6447_v61 }
 0xd51   : > { %v6474_v62 = vpop.eup %6473 }
 0xd52   : > { %v2904_v63 = vmul.f32 %v6474_v62, %v6472_v55  ;;  %v6560_v55 = vld [vmem:[%s8511_s4 + $0x18] sm:$0xff]   ;;  %v6448_v62 = vld [vmem:[%s8485_s20 + $0x28] sm:$0xff]  }
 0xd53   : > { %5463 = vmatpush3.bf16.msra.mxu1 %v6448_v62 }
 0xd54   : > { %v2905_v3 = vpack.c.bf16 %v2904_v63, %v2904_v63  ;;  %v6449_v63 = vld [vmem:[%s8485_s20 + $0x60] sm:$0xff]  }
 0xd55   : > { %5464 = vmatprep.subr.bf16.mxu1 %v6449_v63 }
 0xd56   : > { %5947 = vmatmul.mubr.msk.bf16.vlgmr.msra.gmra.mxu0 %vm1554_vm3, %v2905_v3  ;;  %v6451_v3 = vld [vmem:[%s8485_s20 + $0x58] sm:$0xff]  }
 0xd57   : > { %5951 = vmatpush3.bf16.msra.mxu0 %v6417_v1  ;;  %5954 = vmatprep.mubr.msk.bf16.mxu0 %vm6782_vm0, %v6781_v0  ;;  %v6450_v1 = vld [vmem:[%s8485_s20 + $0x20] sm:$0xff]  }
 0xd58   : > { %5952 = vmatprep.subr.bf16.mxu0 %v6781_v0  ;;  %5465 = vmatpush3.bf16.msra.mxu1 %v6450_v1 }
 0xd59   : > { %5466 = vmatprep.subr.bf16.mxu1 %v6451_v3 }
 0xd5b   : > { %5953 = vmatpush3.bf16.msra.mxu0 %v6418_v4  ;;  %v6452_v4 = vld [vmem:[%s8485_s20 + $0x18] sm:$0xff]  }
 0xd5c   : > { %3133 = vmatprep.subr.bf16.mxu0 %v6421_v21  ;;  %5467 = vmatpush3.bf16.msra.mxu1 %v6452_v4  ;;  %v3043_v21 = vlaneseq }
 0xe16   : > { %v2944_v5 = vpop.f32.mrf.mxu0 }
 0xe17   : > { %v2950_v6 = vpack.c.bf16 %v2944_v5, %v2944_v5  ;;  %v6453_v5 = vld [vmem:[%s8485_s20 + $0x50] sm:$0xff]  }
 0xe18   : > { %v5948_v7 = vpop.f32.mrf.mxu0  ;;  %5468 = vmatprep.subr.bf16.mxu1 %v6453_v5 }
 0xe19   : > { %5955 = vmatmul.mubr.msk.bf16.vlgmr.msra.gmra.mxu0 %vm1505_vm1, %v2950_v6  ;;  %v6454_v6 = vld [vmem:[%s8485_s20 + $0x10] sm:$0xff]   ;;  %v6455_v7 = vld [vmem:[%s8485_s20 + $0x48] sm:$0xff]  }
 0xe1a   : > { %v2947_v8 = vpop.f32.mrf.mxu0  ;;  %3165 = vmatprep.mubr.bf16.mxu0 %v6783_v22  ;;  %3134 = vmatpush1.bf16.msra.mxu0 %v6419_v23  ;;  %v6569_v23 = vld [vmem:[%s8477_s12 + $0x10] sm:$0xff]  }
 0xe1b   : > { %3135 = vmatprep.subr.bf16.mxu0 %v6424_v24  ;;  %5469 = vmatpush3.bf16.msra.mxu1 %v6454_v6  ;;  %v6456_v8 = vld [vmem:[%s8485_s20 + $0x8] sm:$0xff]  }
 0xe1c   : > { %v5949_v10 = vpop.f32.mrf.mxu0  ;;  %5470 = vmatprep.subr.bf16.mxu1 %v6455_v7  ;;  %v6570_v24 = vld [vmem:[%s8477_s12 + $0x8] sm:$0xff]  }
 0xe1d   : > { %v6457_v10 = vld [vmem:[%s8485_s20 + $0x40] sm:$0xff]  }
 0xe1f   : > { %5471 = vmatpush3.bf16.msra.mxu1 %v6456_v8 }
 0xe20   : > { %5472 = vmatprep.subr.bf16.mxu1 %v6457_v10 }
 0xed9   : > { %v3000_v12 = vpop.f32.mrf.mxu0 }
 0xeda   : > { %v3006_v13 = vadd.f32 %v3000_v12, %v7494_v25  ;;  %v6422_v25 = vld [vmem:[%s8483_s18 + $0x60] ss:$8 sps:$4 sm:$0xff]  }
 0xedb   : > { %v5956_v14 = vpop.f32.mrf.mxu0  ;;  %3136 = vmatpush1.bf16.msra.mxu0 %v6422_v25  ;;  %v3426_v12 = vld [vmem:[%s7696_s9] sm:$0xff] }
 0xedc   : > { %v3013_v15 = vadd.f32 %v5265_v11, %v3006_v13  ;;  %3137 = vmatprep.subr.bf16.mxu0 %v6427_v30  ;;  %v6458_v11 = vld [vmem:[%s8485_s20] sm:$0xff]   ;;  %v3427_v13 = vld [vmem:[%s7696_s9 + $0x8] sm:$0xff] }
 0xedd   : > { %v3003_v16 = vpop.f32.mrf.mxu0  ;;  %5473 = vmatpush3.bf16.msra.mxu1 %v6458_v11  ;;  %v7700_v14 = vpack.c.bf16 %v3427_v13, %v3426_v12  ;;  %v3428_v25 = vld [vmem:[%s893_s8] sm:$0xff] }
 0xede   : > { %v3014_v18 = vadd.f32 %v6555_v17, %v3013_v15  ;;  %5978 = vmatprep.subr.bf16.mxu1 %v6781_v0  ;;  %v6564_v15 = vld [vmem:[%s8477_s12 + $0x38] sm:$0xff]   ;;  %v6565_v16 = vld [vmem:[%s8477_s12 + $0x30] sm:$0xff]   ;;  %v6566_v17 = vld [vmem:[%s8477_s12 + $0x28] sm:$0xff]  }
 0xedf   : > { %v5957_v19 = vpop.f32.mrf.mxu0  ;;  %3138 = vmatpush1.bf16.msra.mxu0 %v6425_v31  ;;  %v1163_v30 = vld [vmem:[%s8484_s19] sm:$0x3]  ;;  %v6572_v31 = vld [vmem:[%s8475_s10 + $0x78] sm:$0xff]  }
 0xee0   : > { %3015 = vadd.xlane.f32.xlu1 %v3014_v18  ;;  %3139 = vmatprep.subr.bf16.mxu0 %v6430_v33  ;;  %v6568_v19 = vld [vmem:[%s8477_s12 + $0x18] sm:$0xff]  }
 0xee3   : > { %3140 = vmatpush1.bf16.msra.mxu0 %v6428_v32 }
 0xee4   : > { %3141 = vmatprep.subr.bf16.mxu0 %v6433_v34  ;;  %v6573_v34 = vld [vmem:[%s8475_s10 + $0x70] sm:$0xff]  }
 0xee7   : > { %3142 = vmatpush1.bf16.msra.mxu0 %v6431_v35 }
 0xee8   : > { %3143 = vmatprep.subr.bf16.mxu0 %v6436_v9 }
 0xeeb   : > { %3144 = vmatpush1.bf16.msra.mxu0 %v6434_v2 }
 0xeec   : > { %3145 = vmatprep.subr.bf16.mxu0 %v6439_v36 }
 0xeef   : > { %3146 = vmatpush1.bf16.msra.mxu0 %v6437_v37  ;;  %v6574_v37 = vld [vmem:[%s8475_s10 + $0x68] sm:$0xff]  }
 0xef0   : > { %3147 = vmatprep.subr.bf16.mxu0 %v6442_v38 }
 0xef3   : > { %3148 = vmatpush1.bf16.msra.mxu0 %v6440_v39 }
 0xef4   : > { %5958 = vmatprep.subr.bf16.mxu0 %v6781_v0 }
 0xf69   : > { %v3016_v26 = vpop.xlane.xlu1 %3015 }
 0xf6a   : > { %v3018_v27 = vmul.f32 0.0078125, %v3016_v26  ;;  %v3044_v26 = vshrl.u32 %v3043_v21, 7 }
 0xf6c   : > { %v3019_v28 = vsub.f32 %v3014_v18, %v3018_v27  ;;  %v6567_v18 = vld [vmem:[%s8477_s12 + $0x20] sm:$0xff]   ;;  %v3049_v32 = vsub.s32 1, %v3044_v26 }
 0xf6d   : > { %v6571_v27 = vld [vmem:[%s8477_s12] sm:$0xff]  }
 0xf6e   : > { %v3020_v29 = vmul.f32 %v3019_v28, %v3019_v28  ;;  %v7758_v35 = vrot.slane %v1163_v30, %v3049_v32 }
 0xf70   : > { %3021 = vadd.xlane.f32.xlu1 %v3020_v29  ;;  %v3045_v29 = vsub.s32 0, %v3044_v26  ;;  %v6784_v26 = vmov -1.0  }
 0xf72   : > { %v7753_v33 = vrot.slane %v1163_v30, %v3045_v29 }
 0xff9   : > { %v3022_v40 = vpop.xlane.xlu1 %3021 }
 0xffa   : > { %v3023_v41 = vmul.f32 0.0078125, %v3022_v40 }
 0xffc   : > { %v3024_v42 = vadd.f32 1e-05, %v3023_v41 }
 0xffe   : > { %6475 = vrsqrt.f32 %v3024_v42 }
0x100b   : > { %v6476_v43 = vpop.eup %6475 }
0x100c   : > { %v3026_v45 = vmul.f32 %v6476_v43, %v3019_v28  ;;  %v7740_v28 = vpack.c.bf16 %v3428_v25, %v3428_v25 }
0x100e   : > { %v3033_v47 = vmul.f32 %v5266_v44, %v3026_v45  ;;  %v6575_v44 = vld [vmem:[%s8475_s10 + $0x60] sm:$0xff]  }
0x1010   : > { %v7605_v48 = vadd.f32 %v5267_v46, %v3033_v47 }
0x1012   : > { %v3041_v49 = vpack.c.bf16 %v7605_v48, %v7605_v48 }
0x1014   : > { %3166 = vmatmul.mubr.bf16.vlgmr.msra.gmra.mxu0 %v3041_v49 }
0x1015   : > { %5959 = vmatpush3.bf16.msra.mxu0 %v6556_v51  ;;  %5974 = vmatprep.mubr.msk.bf16.mxu0 %vm6782_vm0, %v6781_v0  ;;  %v6576_v51 = vld [vmem:[%s8475_s10 + $0x58] sm:$0xff]  }
0x1016   : > { %5960 = vmatprep.subr.bf16.mxu0 %v6781_v0 }
0x1019   : > { %5961 = vmatpush3.bf16.msra.mxu0 %v6557_v52 }
0x101a   : > { %5962 = vmatprep.subr.bf16.mxu0 %v6781_v0 }
0x101d   : > { %5963 = vmatpush3.bf16.msra.mxu0 %v6558_v53  ;;  %v6577_v53 = vld [vmem:[%s8475_s10 + $0x50] sm:$0xff]  }
0x101e   : > { %5964 = vmatprep.subr.bf16.mxu0 %v6781_v0 }
0x1021   : > { %5965 = vmatpush3.bf16.msra.mxu0 %v6559_v54 }
0x1022   : > { %5966 = vmatprep.subr.bf16.mxu0 %v6781_v0 }
0x1025   : > { %5967 = vmatpush3.bf16.msra.mxu0 %v6560_v55  ;;  %v6578_v55 = vld [vmem:[%s8475_s10 + $0x48] sm:$0xff]  }
0x1026   : > { %5968 = vmatprep.subr.bf16.mxu0 %v6781_v0 }
0x1029   : > { %5969 = vmatpush3.bf16.msra.mxu0 %v6561_v20 }
0x102a   : > { %5970 = vmatprep.subr.bf16.mxu0 %v6781_v0 }
0x102d   : > { %5971 = vmatpush3.bf16.msra.mxu0 %v6562_v50 }
0x102e   : > { %5972 = vmatprep.subr.bf16.mxu0 %v6781_v0 }
0x1031   : > { %5973 = vmatpush3.bf16.msra.mxu0 %v6563_v56  ;;  %v6579_v56 = vld [vmem:[%s8475_s10 + $0x40] sm:$0xff]  }
0x1032   : > { %5998 = vmatprep.subr.bf16.mxu0 %v6781_v0 }
0x1034   : > { %5975 = vmatmul.mubr.bf16.vlgmr.msra.gmra.mxu0 %v7700_v14 }
0x1035   : > { %5999 = vmatpush3.bf16.msra.mxu0 %v6564_v15  ;;  %6014 = vmatprep.mubr.msk.bf16.mxu0 %vm6782_vm0, %v6781_v0 }
0x1036   : > { %6000 = vmatprep.subr.bf16.mxu0 %v6781_v0 }
0x1039   : > { %6001 = vmatpush3.bf16.msra.mxu0 %v6565_v16 }
0x103a   : > { %6002 = vmatprep.subr.bf16.mxu0 %v6781_v0 }
0x103d   : > { %6003 = vmatpush3.bf16.msra.mxu0 %v6566_v17 }
0x103e   : > { %6004 = vmatprep.subr.bf16.mxu0 %v6781_v0 }
0x1041   : > { %6005 = vmatpush3.bf16.msra.mxu0 %v6567_v18 }
0x1042   : > { %6006 = vmatprep.subr.bf16.mxu0 %v6781_v0 }
0x1045   : > { %6007 = vmatpush3.bf16.msra.mxu0 %v6568_v19 }
0x1046   : > { %6008 = vmatprep.subr.bf16.mxu0 %v6781_v0 }
0x1049   : > { %6009 = vmatpush3.bf16.msra.mxu0 %v6569_v23 }
0x104a   : > { %6010 = vmatprep.subr.bf16.mxu0 %v6781_v0 }
0x104d   : > { %6011 = vmatpush3.bf16.msra.mxu0 %v6570_v24 }
0x104e   : > { %6012 = vmatprep.subr.bf16.mxu0 %v6781_v0 }
0x1051   : > { %6013 = vmatpush3.bf16.msra.mxu0 %v6571_v27 }
0x1052   : > { %6050 = vmatprep.subr.bf16.mxu0 %v6781_v0 }
0x1054   : > { %6015 = vmatmul.mubr.bf16.vlgmr.msra.gmra.mxu0 %v7740_v28 }
0x1055   : > { %6051 = vmatpush3.bf16.msra.mxu0 %v6572_v31  ;;  %6066 = vmatprep.mubr.msk.bf16.mxu0 %vm6782_vm0, %v6781_v0 }
0x1056   : > { %6052 = vmatprep.subr.bf16.mxu0 %v6781_v0 }
0x1059   : > { %6053 = vmatpush3.bf16.msra.mxu0 %v6573_v34 }
0x105a   : > { %6054 = vmatprep.subr.bf16.mxu0 %v6781_v0 }
0x105d   : > { %6055 = vmatpush3.bf16.msra.mxu0 %v6574_v37 }
0x105e   : > { %6056 = vmatprep.subr.bf16.mxu0 %v6781_v0 }
0x1061   : > { %6057 = vmatpush3.bf16.msra.mxu0 %v6575_v44 }
0x1062   : > { %6058 = vmatprep.subr.bf16.mxu0 %v6781_v0 }
0x1065   : > { %6059 = vmatpush3.bf16.msra.mxu0 %v6576_v51  ;;  %v6587_v51 = vld [vmem:[%s8475_s10] sm:$0xff]  }
0x1066   : > { %6060 = vmatprep.subr.bf16.mxu0 %v6781_v0 }
0x1069   : > { %6061 = vmatpush3.bf16.msra.mxu0 %v6577_v53 }
0x106a   : > { %6062 = vmatprep.subr.bf16.mxu0 %v6781_v0 }
0x106d   : > { %6063 = vmatpush3.bf16.msra.mxu0 %v6578_v55  ;;  %v6588_v55 = vld [vmem:[%s8515_s1] ss:$0 sm:$0xff] }
0x106e   : > { %6064 = vmatprep.subr.bf16.mxu0 %v6781_v0 }
0x1071   : > { %6065 = vmatpush3.bf16.msra.mxu0 %v6579_v56 }
0x1072   : > { %6090 = vmatprep.subr.bf16.mxu0 %v6781_v0 }
0x1074   : > { %6067 = vmatmul.mubr.bf16.vlgmr.msra.gmra.mxu0 %v7740_v28 }
0x1075   : > { %6092 = vmatprep.mubr.msk.bf16.mxu0 %vm6782_vm0, %v6781_v0 }
0x10d4   : > { %v3167_v9 = vpop.f32.mrf.mxu0 }
0x10d5   : > { %v7762_v2 = vadd.f32 %v3167_v9, %v7753_v33 }
0x10d6   : > { %v3169_v36 = vpop.f32.mrf.mxu0 }
0x10d7   : > { %v7768_v38 = vmul.f32 0.70710677, %v7762_v2  ;;  %v7771_v39 = vadd.f32 %v3169_v36, %v7758_v35  ;;  %v3174_v36 = vmul.f32 0.5, %v7762_v2  ;;  %v6581_v2 = vld [vmem:[%s8475_s10 + $0x30] sm:$0xff]  }
0x10d8   : > { %v3171_v40 = vpop.f32.mrf.mxu0 }
0x10d9   : > { %v3182_v41 = vand.u32 2147483647, %v7768_v38  ;;  %v7776_v42 = vmul.f32 0.70710677, %v7771_v39  ;;  %vm3178_vm4 = vcmp.ge.f32.partialorder %v7768_v38, 0.0  ;;  %v3175_v37 = vmul.f32 0.5, %v7771_v39 }
0x10da   : > { %v3172_v43 = vpop.f32.mrf.mxu0  ;;  %v3180_v27 = vsel %vm3178_vm4, 1.0, %v6784_v26  ;;  %v6582_v39 = vld [vmem:[%s8475_s10 + $0x28] sm:$0xff]  }
0x10db   : > { %v3184_v45 = vmul.f32 0.3275911, %v3182_v41  ;;  %v3183_v46 = vand.u32 2147483647, %v7776_v42  ;;  %v3210_v54 = vsub.f32 0.0, %v3182_v41  ;;  %vm3179_vm5 = vcmp.ge.f32.partialorder %v7776_v42, 0.0 }
0x10dc   : > { %v3181_v34 = vsel %vm3179_vm5, 1.0, %v6784_v26  ;;  %v6580_v42 = vld [vmem:[%s8475_s10 + $0x38] sm:$0xff]  }
0x10dd   : > { %v3186_v47 = vadd.f32 1.0, %v3184_v45  ;;  %v3185_v49 = vmul.f32 0.3275911, %v3183_v46  ;;  %v3211_v20 = vsub.f32 0.0, %v3183_v46  ;;  %v3212_v50 = vmul.f32 %v3210_v54, %v3182_v41  ;;  %v6583_v45 = vld [vmem:[%s8475_s10 + $0x20] sm:$0xff]  }
0x10df   : > { %6477 = vrcp.f32 %v3186_v47  ;;  %v3187_v52 = vadd.f32 1.0, %v3185_v49  ;;  %v3213_v58 = vmul.f32 %v3211_v20, %v3183_v46  ;;  %v3214_v60 = vmul.f32 1.442695, %v3212_v50  ;;  %v6584_v46 = vld [vmem:[%s8475_s10 + $0x18] sm:$0xff]   ;;  %v6585_v47 = vld [vmem:[%s8475_s10 + $0x10] sm:$0xff]   ;;  %v6586_v49 = vld [vmem:[%s8475_s10 + $0x8] sm:$0xff]  }
0x10e1   : > { %6479 = vrcp.f32 %v3187_v52  ;;  %v3216_v1 = vmul.f32 1.442695, %v3213_v58  ;;  %v3430_v58 = vld [vmem:[%s7133_s28 + $0x8] sm:$0xff] }
0x10e2   : > { %6481 = vpow2.f32 %v3214_v60  ;;  %3441 = vperm.xlu1 %6314, %v3430_v58   ;;  %v6593_v58 = vld [vmem:[%s8511_s4 + $0x68] sm:$0xff]  }
0x10e3   : > { %6483 = vpow2.f32 %v3216_v1 }
0x10ec   : > { %v6478_v57 = vpop.eup %6477 }
0x10ed   : > { %v3192_v59 = vmul.f32 1.0614054, %v6478_v57 }
0x10ee   : > { %v6480_v61 = vpop.eup %6479 }
0x10ef   : > { %v3194_v62 = vadd.f32 -1.4531521, %v3192_v59  ;;  %v3193_v63 = vmul.f32 1.0614054, %v6480_v61  ;;  %v6482_v18 = vpop.eup %6481 }
0x10f0   : > { %v6484_v24 = vpop.eup %6483 }
0x10f1   : > { %v3196_v3 = vmul.f32 %v6478_v57, %v3194_v62  ;;  %v3195_v4 = vadd.f32 -1.4531521, %v3193_v63 }
0x10f3   : > { %v3198_v5 = vadd.f32 1.4214138, %v3196_v3  ;;  %v3197_v6 = vmul.f32 %v6480_v61, %v3195_v4  ;;  %v6589_v3 = vld [vmem:[%s8476_s11] ss:$0 sm:$0xff] }
0x10f4   : > { %v3488_v52 = vpop.f32.mrf.mxu0 }
0x10f5   : > { %v3200_v7 = vmul.f32 %v6478_v57, %v3198_v5  ;;  %v3199_v8 = vadd.f32 1.4214138, %v3197_v6  ;;  %v3489_v20 = vadd.f32 %v6588_v55, %v3488_v52 }
0x10f6   : > { %v5976_v53 = vpop.f32.mrf.mxu0 }
0x10f7   : > { %v3202_v10 = vadd.f32 -0.28449672, %v3200_v7  ;;  %v3201_v11 = vmul.f32 %v6480_v61, %v3199_v8 }
0x10f8   : > { %v3491_v54 = vpop.f32.mrf.mxu0 }
0x10f9   : > { %v3204_v12 = vmul.f32 %v6478_v57, %v3202_v10  ;;  %v3203_v13 = vadd.f32 -0.28449672, %v3201_v11  ;;  %v3492_v56 = vadd.f32 %v6588_v55, %v3491_v54  ;;  %v5303_v11 = vld [vmem:[%s905_s0] ss:$0 sm:$0xff] }
0x10fa   : > { %v5977_v50 = vpop.f32.mrf.mxu0 }
0x10fb   : > { %v3206_v15 = vadd.f32 0.2548296, %v3204_v12  ;;  %v3205_v16 = vmul.f32 %v6480_v61, %v3203_v13  ;;  %v3437_v12 = vpop.permute.xlu0 %3436 }
0x10fd   : > { %v3208_v17 = vmul.f32 %v6478_v57, %v3206_v15  ;;  %v3207_v19 = vadd.f32 0.2548296, %v3205_v16  ;;  %v3575_v57 = vpack.c.bf16 %v3492_v56, %v3489_v20  ;;  %v7863_v15 = vadd.f32 %v5303_v11, %v3437_v12  ;;  %v6591_v56 = vld [vmem:[%s8511_s4 + $0x78] sm:$0xff]   ;;  %v6607_v12 = vld [vmem:[#allocation2 + $0x8] sm:$0xff]  }
0x10ff   : > { %v3218_v23 = vmul.f32 %v6482_v18, %v3208_v17  ;;  %v3209_v21 = vmul.f32 %v6480_v61, %v3207_v19  ;;  %vm3452_vm7 = vcmp.gt.f32.partialorder %v7863_v15, 0.5 }
0x1101   : > { %v3220_v25 = vsub.f32 1.0, %v3218_v23  ;;  %v3219_v29 = vmul.f32 %v6484_v24, %v3209_v21 }
0x1103   : > { %v3222_v30 = vmul.f32 %v3220_v25, %v3180_v27  ;;  %v3221_v31 = vsub.f32 1.0, %v3219_v29 }
0x1105   : > { %v3224_v32 = vadd.f32 1.0, %v3222_v30  ;;  %v3223_v9 = vmul.f32 %v3221_v31, %v3181_v34 }
0x1107   : > { %v3225_v38 = vadd.f32 1.0, %v3223_v9  ;;  %v3226_v40 = vmul.f32 %v3224_v32, %v3174_v36 }
0x1109   : > { %v3227_v41 = vmul.f32 %v3225_v38, %v3175_v37  ;;  %v3228_v44 = vpack.c.bf16 %v3226_v40, %v3226_v40 }
0x110b   : > { %v3229_v43 = vpack.c.bf16 %v3227_v41, %v3227_v41 }
0x110d   : > { %3364 = vmatprep.mubr.bf16.mxu1 %v3229_v43 }
0x110e   : > { %3365 = vmatmul.mubr.bf16.vlgmr.msra.gmra.mxu1 %v3228_v44 }
0x110f   : > { %5979 = vmatpush3.bf16.msra.mxu1 %v6580_v42  ;;  %5994 = vmatprep.mubr.msk.bf16.mxu1 %vm6782_vm0, %v6781_v0  ;;  %v6590_v42 = vld [vmem:[%s8478_s13] ss:$0 sm:$0xff] }
0x1110   : > { %5980 = vmatprep.subr.bf16.mxu1 %v6781_v0 }
0x1113   : > { %5981 = vmatpush3.bf16.msra.mxu1 %v6581_v2 }
0x1114   : > { %5982 = vmatprep.subr.bf16.mxu1 %v6781_v0  ;;  %v3569_v44 = vpop.f32.mrf.mxu0 }
0x1115   : > { %v3570_v2 = vadd.f32 %v6590_v42, %v3569_v44  ;;  %v6616_v44 = vld [vmem:[%s8475_s10 + $0x88] sm:$0xff]  }
0x1117   : > { %5983 = vmatpush3.bf16.msra.mxu1 %v6582_v39  ;;  %v6016_v39 = vpop.f32.mrf.mxu0 }
0x1118   : > { %5984 = vmatprep.subr.bf16.mxu1 %v6781_v0  ;;  %v6617_v39 = vld [vmem:[%s8475_s10 + $0x80] sm:$0xff]  }
0x111b   : > { %5985 = vmatpush3.bf16.msra.mxu1 %v6583_v45  ;;  %v3652_v45 = vpack.c.bf16 %v3570_v2, %v3570_v2 }
0x111c   : > { %5986 = vmatprep.subr.bf16.mxu1 %v6781_v0 }
0x111f   : > { %5987 = vmatpush3.bf16.msra.mxu1 %v6584_v46  ;;  %v3572_v46 = vpop.f32.mrf.mxu0 }
0x1120   : > { %5988 = vmatprep.subr.bf16.mxu1 %v6781_v0 }
0x1123   : > { %5989 = vmatpush3.bf16.msra.mxu1 %v6585_v47  ;;  %v3658_v47 = vsel %vm3656_vm9, %v3652_v45, 0  ;;  %v6618_v45 = vld [vmem:[%s8515_s1 + $0x1] ss:$0 sm:$0xff] }
0x1124   : > { %5990 = vmatprep.subr.bf16.mxu1 %v6781_v0 }
0x1127   : > { %5991 = vmatpush3.bf16.msra.mxu1 %v6586_v49  ;;  %v6017_v49 = vpop.f32.mrf.mxu0 }
0x1128   : > { %5992 = vmatprep.subr.bf16.mxu1 %v6781_v0 }
0x112b   : > { %5993 = vmatpush3.bf16.msra.mxu1 %v6587_v51 }
0x112c   : > { %6018 = vmatprep.subr.bf16.mxu1 %v6781_v0 }
0x112e   : > { %5995 = vmatmul.mubr.bf16.vlgmr.msra.gmra.mxu1 %v7740_v28 }
0x112f   : > { %6020 = vmatprep.mubr.msk.bf16.mxu1 %vm6782_vm0, %v6781_v0 }
0x115d   : > { %v3442_v13 = vpop.permute.xlu1 %3441 }
0x115e   : > { %v7865_v17 = vadd.f32 %v5303_v11, %v3442_v13  ;;  %v6606_v11 = vld [vmem:[%s8477_s12 + $0x40] sm:$0xff]  }
0x115f   : > { %v6608_v13 = vld [vmem:[#allocation2] sm:$0xff]  }
0x1160   : > { %vm3453_vm8 = vcmp.gt.f32.partialorder %v7865_v17, 0.5 }
0x11ce   : > { %v5474_v59 = vpop.f32.mrf.mxu1 }
0x11d0   : > { %v5475_v60 = vpop.f32.mrf.mxu1 }
0x11d1   : > { %v7849_v61 = vadd.f32 %v5475_v60, %v5474_v59  ;;  %v6594_v59 = vld [vmem:[%s8511_s4 + $0x60] sm:$0xff]   ;;  %v6595_v60 = vld [vmem:[%s8511_s4 + $0x58] sm:$0xff]  }
0x11d2   : > { %v5477_v62 = vpop.f32.mrf.mxu1 }
0x11d3   : > { %v6596_v62 = vld [vmem:[%s8511_s4 + $0x50] sm:$0xff]  }
0x11d4   : > { %v5478_v63 = vpop.f32.mrf.mxu1 }
0x11d5   : > { %v6597_v63 = vld [vmem:[%s8511_s4 + $0x48] sm:$0xff]  }
0x11ee   : > { %v3529_v1 = vpop.f32.mrf.mxu1 }
0x11ef   : > { %v3530_v4 = vadd.f32 %v6589_v3, %v3529_v1  ;;  %v6598_v1 = vld [vmem:[%s8511_s4 + $0x40] sm:$0xff]   ;;  %v6599_v3 = vld [vmem:[%s8477_s12 + $0x78] sm:$0xff]  }
0x11f0   : > { %v5996_v5 = vpop.f32.mrf.mxu1 }
0x11f1   : > { %v3576_v6 = vpack.c.bf16 %v3530_v4, %v3530_v4  ;;  %v6600_v4 = vld [vmem:[%s8477_s12 + $0x70] sm:$0xff]   ;;  %v6601_v5 = vld [vmem:[%s8477_s12 + $0x68] sm:$0xff]  }
0x11f2   : > { %v3532_v7 = vpop.f32.mrf.mxu1 }
0x11f3   : > { %v3581_v8 = vsel %vm1505_vm1, %v3576_v6, 0  ;;  %v6602_v6 = vld [vmem:[%s8477_s12 + $0x60] sm:$0xff]   ;;  %v6603_v7 = vld [vmem:[%s8477_s12 + $0x58] sm:$0xff]  }
0x11f4   : > { %v5997_v10 = vpop.f32.mrf.mxu1  ;;  %6019 = vmatpush3.bf16.xpose.msra.mxu1 %v3581_v8  ;;  %v6604_v8 = vld [vmem:[%s8477_s12 + $0x50] sm:$0xff]  }
0x11f5   : > { %6024 = vmatprep.subr.bf16.mxu1 %v6781_v0  ;;  %v6605_v10 = vld [vmem:[%s8477_s12 + $0x48] sm:$0xff]  }
0x11fb   : > { %6021 = vmatmul.mubr.msk.bf16.vlgmr.msra.gmra.mxu1 %vm1505_vm1, %v3575_v57  ;;  %v6592_v57 = vld [vmem:[%s8511_s4 + $0x70] sm:$0xff]  }
0x11fc   : > { %6026 = vmatprep.mubr.msk.bf16.mxu1 %vm6782_vm0, %v6781_v0  ;;  %6025 = vmatpush3.bf16.msra.mxu1 %v3658_v47 }
0x11fd   : > { %6030 = vmatprep.subr.bf16.mxu1 %v6781_v0 }
0x12bb   : > { %v3617_v16 = vpop.f32.mrf.mxu1 }
0x12bc   : > { %v3624_v18 = vmul.f32 0.17677669, %v3617_v16  ;;  %v3777_v16 = vpop.f32.mrf.mxu0 }
0x12bd   : > { %v6022_v19 = vpop.f32.mrf.mxu1 }
0x12be   : > { %v3626_v23 = vsel %vm3452_vm7, -1e+09, %v3624_v18  ;;  %v6609_v18 = vld [vmem:[%s8476_s11 + $0x1] ss:$0 sm:$0xff] }
0x12bf   : > { %v3620_v21 = vpop.f32.mrf.mxu1  ;;  %v3629_v24 = vsel %vm3628_vm6, %v3626_v23, -inf  ;;  %v3778_v19 = vadd.f32 %v6609_v18, %v3777_v16 }
0x12c0   : > { %v3625_v25 = vmul.f32 0.17677669, %v3620_v21  ;;  %3630 = vmax.xlane.f32.xlu1 %v3629_v24 }
0x12c1   : > { %v6023_v27 = vpop.f32.mrf.mxu1  ;;  %v3824_v21 = vpack.c.bf16 %v3778_v19, %v3778_v19 }
0x12c2   : > { %v3627_v29 = vsel %vm3453_vm8, -1e+09, %v3625_v25 }
0x12c3   : > { %v3632_v30 = vsel %vm3628_vm6, %v3627_v29, -inf  ;;  %v3829_v25 = vsel %vm1505_vm1, %v3824_v21, 0 }
0x12c4   : > { %3633 = vmax.xlane.f32.xlu0 %v3632_v30  ;;  %6091 = vmatpush3.bf16.xpose.msra.mxu0 %v3829_v25 }
0x12c5   : > { %6096 = vmatprep.subr.bf16.mxu0 %v6781_v0 }
0x1349   : > { %v3631_v31 = vpop.xlane.xlu1 %3630 }
0x134a   : > { %v3635_v32 = vsub.f32 %v3626_v23, %v3631_v31  ;;  %v6068_v23 = vpop.f32.mrf.mxu0 }
0x134c   : > { %v3637_v34 = vmul.f32 1.442695, %v3635_v32  ;;  %v3780_v24 = vpop.f32.mrf.mxu0 }
0x134d   : > { %v3634_v9 = vpop.xlane.xlu0 %3633 }
0x134e   : > { %6485 = vpow2.f32 %v3637_v34  ;;  %v3636_v36 = vsub.f32 %v3627_v29, %v3634_v9  ;;  %v6069_v27 = vpop.f32.mrf.mxu0  ;;  %v6610_v9 = vld [vmem:[%s8475_s10 + $0xb8] sm:$0xff]  }
0x1350   : > { %v3639_v37 = vmul.f32 1.442695, %v3636_v36  ;;  %v6611_v36 = vld [vmem:[%s8475_s10 + $0xb0] sm:$0xff]  }
0x1352   : > { %6487 = vpow2.f32 %v3639_v37  ;;  %v6612_v37 = vld [vmem:[%s8475_s10 + $0xa8] sm:$0xff]  }
0x135b   : > { %v6486_v38 = vpop.eup %6485 }
0x135c   : > { %v3641_v40 = vsel %vm3628_vm6, %v6486_v38, 0.0 }
0x135d   : > { %3642 = vadd.xlane.f32.xlu0 %v3641_v40  ;;  %v6614_v40 = vld [vmem:[%s8475_s10 + $0x98] sm:$0xff]  }
0x135f   : > { %v6488_v41 = vpop.eup %6487 }
0x1360   : > { %v3644_v43 = vsel %vm3628_vm6, %v6488_v41, 0.0 }
0x1361   : > { %3645 = vadd.xlane.f32.xlu1 %v3644_v43 }
0x13e6   : > { %v3643_v51 = vpop.xlane.xlu0 %3642 }
0x13e7   : > { %6489 = vrcp.f32 %v3643_v51 }
0x13ea   : > { %v3646_v52 = vpop.xlane.xlu1 %3645 }
0x13eb   : > { %6491 = vrcp.f32 %v3646_v52 }
0x13f4   : > { %v6490_v53 = vpop.eup %6489 }
0x13f5   : > { %v3649_v55 = vmul.f32 %v6490_v53, %v6486_v38  ;;  %v6613_v38 = vld [vmem:[%s8475_s10 + $0xa0] sm:$0xff]  }
0x13f6   : > { %v6619_v53 = vld [vmem:[%s8478_s13 + $0x1] ss:$0 sm:$0xff] }
0x13f8   : > { %v6492_v54 = vpop.eup %6491 }
0x13f9   : > { %v3650_v20 = vmul.f32 %v6492_v54, %v6488_v41  ;;  %v6615_v41 = vld [vmem:[%s8475_s10 + $0x90] sm:$0xff]  }
0x13fb   : > { %v3651_v50 = vpack.c.bf16 %v3650_v20, %v3649_v55 }
0x13fd   : > { %6027 = vmatmul.mubr.msk.bf16.vlgmr.msra.gmra.mxu1 %vm3628_vm6, %v3651_v50 }
0x13fe   : > { %6031 = vmatpush3.bf16.msra.mxu1 %v6591_v56  ;;  %6046 = vmatprep.mubr.msk.bf16.mxu1 %vm6782_vm0, %v6781_v0 }
0x13ff   : > { %6032 = vmatprep.subr.bf16.mxu1 %v6781_v0 }
0x1402   : > { %6033 = vmatpush3.bf16.msra.mxu1 %v6592_v57 }
0x1403   : > { %6034 = vmatprep.subr.bf16.mxu1 %v6781_v0 }
0x1406   : > { %6035 = vmatpush3.bf16.msra.mxu1 %v6593_v58 }
0x1407   : > { %6036 = vmatprep.subr.bf16.mxu1 %v6781_v0 }
0x140a   : > { %6037 = vmatpush3.bf16.msra.mxu1 %v6594_v59 }
0x140b   : > { %6038 = vmatprep.subr.bf16.mxu1 %v6781_v0 }
0x140e   : > { %6039 = vmatpush3.bf16.msra.mxu1 %v6595_v60 }
0x140f   : > { %6040 = vmatprep.subr.bf16.mxu1 %v6781_v0 }
0x1412   : > { %6041 = vmatpush3.bf16.msra.mxu1 %v6596_v62 }
0x1413   : > { %6042 = vmatprep.subr.bf16.mxu1 %v6781_v0 }
0x1416   : > { %6043 = vmatpush3.bf16.msra.mxu1 %v6597_v63 }
0x1417   : > { %6044 = vmatprep.subr.bf16.mxu1 %v6781_v0 }
0x141a   : > { %6045 = vmatpush3.bf16.msra.mxu1 %v6598_v1 }
0x141b   : > { %6070 = vmatprep.subr.bf16.mxu1 %v6781_v0 }
0x141d   : > { %6047 = vmatmul.mubr.bf16.vlgmr.msra.gmra.mxu1 %v7700_v14 }
0x141e   : > { %6071 = vmatpush3.bf16.msra.mxu1 %v6599_v3  ;;  %6086 = vmatprep.mubr.msk.bf16.mxu1 %vm6782_vm0, %v6781_v0 }
0x141f   : > { %6072 = vmatprep.subr.bf16.mxu1 %v6781_v0 }
0x1422   : > { %6073 = vmatpush3.bf16.msra.mxu1 %v6600_v4 }
0x1423   : > { %6074 = vmatprep.subr.bf16.mxu1 %v6781_v0 }
0x1426   : > { %6075 = vmatpush3.bf16.msra.mxu1 %v6601_v5 }
0x1427   : > { %6076 = vmatprep.subr.bf16.mxu1 %v6781_v0 }
0x142a   : > { %6077 = vmatpush3.bf16.msra.mxu1 %v6602_v6 }
0x142b   : > { %6078 = vmatprep.subr.bf16.mxu1 %v6781_v0 }
0x142e   : > { %6079 = vmatpush3.bf16.msra.mxu1 %v6603_v7 }
0x142f   : > { %6080 = vmatprep.subr.bf16.mxu1 %v6781_v0 }
0x1432   : > { %6081 = vmatpush3.bf16.msra.mxu1 %v6604_v8 }
0x1433   : > { %6082 = vmatprep.subr.bf16.mxu1 %v6781_v0 }
0x1436   : > { %6083 = vmatpush3.bf16.msra.mxu1 %v6605_v10 }
0x1437   : > { %6084 = vmatprep.subr.bf16.mxu1 %v6781_v0 }
0x143a   : > { %6085 = vmatpush3.bf16.msra.mxu1 %v6606_v11 }
0x143b   : > { %6110 = vmatprep.subr.bf16.mxu1 %v6781_v0 }
0x143d   : > { %6087 = vmatmul.mubr.bf16.vlgmr.msra.gmra.mxu1 %v7740_v28 }
0x143e   : > { %6111 = vmatpush3.bf16.msra.mxu1 %v6607_v12  ;;  %6114 = vmatprep.mubr.msk.bf16.mxu1 %vm6782_vm0, %v6781_v0 }
0x143f   : > { %6112 = vmatprep.subr.bf16.mxu1 %v6781_v0 }
0x1442   : > { %6113 = vmatpush3.bf16.msra.mxu1 %v6608_v13 }
0x1443   : > { %6138 = vmatprep.subr.bf16.mxu1 %v6781_v0 }
0x14bd   : > { %v3694_v29 = vpop.f32.mrf.mxu1 }
0x14bf   : > { %v6028_v30 = vpop.f32.mrf.mxu1 }
0x14c1   : > { %v3697_v31 = vpop.f32.mrf.mxu1 }
0x14c2   : > { %v3701_v32 = vpack.c.bf16 %v3697_v31, %v3694_v29 }
0x14c3   : > { %v6029_v34 = vpop.f32.mrf.mxu1 }
0x14c4   : > { %6115 = vmatmul.mubr.msk.bf16.vlgmr.msra.gmra.mxu1 %vm1505_vm1, %v3701_v32 }
0x14c5   : > { %6139 = vmatpush3.bf16.msra.mxu1 %v6610_v9  ;;  %6154 = vmatprep.mubr.msk.bf16.mxu1 %vm6782_vm0, %v6781_v0 }
0x14c6   : > { %6140 = vmatprep.subr.bf16.mxu1 %v6781_v0 }
0x14c9   : > { %6141 = vmatpush3.bf16.msra.mxu1 %v6611_v36 }
0x14ca   : > { %6142 = vmatprep.subr.bf16.mxu1 %v6781_v0 }
0x14cd   : > { %6143 = vmatpush3.bf16.msra.mxu1 %v6612_v37  ;;  %v6620_v37 = vld [vmem:[#allocation2 + $0x18] sm:$0xff]  }
0x14ce   : > { %6144 = vmatprep.subr.bf16.mxu1 %v6781_v0 }
0x14d1   : > { %6145 = vmatpush3.bf16.msra.mxu1 %v6613_v38  ;;  %v6621_v38 = vld [vmem:[#allocation2 + $0x10] sm:$0xff]  }
0x14d2   : > { %6146 = vmatprep.subr.bf16.mxu1 %v6781_v0 }
0x14d5   : > { %6147 = vmatpush3.bf16.msra.mxu1 %v6614_v40 }
0x14d6   : > { %6148 = vmatprep.subr.bf16.mxu1 %v6781_v0 }
0x14d9   : > { %6149 = vmatpush3.bf16.msra.mxu1 %v6615_v41 }
0x14da   : > { %6150 = vmatprep.subr.bf16.mxu1 %v6781_v0 }
0x14dd   : > { %v3736_v43 = vpop.f32.mrf.mxu1  ;;  %6151 = vmatpush3.bf16.msra.mxu1 %v6616_v44 }
0x14de   : > { %6152 = vmatprep.subr.bf16.mxu1 %v6781_v0  ;;  %v3737_v46 = vadd.f32 %v6618_v45, %v3736_v43 }
0x14df   : > { %v6048_v42 = vpop.f32.mrf.mxu1 }
0x14e1   : > { %v3739_v2 = vpop.f32.mrf.mxu1  ;;  %6153 = vmatpush3.bf16.msra.mxu1 %v6617_v39  ;;  %v6623_v39 = vld [vmem:[%s8511_s4 + $0xb0] sm:$0xff]  }
0x14e2   : > { %v3740_v47 = vadd.f32 %v6618_v45, %v3739_v2  ;;  %6178 = vmatprep.subr.bf16.mxu1 %v6781_v0  ;;  %v6622_v2 = vld [vmem:[%s8511_s4 + $0xb8] sm:$0xff]   ;;  %v6624_v45 = vld [vmem:[%s8511_s4 + $0xa8] sm:$0xff]  }
0x14e3   : > { %v6049_v49 = vpop.f32.mrf.mxu1 }
0x14e4   : > { %v3823_v51 = vpack.c.bf16 %v3740_v47, %v3737_v46  ;;  %6155 = vmatmul.mubr.bf16.vlgmr.msra.gmra.mxu1 %v7740_v28  ;;  %v6625_v46 = vld [vmem:[%s8511_s4 + $0xa0] sm:$0xff]   ;;  %v6626_v47 = vld [vmem:[%s8511_s4 + $0x98] sm:$0xff]   ;;  %v6627_v49 = vld [vmem:[%s8511_s4 + $0x90] sm:$0xff]  }
0x14e5   : > { %6180 = vmatprep.mubr.msk.bf16.mxu1 %vm6782_vm0, %v6781_v0 }
0x14e6   : > { %6093 = vmatmul.mubr.msk.bf16.vlgmr.msra.gmra.mxu0 %vm1505_vm1, %v3823_v51  ;;  %v6628_v51 = vld [vmem:[%s8511_s4 + $0x88] sm:$0xff]  }
0x14e7   : > { %6098 = vmatprep.mubr.msk.bf16.mxu0 %vm6782_vm0, %v6781_v0 }
0x14fd   : > { %v3817_v52 = vpop.f32.mrf.mxu1 }
0x14fe   : > { %v3818_v54 = vadd.f32 %v6619_v53, %v3817_v52  ;;  %v6629_v52 = vld [vmem:[%s8511_s4 + $0x80] sm:$0xff]   ;;  %v6630_v53 = vld [vmem:[%s8477_s12 + $0xb8] sm:$0xff]  }
0x14ff   : > { %v6088_v55 = vpop.f32.mrf.mxu1 }
0x1500   : > { %v3899_v20 = vpack.c.bf16 %v3818_v54, %v3818_v54  ;;  %v6631_v54 = vld [vmem:[%s8477_s12 + $0xb0] sm:$0xff]   ;;  %v6632_v55 = vld [vmem:[%s8477_s12 + $0xa8] sm:$0xff]  }
0x1501   : > { %v3820_v50 = vpop.f32.mrf.mxu1 }
0x1502   : > { %v3904_v56 = vsel %vm3656_vm9, %v3899_v20, 0  ;;  %v6633_v20 = vld [vmem:[%s8477_s12 + $0xa0] sm:$0xff]   ;;  %v6634_v50 = vld [vmem:[%s8477_s12 + $0x98] sm:$0xff]  }
0x1503   : > { %v6089_v57 = vpop.f32.mrf.mxu1  ;;  %6097 = vmatpush3.bf16.msra.mxu0 %v3904_v56  ;;  %v6635_v56 = vld [vmem:[%s8477_s12 + $0x90] sm:$0xff]  }
0x1504   : > { %6102 = vmatprep.subr.bf16.mxu0 %v6781_v0  ;;  %v6636_v57 = vld [vmem:[%s8477_s12 + $0x88] sm:$0xff]  }
0x1584   : > { %v8011_v58 = vpop.f32.mrf.mxu1 }
0x1586   : > { %v6116_v59 = vpop.f32.mrf.mxu1 }
0x1587   : > { %v6637_v59 = vld [vmem:[%s8477_s12 + $0x80] sm:$0xff]  }
0x1588   : > { %v8013_v60 = vpop.f32.mrf.mxu1 }
0x158a   : > { %v6117_v62 = vpop.f32.mrf.mxu1 }
0x158b   : > { %v6638_v62 = vld [vmem:[%s8475_s10 + $0xf8] sm:$0xff]  }
0x15a6   : > { %v3865_v63 = vpop.f32.mrf.mxu0 }
0x15a7   : > { %v3872_v1 = vmul.f32 0.17677669, %v3865_v63  ;;  %v6639_v63 = vld [vmem:[%s8475_s10 + $0xf0] sm:$0xff]  }
0x15a8   : > { %v6094_v3 = vpop.f32.mrf.mxu0 }
0x15a9   : > { %v3874_v4 = vsel %vm3452_vm7, -1e+09, %v3872_v1  ;;  %v4111_v1 = vpop.f32.mrf.mxu1  ;;  %v6640_v3 = vld [vmem:[%s8476_s11 + $0x2] ss:$0 sm:$0xff] }
0x15aa   : > { %v3868_v5 = vpop.f32.mrf.mxu0  ;;  %v3876_v6 = vsel %vm3628_vm6, %v3874_v4, -inf }
0x15ab   : > { %v3873_v7 = vmul.f32 0.17677669, %v3868_v5  ;;  %3877 = vmax.xlane.f32.xlu0 %v3876_v6  ;;  %v6156_v5 = vpop.f32.mrf.mxu1 }
0x15ac   : > { %v6095_v8 = vpop.f32.mrf.mxu0 }
0x15ad   : > { %v3875_v10 = vsel %vm3453_vm8, -1e+09, %v3873_v7  ;;  %v6641_v7 = vld [vmem:[%s8475_s10 + $0xe8] sm:$0xff]   ;;  %v4114_v8 = vpop.f32.mrf.mxu1 }
0x15ae   : > { %v3879_v11 = vsel %vm3628_vm6, %v3875_v10, -inf }
0x15af   : > { %3880 = vmax.xlane.f32.xlu1 %v3879_v11  ;;  %v6157_v11 = vpop.f32.mrf.mxu1 }
0x1634   : > { %v3878_v12 = vpop.xlane.xlu0 %3877 }
0x1635   : > { %v3882_v13 = vsub.f32 %v3874_v4, %v3878_v12  ;;  %v4112_v4 = vadd.f32 %v6640_v3, %v4111_v1  ;;  %v6642_v12 = vld [vmem:[%s8475_s10 + $0xe0] sm:$0xff]  }
0x1637   : > { %v3884_v16 = vmul.f32 1.442695, %v3882_v13  ;;  %v4158_v6 = vpack.c.bf16 %v4112_v4, %v4112_v4  ;;  %v6643_v13 = vld [vmem:[%s8475_s10 + $0xd8] sm:$0xff]  }
0x1638   : > { %v3881_v18 = vpop.xlane.xlu1 %3880 }
0x1639   : > { %6493 = vpow2.f32 %v3884_v16  ;;  %v3883_v19 = vsub.f32 %v3875_v10, %v3881_v18  ;;  %v4163_v10 = vsel %vm1505_vm1, %v4158_v6, 0  ;;  %v6644_v16 = vld [vmem:[%s8475_s10 + $0xd0] sm:$0xff]   ;;  %v6645_v18 = vld [vmem:[%s8475_s10 + $0xc8] sm:$0xff]  }
0x163a   : > { %6179 = vmatpush3.bf16.xpose.msra.mxu1 %v4163_v10 }
0x163b   : > { %v3886_v23 = vmul.f32 1.442695, %v3883_v19  ;;  %6184 = vmatprep.subr.bf16.mxu1 %v6781_v0  ;;  %v6646_v19 = vld [vmem:[%s8475_s10 + $0xc0] sm:$0xff]  }
0x163d   : > { %6495 = vpow2.f32 %v3886_v23 }
0x1646   : > { %v6494_v21 = vpop.eup %6493 }
0x1647   : > { %v3888_v24 = vsel %vm3628_vm6, %v6494_v21, 0.0 }
0x1648   : > { %3889 = vadd.xlane.f32.xlu0 %v3888_v24 }
0x164a   : > { %v6496_v25 = vpop.eup %6495 }
0x164b   : > { %v3891_v27 = vsel %vm3628_vm6, %v6496_v25, 0.0 }
0x164c   : > { %3892 = vadd.xlane.f32.xlu1 %v3891_v27 }
0x16d1   : > { %v3890_v29 = vpop.xlane.xlu0 %3889 }
0x16d2   : > { %6497 = vrcp.f32 %v3890_v29 }
0x16d5   : > { %v3893_v30 = vpop.xlane.xlu1 %3892 }
0x16d6   : > { %6499 = vrcp.f32 %v3893_v30 }
0x16df   : > { %v6498_v31 = vpop.eup %6497 }
0x16e0   : > { %v3896_v34 = vmul.f32 %v6498_v31, %v6494_v21  ;;  %v6647_v31 = vld [vmem:[%s8515_s1 + $0x2] ss:$0 sm:$0xff] }
0x16e3   : > { %v6500_v32 = vpop.eup %6499 }
0x16e4   : > { %v3897_v9 = vmul.f32 %v6500_v32, %v6496_v25 }
0x16e6   : > { %v3898_v36 = vpack.c.bf16 %v3897_v9, %v3896_v34 }
0x16e8   : > { %6099 = vmatmul.mubr.msk.bf16.vlgmr.msra.gmra.mxu0 %vm3628_vm6, %v3898_v36 }
0x16e9   : > { %6103 = vmatpush3.bf16.msra.mxu0 %v6620_v37  ;;  %6106 = vmatprep.mubr.msk.bf16.mxu0 %vm6782_vm0, %v6781_v0 }
0x16ea   : > { %6104 = vmatprep.subr.bf16.mxu0 %v6781_v0 }
0x16ed   : > { %6105 = vmatpush3.bf16.msra.mxu0 %v6621_v38 }
0x16ee   : > { %6118 = vmatprep.subr.bf16.mxu0 %v6781_v0 }
0x17a8   : > { %v3940_v40 = vpop.f32.mrf.mxu0 }
0x17aa   : > { %v6100_v41 = vpop.f32.mrf.mxu0 }
0x17ac   : > { %v3943_v43 = vpop.f32.mrf.mxu0 }
0x17ad   : > { %v3947_v44 = vpack.c.bf16 %v3943_v43, %v3940_v40 }
0x17ae   : > { %v6101_v42 = vpop.f32.mrf.mxu0 }
0x17af   : > { %6107 = vmatmul.mubr.msk.bf16.vlgmr.msra.gmra.mxu0 %vm1505_vm1, %v3947_v44 }
0x17b0   : > { %6119 = vmatpush3.bf16.msra.mxu0 %v6622_v2  ;;  %6134 = vmatprep.mubr.msk.bf16.mxu0 %vm6782_vm0, %v6781_v0 }
0x17b1   : > { %6120 = vmatprep.subr.bf16.mxu0 %v6781_v0 }
0x17b4   : > { %6121 = vmatpush3.bf16.msra.mxu0 %v6623_v39 }
0x17b5   : > { %6122 = vmatprep.subr.bf16.mxu0 %v6781_v0 }
0x17b8   : > { %6123 = vmatpush3.bf16.msra.mxu0 %v6624_v45 }
0x17b9   : > { %6124 = vmatprep.subr.bf16.mxu0 %v6781_v0 }
0x17bc   : > { %6125 = vmatpush3.bf16.msra.mxu0 %v6625_v46 }
0x17bd   : > { %6126 = vmatprep.subr.bf16.mxu0 %v6781_v0 }
0x17c0   : > { %6127 = vmatpush3.bf16.msra.mxu0 %v6626_v47 }
0x17c1   : > { %6128 = vmatprep.subr.bf16.mxu0 %v6781_v0 }
0x17c4   : > { %6129 = vmatpush3.bf16.msra.mxu0 %v6627_v49 }
0x17c5   : > { %6130 = vmatprep.subr.bf16.mxu0 %v6781_v0 }
0x17c8   : > { %6131 = vmatpush3.bf16.msra.mxu0 %v6628_v51 }
0x17c9   : > { %6132 = vmatprep.subr.bf16.mxu0 %v6781_v0 }
0x17cc   : > { %6133 = vmatpush3.bf16.msra.mxu0 %v6629_v52 }
0x17cd   : > { %6158 = vmatprep.subr.bf16.mxu0 %v6781_v0 }
0x17cf   : > { %6135 = vmatmul.mubr.bf16.vlgmr.msra.gmra.mxu0 %v7700_v14 }
0x17d0   : > { %6159 = vmatpush3.bf16.msra.mxu0 %v6630_v53  ;;  %6174 = vmatprep.mubr.msk.bf16.mxu0 %vm6782_vm0, %v6781_v0 }
0x17d1   : > { %6160 = vmatprep.subr.bf16.mxu0 %v6781_v0 }
0x17d4   : > { %6161 = vmatpush3.bf16.msra.mxu0 %v6631_v54 }
0x17d5   : > { %6162 = vmatprep.subr.bf16.mxu0 %v6781_v0 }
0x17d8   : > { %6163 = vmatpush3.bf16.msra.mxu0 %v6632_v55 }
0x17d9   : > { %6164 = vmatprep.subr.bf16.mxu0 %v6781_v0 }
0x17dc   : > { %6165 = vmatpush3.bf16.msra.mxu0 %v6633_v20 }
0x17dd   : > { %6166 = vmatprep.subr.bf16.mxu0 %v6781_v0 }
0x17e0   : > { %6167 = vmatpush3.bf16.msra.mxu0 %v6634_v50 }
0x17e1   : > { %6168 = vmatprep.subr.bf16.mxu0 %v6781_v0 }
0x17e4   : > { %6169 = vmatpush3.bf16.msra.mxu0 %v6635_v56 }
0x17e5   : > { %6170 = vmatprep.subr.bf16.mxu0 %v6781_v0 }
0x17e8   : > { %6171 = vmatpush3.bf16.msra.mxu0 %v6636_v57  ;;  %v6648_v57 = vld [vmem:[%s8478_s13 + $0x2] ss:$0 sm:$0xff] }
0x17e9   : > { %6172 = vmatprep.subr.bf16.mxu0 %v6781_v0 }
0x17ec   : > { %6173 = vmatpush3.bf16.msra.mxu0 %v6637_v59 }
0x17ed   : > { %6218 = vmatprep.subr.bf16.mxu0 %v6781_v0 }
0x17ef   : > { %6175 = vmatmul.mubr.bf16.vlgmr.msra.gmra.mxu0 %v7740_v28 }
0x17f0   : > { %6219 = vmatpush3.bf16.msra.mxu0 %v6638_v62  ;;  %6234 = vmatprep.mubr.msk.bf16.mxu0 %vm6782_vm0, %v6781_v0 }
0x17f1   : > { %6220 = vmatprep.subr.bf16.mxu0 %v6781_v0 }
0x17f4   : > { %6221 = vmatpush3.bf16.msra.mxu0 %v6639_v63 }
0x17f5   : > { %6222 = vmatprep.subr.bf16.mxu0 %v6781_v0 }
0x17f8   : > { %6223 = vmatpush3.bf16.msra.mxu0 %v6641_v7 }
0x17f9   : > { %6224 = vmatprep.subr.bf16.mxu0 %v6781_v0 }
0x17fc   : > { %6225 = vmatpush3.bf16.msra.mxu0 %v6642_v12 }
0x17fd   : > { %6226 = vmatprep.subr.bf16.mxu0 %v6781_v0 }
0x1800   : > { %6227 = vmatpush3.bf16.msra.mxu0 %v6643_v13  ;;  %v6649_v13 = vld [vmem:[#allocation2 + $0x28] sm:$0xff]  }
0x1801   : > { %6228 = vmatprep.subr.bf16.mxu0 %v6781_v0 }
0x1804   : > { %6229 = vmatpush3.bf16.msra.mxu0 %v6644_v16  ;;  %v6650_v16 = vld [vmem:[#allocation2 + $0x20] sm:$0xff]  }
0x1805   : > { %6230 = vmatprep.subr.bf16.mxu0 %v6781_v0 }
0x1808   : > { %6231 = vmatpush3.bf16.msra.mxu0 %v6645_v18 }
0x1809   : > { %6232 = vmatprep.subr.bf16.mxu0 %v6781_v0 }
0x180c   : > { %6233 = vmatpush3.bf16.msra.mxu0 %v6646_v19 }
0x180d   : > { %6258 = vmatprep.subr.bf16.mxu0 %v6781_v0 }
0x180f   : > { %6235 = vmatmul.mubr.bf16.vlgmr.msra.gmra.mxu0 %v7740_v28 }
0x1810   : > { %6260 = vmatprep.mubr.msk.bf16.mxu0 %vm6782_vm0, %v6781_v0 }
0x186f   : > { %v8141_v23 = vpop.f32.mrf.mxu0 }
0x1871   : > { %v6108_v21 = vpop.f32.mrf.mxu0 }
0x1873   : > { %v8143_v24 = vpop.f32.mrf.mxu0 }
0x1875   : > { %v6109_v25 = vpop.f32.mrf.mxu0 }
0x188f   : > { %v4070_v27 = vpop.f32.mrf.mxu0 }
0x1890   : > { %v4071_v32 = vadd.f32 %v6647_v31, %v4070_v27 }
0x1891   : > { %v6136_v29 = vpop.f32.mrf.mxu0 }
0x1892   : > { %v6651_v29 = vld [vmem:[%s8511_s4 + $0xf8] sm:$0xff]  }
0x1893   : > { %v4073_v30 = vpop.f32.mrf.mxu0 }
0x1894   : > { %v4074_v34 = vadd.f32 %v6647_v31, %v4073_v30  ;;  %v6652_v30 = vld [vmem:[%s8511_s4 + $0xf0] sm:$0xff]   ;;  %v6653_v31 = vld [vmem:[%s8511_s4 + $0xe8] sm:$0xff]  }
0x1895   : > { %v6137_v9 = vpop.f32.mrf.mxu0 }
0x1896   : > { %v4157_v36 = vpack.c.bf16 %v4074_v34, %v4071_v32  ;;  %v6654_v32 = vld [vmem:[%s8511_s4 + $0xe0] sm:$0xff]   ;;  %v6655_v34 = vld [vmem:[%s8511_s4 + $0xd8] sm:$0xff]   ;;  %v6656_v9 = vld [vmem:[%s8511_s4 + $0xd0] sm:$0xff]  }
0x1898   : > { %6181 = vmatmul.mubr.msk.bf16.vlgmr.msra.gmra.mxu1 %vm1505_vm1, %v4157_v36  ;;  %v6657_v36 = vld [vmem:[%s8511_s4 + $0xc8] sm:$0xff]  }
0x1899   : > { %6186 = vmatprep.mubr.msk.bf16.mxu1 %vm6782_vm0, %v6781_v0 }
0x18af   : > { %v4151_v56 = vpop.f32.mrf.mxu0 }
0x18b0   : > { %v4152_v59 = vadd.f32 %v6648_v57, %v4151_v56 }
0x18b1   : > { %v6176_v62 = vpop.f32.mrf.mxu0 }
0x18b2   : > { %v4233_v63 = vpack.c.bf16 %v4152_v59, %v4152_v59  ;;  %v6675_v59 = vld [vmem:[%s8485_s20 + $0x20] sm:$0xff]   ;;  %v6676_v62 = vld [vmem:[%s8485_s20 + $0x58] sm:$0xff]  }
0x18b3   : > { %v4154_v1 = vpop.f32.mrf.mxu0 }
0x18b4   : > { %v4238_v3 = vsel %vm3656_vm9, %v4233_v63, 0  ;;  %v6677_v63 = vld [vmem:[%s8485_s20 + $0x18] sm:$0xff]   ;;  %v6678_v1 = vld [vmem:[%s8485_s20 + $0x50] sm:$0xff]  }
0x18b5   : > { %v6177_v4 = vpop.f32.mrf.mxu0  ;;  %6185 = vmatpush3.bf16.msra.mxu1 %v4238_v3  ;;  %v6679_v3 = vld [vmem:[%s8485_s20 + $0x10] sm:$0xff]  }
0x18b6   : > { %6190 = vmatprep.subr.bf16.mxu1 %v6781_v0  ;;  %v6680_v4 = vld [vmem:[%s8485_s20 + $0x48] sm:$0xff]  }
0x1958   : > { %v4199_v37 = vpop.f32.mrf.mxu1 }
0x1959   : > { %v4206_v38 = vmul.f32 0.17677669, %v4199_v37  ;;  %v6658_v37 = vld [vmem:[%s8511_s4 + $0xc0] sm:$0xff]  }
0x195a   : > { %v6182_v40 = vpop.f32.mrf.mxu1 }
0x195b   : > { %v4208_v41 = vsel %vm3452_vm7, -1e+09, %v4206_v38  ;;  %v6659_v38 = vld [vmem:[%s8477_s12 + $0xf8] sm:$0xff]   ;;  %v6660_v40 = vld [vmem:[%s8477_s12 + $0xf0] sm:$0xff]  }
0x195c   : > { %v4202_v43 = vpop.f32.mrf.mxu1  ;;  %v4210_v44 = vsel %vm3628_vm6, %v4208_v41, -inf }
0x195d   : > { %v4207_v42 = vmul.f32 0.17677669, %v4202_v43  ;;  %4211 = vmax.xlane.f32.xlu0 %v4210_v44  ;;  %v6663_v43 = vld [vmem:[%s8477_s12 + $0xd8] sm:$0xff]   ;;  %v6664_v44 = vld [vmem:[%s8477_s12 + $0xd0] sm:$0xff]  }
0x195e   : > { %v6183_v2 = vpop.f32.mrf.mxu1 }
0x195f   : > { %v4209_v39 = vsel %vm3453_vm8, -1e+09, %v4207_v42  ;;  %v6665_v42 = vld [vmem:[%s8477_s12 + $0xc8] sm:$0xff]   ;;  %v6666_v2 = vld [vmem:[%s8477_s12 + $0xc0] sm:$0xff]  }
0x1960   : > { %v4213_v45 = vsel %vm3628_vm6, %v4209_v39, -inf }
0x1961   : > { %4214 = vmax.xlane.f32.xlu1 %v4213_v45  ;;  %v6668_v45 = vld [vmem:[%s8485_s20 + $0x38] sm:$0xff]  }
0x19e6   : > { %v4212_v46 = vpop.xlane.xlu0 %4211 }
0x19e7   : > { %v4216_v47 = vsub.f32 %v4208_v41, %v4212_v46  ;;  %v6662_v41 = vld [vmem:[%s8477_s12 + $0xe0] sm:$0xff]   ;;  %v6669_v46 = vld [vmem:[%s8485_s20 + $0x70] sm:$0xff]  }
0x19e9   : > { %v4218_v49 = vmul.f32 1.442695, %v4216_v47  ;;  %v6670_v47 = vld [vmem:[%s8485_s20 + $0x30] sm:$0xff]  }
0x19ea   : > { %v4215_v51 = vpop.xlane.xlu1 %4214 }
0x19eb   : > { %6501 = vpow2.f32 %v4218_v49  ;;  %v4217_v52 = vsub.f32 %v4209_v39, %v4215_v51  ;;  %v6667_v39 = vld [vmem:[%s8485_s20 + $0x78] sm:$0xff]   ;;  %v4403_v49 = vpop.f32.mrf.mxu0  ;;  %v6672_v51 = vld [vmem:[%s8476_s11 + $0x3] ss:$0 sm:$0xff] }
0x19ed   : > { %v4220_v53 = vmul.f32 1.442695, %v4217_v52  ;;  %v4404_v52 = vadd.f32 %v6672_v51, %v4403_v49  ;;  %v6685_v49 = vld [vmem:[%s8478_s13 + $0x3] ss:$0 sm:$0xff] }
0x19ef   : > { %6503 = vpow2.f32 %v4220_v53  ;;  %v6236_v53 = vpop.f32.mrf.mxu0 }
0x19f8   : > { %v6502_v54 = vpop.eup %6501 }
0x19f9   : > { %v4222_v55 = vsel %vm3628_vm6, %v6502_v54, 0.0 }
0x19fa   : > { %4223 = vadd.xlane.f32.xlu0 %v4222_v55  ;;  %v6673_v55 = vld [vmem:[%s8485_s20 + $0x28] sm:$0xff]  }
0x19fc   : > { %v6504_v20 = vpop.eup %6503 }
0x19fd   : > { %v4225_v50 = vsel %vm3628_vm6, %v6504_v20, 0.0 }
0x19fe   : > { %4226 = vadd.xlane.f32.xlu1 %v4225_v50  ;;  %v6674_v50 = vld [vmem:[%s8485_s20 + $0x60] sm:$0xff]  }
0x1a83   : > { %v4224_v5 = vpop.xlane.xlu0 %4223 }
0x1a84   : > { %6505 = vrcp.f32 %v4224_v5  ;;  %v6681_v5 = vld [vmem:[%s8485_s20 + $0x8] sm:$0xff]  }
0x1a87   : > { %v4227_v6 = vpop.xlane.xlu1 %4226 }
0x1a88   : > { %6507 = vrcp.f32 %v4227_v6  ;;  %v6682_v6 = vld [vmem:[%s8485_s20 + $0x40] sm:$0xff]  }
0x1a91   : > { %v6506_v7 = vpop.eup %6505 }
0x1a92   : > { %v4230_v10 = vmul.f32 %v6506_v7, %v6502_v54  ;;  %v4450_v54 = vpack.c.bf16 %v4404_v52, %v4404_v52  ;;  %v6683_v7 = vld [vmem:[%s8485_s20] sm:$0xff]  }
0x1a94   : > { %v4455_v56 = vsel %vm1505_vm1, %v4450_v54, 0 }
0x1a95   : > { %v6508_v8 = vpop.eup %6507  ;;  %6259 = vmatpush3.bf16.xpose.msra.mxu0 %v4455_v56 }
0x1a96   : > { %v4231_v11 = vmul.f32 %v6508_v8, %v6504_v20  ;;  %v4406_v20 = vpop.f32.mrf.mxu0  ;;  %6264 = vmatprep.subr.bf16.mxu0 %v6781_v0  ;;  %v4030_v8 = vadd.f32 %v8011_v58, %v8141_v23 }
0x1a98   : > { %v4232_v12 = vpack.c.bf16 %v4231_v11, %v4230_v10  ;;  %v6237_v57 = vpop.f32.mrf.mxu0 }
0x1a9a   : > { %6187 = vmatmul.mubr.msk.bf16.vlgmr.msra.gmra.mxu1 %vm3628_vm6, %v4232_v12 }
0x1a9b   : > { %6191 = vmatpush3.bf16.msra.mxu1 %v6649_v13  ;;  %6194 = vmatprep.mubr.msk.bf16.mxu1 %vm6782_vm0, %v6781_v0  ;;  %v4033_v13 = vadd.f32 %v8013_v60, %v8143_v24 }
0x1a9c   : > { %6192 = vmatprep.subr.bf16.mxu1 %v6781_v0 }
0x1a9f   : > { %6193 = vmatpush3.bf16.msra.mxu1 %v6650_v16 }
0x1aa0   : > { %6198 = vmatprep.subr.bf16.mxu1 %v6781_v0 }
0x1b5a   : > { %v4274_v18 = vpop.f32.mrf.mxu1 }
0x1b5c   : > { %v6188_v19 = vpop.f32.mrf.mxu1 }
0x1b5e   : > { %v4277_v21 = vpop.f32.mrf.mxu1 }
0x1b5f   : > { %v4281_v25 = vpack.c.bf16 %v4277_v21, %v4274_v18 }
0x1b60   : > { %v6189_v27 = vpop.f32.mrf.mxu1 }
0x1b61   : > { %6195 = vmatmul.mubr.msk.bf16.vlgmr.msra.gmra.mxu1 %vm1505_vm1, %v4281_v25 }
0x1b62   : > { %6199 = vmatpush3.bf16.msra.mxu1 %v6651_v29  ;;  %6214 = vmatprep.mubr.msk.bf16.mxu1 %vm6782_vm0, %v6781_v0  ;;  %v6684_v29 = vld [vmem:[%s8515_s1 + $0x3] ss:$0 sm:$0xff] }
0x1b63   : > { %6200 = vmatprep.subr.bf16.mxu1 %v6781_v0 }
0x1b66   : > { %6201 = vmatpush3.bf16.msra.mxu1 %v6652_v30 }
0x1b67   : > { %6202 = vmatprep.subr.bf16.mxu1 %v6781_v0 }
0x1b6a   : > { %6203 = vmatpush3.bf16.msra.mxu1 %v6653_v31 }
0x1b6b   : > { %6204 = vmatprep.subr.bf16.mxu1 %v6781_v0 }
0x1b6e   : > { %6205 = vmatpush3.bf16.msra.mxu1 %v6654_v32 }
0x1b6f   : > { %6206 = vmatprep.subr.bf16.mxu1 %v6781_v0 }
0x1b72   : > { %6207 = vmatpush3.bf16.msra.mxu1 %v6655_v34 }
0x1b73   : > { %6208 = vmatprep.subr.bf16.mxu1 %v6781_v0 }
0x1b76   : > { %6209 = vmatpush3.bf16.msra.mxu1 %v6656_v9 }
0x1b77   : > { %6210 = vmatprep.subr.bf16.mxu1 %v6781_v0 }
0x1b7a   : > { %6211 = vmatpush3.bf16.msra.mxu1 %v6657_v36 }
0x1b7b   : > { %6212 = vmatprep.subr.bf16.mxu1 %v6781_v0 }
0x1b7e   : > { %6213 = vmatpush3.bf16.msra.mxu1 %v6658_v37 }
0x1b7f   : > { %6238 = vmatprep.subr.bf16.mxu1 %v6781_v0 }
0x1b81   : > { %6215 = vmatmul.mubr.bf16.vlgmr.msra.gmra.mxu1 %v7700_v14  ;;  %v6661_v14 = vld [vmem:[%s8477_s12 + $0xe8] sm:$0xff]  }
0x1b82   : > { %6239 = vmatpush3.bf16.msra.mxu1 %v6659_v38  ;;  %6254 = vmatprep.mubr.msk.bf16.mxu1 %vm6782_vm0, %v6781_v0 }
0x1b83   : > { %6240 = vmatprep.subr.bf16.mxu1 %v6781_v0 }
0x1b86   : > { %6241 = vmatpush3.bf16.msra.mxu1 %v6660_v40 }
0x1b87   : > { %6242 = vmatprep.subr.bf16.mxu1 %v6781_v0 }
0x1b8a   : > { %6243 = vmatpush3.bf16.msra.mxu1 %v6661_v14 }
0x1b8b   : > { %6244 = vmatprep.subr.bf16.mxu1 %v6781_v0 }
0x1b8e   : > { %6245 = vmatpush3.bf16.msra.mxu1 %v6662_v41 }
0x1b8f   : > { %6246 = vmatprep.subr.bf16.mxu1 %v6781_v0 }
0x1b92   : > { %6247 = vmatpush3.bf16.msra.mxu1 %v6663_v43 }
0x1b93   : > { %6248 = vmatprep.subr.bf16.mxu1 %v6781_v0 }
0x1b96   : > { %6249 = vmatpush3.bf16.msra.mxu1 %v6664_v44 }
0x1b97   : > { %6250 = vmatprep.subr.bf16.mxu1 %v6781_v0 }
0x1b9a   : > { %6251 = vmatpush3.bf16.msra.mxu1 %v6665_v42 }
0x1b9b   : > { %6252 = vmatprep.subr.bf16.mxu1 %v6781_v0 }
0x1b9e   : > { %6253 = vmatpush3.bf16.msra.mxu1 %v6666_v2 }
0x1b9f   : > { %5616 = vmatprep.subr.bf16.mxu1 %v6667_v39 }
0x1ba1   : > { %6255 = vmatmul.mubr.bf16.vlgmr.msra.gmra.mxu1 %v7740_v28  ;;  %v6671_v28 = vld [vmem:[%s8485_s20 + $0x68] sm:$0xff]  }
0x1ba2   : > { %5617 = vmatpush3.bf16.msra.mxu1 %v6668_v45 }
0x1ba3   : > { %5618 = vmatprep.subr.bf16.mxu1 %v6669_v46 }
0x1ba6   : > { %5619 = vmatpush3.bf16.msra.mxu1 %v6670_v47 }
0x1ba7   : > { %5620 = vmatprep.subr.bf16.mxu1 %v6671_v28 }
0x1baa   : > { %5621 = vmatpush3.bf16.msra.mxu1 %v6673_v55 }
0x1bab   : > { %5622 = vmatprep.subr.bf16.mxu1 %v6674_v50 }
0x1bae   : > { %5623 = vmatpush3.bf16.msra.mxu1 %v6675_v59 }
0x1baf   : > { %5624 = vmatprep.subr.bf16.mxu1 %v6676_v62 }
0x1bb2   : > { %5625 = vmatpush3.bf16.msra.mxu1 %v6677_v63 }
0x1bb3   : > { %5626 = vmatprep.subr.bf16.mxu1 %v6678_v1  ;;  %v6686_v1 = vld [vmem:[#allocation2 + $0x38] sm:$0xff]  }
0x1bb6   : > { %5627 = vmatpush3.bf16.msra.mxu1 %v6679_v3  ;;  %v6687_v3 = vld [vmem:[#allocation2 + $0x30] sm:$0xff]  }
0x1bb7   : > { %5628 = vmatprep.subr.bf16.mxu1 %v6680_v4  ;;  %v6688_v4 = vld [vmem:[%s8483_s18 + $0x74] ss:$8 sps:$4 sm:$0xff]  }
0x1bba   : > { %5629 = vmatpush3.bf16.msra.mxu1 %v6681_v5 }
0x1bbb   : > { %5630 = vmatprep.subr.bf16.mxu1 %v6682_v6 }
0x1bbe   : > { %5631 = vmatpush3.bf16.msra.mxu1 %v6683_v7 }
0x1c21   : > { %v4319_v10 = vpop.f32.mrf.mxu1 }
0x1c22   : > { %v8294_v11 = vadd.f32 %v4319_v10, %v4030_v8 }
0x1c23   : > { %v6196_v12 = vpop.f32.mrf.mxu1 }
0x1c24   : > { %v6689_v12 = vld [vmem:[%s8483_s18 + $0x70] ss:$8 sps:$4 sm:$0xff]  }
0x1c25   : > { %v4322_v16 = vpop.f32.mrf.mxu1 }
0x1c26   : > { %v8298_v18 = vadd.f32 %v4322_v16, %v4033_v13  ;;  %v6691_v13 = vld [vmem:[%s8483_s18 + $0x60] ss:$8 sps:$4 sm:$0xff]   ;;  %v6692_v16 = vld [vmem:[%s8483_s18 + $0x54] ss:$8 sps:$4 sm:$0xff]  }
0x1c27   : > { %v6197_v19 = vpop.f32.mrf.mxu1 }
0x1c28   : > { %v6693_v19 = vld [vmem:[%s8483_s18 + $0x50] ss:$8 sps:$4 sm:$0xff]  }
0x1c41   : > { %v4362_v21 = vpop.f32.mrf.mxu1 }
0x1c42   : > { %v4363_v30 = vadd.f32 %v6684_v29, %v4362_v21  ;;  %v6695_v21 = vld [vmem:[%s8483_s18 + $0x40] ss:$8 sps:$4 sm:$0xff]  }
0x1c43   : > { %v6216_v25 = vpop.f32.mrf.mxu1 }
0x1c44   : > { %v6696_v25 = vld [vmem:[%s8483_s18 + $0x34] ss:$8 sps:$4 sm:$0xff]  }
0x1c45   : > { %v4365_v27 = vpop.f32.mrf.mxu1 }
0x1c46   : > { %v4366_v58 = vadd.f32 %v6684_v29, %v4365_v27  ;;  %v6697_v27 = vld [vmem:[%s8483_s18 + $0x30] ss:$8 sps:$4 sm:$0xff]   ;;  %v6698_v29 = vld [vmem:[%s8483_s18 + $0x24] ss:$8 sps:$4 sm:$0xff]  }
0x1c47   : > { %v6217_v23 = vpop.f32.mrf.mxu1 }
0x1c48   : > { %v4449_v31 = vpack.c.bf16 %v4366_v58, %v4363_v30  ;;  %v6699_v30 = vld [vmem:[%s8483_s18 + $0x20] ss:$8 sps:$4 sm:$0xff]   ;;  %v6700_v58 = vld [vmem:[%s8483_s18 + $0x14] ss:$8 sps:$4 sm:$0xff]   ;;  %v6701_v23 = vld [vmem:[%s8483_s18 + $0x10] ss:$8 sps:$4 sm:$0xff]  }
0x1c4a   : > { %6261 = vmatmul.mubr.msk.bf16.vlgmr.msra.gmra.mxu0 %vm1505_vm1, %v4449_v31  ;;  %v6702_v31 = vld [vmem:[%s8483_s18 + $0x4] ss:$8 sps:$4 sm:$0xff]  }
0x1c4b   : > { %6266 = vmatprep.mubr.msk.bf16.mxu0 %vm6782_vm0, %v6781_v0 }
0x1c61   : > { %v4443_v17 = vpop.f32.mrf.mxu1 }
0x1c62   : > { %v4444_v28 = vadd.f32 %v6685_v49, %v4443_v17 }
0x1c63   : > { %v6256_v51 = vpop.f32.mrf.mxu1 }
0x1c64   : > { %v4525_v52 = vpack.c.bf16 %v4444_v28, %v4444_v28 }
0x1c65   : > { %v4446_v53 = vpop.f32.mrf.mxu1 }
0x1c66   : > { %v4530_v54 = vsel %vm3656_vm9, %v4525_v52, 0 }
0x1c67   : > { %v6257_v55 = vpop.f32.mrf.mxu1  ;;  %6265 = vmatpush3.bf16.msra.mxu0 %v4530_v54 }
0x1c68   : > { %6270 = vmatprep.subr.bf16.mxu0 %v6781_v0 }
0x1d0a   : > { %v4491_v60 = vpop.f32.mrf.mxu0 }
0x1d0b   : > { %v4498_v24 = vmul.f32 0.17677669, %v4491_v60  ;;  %v6703_v60 = vld [vmem:[%s8483_s18] ss:$8 sps:$4 sm:$0xff]  }
0x1d0c   : > { %v6262_v32 = vpop.f32.mrf.mxu0 }
0x1d0d   : > { %v4500_v34 = vsel %vm3452_vm7, -1e+09, %v4498_v24 }
0x1d0e   : > { %v4494_v9 = vpop.f32.mrf.mxu0  ;;  %v4502_v36 = vsel %vm3628_vm6, %v4500_v34, -inf }
0x1d0f   : > { %v4499_v37 = vmul.f32 0.17677669, %v4494_v9  ;;  %4503 = vmax.xlane.f32.xlu0 %v4502_v36  ;;  %v6704_v9 = vld [vmem:[%s8480_s15] ss:$0 sm:$0xff] }
0x1d10   : > { %v6263_v38 = vpop.f32.mrf.mxu0 }
0x1d11   : > { %v4501_v40 = vsel %vm3453_vm8, -1e+09, %v4499_v37 }
0x1d12   : > { %v4505_v14 = vsel %vm3628_vm6, %v4501_v40, -inf }
0x1d13   : > { %4506 = vmax.xlane.f32.xlu1 %v4505_v14 }
0x1d98   : > { %v4504_v41 = vpop.xlane.xlu0 %4503 }
0x1d99   : > { %v4508_v43 = vsub.f32 %v4500_v34, %v4504_v41 }
0x1d9b   : > { %v4510_v44 = vmul.f32 1.442695, %v4508_v43 }
0x1d9c   : > { %v4507_v42 = vpop.xlane.xlu1 %4506 }
0x1d9d   : > { %6509 = vpow2.f32 %v4510_v44  ;;  %v4509_v2 = vsub.f32 %v4501_v40, %v4507_v42  ;;  %v6705_v40 = vld [vmem:[%s7696_s9] sm:$0xff]  ;;  %v6706_v44 = vld [vmem:[%s7696_s9 + $0x8] sm:$0xff] }
0x1d9f   : > { %v4512_v15 = vmul.f32 1.442695, %v4509_v2 }
0x1da1   : > { %6511 = vpow2.f32 %v4512_v15 }
0x1daa   : > { %v6510_v39 = vpop.eup %6509 }
0x1dab   : > { %v4514_v45 = vsel %vm3628_vm6, %v6510_v39, 0.0 }
0x1dac   : > { %4515 = vadd.xlane.f32.xlu0 %v4514_v45 }
0x1dae   : > { %v6512_v46 = vpop.eup %6511 }
0x1daf   : > { %v4517_v47 = vsel %vm3628_vm6, %v6512_v46, 0.0 }
0x1db0   : > { %4518 = vadd.xlane.f32.xlu1 %v4517_v47 }
0x1e35   : > { %v4516_v20 = vpop.xlane.xlu0 %4515 }
0x1e36   : > { %6513 = vrcp.f32 %v4516_v20 }
0x1e39   : > { %v4519_v50 = vpop.xlane.xlu1 %4518 }
0x1e3a   : > { %6515 = vrcp.f32 %v4519_v50 }
0x1e43   : > { %v6514_v56 = vpop.eup %6513 }
0x1e44   : > { %v4522_v59 = vmul.f32 %v6514_v56, %v6510_v39 }
0x1e47   : > { %v6516_v57 = vpop.eup %6515 }
0x1e48   : > { %v4523_v62 = vmul.f32 %v6516_v57, %v6512_v46 }
0x1e4a   : > { %v4524_v63 = vpack.c.bf16 %v4523_v62, %v4522_v59 }
0x1e4c   : > { %6267 = vmatmul.mubr.msk.bf16.vlgmr.msra.gmra.mxu0 %vm3628_vm6, %v4524_v63 }
0x1e4d   : > { %6271 = vmatpush3.bf16.msra.mxu0 %v6686_v1  ;;  %6274 = vmatprep.mubr.msk.bf16.mxu0 %vm6782_vm0, %v6781_v0 }
0x1e4e   : > { %6272 = vmatprep.subr.bf16.mxu0 %v6781_v0  ;;  %v6690_v0 = vld [vmem:[%s8483_s18 + $0x64] ss:$8 sps:$4 sm:$0xff]  }
0x1e51   : > { %6273 = vmatpush3.bf16.msra.mxu0 %v6687_v3 }
0x1e52   : > { %4651 = vmatprep.subr.bf16.mxu0 %v6688_v4 }
0x1f0c   : > { %v4566_v5 = vpop.f32.mrf.mxu0 }
0x1f0e   : > { %v6268_v6 = vpop.f32.mrf.mxu0 }
0x1f10   : > { %v4569_v7 = vpop.f32.mrf.mxu0 }
0x1f11   : > { %v4573_v8 = vpack.c.bf16 %v4569_v7, %v4566_v5 }
0x1f12   : > { %v6269_v10 = vpop.f32.mrf.mxu0 }
0x1f13   : > { %6275 = vmatmul.mubr.msk.bf16.vlgmr.msra.gmra.mxu0 %vm1505_vm1, %v4573_v8 }
0x1f14   : > { %4652 = vmatpush1.bf16.msra.mxu0 %v6689_v12  ;;  %4683 = vmatprep.mubr.bf16.mxu0 %v6783_v22  ;;  %v6694_v22 = vld [vmem:[%s8483_s18 + $0x44] ss:$8 sps:$4 sm:$0xff]  }
0x1f15   : > { %4653 = vmatprep.subr.bf16.mxu0 %v6690_v0 }
0x1f18   : > { %4654 = vmatpush1.bf16.msra.mxu0 %v6691_v13 }
0x1f19   : > { %4655 = vmatprep.subr.bf16.mxu0 %v6692_v16 }
0x1f1c   : > { %4656 = vmatpush1.bf16.msra.mxu0 %v6693_v19 }
0x1f1d   : > { %4657 = vmatprep.subr.bf16.mxu0 %v6694_v22 }
0x1f20   : > { %4658 = vmatpush1.bf16.msra.mxu0 %v6695_v21 }
0x1f21   : > { %4659 = vmatprep.subr.bf16.mxu0 %v6696_v25 }
0x1f24   : > { %4660 = vmatpush1.bf16.msra.mxu0 %v6697_v27 }
0x1f25   : > { %4661 = vmatprep.subr.bf16.mxu0 %v6698_v29 }
0x1f28   : > { %4662 = vmatpush1.bf16.msra.mxu0 %v6699_v30 }
0x1f29   : > { %4663 = vmatprep.subr.bf16.mxu0 %v6700_v58 }
0x1f2c   : > { %4664 = vmatpush1.bf16.msra.mxu0 %v6701_v23 }
0x1f2d   : > { %4665 = vmatprep.subr.bf16.mxu0 %v6702_v31 }
0x1f30   : > { %4666 = vmatpush1.bf16.msra.mxu0 %v6703_v60  ;;  %v6707_v60 = vld [vmem:[#allocation4] ss:$0 sm:$0xff] }
0x1fd3   : > { %v4611_v24 = vpop.f32.mrf.mxu0 }
0x1fd4   : > { %v4618_v32 = vadd.f32 %v4611_v24, %v8294_v11  ;;  %v8383_v11 = vld [vmem:[%s8486_s21] ss:$0 sm:$0xff] }
0x1fd5   : > { %v6276_v34 = vpop.f32.mrf.mxu0  ;;  %v3367_v2 = vadd.f32 %v7849_v61, %v8383_v11 }
0x1fd6   : > { %v4620_v36 = vadd.f32 %v6704_v9, %v4618_v32 }
0x1fd7   : > { %v4614_v37 = vpop.f32.mrf.mxu0  ;;  %v3373_v15 = vmul.f32 0.70710677, %v3367_v2  ;;  %v3372_v5 = vmul.f32 0.5, %v3367_v2 }
0x1fd8   : > { %v4619_v38 = vadd.f32 %v4614_v37, %v8298_v18  ;;  %v4622_v14 = vadd.f32 %v6705_v40, %v4620_v36 }
0x1fd9   : > { %v6277_v41 = vpop.f32.mrf.mxu0  ;;  %v3376_v39 = vand.u32 2147483647, %v3373_v15  ;;  %vm3374_vm10 = vcmp.ge.f32.partialorder %v3373_v15, 0.0 }
0x1fda   : > { %v4621_v43 = vadd.f32 %v6704_v9, %v4619_v38  ;;  %4624 = vadd.xlane.f32.xlu0 %v4622_v14  ;;  %v3375_v62 = vsel %vm3374_vm10, 1.0, %v6784_v26 }
0x1fdb   : > { %v3377_v45 = vmul.f32 0.3275911, %v3376_v39  ;;  %v3390_v28 = vsub.f32 0.0, %v3376_v39 }
0x1fdc   : > { %v4623_v42 = vadd.f32 %v6706_v44, %v4621_v43 }
0x1fdd   : > { %v3378_v18 = vadd.f32 1.0, %v3377_v45  ;;  %v3391_v52 = vmul.f32 %v3390_v28, %v3376_v39 }
0x1fde   : > { %4626 = vadd.xlane.f32.xlu1 %v4623_v42 }
0x1fdf   : > { %6517 = vrcp.f32 %v3378_v18  ;;  %v3392_v54 = vmul.f32 1.442695, %v3391_v52 }
0x1fe1   : > { %6519 = vpow2.f32 %v3392_v54 }
0x1fec   : > { %v6518_v46 = vpop.eup %6517 }
0x1fed   : > { %v3381_v47 = vmul.f32 1.0614054, %v6518_v46 }
0x1fee   : > { %v6520_v61 = vpop.eup %6519 }
0x1fef   : > { %v3382_v17 = vadd.f32 -1.4531521, %v3381_v47 }
0x1ff1   : > { %v3383_v49 = vmul.f32 %v6518_v46, %v3382_v17 }
0x1ff3   : > { %v3384_v51 = vadd.f32 1.4214138, %v3383_v49 }
0x1ff5   : > { %v3385_v53 = vmul.f32 %v6518_v46, %v3384_v51 }
0x1ff7   : > { %v3386_v55 = vadd.f32 -0.28449672, %v3385_v53 }
0x1ff9   : > { %v3387_v20 = vmul.f32 %v6518_v46, %v3386_v55 }
0x1ffb   : > { %v3388_v50 = vadd.f32 0.2548296, %v3387_v20 }
0x1ffd   : > { %v3389_v56 = vmul.f32 %v6518_v46, %v3388_v50 }
0x1fff   : > { %v3394_v57 = vmul.f32 %v6520_v61, %v3389_v56 }
0x2001   : > { %v3395_v59 = vsub.f32 1.0, %v3394_v57 }
0x2003   : > { %v3396_v63 = vmul.f32 %v3395_v59, %v3375_v62 }
0x2005   : > { %v3397_v4 = vadd.f32 1.0, %v3396_v63 }
0x2007   : > { %v3398_v12 = vmul.f32 %v3397_v4, %v3372_v5 }
0x2009   : > { %v8389_v16 = vadd.f32 %v3398_v12, %v7605_v48  ;;  %v6708_v48 = vld [vmem:[%s8482_s17] ss:$0 sm:$0xff] }
0x2063   : > { %v4625_v1 = vpop.xlane.xlu0 %4624 }
0x2064   : > { %v4628_v3 = vmul.f32 0.0078125, %v4625_v1 }
0x2066   : > { %v4630_v6 = vsub.f32 %v4622_v14, %v4628_v3 }
0x2067   : > { %v4627_v7 = vpop.xlane.xlu1 %4626 }
0x2068   : > { %v4629_v8 = vmul.f32 0.0078125, %v4627_v7  ;;  %v4632_v10 = vmul.f32 %v4630_v6, %v4630_v6 }
0x206a   : > { %v4631_v0 = vsub.f32 %v4623_v42, %v4629_v8  ;;  %4634 = vadd.xlane.f32.xlu0 %v4632_v10 }
0x206c   : > { %v4633_v13 = vmul.f32 %v4631_v0, %v4631_v0 }
0x206e   : > { %4636 = vadd.xlane.f32.xlu1 %v4633_v13  ;;  %3400 = vadd.xlane.f32.xlu0 %v8389_v16 }
0x20f3   : > { %v4635_v19 = vpop.xlane.xlu0 %4634 }
0x20f4   : > { %v4638_v22 = vmul.f32 0.0078125, %v4635_v19 }
0x20f6   : > { %v4640_v21 = vadd.f32 1e-05, %v4638_v22 }
0x20f7   : > { %v4637_v25 = vpop.xlane.xlu1 %4636 }
0x20f8   : > { %6521 = vrsqrt.f32 %v4640_v21  ;;  %v4639_v27 = vmul.f32 0.0078125, %v4637_v25 }
0x20fa   : > { %v4641_v29 = vadd.f32 1e-05, %v4639_v27 }
0x20fc   : > { %6523 = vrsqrt.f32 %v4641_v29 }
0x2105   : > { %v6522_v30 = vpop.eup %6521 }
0x2106   : > { %v4644_v58 = vmul.f32 %v6522_v30, %v4630_v6 }
0x2108   : > { %v4646_v24 = vmul.f32 %v6707_v60, %v4644_v58 }
0x2109   : > { %v6524_v23 = vpop.eup %6523 }
0x210a   : > { %v4645_v31 = vmul.f32 %v6524_v23, %v4631_v0  ;;  %v8395_v34 = vadd.f32 %v6708_v48, %v4646_v24 }
0x210c   : > { %v4647_v32 = vmul.f32 %v6707_v60, %v4645_v31 }
0x210e   : > { %v8397_v9 = vadd.f32 %v6708_v48, %v4647_v32 }
0x2110   : > { %v4650_v36 = vpack.c.bf16 %v8397_v9, %v8395_v34 }
0x2112   : > { %4684 = vmatmul.mubr.bf16.vlgmr.msra.gmra.mxu0 %v4650_v36 }
0x21d2   : > { %v4685_v37 = vpop.f32.mrf.mxu0 }
0x21d3   : > { %v8402_v38 = vadd.f32 %v4685_v37, %v7753_v33 }
0x21d4   : > { %v4687_v40 = vpop.f32.mrf.mxu0 }
0x21d5   : > { %v8405_v14 = vmul.f32 0.70710677, %v8402_v38  ;;  %v8408_v41 = vadd.f32 %v4687_v40, %v7758_v35 }
0x21d6   : > { %v4689_v43 = vpop.f32.mrf.mxu0 }
0x21d7   : > { %v4710_v44 = vand.u32 2147483647, %v8405_v14  ;;  %v8412_v42 = vmul.f32 0.70710677, %v8408_v41  ;;  %v8415_v2 = vadd.f32 %v4689_v43, %v7753_v33  ;;  %vm4702_vm11 = vcmp.ge.f32.partialorder %v8405_v14, 0.0 }
0x21d8   : > { %v4691_v15 = vpop.f32.mrf.mxu0 }
0x21d9   : > { %v4714_v39 = vmul.f32 0.3275911, %v4710_v44  ;;  %v4711_v45 = vand.u32 2147483647, %v8412_v42  ;;  %v8419_v18 = vmul.f32 0.70710677, %v8415_v2  ;;  %v8422_v46 = vadd.f32 %v4691_v15, %v7758_v35 }
0x21da   : > { %v4766_v20 = vsub.f32 0.0, %v4710_v44  ;;  %vm4703_vm12 = vcmp.ge.f32.partialorder %v8412_v42, 0.0 }
0x21db   : > { %v4718_v47 = vadd.f32 1.0, %v4714_v39  ;;  %v4715_v17 = vmul.f32 0.3275911, %v4711_v45  ;;  %v4712_v49 = vand.u32 2147483647, %v8419_v18  ;;  %v4767_v35 = vsub.f32 0.0, %v4711_v45 }
0x21dc   : > { %v8426_v28 = vmul.f32 0.70710677, %v8422_v46  ;;  %v4770_v50 = vmul.f32 %v4766_v20, %v4710_v44  ;;  %vm4704_vm13 = vcmp.ge.f32.partialorder %v8419_v18, 0.0 }
0x21dd   : > { %6525 = vrcp.f32 %v4718_v47  ;;  %v4719_v33 = vadd.f32 1.0, %v4715_v17  ;;  %v4716_v51 = vmul.f32 0.3275911, %v4712_v49  ;;  %v4768_v56 = vsub.f32 0.0, %v4712_v49 }
0x21de   : > { %v4713_v52 = vand.u32 2147483647, %v8426_v28  ;;  %v4771_v57 = vmul.f32 %v4767_v35, %v4711_v45  ;;  %v4774_v63 = vmul.f32 1.442695, %v4770_v50  ;;  %vm4705_vm14 = vcmp.ge.f32.partialorder %v8426_v28, 0.0 }
0x21df   : > { %6527 = vrcp.f32 %v4719_v33  ;;  %v4720_v53 = vadd.f32 1.0, %v4716_v51  ;;  %v4772_v1 = vmul.f32 %v4768_v56, %v4712_v49  ;;  %v4709_v18 = vsel %vm4705_vm14, 1.0, %v6784_v26 }
0x21e0   : > { %v4717_v54 = vmul.f32 0.3275911, %v4713_v52  ;;  %v4769_v62 = vsub.f32 0.0, %v4713_v52  ;;  %v4776_v6 = vmul.f32 1.442695, %v4771_v57 }
0x21e1   : > { %6529 = vrcp.f32 %v4720_v53  ;;  %v4778_v13 = vmul.f32 1.442695, %v4772_v1 }
0x21e2   : > { %v4721_v55 = vadd.f32 1.0, %v4717_v54  ;;  %v4773_v10 = vmul.f32 %v4769_v62, %v4713_v52 }
0x21e4   : > { %6531 = vrcp.f32 %v4721_v55  ;;  %v4780_v30 = vmul.f32 1.442695, %v4773_v10 }
0x21e5   : > { %6533 = vpow2.f32 %v4774_v63 }
0x21e6   : > { %6535 = vpow2.f32 %v4776_v6 }
0x21e7   : > { %6537 = vpow2.f32 %v4778_v13 }
0x21e8   : > { %6539 = vpow2.f32 %v4780_v30 }
0x21ea   : > { %v6526_v61 = vpop.eup %6525 }
0x21eb   : > { %v4730_v59 = vmul.f32 1.0614054, %v6526_v61 }
0x21ec   : > { %v6528_v3 = vpop.eup %6527 }
0x21ed   : > { %v4734_v4 = vadd.f32 -1.4531521, %v4730_v59  ;;  %v4731_v5 = vmul.f32 1.0614054, %v6528_v3 }
0x21ee   : > { %v6530_v7 = vpop.eup %6529 }
0x21ef   : > { %v4738_v8 = vmul.f32 %v6526_v61, %v4734_v4  ;;  %v4735_v12 = vadd.f32 -1.4531521, %v4731_v5  ;;  %v4732_v0 = vmul.f32 1.0614054, %v6530_v7  ;;  %v4707_v4 = vsel %vm4703_vm12, 1.0, %v6784_v26 }
0x21f1   : > { %v4742_v19 = vadd.f32 1.4214138, %v4738_v8  ;;  %v6532_v22 = vpop.eup %6531  ;;  %v4739_v21 = vmul.f32 %v6528_v3, %v4735_v12  ;;  %v4736_v25 = vadd.f32 -1.4531521, %v4732_v0 }
0x21f2   : > { %v4733_v29 = vmul.f32 1.0614054, %v6532_v22  ;;  %v6534_v33 = vpop.eup %6533 }
0x21f3   : > { %v4746_v27 = vmul.f32 %v6526_v61, %v4742_v19  ;;  %v4743_v58 = vadd.f32 1.4214138, %v4739_v21  ;;  %v4740_v23 = vmul.f32 %v6530_v7, %v4736_v25  ;;  %v6536_v55 = vpop.eup %6535  ;;  %v4695_v21 = vmul.f32 0.5, %v8408_v41 }
0x21f4   : > { %v4737_v60 = vadd.f32 -1.4531521, %v4733_v29  ;;  %v6538_v56 = vpop.eup %6537  ;;  %v4697_v25 = vmul.f32 0.5, %v8422_v46  ;;  %v4694_v29 = vmul.f32 0.5, %v8402_v38 }
0x21f5   : > { %v4750_v31 = vadd.f32 -0.28449672, %v4746_v27  ;;  %v4747_v24 = vmul.f32 %v6528_v3, %v4743_v58  ;;  %v4744_v32 = vadd.f32 1.4214138, %v4740_v23  ;;  %v6540_v1 = vpop.eup %6539 }
0x21f6   : > { %v4741_v36 = vmul.f32 %v6532_v22, %v4737_v60 }
0x21f7   : > { %v4754_v48 = vmul.f32 %v6526_v61, %v4750_v31  ;;  %v4751_v37 = vadd.f32 -0.28449672, %v4747_v24  ;;  %v4748_v40 = vmul.f32 %v6530_v7, %v4744_v32 }
0x21f8   : > { %v4745_v44 = vadd.f32 1.4214138, %v4741_v36 }
0x21f9   : > { %v4758_v43 = vadd.f32 0.2548296, %v4754_v48  ;;  %v4755_v15 = vmul.f32 %v6528_v3, %v4751_v37  ;;  %v4752_v39 = vadd.f32 -0.28449672, %v4748_v40 }
0x21fa   : > { %v4749_v47 = vmul.f32 %v6532_v22, %v4745_v44 }
0x21fb   : > { %v4762_v45 = vmul.f32 %v6526_v61, %v4758_v43  ;;  %v4759_v17 = vadd.f32 0.2548296, %v4755_v15  ;;  %v4756_v49 = vmul.f32 %v6530_v7, %v4752_v39 }
0x21fc   : > { %v4753_v51 = vadd.f32 -0.28449672, %v4749_v47 }
0x21fd   : > { %v4782_v52 = vmul.f32 %v6534_v33, %v4762_v45  ;;  %v4763_v53 = vmul.f32 %v6528_v3, %v4759_v17  ;;  %v4760_v54 = vadd.f32 0.2548296, %v4756_v49  ;;  %v4706_v3 = vsel %vm4702_vm11, 1.0, %v6784_v26 }
0x21fe   : > { %v4757_v20 = vmul.f32 %v6532_v22, %v4753_v51 }
0x21ff   : > { %v4783_v35 = vmul.f32 %v6536_v55, %v4763_v53  ;;  %v4764_v50 = vmul.f32 %v6530_v7, %v4760_v54  ;;  %v4786_v59 = vsub.f32 1.0, %v4782_v52  ;;  %v4708_v7 = vsel %vm4704_vm13, 1.0, %v6784_v26 }
0x2200   : > { %v4761_v57 = vadd.f32 0.2548296, %v4757_v20 }
0x2201   : > { %v4787_v61 = vsub.f32 1.0, %v4783_v35  ;;  %v4784_v62 = vmul.f32 %v6538_v56, %v4764_v50  ;;  %v4790_v42 = vmul.f32 %v4786_v59, %v4706_v3 }
0x2202   : > { %v4765_v63 = vmul.f32 %v6532_v22, %v4761_v57  ;;  %v4696_v22 = vmul.f32 0.5, %v8415_v2 }
0x2203   : > { %v4788_v5 = vsub.f32 1.0, %v4784_v62  ;;  %v4791_v6 = vmul.f32 %v4787_v61, %v4707_v4  ;;  %v4794_v19 = vadd.f32 1.0, %v4790_v42 }
0x2204   : > { %v4785_v14 = vmul.f32 %v6540_v1, %v4765_v63 }
0x2205   : > { %v4792_v8 = vmul.f32 %v4788_v5, %v4708_v7  ;;  %v4795_v0 = vadd.f32 1.0, %v4791_v6  ;;  %v4798_v23 = vmul.f32 %v4794_v19, %v4694_v29 }
0x2206   : > { %v4789_v10 = vsub.f32 1.0, %v4785_v14 }
0x2207   : > { %v4796_v12 = vadd.f32 1.0, %v4792_v8  ;;  %v4799_v30 = vmul.f32 %v4795_v0, %v4695_v21  ;;  %v3401_v0 = vpop.xlane.xlu0 %3400 }
0x2208   : > { %v4793_v13 = vmul.f32 %v4789_v10, %v4709_v18  ;;  %v3402_v21 = vmul.f32 0.0078125, %v3401_v0 }
0x2209   : > { %v4800_v28 = vmul.f32 %v4796_v12, %v4696_v22 }
0x220a   : > { %v4797_v27 = vadd.f32 1.0, %v4793_v13 }
0x220b   : > { %v4802_v60 = vpack.c.bf16 %v4800_v28, %v4798_v23  ;;  %v3403_v23 = vsub.f32 %v8389_v16, %v3402_v21 }
0x220c   : > { %v4801_v58 = vmul.f32 %v4797_v27, %v4697_v25 }
0x220e   : > { %v4803_v31 = vpack.c.bf16 %v4801_v58, %v4799_v30 }
0x2210   : > { %4836 = vmatprep.mubr.bf16.mxu1 %v4803_v31 }
0x2211   : > { %4837 = vmatmul.mubr.bf16.vlgmr.msra.gmra.mxu1 %v4802_v60 }
0x22d1   : > { %v5632_v24 = vpop.f32.mrf.mxu1 }
0x22d3   : > { %v5633_v32 = vpop.f32.mrf.mxu1 }
0x22d4   : > { %v5634_v48 = vadd.f32 %v5633_v32, %v5632_v24 }
0x22d5   : > { %v5635_v36 = vpop.f32.mrf.mxu1 }
0x22d6   : > { %v4839_v2 = vadd.f32 %v5634_v48, %v8383_v11 }
0x22d7   : > { %v5636_v41 = vpop.f32.mrf.mxu1 }
0x22d8   : > { %v4847_v37 = vmul.f32 0.70710677, %v4839_v2  ;;  %v5637_v46 = vadd.f32 %v5636_v41, %v5635_v36  ;;  %v4845_v25 = vmul.f32 0.5, %v4839_v2  ;;  %v3404_v36 = vmul.f32 %v3403_v23, %v3403_v23 }
0x22da   : > { %v4853_v40 = vand.u32 2147483647, %v4847_v37  ;;  %v4842_v38 = vadd.f32 %v5637_v46, %v8383_v11  ;;  %vm4849_vm15 = vcmp.ge.f32.partialorder %v4847_v37, 0.0 }
0x22db   : > { %v4851_v13 = vsel %vm4849_vm15, 1.0, %v6784_v26 }
0x22dc   : > { %v4855_v43 = vmul.f32 0.3275911, %v4853_v40  ;;  %v4848_v44 = vmul.f32 0.70710677, %v4842_v38  ;;  %v4881_v17 = vsub.f32 0.0, %v4853_v40  ;;  %v4846_v31 = vmul.f32 0.5, %v4842_v38 }
0x22de   : > { %v4857_v15 = vadd.f32 1.0, %v4855_v43  ;;  %v4854_v39 = vand.u32 2147483647, %v4848_v44  ;;  %v4883_v49 = vmul.f32 %v4881_v17, %v4853_v40  ;;  %vm4850_vm0 = vcmp.ge.f32.partialorder %v4848_v44, 0.0 }
0x22df   : > { %v4852_v28 = vsel %vm4850_vm0, 1.0, %v6784_v26 }
0x22e0   : > { %6541 = vrcp.f32 %v4857_v15  ;;  %v4856_v45 = vmul.f32 0.3275911, %v4854_v39  ;;  %v4882_v33 = vsub.f32 0.0, %v4854_v39  ;;  %v4885_v52 = vmul.f32 1.442695, %v4883_v49 }
0x22e2   : > { %v4858_v47 = vadd.f32 1.0, %v4856_v45  ;;  %v4884_v53 = vmul.f32 %v4882_v33, %v4854_v39  ;;  %v5302_v45 = vld [vmem:[%s8488_s23] ss:$0 sm:$0xff] }
0x22e4   : > { %6543 = vrcp.f32 %v4858_v47  ;;  %v4887_v35 = vmul.f32 1.442695, %v4884_v53 }
0x22e5   : > { %6545 = vpow2.f32 %v4885_v52 }
0x22e6   : > { %6547 = vpow2.f32 %v4887_v35 }
0x22ed   : > { %v6542_v51 = vpop.eup %6541 }
0x22ee   : > { %v4863_v54 = vmul.f32 1.0614054, %v6542_v51 }
0x22f0   : > { %v4865_v55 = vadd.f32 -1.4531521, %v4863_v54 }
0x22f1   : > { %v6544_v20 = vpop.eup %6543 }
0x22f2   : > { %v4867_v11 = vmul.f32 %v6542_v51, %v4865_v55  ;;  %v4864_v50 = vmul.f32 1.0614054, %v6544_v20  ;;  %v6546_v14 = vpop.eup %6545 }
0x22f3   : > { %v6548_v18 = vpop.eup %6547 }
0x22f4   : > { %v4869_v56 = vadd.f32 1.4214138, %v4867_v11  ;;  %v4866_v57 = vadd.f32 -1.4531521, %v4864_v50 }
0x22f6   : > { %v4871_v59 = vmul.f32 %v6542_v51, %v4869_v56  ;;  %v4868_v61 = vmul.f32 %v6544_v20, %v4866_v57 }
0x22f8   : > { %v4873_v62 = vadd.f32 -0.28449672, %v4871_v59  ;;  %v4870_v63 = vadd.f32 1.4214138, %v4868_v61 }
0x22fa   : > { %v4875_v1 = vmul.f32 %v6542_v51, %v4873_v62  ;;  %v4872_v3 = vmul.f32 %v6544_v20, %v4870_v63 }
0x22fc   : > { %v4877_v4 = vadd.f32 0.2548296, %v4875_v1  ;;  %v4874_v5 = vadd.f32 -0.28449672, %v4872_v3 }
0x22fe   : > { %v4879_v6 = vmul.f32 %v6542_v51, %v4877_v4  ;;  %v4876_v7 = vmul.f32 %v6544_v20, %v4874_v5 }
0x2300   : > { %v4889_v42 = vmul.f32 %v6546_v14, %v4879_v6  ;;  %v4878_v8 = vadd.f32 0.2548296, %v4876_v7 }
0x2302   : > { %v4891_v10 = vsub.f32 1.0, %v4889_v42  ;;  %v4880_v12 = vmul.f32 %v6544_v20, %v4878_v8 }
0x2304   : > { %v4893_v19 = vmul.f32 %v4891_v10, %v4851_v13  ;;  %v4890_v22 = vmul.f32 %v6548_v18, %v4880_v12 }
0x2306   : > { %v4895_v27 = vadd.f32 1.0, %v4893_v19  ;;  %v4892_v29 = vsub.f32 1.0, %v4890_v22 }
0x2308   : > { %v4897_v30 = vmul.f32 %v4895_v27, %v4845_v25  ;;  %v4894_v58 = vmul.f32 %v4892_v29, %v4852_v28 }
0x230a   : > { %v4899_v60 = vadd.f32 %v4897_v30, %v8395_v34  ;;  %v4896_v24 = vadd.f32 1.0, %v4894_v58 }
0x230c   : > { %4901 = vadd.xlane.f32.xlu1 %v4899_v60  ;;  %v4898_v32 = vmul.f32 %v4896_v24, %v4846_v31 }
0x230e   : > { %v4900_v48 = vadd.f32 %v4898_v32, %v8397_v9  ;;  %v5301_v9 = vld [vmem:[%s8487_s22] ss:$0 sm:$0xff] }
0x2310   : > { %4903 = vadd.xlane.f32.xlu0 %v4900_v48  ;;  %3405 = vadd.xlane.f32.xlu1 %v3404_v36 }
0x2395   : > { %v4902_v2 = vpop.xlane.xlu1 %4901 }
0x2396   : > { %v4905_v41 = vmul.f32 0.0078125, %v4902_v2 }
0x2398   : > { %v4907_v37 = vsub.f32 %v4899_v60, %v4905_v41 }
0x2399   : > { %v3406_v46 = vpop.xlane.xlu1 %3405  ;;  %v4904_v26 = vpop.xlane.xlu0 %4903 }
0x239a   : > { %v3407_v40 = vmul.f32 0.0078125, %v3406_v46  ;;  %v4906_v43 = vmul.f32 0.0078125, %v4904_v26  ;;  %v4909_v16 = vmul.f32 %v4907_v37, %v4907_v37 }
0x239c   : > { %v3408_v38 = vadd.f32 1e-05, %v3407_v40  ;;  %v4908_v44 = vsub.f32 %v4900_v48, %v4906_v43  ;;  %4911 = vadd.xlane.f32.xlu0 %v4909_v16 }
0x239e   : > { %6549 = vrsqrt.f32 %v3408_v38  ;;  %v4910_v34 = vmul.f32 %v4908_v44, %v4908_v44 }
0x23a0   : > { %4913 = vadd.xlane.f32.xlu1 %v4910_v34 }
0x23ab   : > { %v6550_v15 = vpop.eup %6549 }
0x23ac   : > { %v3410_v39 = vmul.f32 %v6550_v15, %v3403_v23 }
0x23ae   : > { %v3417_v47 = vmul.f32 %v5301_v9, %v3410_v39 }
0x23b0   : > { %v3424_v17 = vadd.f32 %v5302_v45, %v3417_v47 }
0x23b2   : > { %3425 = vst [vmem:[%s917_s27] sm:$0xff] %v3424_v17 }
0x2425   : > { %v4912_v49 = vpop.xlane.xlu0 %4911 }
0x2426   : > { %v4915_v33 = vmul.f32 0.0078125, %v4912_v49 }
0x2428   : > { %v4917_v51 = vadd.f32 1e-05, %v4915_v33 }
0x2429   : > { %v4914_v52 = vpop.xlane.xlu1 %4913 }
0x242a   : > { %6551 = vrsqrt.f32 %v4917_v51  ;;  %v4916_v53 = vmul.f32 0.0078125, %v4914_v52 }
0x242c   : > { %v4918_v54 = vadd.f32 1e-05, %v4916_v53 }
0x242e   : > { %6553 = vrsqrt.f32 %v4918_v54 }
0x2437   : > { %v6552_v55 = vpop.eup %6551 }
0x2438   : > { %v4921_v20 = vmul.f32 %v6552_v55, %v4907_v37 }
0x243a   : > { %v4923_v35 = vmul.f32 %v5301_v9, %v4921_v20 }
0x243b   : > { %v6554_v11 = vpop.eup %6553 }
0x243c   : > { %v4925_v50 = vadd.f32 %v5302_v45, %v4923_v35  ;;  %v4922_v56 = vmul.f32 %v6554_v11, %v4908_v44 }
0x243e   : > { %4927 = vst [vmem:[%s922_s5] sm:$0xff] %v4925_v50  ;;  %v4924_v57 = vmul.f32 %v5301_v9, %v4922_v56 }
0x2440   : > { %v4926_v59 = vadd.f32 %v5302_v45, %v4924_v57 }
0x2442   : > { %4928 = vst [vmem:[%s922_s5 + $0x8] sm:$0xff] %v4926_v59 }
0x2443 PF: > { %s8521_s3 = sld [smem:[#allocation8_spill]] }
0x2449   : > { %s38_s29 = sadd.s32 1, %s8521_s3  }
0x244a   : > { %p35_p3 = scmp.ge.s32.totalorder %s38_s29, 4  }
0x244c   :  { %37 = sbr.rel (!%p35_p3) target bundleno = 15 (0xf), region = 188 }
0x2451   :  { %4964 = vsyncpa [#allocation3], 1 }
0x2452   :  { %4966 = vsyncpa [#allocation3 + $0x1], 1 }
0x2453   :  { %4967 = vsyncpa [#allocation5], 1 }

</bundles_post_ra>
